<compile_context>
chip_gen: v6e
topology: v6e:2x2x1
jax: 0.10.0
libtpu: 0.0.40
codegen_flags: <defaults>
</compile_context>

<pallas_src>
import functools
import numpy as np
import jax
import jax.numpy as jnp
from jax.experimental import pallas as pl
from jax.experimental.pallas import tpu as pltpu


def tree_lstm_kernel(embeds_ref, adj_ref, lvl_ref,
                     wcat_ref, ucat_ref, bcat_ref,
                     wff_ref, bff_ref, rmat_ref,
                     out_ref, *, num_levels, hidden):
    H = hidden
    x = embeds_ref[0]              # (Np, E)  already mask-folded
    A = adj_ref[0]                 # (Np, Np) block-diagonal packed adjacency
    lv = lvl_ref[0]                # (L, Np, 1)
    Wcat = wcat_ref[...]           # (E, 3H)  [Wi|Wo|Wu] (pre-transposed)
    Ucat = ucat_ref[...]           # (H, 4H)  [Ui|Uo|Uu|Uf]
    bcat = bcat_ref[...]           # (1, 4H)  [bi|bo|bu|bf]
    b_iou = bcat[:, :3 * H]
    b_f = bcat[:, 3 * H:]

    # g.ndata['iou'] = W_iou(dropout(embeds)) * mask  (mask folded into x; dropout = identity)
    iou_x = jnp.dot(x, Wcat, preferred_element_type=jnp.float32)      # (Np, 3H)

    Np = x.shape[0]
    h = jnp.zeros((Np, H), jnp.float32)
    c = jnp.zeros((Np, H), jnp.float32)

    # dgl.prop_nodes_topo -> static unrolled sweep over topological levels.
    # TODO(synk): for deep trees (L >~ 16) switch to lax.fori_loop with dynamic lvl_ref[l].
    for l in range(num_levels):
        hU = jnp.dot(h, Ucat, preferred_element_type=jnp.float32)     # (Np, 4H)
        fgate = jax.nn.sigmoid(hU[:, 3 * H:] + b_f)                   # (Np, H)
        # reduce_func: h_tild@U_iou == A@(h@U_iou); c_tild = A @ (sigmoid(Uf h)*c)
        iou_h = jnp.dot(A, hU[:, :3 * H], preferred_element_type=jnp.float32)   # (Np, 3H)
        c_tild = jnp.dot(A, fgate * c, preferred_element_type=jnp.float32)      # (Np, H)
        # apply_node_func
        iou = iou_x + iou_h + b_iou
        i = jax.nn.sigmoid(iou[:, :H])
        o = jax.nn.sigmoid(iou[:, H:2 * H])
        u = jnp.tanh(iou[:, 2 * H:])
        c_new = i * u + c_tild
        h_new = o * jnp.tanh(c_new)
        sel = lv[l]                                                   # (Np, 1) nodes at this level
        h = jnp.where(sel > 0.0, h_new, h)
        c = jnp.where(sel > 0.0, c_new, c)

    # graph_readout 'mean' per original graph (R rows hold 1/N over each graph's nodes)
    mean_h = jnp.dot(rmat_ref[...], h, preferred_element_type=jnp.float32)      # (Gb, H)
    feats = jnp.maximum(mean_h, 0.0)                                  # relu
    logits = jnp.dot(feats, wff_ref[...], preferred_element_type=jnp.float32) + bff_ref[...]
    dense = jnp.where(logits >= 0.0, logits, 0.01 * logits)           # leaky_relu
    mx = jnp.max(dense, axis=-1, keepdims=True)
    e = jnp.exp(dense - mx)
    out_ref[0] = e / jnp.sum(e, axis=-1, keepdims=True)               # softmax


def _pack_graphs(embeds, mask, adj, levels, graphs_per_step):
    """Pack Gb graphs per grid step: stacked node rows, block-diag adjacency,
    stacked level selectors, and a per-graph mean-readout matrix."""
    G, N, E = embeds.shape
    L = levels.shape[1]
    Gb = graphs_per_step
    assert G % Gb == 0
    S = G // Gb
    Np = Gb * N

    x = (embeds * mask).reshape(S, Np, E).astype(jnp.float32)         # mask folded in
    adj_r = adj.reshape(S, Gb, N, N).astype(jnp.float32)
    eye = jnp.eye(Gb, dtype=jnp.float32)
    A = jnp.einsum('gh,sgnm->sgnhm', eye, adj_r).reshape(S, Np, Np)   # block-diagonal
    lv = levels.reshape(S, Gb, L, N, 1).transpose(0, 2, 1, 3, 4).reshape(S, L, Np, 1)
    lv = lv.astype(jnp.float32)
    # per-graph mean readout (divide by N of the original graph, not Np)
    R = (jnp.kron(jnp.eye(Gb, dtype=jnp.float32), jnp.ones((1, N), jnp.float32)) / N)
    return x, A, lv, R, S, Np


def tree_lstm_forward(embeds, mask, adj, levels, params, graphs_per_step=8):
    G, N, E = embeds.shape
    L = levels.shape[1]
    H = params['U_f'].shape[0]
    C = params['W_ff'].shape[0]
    Gb = graphs_per_step

    x, A, lv, R, S, Np = _pack_graphs(embeds, mask, adj, levels, Gb)

    # PyTorch nn.Linear stores weight as (out, in); pre-transpose and fuse.
    Wcat = params['W_iou'].T.astype(jnp.float32)                          # (E, 3H)
    Ucat = jnp.concatenate([params['U_iou'].T, params['U_f'].T], axis=1)  # (H, 4H)
    Ucat = Ucat.astype(jnp.float32)
    bcat = jnp.concatenate([params['b_iou'], params['b_f']]).reshape(1, 4 * H).astype(jnp.float32)
    Wff = params['W_ff'].T.astype(jnp.float32)                            # (H, C)
    bff = params['b_ff'].reshape(1, C).astype(jnp.float32)

    gmap3 = lambda s: (s, 0, 0)
    gmap4 = lambda s: (s, 0, 0, 0)
    wmap = lambda s: (0, 0)

    kernel = functools.partial(tree_lstm_kernel, num_levels=L, hidden=H)
    out = pl.pallas_call(
        kernel,
        out_shape=jax.ShapeDtypeStruct((S, Gb, C), jnp.float32),
        grid=(S,),
        in_specs=[
            pl.BlockSpec((1, Np, E), gmap3),
            pl.BlockSpec((1, Np, Np), gmap3),
            pl.BlockSpec((1, L, Np, 1), gmap4),
            pl.BlockSpec((E, 3 * H), wmap),
            pl.BlockSpec((H, 4 * H), wmap),
            pl.BlockSpec((1, 4 * H), wmap),
            pl.BlockSpec((H, C), wmap),
            pl.BlockSpec((1, C), wmap),
            pl.BlockSpec((Gb, Np), wmap),
        ],
        out_specs=pl.BlockSpec((1, Gb, C), gmap3),
        compiler_params=pltpu.CompilerParams(dimension_semantics=("parallel",)),
    )(x, A, lv, Wcat, Ucat, bcat, Wff, bff, R)
    return out.reshape(G, C)


def reference_forward(embeds, mask, adj, levels, params):
    """Pure-JAX mirror of the PyTorch ChildSumTreeLSTM forward (eval mode)."""
    G, N, _ = embeds.shape
    L = levels.shape[1]
    H = params['U_f'].shape[0]
    outs = []
    for g in range(G):
        x, m, A = embeds[g], mask[g], adj[g]
        iou_base = (x @ params['W_iou'].T) * m
        h = jnp.zeros((N, H), jnp.float32)
        c = jnp.zeros((N, H), jnp.float32)
        for l in range(L):
            h_tild = A @ h
            fg = 1.0 / (1.0 + jnp.exp(-(h @ params['U_f'].T + params['b_f'])))
            c_tild = A @ (fg * c)
            iou = iou_base + h_tild @ params['U_iou'].T + params['b_iou']
            i, o, u = jnp.split(iou, 3, axis=1)
            i = 1.0 / (1.0 + jnp.exp(-i))
            o = 1.0 / (1.0 + jnp.exp(-o))
            u = jnp.tanh(u)
            c_new = i * u + c_tild
            h_new = o * jnp.tanh(c_new)
            sel = levels[g, l]
            h = sel * h_new + (1.0 - sel) * h
            c = sel * c_new + (1.0 - sel) * c
        feats = jnp.maximum(h.mean(axis=0, keepdims=True), 0.0)
        logits = feats @ params['W_ff'].T + params['b_ff']
        dense = jnp.where(logits >= 0.0, logits, 0.01 * logits)
        outs.append(jax.nn.softmax(dense, axis=-1)[0])
    return jnp.stack(outs)


def build_tree(num_nodes):
    """Binary-heap-shaped tree: parent(i) = (i-1)//2. Returns adjacency, level
    selectors (deepest level first), and leaf mask."""
    adj = np.zeros((num_nodes, num_nodes), np.float32)
    depth = np.zeros((num_nodes,), np.int32)
    for i in range(1, num_nodes):
        p = (i - 1) // 2
        adj[p, i] = 1.0
        depth[i] = depth[p] + 1
    max_d = int(depth.max())
    L = max_d + 1
    levels = np.zeros((L, num_nodes, 1), np.float32)
    for l in range(L):
        levels[l, depth == (max_d - l), 0] = 1.0
    is_leaf = (adj.sum(axis=1) == 0).astype(np.float32).reshape(num_nodes, 1)
    return adj, levels, is_leaf


if __name__ == "__main__":
    # Config-implied small shapes: word_emb_dims=32, treelstm in_dim=32, class_num=8.
    # G=16 graphs of N=16 nodes packed 8 per grid step -> 128-row block-diagonal
    # super-graph per step (fills the MXU M dimension), 2 grid steps (both v7x TCs busy).
    G, N, E, H, C = 16, 16, 32, 32, 8
    Gb = 8

    key = jax.random.PRNGKey(0)
    ks = jax.random.split(key, 8)

    # TODO(synk): node_emb_layer (NodeEmbedFactory) is config-dependent; node
    # embeddings are taken as a dense (G, N, E) input instead.
    embeds = jax.random.normal(ks[0], (G, N, E), jnp.float32) * 0.5

    adj_np, levels_np, leaf_np = build_tree(N)
    adj = jnp.asarray(np.broadcast_to(adj_np, (G, N, N)).copy())
    levels = jnp.asarray(np.broadcast_to(levels_np, (G,) + levels_np.shape).copy())
    mask = jnp.asarray(np.broadcast_to(leaf_np, (G, N, 1)).copy())

    params = {
        'W_iou': jax.random.normal(ks[1], (3 * H, E), jnp.float32) * 0.1,
        'U_iou': jax.random.normal(ks[2], (3 * H, H), jnp.float32) * 0.1,
        'b_iou': jnp.zeros((3 * H,), jnp.float32),
        'U_f':   jax.random.normal(ks[3], (H, H), jnp.float32) * 0.1,
        'b_f':   jax.random.normal(ks[4], (H,), jnp.float32) * 0.1,
        'W_ff':  jax.random.normal(ks[5], (C, H), jnp.float32) * 0.1,
        'b_ff':  jax.random.normal(ks[6], (C,), jnp.float32) * 0.1,
    }

    probs = tree_lstm_forward(embeds, mask, adj, levels, params, graphs_per_step=Gb)
    jax.block_until_ready(probs)

    ref = reference_forward(embeds, mask, adj, levels, params)
    np.testing.assert_allclose(np.asarray(probs), np.asarray(ref), rtol=1e-4, atol=1e-5)

    print("KERNEL_OK")
</pallas_src>

<mosaic_0001>
module attributes {stable_mosaic.version = 11 : i64} {
  func.func @tree_lstm_kernel(%arg0: i32, %arg1: memref<1x128x32xf32, #tpu.memory_space<vmem>>, %arg2: memref<1x128x128xf32, #tpu.memory_space<vmem>>, %arg3: memref<1x5x128x1xf32, #tpu.memory_space<vmem>>, %arg4: memref<32x96xf32, #tpu.memory_space<vmem>>, %arg5: memref<32x128xf32, #tpu.memory_space<vmem>>, %arg6: memref<1x128xf32, #tpu.memory_space<vmem>>, %arg7: memref<32x8xf32, #tpu.memory_space<vmem>>, %arg8: memref<1x8xf32, #tpu.memory_space<vmem>>, %arg9: memref<8x128xf32, #tpu.memory_space<vmem>>, %arg10: memref<1x8x8xf32, #tpu.memory_space<vmem>>) attributes {dimension_semantics = [#tpu.dimension_semantics<parallel>], iteration_bounds = array<i64: 2>, scalar_prefetch = 0 : i64, scratch_operands = 0 : i64, tpu.core_type = #tpu.core_type<tc>, window_params = [{transform_indices = @transform_0, window_bounds = array<i64: 1, 128, 32>}, {transform_indices = @transform_1, window_bounds = array<i64: 1, 128, 128>}, {transform_indices = @transform_2, window_bounds = array<i64: 1, 5, 128, 1>}, {pipeline_mode = #tpu.pipeline_mode<synchronous>, transform_indices = @transform_3, window_bounds = array<i64: 32, 96>}, {pipeline_mode = #tpu.pipeline_mode<synchronous>, transform_indices = @transform_4, window_bounds = array<i64: 32, 128>}, {pipeline_mode = #tpu.pipeline_mode<synchronous>, transform_indices = @transform_5, window_bounds = array<i64: 1, 128>}, {pipeline_mode = #tpu.pipeline_mode<synchronous>, transform_indices = @transform_6, window_bounds = array<i64: 32, 8>}, {pipeline_mode = #tpu.pipeline_mode<synchronous>, transform_indices = @transform_7, window_bounds = array<i64: 1, 8>}, {pipeline_mode = #tpu.pipeline_mode<synchronous>, transform_indices = @transform_8, window_bounds = array<i64: 8, 128>}, {transform_indices = @transform_9, window_bounds = array<i64: 1, 8, 8>}]} {
    %c0 = arith.constant 0 : index
    %c0_0 = arith.constant 0 : index
    %c0_1 = arith.constant 0 : index
    %0 = vector.load %arg1[%c0, %c0_0, %c0_1] : memref<1x128x32xf32, #tpu.memory_space<vmem>>, vector<1x128x32xf32>
    %1 = vector.shape_cast %0 : vector<1x128x32xf32> to vector<128x32xf32>
    %c0_2 = arith.constant 0 : index
    %c0_3 = arith.constant 0 : index
    %c0_4 = arith.constant 0 : index
    %2 = vector.load %arg2[%c0_2, %c0_3, %c0_4] : memref<1x128x128xf32, #tpu.memory_space<vmem>>, vector<1x128x128xf32>
    %3 = vector.shape_cast %2 : vector<1x128x128xf32> to vector<128x128xf32>
    %c0_5 = arith.constant 0 : index
    %c0_6 = arith.constant 0 : index
    %c0_7 = arith.constant 0 : index
    %c0_8 = arith.constant 0 : index
    %4 = vector.load %arg3[%c0_5, %c0_6, %c0_7, %c0_8] : memref<1x5x128x1xf32, #tpu.memory_space<vmem>>, vector<1x5x128x1xf32>
    %5 = vector.shape_cast %4 : vector<1x5x128x1xf32> to vector<5x128x1xf32>
    %c0_9 = arith.constant 0 : index
    %c0_10 = arith.constant 0 : index
    %6 = vector.load %arg4[%c0_9, %c0_10] : memref<32x96xf32, #tpu.memory_space<vmem>>, vector<32x96xf32>
    %c0_11 = arith.constant 0 : index
    %c0_12 = arith.constant 0 : index
    %7 = vector.load %arg5[%c0_11, %c0_12] : memref<32x128xf32, #tpu.memory_space<vmem>>, vector<32x128xf32>
    %c0_13 = arith.constant 0 : index
    %c0_14 = arith.constant 0 : index
    %8 = vector.load %arg6[%c0_13, %c0_14] : memref<1x128xf32, #tpu.memory_space<vmem>>, vector<1x128xf32>
    %9 = vector.extract_strided_slice %8 {offsets = [0, 0], sizes = [1, 96], strides = [1, 1]} : vector<1x128xf32> to vector<1x96xf32>
    %10 = vector.extract_strided_slice %8 {offsets = [0, 96], sizes = [1, 32], strides = [1, 1]} : vector<1x128xf32> to vector<1x32xf32>
    %cst = arith.constant dense<0.000000e+00> : vector<128x96xf32>
    %11 = tpu.matmul %1, %6, %cst {dimension_numbers = #tpu.dot_dimension_numbers<[1], [0], [0], [1], [0, 0, 1, 1], [], []>} : vector<128x32xf32>, vector<32x96xf32>, vector<128x96xf32> -> vector<128x96xf32>
    %cst_15 = arith.constant 0.000000e+00 : f32
    %12 = vector.broadcast %cst_15 : f32 to vector<128x32xf32>
    %cst_16 = arith.constant 0.000000e+00 : f32
    %13 = vector.broadcast %cst_16 : f32 to vector<128x32xf32>
    %cst_17 = arith.constant dense<0.000000e+00> : vector<128x128xf32>
    %14 = tpu.matmul %12, %7, %cst_17 {dimension_numbers = #tpu.dot_dimension_numbers<[1], [0], [0], [1], [0, 0, 1, 1], [], []>} : vector<128x32xf32>, vector<32x128xf32>, vector<128x128xf32> -> vector<128x128xf32>
    %15 = vector.extract_strided_slice %14 {offsets = [0, 96], sizes = [128, 32], strides = [1, 1]} : vector<128x128xf32> to vector<128x32xf32>
    %16 = vector.broadcast %10 : vector<1x32xf32> to vector<128x32xf32>
    %17 = arith.addf %15, %16 : vector<128x32xf32>
    %18 = arith.negf %17 : vector<128x32xf32>
    %19 = math.exp %18 : vector<128x32xf32>
    %cst_18 = arith.constant 1.000000e+00 : f32
    %20 = vector.broadcast %cst_18 : f32 to vector<128x32xf32>
    %21 = arith.addf %20, %19 : vector<128x32xf32>
    %22 = arith.divf %20, %21 : vector<128x32xf32>
    %23 = vector.extract_strided_slice %14 {offsets = [0, 0], sizes = [128, 96], strides = [1, 1]} : vector<128x128xf32> to vector<128x96xf32>
    %cst_19 = arith.constant dense<0.000000e+00> : vector<128x96xf32>
    %24 = tpu.matmul %3, %23, %cst_19 {dimension_numbers = #tpu.dot_dimension_numbers<[1], [0], [0], [1], [0, 0, 1, 1], [], []>} : vector<128x128xf32>, vector<128x96xf32>, vector<128x96xf32> -> vector<128x96xf32>
    %25 = arith.mulf %22, %13 : vector<128x32xf32>
    %cst_20 = arith.constant dense<0.000000e+00> : vector<128x32xf32>
    %26 = tpu.matmul %3, %25, %cst_20 {dimension_numbers = #tpu.dot_dimension_numbers<[1], [0], [0], [1], [0, 0, 1, 1], [], []>} : vector<128x128xf32>, vector<128x32xf32>, vector<128x32xf32> -> vector<128x32xf32>
    %27 = arith.addf %11, %24 : vector<128x96xf32>
    %28 = vector.broadcast %9 : vector<1x96xf32> to vector<128x96xf32>
    %29 = arith.addf %27, %28 : vector<128x96xf32>
    %30 = vector.extract_strided_slice %29 {offsets = [0, 0], sizes = [128, 32], strides = [1, 1]} : vector<128x96xf32> to vector<128x32xf32>
    %31 = arith.negf %30 : vector<128x32xf32>
    %32 = math.exp %31 : vector<128x32xf32>
    %cst_21 = arith.constant 1.000000e+00 : f32
    %33 = vector.broadcast %cst_21 : f32 to vector<128x32xf32>
    %34 = arith.addf %33, %32 : vector<128x32xf32>
    %35 = arith.divf %33, %34 : vector<128x32xf32>
    %36 = vector.extract_strided_slice %29 {offsets = [0, 32], sizes = [128, 32], strides = [1, 1]} : vector<128x96xf32> to vector<128x32xf32>
    %37 = arith.negf %36 : vector<128x32xf32>
    %38 = math.exp %37 : vector<128x32xf32>
    %cst_22 = arith.constant 1.000000e+00 : f32
    %39 = vector.broadcast %cst_22 : f32 to vector<128x32xf32>
    %40 = arith.addf %39, %38 : vector<128x32xf32>
    %41 = arith.divf %39, %40 : vector<128x32xf32>
    %42 = vector.extract_strided_slice %29 {offsets = [0, 64], sizes = [128, 32], strides = [1, 1]} : vector<128x96xf32> to vector<128x32xf32>
    %43 = math.tanh %42 : vector<128x32xf32>
    %44 = arith.mulf %35, %43 : vector<128x32xf32>
    %45 = arith.addf %44, %26 : vector<128x32xf32>
    %46 = math.tanh %45 : vector<128x32xf32>
    %47 = arith.mulf %41, %46 : vector<128x32xf32>
    %48 = vector.extract_strided_slice %5 {offsets = [0, 0, 0], sizes = [1, 128, 1], strides = [1, 1, 1]} : vector<5x128x1xf32> to vector<1x128x1xf32>
    %49 = vector.shape_cast %48 : vector<1x128x1xf32> to vector<128x1xf32>
    %cst_23 = arith.constant 0.000000e+00 : f32
    %50 = vector.broadcast %cst_23 : f32 to vector<128x1xf32>
    %51 = arith.cmpf ogt, %49, %50 : vector<128x1xf32>
    %52 = vector.shape_cast %51 : vector<128x1xi1> to vector<128x1xi1>
    %53 = vector.broadcast %52 : vector<128x1xi1> to vector<128x32xi1>
    %54 = arith.select %53, %47, %12 : vector<128x32xi1>, vector<128x32xf32>
    %cst_24 = arith.constant 0.000000e+00 : f32
    %55 = vector.broadcast %cst_24 : f32 to vector<128x1xf32>
    %56 = arith.cmpf ogt, %49, %55 : vector<128x1xf32>
    %57 = vector.shape_cast %56 : vector<128x1xi1> to vector<128x1xi1>
    %58 = vector.broadcast %57 : vector<128x1xi1> to vector<128x32xi1>
    %59 = arith.select %58, %45, %13 : vector<128x32xi1>, vector<128x32xf32>
    %cst_25 = arith.constant dense<0.000000e+00> : vector<128x128xf32>
    %60 = tpu.matmul %54, %7, %cst_25 {dimension_numbers = #tpu.dot_dimension_numbers<[1], [0], [0], [1], [0, 0, 1, 1], [], []>} : vector<128x32xf32>, vector<32x128xf32>, vector<128x128xf32> -> vector<128x128xf32>
    %61 = vector.extract_strided_slice %60 {offsets = [0, 96], sizes = [128, 32], strides = [1, 1]} : vector<128x128xf32> to vector<128x32xf32>
    %62 = vector.broadcast %10 : vector<1x32xf32> to vector<128x32xf32>
    %63 = arith.addf %61, %62 : vector<128x32xf32>
    %64 = arith.negf %63 : vector<128x32xf32>
    %65 = math.exp %64 : vector<128x32xf32>
    %cst_26 = arith.constant 1.000000e+00 : f32
    %66 = vector.broadcast %cst_26 : f32 to vector<128x32xf32>
    %67 = arith.addf %66, %65 : vector<128x32xf32>
    %68 = arith.divf %66, %67 : vector<128x32xf32>
    %69 = vector.extract_strided_slice %60 {offsets = [0, 0], sizes = [128, 96], strides = [1, 1]} : vector<128x128xf32> to vector<128x96xf32>
    %cst_27 = arith.constant dense<0.000000e+00> : vector<128x96xf32>
    %70 = tpu.matmul %3, %69, %cst_27 {dimension_numbers = #tpu.dot_dimension_numbers<[1], [0], [0], [1], [0, 0, 1, 1], [], []>} : vector<128x128xf32>, vector<128x96xf32>, vector<128x96xf32> -> vector<128x96xf32>
    %71 = arith.mulf %68, %59 : vector<128x32xf32>
    %cst_28 = arith.constant dense<0.000000e+00> : vector<128x32xf32>
    %72 = tpu.matmul %3, %71, %cst_28 {dimension_numbers = #tpu.dot_dimension_numbers<[1], [0], [0], [1], [0, 0, 1, 1], [], []>} : vector<128x128xf32>, vector<128x32xf32>, vector<128x32xf32> -> vector<128x32xf32>
    %73 = arith.addf %11, %70 : vector<128x96xf32>
    %74 = vector.broadcast %9 : vector<1x96xf32> to vector<128x96xf32>
    %75 = arith.addf %73, %74 : vector<128x96xf32>
    %76 = vector.extract_strided_slice %75 {offsets = [0, 0], sizes = [128, 32], strides = [1, 1]} : vector<128x96xf32> to vector<128x32xf32>
    %77 = arith.negf %76 : vector<128x32xf32>
    %78 = math.exp %77 : vector<128x32xf32>
    %cst_29 = arith.constant 1.000000e+00 : f32
    %79 = vector.broadcast %cst_29 : f32 to vector<128x32xf32>
    %80 = arith.addf %79, %78 : vector<128x32xf32>
    %81 = arith.divf %79, %80 : vector<128x32xf32>
    %82 = vector.extract_strided_slice %75 {offsets = [0, 32], sizes = [128, 32], strides = [1, 1]} : vector<128x96xf32> to vector<128x32xf32>
    %83 = arith.negf %82 : vector<128x32xf32>
    %84 = math.exp %83 : vector<128x32xf32>
    %cst_30 = arith.constant 1.000000e+00 : f32
    %85 = vector.broadcast %cst_30 : f32 to vector<128x32xf32>
    %86 = arith.addf %85, %84 : vector<128x32xf32>
    %87 = arith.divf %85, %86 : vector<128x32xf32>
    %88 = vector.extract_strided_slice %75 {offsets = [0, 64], sizes = [128, 32], strides = [1, 1]} : vector<128x96xf32> to vector<128x32xf32>
    %89 = math.tanh %88 : vector<128x32xf32>
    %90 = arith.mulf %81, %89 : vector<128x32xf32>
    %91 = arith.addf %90, %72 : vector<128x32xf32>
    %92 = math.tanh %91 : vector<128x32xf32>
    %93 = arith.mulf %87, %92 : vector<128x32xf32>
    %94 = vector.extract_strided_slice %5 {offsets = [1, 0, 0], sizes = [1, 128, 1], strides = [1, 1, 1]} : vector<5x128x1xf32> to vector<1x128x1xf32>
    %95 = vector.shape_cast %94 : vector<1x128x1xf32> to vector<128x1xf32>
    %cst_31 = arith.constant 0.000000e+00 : f32
    %96 = vector.broadcast %cst_31 : f32 to vector<128x1xf32>
    %97 = arith.cmpf ogt, %95, %96 : vector<128x1xf32>
    %98 = vector.shape_cast %97 : vector<128x1xi1> to vector<128x1xi1>
    %99 = vector.broadcast %98 : vector<128x1xi1> to vector<128x32xi1>
    %100 = arith.select %99, %93, %54 : vector<128x32xi1>, vector<128x32xf32>
    %cst_32 = arith.constant 0.000000e+00 : f32
    %101 = vector.broadcast %cst_32 : f32 to vector<128x1xf32>
    %102 = arith.cmpf ogt, %95, %101 : vector<128x1xf32>
    %103 = vector.shape_cast %102 : vector<128x1xi1> to vector<128x1xi1>
    %104 = vector.broadcast %103 : vector<128x1xi1> to vector<128x32xi1>
    %105 = arith.select %104, %91, %59 : vector<128x32xi1>, vector<128x32xf32>
    %cst_33 = arith.constant dense<0.000000e+00> : vector<128x128xf32>
    %106 = tpu.matmul %100, %7, %cst_33 {dimension_numbers = #tpu.dot_dimension_numbers<[1], [0], [0], [1], [0, 0, 1, 1], [], []>} : vector<128x32xf32>, vector<32x128xf32>, vector<128x128xf32> -> vector<128x128xf32>
    %107 = vector.extract_strided_slice %106 {offsets = [0, 96], sizes = [128, 32], strides = [1, 1]} : vector<128x128xf32> to vector<128x32xf32>
    %108 = vector.broadcast %10 : vector<1x32xf32> to vector<128x32xf32>
    %109 = arith.addf %107, %108 : vector<128x32xf32>
    %110 = arith.negf %109 : vector<128x32xf32>
    %111 = math.exp %110 : vector<128x32xf32>
    %cst_34 = arith.constant 1.000000e+00 : f32
    %112 = vector.broadcast %cst_34 : f32 to vector<128x32xf32>
    %113 = arith.addf %112, %111 : vector<128x32xf32>
    %114 = arith.divf %112, %113 : vector<128x32xf32>
    %115 = vector.extract_strided_slice %106 {offsets = [0, 0], sizes = [128, 96], strides = [1, 1]} : vector<128x128xf32> to vector<128x96xf32>
    %cst_35 = arith.constant dense<0.000000e+00> : vector<128x96xf32>
    %116 = tpu.matmul %3, %115, %cst_35 {dimension_numbers = #tpu.dot_dimension_numbers<[1], [0], [0], [1], [0, 0, 1, 1], [], []>} : vector<128x128xf32>, vector<128x96xf32>, vector<128x96xf32> -> vector<128x96xf32>
    %117 = arith.mulf %114, %105 : vector<128x32xf32>
    %cst_36 = arith.constant dense<0.000000e+00> : vector<128x32xf32>
    %118 = tpu.matmul %3, %117, %cst_36 {dimension_numbers = #tpu.dot_dimension_numbers<[1], [0], [0], [1], [0, 0, 1, 1], [], []>} : vector<128x128xf32>, vector<128x32xf32>, vector<128x32xf32> -> vector<128x32xf32>
    %119 = arith.addf %11, %116 : vector<128x96xf32>
    %120 = vector.broadcast %9 : vector<1x96xf32> to vector<128x96xf32>
    %121 = arith.addf %119, %120 : vector<128x96xf32>
    %122 = vector.extract_strided_slice %121 {offsets = [0, 0], sizes = [128, 32], strides = [1, 1]} : vector<128x96xf32> to vector<128x32xf32>
    %123 = arith.negf %122 : vector<128x32xf32>
    %124 = math.exp %123 : vector<128x32xf32>
    %cst_37 = arith.constant 1.000000e+00 : f32
    %125 = vector.broadcast %cst_37 : f32 to vector<128x32xf32>
    %126 = arith.addf %125, %124 : vector<128x32xf32>
    %127 = arith.divf %125, %126 : vector<128x32xf32>
    %128 = vector.extract_strided_slice %121 {offsets = [0, 32], sizes = [128, 32], strides = [1, 1]} : vector<128x96xf32> to vector<128x32xf32>
    %129 = arith.negf %128 : vector<128x32xf32>
    %130 = math.exp %129 : vector<128x32xf32>
    %cst_38 = arith.constant 1.000000e+00 : f32
    %131 = vector.broadcast %cst_38 : f32 to vector<128x32xf32>
    %132 = arith.addf %131, %130 : vector<128x32xf32>
    %133 = arith.divf %131, %132 : vector<128x32xf32>
    %134 = vector.extract_strided_slice %121 {offsets = [0, 64], sizes = [128, 32], strides = [1, 1]} : vector<128x96xf32> to vector<128x32xf32>
    %135 = math.tanh %134 : vector<128x32xf32>
    %136 = arith.mulf %127, %135 : vector<128x32xf32>
    %137 = arith.addf %136, %118 : vector<128x32xf32>
    %138 = math.tanh %137 : vector<128x32xf32>
    %139 = arith.mulf %133, %138 : vector<128x32xf32>
    %140 = vector.extract_strided_slice %5 {offsets = [2, 0, 0], sizes = [1, 128, 1], strides = [1, 1, 1]} : vector<5x128x1xf32> to vector<1x128x1xf32>
    %141 = vector.shape_cast %140 : vector<1x128x1xf32> to vector<128x1xf32>
    %cst_39 = arith.constant 0.000000e+00 : f32
    %142 = vector.broadcast %cst_39 : f32 to vector<128x1xf32>
    %143 = arith.cmpf ogt, %141, %142 : vector<128x1xf32>
    %144 = vector.shape_cast %143 : vector<128x1xi1> to vector<128x1xi1>
    %145 = vector.broadcast %144 : vector<128x1xi1> to vector<128x32xi1>
    %146 = arith.select %145, %139, %100 : vector<128x32xi1>, vector<128x32xf32>
    %cst_40 = arith.constant 0.000000e+00 : f32
    %147 = vector.broadcast %cst_40 : f32 to vector<128x1xf32>
    %148 = arith.cmpf ogt, %141, %147 : vector<128x1xf32>
    %149 = vector.shape_cast %148 : vector<128x1xi1> to vector<128x1xi1>
    %150 = vector.broadcast %149 : vector<128x1xi1> to vector<128x32xi1>
    %151 = arith.select %150, %137, %105 : vector<128x32xi1>, vector<128x32xf32>
    %cst_41 = arith.constant dense<0.000000e+00> : vector<128x128xf32>
    %152 = tpu.matmul %146, %7, %cst_41 {dimension_numbers = #tpu.dot_dimension_numbers<[1], [0], [0], [1], [0, 0, 1, 1], [], []>} : vector<128x32xf32>, vector<32x128xf32>, vector<128x128xf32> -> vector<128x128xf32>
    %153 = vector.extract_strided_slice %152 {offsets = [0, 96], sizes = [128, 32], strides = [1, 1]} : vector<128x128xf32> to vector<128x32xf32>
    %154 = vector.broadcast %10 : vector<1x32xf32> to vector<128x32xf32>
    %155 = arith.addf %153, %154 : vector<128x32xf32>
    %156 = arith.negf %155 : vector<128x32xf32>
    %157 = math.exp %156 : vector<128x32xf32>
    %cst_42 = arith.constant 1.000000e+00 : f32
    %158 = vector.broadcast %cst_42 : f32 to vector<128x32xf32>
    %159 = arith.addf %158, %157 : vector<128x32xf32>
    %160 = arith.divf %158, %159 : vector<128x32xf32>
    %161 = vector.extract_strided_slice %152 {offsets = [0, 0], sizes = [128, 96], strides = [1, 1]} : vector<128x128xf32> to vector<128x96xf32>
    %cst_43 = arith.constant dense<0.000000e+00> : vector<128x96xf32>
    %162 = tpu.matmul %3, %161, %cst_43 {dimension_numbers = #tpu.dot_dimension_numbers<[1], [0], [0], [1], [0, 0, 1, 1], [], []>} : vector<128x128xf32>, vector<128x96xf32>, vector<128x96xf32> -> vector<128x96xf32>
    %163 = arith.mulf %160, %151 : vector<128x32xf32>
    %cst_44 = arith.constant dense<0.000000e+00> : vector<128x32xf32>
    %164 = tpu.matmul %3, %163, %cst_44 {dimension_numbers = #tpu.dot_dimension_numbers<[1], [0], [0], [1], [0, 0, 1, 1], [], []>} : vector<128x128xf32>, vector<128x32xf32>, vector<128x32xf32> -> vector<128x32xf32>
    %165 = arith.addf %11, %162 : vector<128x96xf32>
    %166 = vector.broadcast %9 : vector<1x96xf32> to vector<128x96xf32>
    %167 = arith.addf %165, %166 : vector<128x96xf32>
    %168 = vector.extract_strided_slice %167 {offsets = [0, 0], sizes = [128, 32], strides = [1, 1]} : vector<128x96xf32> to vector<128x32xf32>
    %169 = arith.negf %168 : vector<128x32xf32>
    %170 = math.exp %169 : vector<128x32xf32>
    %cst_45 = arith.constant 1.000000e+00 : f32
    %171 = vector.broadcast %cst_45 : f32 to vector<128x32xf32>
    %172 = arith.addf %171, %170 : vector<128x32xf32>
    %173 = arith.divf %171, %172 : vector<128x32xf32>
    %174 = vector.extract_strided_slice %167 {offsets = [0, 32], sizes = [128, 32], strides = [1, 1]} : vector<128x96xf32> to vector<128x32xf32>
    %175 = arith.negf %174 : vector<128x32xf32>
    %176 = math.exp %175 : vector<128x32xf32>
    %cst_46 = arith.constant 1.000000e+00 : f32
    %177 = vector.broadcast %cst_46 : f32 to vector<128x32xf32>
    %178 = arith.addf %177, %176 : vector<128x32xf32>
    %179 = arith.divf %177, %178 : vector<128x32xf32>
    %180 = vector.extract_strided_slice %167 {offsets = [0, 64], sizes = [128, 32], strides = [1, 1]} : vector<128x96xf32> to vector<128x32xf32>
    %181 = math.tanh %180 : vector<128x32xf32>
    %182 = arith.mulf %173, %181 : vector<128x32xf32>
    %183 = arith.addf %182, %164 : vector<128x32xf32>
    %184 = math.tanh %183 : vector<128x32xf32>
    %185 = arith.mulf %179, %184 : vector<128x32xf32>
    %186 = vector.extract_strided_slice %5 {offsets = [3, 0, 0], sizes = [1, 128, 1], strides = [1, 1, 1]} : vector<5x128x1xf32> to vector<1x128x1xf32>
    %187 = vector.shape_cast %186 : vector<1x128x1xf32> to vector<128x1xf32>
    %cst_47 = arith.constant 0.000000e+00 : f32
    %188 = vector.broadcast %cst_47 : f32 to vector<128x1xf32>
    %189 = arith.cmpf ogt, %187, %188 : vector<128x1xf32>
    %190 = vector.shape_cast %189 : vector<128x1xi1> to vector<128x1xi1>
    %191 = vector.broadcast %190 : vector<128x1xi1> to vector<128x32xi1>
    %192 = arith.select %191, %185, %146 : vector<128x32xi1>, vector<128x32xf32>
    %cst_48 = arith.constant 0.000000e+00 : f32
    %193 = vector.broadcast %cst_48 : f32 to vector<128x1xf32>
    %194 = arith.cmpf ogt, %187, %193 : vector<128x1xf32>
    %195 = vector.shape_cast %194 : vector<128x1xi1> to vector<128x1xi1>
    %196 = vector.broadcast %195 : vector<128x1xi1> to vector<128x32xi1>
    %197 = arith.select %196, %183, %151 : vector<128x32xi1>, vector<128x32xf32>
    %cst_49 = arith.constant dense<0.000000e+00> : vector<128x128xf32>
    %198 = tpu.matmul %192, %7, %cst_49 {dimension_numbers = #tpu.dot_dimension_numbers<[1], [0], [0], [1], [0, 0, 1, 1], [], []>} : vector<128x32xf32>, vector<32x128xf32>, vector<128x128xf32> -> vector<128x128xf32>
    %199 = vector.extract_strided_slice %198 {offsets = [0, 96], sizes = [128, 32], strides = [1, 1]} : vector<128x128xf32> to vector<128x32xf32>
    %200 = vector.broadcast %10 : vector<1x32xf32> to vector<128x32xf32>
    %201 = arith.addf %199, %200 : vector<128x32xf32>
    %202 = arith.negf %201 : vector<128x32xf32>
    %203 = math.exp %202 : vector<128x32xf32>
    %cst_50 = arith.constant 1.000000e+00 : f32
    %204 = vector.broadcast %cst_50 : f32 to vector<128x32xf32>
    %205 = arith.addf %204, %203 : vector<128x32xf32>
    %206 = arith.divf %204, %205 : vector<128x32xf32>
    %207 = vector.extract_strided_slice %198 {offsets = [0, 0], sizes = [128, 96], strides = [1, 1]} : vector<128x128xf32> to vector<128x96xf32>
    %cst_51 = arith.constant dense<0.000000e+00> : vector<128x96xf32>
    %208 = tpu.matmul %3, %207, %cst_51 {dimension_numbers = #tpu.dot_dimension_numbers<[1], [0], [0], [1], [0, 0, 1, 1], [], []>} : vector<128x128xf32>, vector<128x96xf32>, vector<128x96xf32> -> vector<128x96xf32>
    %209 = arith.mulf %206, %197 : vector<128x32xf32>
    %cst_52 = arith.constant dense<0.000000e+00> : vector<128x32xf32>
    %210 = tpu.matmul %3, %209, %cst_52 {dimension_numbers = #tpu.dot_dimension_numbers<[1], [0], [0], [1], [0, 0, 1, 1], [], []>} : vector<128x128xf32>, vector<128x32xf32>, vector<128x32xf32> -> vector<128x32xf32>
    %211 = arith.addf %11, %208 : vector<128x96xf32>
    %212 = vector.broadcast %9 : vector<1x96xf32> to vector<128x96xf32>
    %213 = arith.addf %211, %212 : vector<128x96xf32>
    %214 = vector.extract_strided_slice %213 {offsets = [0, 0], sizes = [128, 32], strides = [1, 1]} : vector<128x96xf32> to vector<128x32xf32>
    %215 = arith.negf %214 : vector<128x32xf32>
    %216 = math.exp %215 : vector<128x32xf32>
    %cst_53 = arith.constant 1.000000e+00 : f32
    %217 = vector.broadcast %cst_53 : f32 to vector<128x32xf32>
    %218 = arith.addf %217, %216 : vector<128x32xf32>
    %219 = arith.divf %217, %218 : vector<128x32xf32>
    %220 = vector.extract_strided_slice %213 {offsets = [0, 32], sizes = [128, 32], strides = [1, 1]} : vector<128x96xf32> to vector<128x32xf32>
    %221 = arith.negf %220 : vector<128x32xf32>
    %222 = math.exp %221 : vector<128x32xf32>
    %cst_54 = arith.constant 1.000000e+00 : f32
    %223 = vector.broadcast %cst_54 : f32 to vector<128x32xf32>
    %224 = arith.addf %223, %222 : vector<128x32xf32>
    %225 = arith.divf %223, %224 : vector<128x32xf32>
    %226 = vector.extract_strided_slice %213 {offsets = [0, 64], sizes = [128, 32], strides = [1, 1]} : vector<128x96xf32> to vector<128x32xf32>
    %227 = math.tanh %226 : vector<128x32xf32>
    %228 = arith.mulf %219, %227 : vector<128x32xf32>
    %229 = arith.addf %228, %210 : vector<128x32xf32>
    %230 = math.tanh %229 : vector<128x32xf32>
    %231 = arith.mulf %225, %230 : vector<128x32xf32>
    %232 = vector.extract_strided_slice %5 {offsets = [4, 0, 0], sizes = [1, 128, 1], strides = [1, 1, 1]} : vector<5x128x1xf32> to vector<1x128x1xf32>
    %233 = vector.shape_cast %232 : vector<1x128x1xf32> to vector<128x1xf32>
    %cst_55 = arith.constant 0.000000e+00 : f32
    %234 = vector.broadcast %cst_55 : f32 to vector<128x1xf32>
    %235 = arith.cmpf ogt, %233, %234 : vector<128x1xf32>
    %236 = vector.shape_cast %235 : vector<128x1xi1> to vector<128x1xi1>
    %237 = vector.broadcast %236 : vector<128x1xi1> to vector<128x32xi1>
    %238 = arith.select %237, %231, %192 : vector<128x32xi1>, vector<128x32xf32>
    %c0_56 = arith.constant 0 : index
    %c0_57 = arith.constant 0 : index
    %239 = vector.load %arg9[%c0_56, %c0_57] : memref<8x128xf32, #tpu.memory_space<vmem>>, vector<8x128xf32>
    %cst_58 = arith.constant dense<0.000000e+00> : vector<8x32xf32>
    %240 = tpu.matmul %239, %238, %cst_58 {dimension_numbers = #tpu.dot_dimension_numbers<[1], [0], [0], [1], [0, 0, 1, 1], [], []>} : vector<8x128xf32>, vector<128x32xf32>, vector<8x32xf32> -> vector<8x32xf32>
    %cst_59 = arith.constant 0.000000e+00 : f32
    %241 = vector.broadcast %cst_59 : f32 to vector<8x32xf32>
    %242 = arith.maximumf %240, %241 : vector<8x32xf32>
    %c0_60 = arith.constant 0 : index
    %c0_61 = arith.constant 0 : index
    %243 = vector.load %arg7[%c0_60, %c0_61] : memref<32x8xf32, #tpu.memory_space<vmem>>, vector<32x8xf32>
    %cst_62 = arith.constant dense<0.000000e+00> : vector<8x8xf32>
    %244 = tpu.matmul %242, %243, %cst_62 {dimension_numbers = #tpu.dot_dimension_numbers<[1], [0], [0], [1], [0, 0, 1, 1], [], []>} : vector<8x32xf32>, vector<32x8xf32>, vector<8x8xf32> -> vector<8x8xf32>
    %c0_63 = arith.constant 0 : index
    %c0_64 = arith.constant 0 : index
    %245 = vector.load %arg8[%c0_63, %c0_64] : memref<1x8xf32, #tpu.memory_space<vmem>>, vector<1x8xf32>
    %246 = vector.broadcast %245 : vector<1x8xf32> to vector<8x8xf32>
    %247 = arith.addf %244, %246 : vector<8x8xf32>
    %cst_65 = arith.constant 0.000000e+00 : f32
    %248 = vector.broadcast %cst_65 : f32 to vector<8x8xf32>
    %249 = arith.cmpf oge, %247, %248 : vector<8x8xf32>
    %cst_66 = arith.constant 0.00999999977 : f32
    %250 = vector.broadcast %cst_66 : f32 to vector<8x8xf32>
    %251 = arith.mulf %250, %247 : vector<8x8xf32>
    %252 = arith.select %249, %247, %251 : vector<8x8xi1>, vector<8x8xf32>
    %cst_67 = arith.constant dense<0xFF800000> : vector<8xf32>
    %253 = vector.multi_reduction <maximumf>, %252, %cst_67 [1] : vector<8x8xf32> to vector<8xf32>
    %254 = vector.shape_cast %253 : vector<8xf32> to vector<8x1xf32>
    %255 = vector.broadcast %254 : vector<8x1xf32> to vector<8x8xf32>
    %256 = arith.subf %252, %255 : vector<8x8xf32>
    %257 = math.exp %256 : vector<8x8xf32>
    %cst_68 = arith.constant dense<0.000000e+00> : vector<8xf32>
    %258 = vector.multi_reduction <add>, %257, %cst_68 [1] : vector<8x8xf32> to vector<8xf32>
    %259 = vector.shape_cast %258 : vector<8xf32> to vector<8x1xf32>
    %260 = vector.broadcast %259 : vector<8x1xf32> to vector<8x8xf32>
    %261 = arith.divf %257, %260 : vector<8x8xf32>
    %c0_69 = arith.constant 0 : index
    %c0_70 = arith.constant 0 : index
    %c0_71 = arith.constant 0 : index
    %262 = vector.load %arg10[%c0_69, %c0_70, %c0_71] : memref<1x8x8xf32, #tpu.memory_space<vmem>>, vector<1x8x8xf32>
    %263 = vector.shape_cast %262 : vector<1x8x8xf32> to vector<8x8xf32>
    %264 = vector.shape_cast %261 : vector<8x8xf32> to vector<1x8x8xf32>
    tpu.vector_store %arg10[%c0_69, %c0_70, %c0_71], %264 {strides = array<i32>} : memref<1x8x8xf32, #tpu.memory_space<vmem>>, vector<1x8x8xf32>,
    return
  }
  func.func @transform_0(%arg0: i32) -> (i32, i32, i32) {
    %c0_i32 = arith.constant 0 : i32
    %c0_i32_0 = arith.constant 0 : i32
    %c0_i32_1 = arith.constant 0 : i32
    return %arg0, %c0_i32, %c0_i32_0 : i32, i32, i32
  }
  func.func @transform_1(%arg0: i32) -> (i32, i32, i32) {
    %c0_i32 = arith.constant 0 : i32
    %c0_i32_0 = arith.constant 0 : i32
    %c0_i32_1 = arith.constant 0 : i32
    return %arg0, %c0_i32, %c0_i32_0 : i32, i32, i32
  }
  func.func @transform_2(%arg0: i32) -> (i32, i32, i32, i32) {
    %c0_i32 = arith.constant 0 : i32
    %c0_i32_0 = arith.constant 0 : i32
    %c0_i32_1 = arith.constant 0 : i32
    %c0_i32_2 = arith.constant 0 : i32
    return %arg0, %c0_i32, %c0_i32_0, %c0_i32_1 : i32, i32, i32, i32
  }
  func.func @transform_3(%arg0: i32) -> (i32, i32) {
    %c0_i32 = arith.constant 0 : i32
    %c0_i32_0 = arith.constant 0 : i32
    %c0_i32_1 = arith.constant 0 : i32
    return %c0_i32, %c0_i32_0 : i32, i32
  }
  func.func @transform_4(%arg0: i32) -> (i32, i32) {
    %c0_i32 = arith.constant 0 : i32
    %c0_i32_0 = arith.constant 0 : i32
    %c0_i32_1 = arith.constant 0 : i32
    return %c0_i32, %c0_i32_0 : i32, i32
  }
  func.func @transform_5(%arg0: i32) -> (i32, i32) {
    %c0_i32 = arith.constant 0 : i32
    %c0_i32_0 = arith.constant 0 : i32
    %c0_i32_1 = arith.constant 0 : i32
    return %c0_i32, %c0_i32_0 : i32, i32
  }
  func.func @transform_6(%arg0: i32) -> (i32, i32) {
    %c0_i32 = arith.constant 0 : i32
    %c0_i32_0 = arith.constant 0 : i32
    %c0_i32_1 = arith.constant 0 : i32
    return %c0_i32, %c0_i32_0 : i32, i32
  }
  func.func @transform_7(%arg0: i32) -> (i32, i32) {
    %c0_i32 = arith.constant 0 : i32
    %c0_i32_0 = arith.constant 0 : i32
    %c0_i32_1 = arith.constant 0 : i32
    return %c0_i32, %c0_i32_0 : i32, i32
  }
  func.func @transform_8(%arg0: i32) -> (i32, i32) {
    %c0_i32 = arith.constant 0 : i32
    %c0_i32_0 = arith.constant 0 : i32
    %c0_i32_1 = arith.constant 0 : i32
    return %c0_i32, %c0_i32_0 : i32, i32
  }
  func.func @transform_9(%arg0: i32) -> (i32, i32, i32) {
    %c0_i32 = arith.constant 0 : i32
    %c0_i32_0 = arith.constant 0 : i32
    %c0_i32_1 = arith.constant 0 : i32
    return %arg0, %c0_i32, %c0_i32_0 : i32, i32, i32
  }
}

</mosaic_0001>

<bundles_post_ra>
// kernel: tpu_custom_call.1
= control target key start
LH: loop header
LB: loop body
LE: loop exit
PB: predicated region body
PF: predicated region fallthrough
CT: control target
= control target key end

     0   :  { %14 = vsyncpa [#allocation3], 0  ;;  %s13353_s0 = inlined_call_operand.vmem [shape: f32[2,128,32], index: 0, kind: input, shape index: {}]   ;;  %s13354_s1 = inlined_call_operand.vmem [shape: f32[2,128,128], index: 1, kind: input, shape index: {}]   ;;  %s13355_s2 = inlined_call_operand.vmem [shape: f32[2,5,128,1], index: 2, kind: input, shape index: {}]   ;;  %s13356_s3 = inlined_call_operand.vmem [shape: f32[32,96], index: 3, kind: input, shape index: {}]   ;;  %s13357_s4 = inlined_call_operand.vmem [shape: f32[32,128], index: 4, kind: input, shape index: {}]   ;;  %s13358_s5 = inlined_call_operand.vmem [shape: f32[1,128], index: 5, kind: input, shape index: {}]   ;;  %s13359_s6 = inlined_call_operand.vmem [shape: f32[32,8], index: 6, kind: input, shape index: {}]   ;;  %s13360_s7 = inlined_call_operand.vmem [shape: f32[1,8], index: 7, kind: input, shape index: {}]   ;;  %s13361_s8 = inlined_call_operand.vmem [shape: f32[8,128], index: 8, kind: input, shape index: {}]   ;;  %s13362_s9 = inlined_call_operand.hbm [shape: f32[2,8,8], index: 9, kind: output, shape index: {}]  }
   0x1   :  { %16 = vsyncpa [#allocation3 + $0x1], 0  ;;  %s9773_s30 = smov 0   ;;  %s9775_s10 = smov 0  }
   0x2   :  { %s9777_s11 = smov 0   ;;  %s9779_s12 = smov 0  }
   0x3 LB: > { %s9794_s13 = sadd.s32 4294967295, %s9714_s12   ;;  %s7043_s14 = sadd.s32 4294967294, %s9714_s12   ;;  %s9714_s12 = sphi %s9779_s12, %s13610_s12   ;;  %s9710_s11 = sphi %s9777_s11, %s13609_s11   ;;  %s9706_s10 = sphi %s9775_s10, %s13608_s10   ;;  %s9702_s30 = sphi %s9773_s30, %s13607_s30  }
   0x4   : > { %s9798_s15 = sadd.s32 1, %s9714_s12   ;;  %s233_s16 = sadd.s32 1, %s9710_s11 }
   0x5   : > { %s230_s17 = ssub.s32 %s9714_s12, %s9798_s15  ;;  %p243_p0 = scmp.ne.s32.totalorder %s9710_s11, %s9706_s10 }
   0x6   : > { %p231_p1 = scmp.eq.s32.totalorder %s230_s17, 0  ;;  %p244_p2 = scmp.eq.s32.totalorder %s9794_s13, 1 }
   0x7   : > { %p249_p3 = scmp.ne.s32.totalorder %s9706_s10, %s9702_s30  ;;  %p250_p4 = scmp.eq.s32.totalorder %s7043_s14, 1 }
   0x8   : > { %s9809_s18 = scalar_select %p231_p1, %s9710_s11, %s233_s16  }
   0x9   : > { %p9811_p5 = por %p244_p2, %p243_p0  ;;  %p9815_p6 = por %p250_p4, %p249_p3 }
   0xa   : > { %p7046_p7 = scmp.ge.s32.totalorder %s9714_s12, 1  ;;  %p310_p8 = scmp.lt.s32.totalorder %s9714_s12, 3 }
   0xc   : > { %p311_p9 = pnand %p7046_p7, %p310_p8 }
   0xe   : > { %314 = sbr.rel (%p311_p9) target bundleno = 5177 (0x1439), region = 56 }
  0x13   : > { %v9824_v0 = vld [vmem:[%s13357_s4 + $0x18] sm:$0xff]  ;;  %v9829_v1 = vld [vmem:[%s13357_s4 + $0x10] sm:$0xff]  ;;  %v13363_v2 = vmov 0.0   ;;  %v9837_v3 = vld [vmem:[%s13357_s4 + $0x8] sm:$0xff]  ;;  %p356_p10 = scmp.lt.s32.totalorder %s9794_s13, 1  ;;  %vm492_vm0 = vcmask 261120  }
  0x14   : > { %7796 = vmatprep.subr.mxu1 %v9824_v0  ;;  %7804 = vmatprep.mubr.f32.mxu1 %v13363_v2  ;;  %v9844_v4 = vld [vmem:[%s13357_s4] sm:$0xff]  ;;  %v486_v5 = vld [vmem:[%s13356_s3 + $0x18] sm:$0xff]  ;;  %v485_v6 = vld [vmem:[%s13356_s3 + $0x10] sm:$0xff]  ;;  %s9719_s25 = smov 64   ;;  %s9722_s22 = smov [#allocation2]  }
  0x15   : > { %7797 = vmatpush3.msra.mxu1 %v9824_v0  ;;  %7764 = vmatprep.subr.mxu0 %v486_v5  ;;  %s9873_s21 = scalar_select %p356_p10, %s9794_s13, 1  ;;  %v484_v7 = vld [vmem:[%s13356_s3 + $0x8] sm:$0xff]  ;;  %v483_v8 = vld [vmem:[%s13356_s3] sm:$0xff] }
  0x16   : > { %7798 = vmatprep.subr.mxu1 %v9829_v1  ;;  %7765 = vmatpush3.msra.mxu0 %v486_v5  ;;  %v9954_v37 = vld [vmem:[%s13358_s5] ss:$0 sm:$0xff]  ;;  %s9658_s23 = sshll.u32 %s9722_s22, 4  ;;  %s9659_s23 = int_to_ptr.vmem [resolvable:$false] %s9658_s23 }
  0x17   : > { %7799 = vmatpush3.msra.mxu1 %v9829_v1  ;;  %7766 = vmatprep.subr.mxu0 %v485_v6  ;;  %s7300_s24 = sshll.u32 %s9873_s21, 7  ;;  %s8562_s26 = smul.u32 640, %s9873_s21 }
  0x18   : > { %7800 = vmatprep.subr.mxu1 %v9837_v3  ;;  %7767 = vmatpush3.msra.mxu0 %v485_v6  ;;  %s9887_s29 = scalar_lea.vmem %s13353_s0, %s7300_s24  ;;  %s9923_s17 = scalar_lea.vmem %s13354_s1, %s7300_s24 }
  0x19   : > { %7801 = vmatpush3.msra.mxu1 %v9837_v3  ;;  %7768 = vmatprep.subr.mxu0 %v484_v7  ;;  %v371_v9 = vld [vmem:[%s9887_s29] sm:$0xff]  ;;  %v372_v10 = vld [vmem:[%s9887_s29 + $0x8] sm:$0xff]  ;;  %v373_v11 = vld [vmem:[%s9887_s29 + $0x10] sm:$0xff]  ;;  %s9717_s24 = smov 32   ;;  %s9720_s21 = smov 96  }
  0x1a   : > { %7802 = vmatprep.subr.mxu1 %v9844_v4  ;;  %7769 = vmatpush3.msra.mxu0 %v484_v7  ;;  %v374_v12 = vld [vmem:[%s9887_s29 + $0x18] sm:$0xff]  ;;  %v375_v13 = vld [vmem:[%s9887_s29 + $0x20] sm:$0xff]  ;;  %v376_v14 = vld [vmem:[%s9887_s29 + $0x28] sm:$0xff] }
  0x1b   : > { %7803 = vmatpush3.msra.mxu1 %v9844_v4  ;;  %7770 = vmatprep.subr.mxu0 %v483_v8  ;;  %v377_v15 = vld [vmem:[%s9887_s29 + $0x30] sm:$0xff]  ;;  %v378_v16 = vld [vmem:[%s9887_s29 + $0x38] sm:$0xff]  ;;  %v379_v17 = vld [vmem:[%s9887_s29 + $0x40] sm:$0xff] }
  0x1c   : > { %7805 = vmatmul.mubr.f32.vlgmr.msra.gmra.mxu1 %v13363_v2  ;;  %7771 = vmatpush3.msra.mxu0 %v483_v8  ;;  %v380_v18 = vld [vmem:[%s9887_s29 + $0x48] sm:$0xff]  ;;  %v381_v19 = vld [vmem:[%s9887_s29 + $0x50] sm:$0xff]  ;;  %v382_v20 = vld [vmem:[%s9887_s29 + $0x58] sm:$0xff] }
  0x1d   : > { %7807 = vmatprep.mubr.f32.mxu1 %v13363_v2  ;;  %7772 = vmatprep.mubr.msk.f32.mxu0 %vm492_vm0, %v371_v9  ;;  %v383_v21 = vld [vmem:[%s9887_s29 + $0x60] sm:$0xff]  ;;  %v384_v22 = vld [vmem:[%s9887_s29 + $0x68] sm:$0xff]  ;;  %v385_v23 = vld [vmem:[%s9887_s29 + $0x70] sm:$0xff] }
  0x1e   : > { %7773 = vmatmul.mubr.msk.f32.vlgmr.msra.gmra.mxu0 %vm492_vm0, %v372_v10  ;;  %v386_v24 = vld [vmem:[%s9887_s29 + $0x78] sm:$0xff]  ;;  %v9929_v25 = vld [vmem:[%s9923_s17] sm:$0xff]  ;;  %s10229_s29 = scalar_lea.vmem %s13355_s2, %s8562_s26 }
  0x1f   : > { %7775 = vmatprep.mubr.msk.f32.mxu0 %vm492_vm0, %v373_v11 }
  0x20   : > { %7808 = vmatmul.mubr.f32.gmra.mxu1 %v13363_v2 }
  0x21   : > { %7810 = vmatprep.mubr.f32.mxu1 %v13363_v2 }
  0x22   : > { %7776 = vmatmul.mubr.msk.f32.gmra.mxu0 %vm492_vm0, %v374_v12 }
  0x23   : > { %7778 = vmatprep.mubr.msk.f32.mxu0 %vm492_vm0, %v375_v13 }
  0x24   : > { %7811 = vmatmul.mubr.f32.gmra.mxu1 %v13363_v2 }
  0x25   : > { %7813 = vmatprep.mubr.f32.mxu1 %v13363_v2 }
  0x26   : > { %7779 = vmatmul.mubr.msk.f32.gmra.mxu0 %vm492_vm0, %v376_v14 }
  0x27   : > { %7781 = vmatprep.mubr.msk.f32.mxu0 %vm492_vm0, %v377_v15 }
  0x28   : > { %7814 = vmatmul.mubr.f32.gmra.mxu1 %v13363_v2 }
  0x29   : > { %7816 = vmatprep.mubr.f32.mxu1 %v13363_v2 }
  0x2a   : > { %7782 = vmatmul.mubr.msk.f32.gmra.mxu0 %vm492_vm0, %v378_v16 }
  0x2b   : > { %7784 = vmatprep.mubr.msk.f32.mxu0 %vm492_vm0, %v379_v17 }
  0x2c   : > { %7817 = vmatmul.mubr.f32.gmra.mxu1 %v13363_v2 }
  0x2d   : > { %7819 = vmatprep.mubr.f32.mxu1 %v13363_v2 }
  0x2e   : > { %7785 = vmatmul.mubr.msk.f32.gmra.mxu0 %vm492_vm0, %v380_v18 }
  0x2f   : > { %7787 = vmatprep.mubr.msk.f32.mxu0 %vm492_vm0, %v381_v19 }
  0x30   : > { %7820 = vmatmul.mubr.f32.gmra.mxu1 %v13363_v2 }
  0x31   : > { %7822 = vmatprep.mubr.f32.mxu1 %v13363_v2 }
  0x32   : > { %7788 = vmatmul.mubr.msk.f32.gmra.mxu0 %vm492_vm0, %v382_v20 }
  0x33   : > { %7790 = vmatprep.mubr.msk.f32.mxu0 %vm492_vm0, %v383_v21 }
  0x34   : > { %7823 = vmatmul.mubr.f32.gmra.mxu1 %v13363_v2 }
  0x35   : > { %7825 = vmatprep.mubr.f32.mxu1 %v13363_v2 }
  0x36   : > { %7791 = vmatmul.mubr.msk.f32.gmra.mxu0 %vm492_vm0, %v384_v22 }
  0x37   : > { %7793 = vmatprep.mubr.msk.f32.mxu0 %vm492_vm0, %v385_v23 }
  0x38   : > { %7826 = vmatmul.mubr.f32.gmra.mxu1 %v13363_v2 }
  0x39   : > { %7916 = vmatprep.mubr.f32.mxu1 %v9929_v25 }
  0x3a   : > { %7794 = vmatmul.mubr.msk.f32.gmra.mxu0 %vm492_vm0, %v386_v24 }
  0x3b   : > { %7860 = vmatprep.mubr.f32.mxu0 %v9929_v25 }
  0xdc   : > { %v9933_v26 = vpop.f32.mrf.mxu1 }
  0xdd   : > { %v841_v19 = vadd.f32 %v9933_v26, %v9954_v37 }
  0xde   : > { %v9935_v27 = vpop.f32.mrf.mxu1 }
  0xdf   : > { %v840_v58 = vadd.f32 %v9954_v37, %v9935_v27 }
  0xe0   : > { %v9937_v28 = vpop.f32.mrf.mxu1 }
  0xe1   : > { %v7070_v6 = vmul.f32 -1.442695, %v840_v58  ;;  %v843_v10 = vadd.f32 %v9937_v28, %v9954_v37 }
  0xe2   : > { %v9939_v29 = vpop.f32.mrf.mxu1 }
  0xe3   : > { %v842_v5 = vadd.f32 %v9954_v37, %v9939_v29  ;;  %v7073_v17 = vmul.f32 -1.442695, %v843_v10 }
  0xe4   : > { %v9941_v30 = vpop.f32.mrf.mxu1 }
  0xe5   : > { %v845_v7 = vadd.f32 %v9941_v30, %v9954_v37  ;;  %v7072_v11 = vmul.f32 -1.442695, %v842_v5 }
  0xe6   : > { %v9943_v31 = vpop.f32.mrf.mxu1 }
  0xe7   : > { %v844_v60 = vadd.f32 %v9954_v37, %v9943_v31  ;;  %v7075_v13 = vmul.f32 -1.442695, %v845_v7 }
  0xe8   : > { %v9945_v32 = vpop.f32.mrf.mxu1 }
  0xe9   : > { %v847_v62 = vadd.f32 %v9945_v32, %v9954_v37  ;;  %v7074_v8 = vmul.f32 -1.442695, %v844_v60 }
  0xea   : > { %v9947_v33 = vpop.f32.mrf.mxu1 }
  0xeb   : > { %v846_v52 = vadd.f32 %v9954_v37, %v9947_v33  ;;  %v7077_v9 = vmul.f32 -1.442695, %v847_v62  ;;  %v10022_v62 = vld [vmem:[%s9923_s17 + $0x28] sm:$0xff] }
  0xec   : > { %v7818_v34 = vpop.f32.mrf.mxu1 }
  0xed   : > { %v849_v55 = vadd.f32 %v7818_v34, %v9954_v37  ;;  %v7076_v61 = vmul.f32 -1.442695, %v846_v52 }
  0xee   : > { %v9949_v35 = vpop.f32.mrf.mxu1 }
  0xef   : > { %v848_v40 = vadd.f32 %v9954_v37, %v9949_v35  ;;  %v7079_v63 = vmul.f32 -1.442695, %v849_v55  ;;  %v10010_v55 = vld [vmem:[%s9923_s17 + $0x18] sm:$0xff] }
  0xf0   : > { %v7821_v36 = vpop.f32.mrf.mxu1 }
  0xf1   : > { %v851_v43 = vadd.f32 %v7821_v36, %v9954_v37  ;;  %v7078_v48 = vmul.f32 -1.442695, %v848_v40 }
  0xf2   : > { %v805_v38 = vpop.f32.mrf.mxu1 }
  0xf3   : > { %v850_v39 = vadd.f32 %v9954_v37, %v805_v38  ;;  %v7081_v53 = vmul.f32 -1.442695, %v851_v43 }
  0xf4   : > { %v7824_v41 = vpop.f32.mrf.mxu1 }
  0xf5   : > { %v853_v42 = vadd.f32 %v7824_v41, %v9954_v37  ;;  %v7080_v44 = vmul.f32 -1.442695, %v850_v39 }
  0xf6   : > { %v815_v45 = vpop.f32.mrf.mxu1 }
  0xf7   : > { %v7083_v46 = vmul.f32 -1.442695, %v853_v42  ;;  %v852_v47 = vadd.f32 %v9954_v37, %v815_v45 }
  0xf8   : > { %v7827_v49 = vpop.f32.mrf.mxu1 }
  0xf9   : > { %8610 = vpow2.f32 %v7083_v46  ;;  %v7082_v50 = vmul.f32 -1.442695, %v852_v47  ;;  %v855_v51 = vadd.f32 %v7827_v49, %v9954_v37  ;;  %7828 = vmatprep.subr.mxu0 %v7827_v49 }
  0xfa   : > { %8612 = vpow2.f32 %v7080_v44  ;;  %v825_v54 = vpop.f32.mrf.mxu1  ;;  %7829 = vmatpush3.msra.mxu0 %v7827_v49 }
  0xfb   : > { %8614 = vpow2.f32 %v7082_v50  ;;  %v7085_v56 = vmul.f32 -1.442695, %v855_v51  ;;  %v854_v57 = vadd.f32 %v9954_v37, %v825_v54  ;;  %7830 = vmatprep.subr.mxu0 %v825_v54 }
  0xfc   : > { %8616 = vpow2.f32 %v7078_v48  ;;  %7831 = vmatpush3.msra.mxu0 %v825_v54  ;;  %v10002_v48 = vld [vmem:[%s9923_s17 + $0x10] sm:$0xff] }
  0xfd   : > { %8618 = vpow2.f32 %v7085_v56  ;;  %v7084_v59 = vmul.f32 -1.442695, %v854_v57  ;;  %7832 = vmatprep.subr.mxu0 %v7824_v41  ;;  %v10014_v57 = vld [vmem:[%s9923_s17 + $0x20] sm:$0xff] }
  0xfe   : > { %8620 = vpow2.f32 %v7081_v53  ;;  %7833 = vmatpush3.msra.mxu0 %v7824_v41 }
  0xff   : > { %8622 = vpow2.f32 %v7084_v59  ;;  %7834 = vmatprep.subr.mxu0 %v815_v45 }
 0x100   : > { %7835 = vmatpush3.msra.mxu0 %v815_v45  ;;  %8624 = vpow2.f32 %v7076_v61  ;;  %v9998_v45 = vld [vmem:[%s9923_s17 + $0x8] sm:$0xff] }
 0x101   : > { %7836 = vmatprep.subr.mxu0 %v7821_v36  ;;  %8626 = vpow2.f32 %v7079_v63 }
 0x102   : > { %7837 = vmatpush3.msra.mxu0 %v7821_v36  ;;  %8628 = vpow2.f32 %v7070_v6  ;;  %v10026_v6 = vld [vmem:[%s9923_s17 + $0x30] sm:$0xff] }
 0x103   : > { %7838 = vmatprep.subr.mxu0 %v805_v38  ;;  %8630 = vpow2.f32 %v7074_v8 }
 0x104   : > { %7839 = vmatpush3.msra.mxu0 %v805_v38  ;;  %8632 = vpow2.f32 %v7077_v9 }
 0x105   : > { %7840 = vmatprep.subr.mxu0 %v7818_v34  ;;  %8634 = vpow2.f32 %v7072_v11 }
 0x106   : > { %v8611_v12 = vpop.eup %8610  ;;  %7841 = vmatpush3.msra.mxu0 %v7818_v34 }
 0x107   : > { %v8613_v14 = vpop.eup %8612  ;;  %7842 = vmatprep.subr.mxu0 %v9949_v35  ;;  %v917_v15 = vadd.f32 1.0, %v8611_v12  ;;  %v10038_v12 = vld [vmem:[%s9923_s17 + $0x40] sm:$0xff] }
 0x108   : > { %v8615_v16 = vpop.eup %8614  ;;  %7843 = vmatpush3.msra.mxu0 %v9949_v35  ;;  %v914_v22 = vadd.f32 1.0, %v8613_v14  ;;  %v7071_v35 = vmul.f32 -1.442695, %v841_v19 }
 0x109   : > { %v8617_v18 = vpop.eup %8616  ;;  %7844 = vmatprep.subr.mxu0 %v9945_v32  ;;  %8636 = vrcp.f32 %v917_v15  ;;  %v916_v20 = vadd.f32 1.0, %v8615_v16  ;;  %v10046_v16 = vld [vmem:[%s9923_s17 + $0x48] sm:$0xff] }
 0x10a   : > { %v8619_v21 = vpop.eup %8618  ;;  %8638 = vpow2.f32 %v7075_v13  ;;  %7845 = vmatpush3.msra.mxu0 %v9945_v32  ;;  %v912_v38 = vadd.f32 1.0, %v8617_v18 }
 0x10b   : > { %v8621_v23 = vpop.eup %8620  ;;  %7846 = vmatprep.subr.mxu0 %v9947_v33  ;;  %8640 = vrcp.f32 %v916_v20  ;;  %v919_v24 = vadd.f32 1.0, %v8619_v21  ;;  %v10057_v21 = vld [vmem:[%s9923_s17 + $0x58] sm:$0xff] }
 0x10c   : > { %v8623_v34 = vpop.eup %8622  ;;  %8642 = vpow2.f32 %v7073_v17  ;;  %7847 = vmatpush3.msra.mxu0 %v9947_v33  ;;  %v915_v39 = vadd.f32 1.0, %v8621_v23  ;;  %v10050_v17 = vld [vmem:[%s9923_s17 + $0x50] sm:$0xff] }
 0x10d   : > { %7848 = vmatprep.subr.mxu0 %v9941_v30  ;;  %8644 = vrcp.f32 %v919_v24  ;;  %v918_v36 = vadd.f32 1.0, %v8623_v34  ;;  %v8625_v32 = vpop.eup %8624 }
 0x10e   : > { %7849 = vmatpush3.msra.mxu0 %v9941_v30  ;;  %8646 = vrcp.f32 %v914_v22  ;;  %v8627_v40 = vpop.eup %8626  ;;  %v910_v41 = vadd.f32 1.0, %v8625_v32 }
 0x10f   : > { %7850 = vmatprep.subr.mxu0 %v9943_v31  ;;  %8648 = vrcp.f32 %v918_v36  ;;  %v8629_v33 = vpop.eup %8628  ;;  %v913_v42 = vadd.f32 1.0, %v8627_v40  ;;  %v10077_v40 = vld [vmem:[%s9923_s17 + $0x78] sm:$0xff] }
 0x110   : > { %7851 = vmatpush3.msra.mxu0 %v9943_v31  ;;  %8650 = vpow2.f32 %v7071_v35  ;;  %v8631_v30 = vpop.eup %8630  ;;  %v904_v59 = vadd.f32 1.0, %v8629_v33  ;;  %v10067_v35 = vld [vmem:[%s9923_s17 + $0x68] sm:$0xff] }
 0x111   : > { %7852 = vmatprep.subr.mxu0 %v9937_v28  ;;  %8652 = vrcp.f32 %v912_v38  ;;  %v8633_v43 = vpop.eup %8632  ;;  %v10070_v38 = vld [vmem:[%s9923_s17 + $0x70] sm:$0xff] }
 0x112   : > { %7853 = vmatpush3.msra.mxu0 %v9937_v28  ;;  %8654 = vrcp.f32 %v915_v39  ;;  %v8635_v44 = vpop.eup %8634  ;;  %v908_v28 = vadd.f32 1.0, %v8631_v30  ;;  %v911_v49 = vadd.f32 1.0, %v8633_v43 }
 0x113   : > { %7854 = vmatprep.subr.mxu0 %v9939_v29  ;;  %8656 = vrcp.f32 %v910_v41  ;;  %v906_v51 = vadd.f32 1.0, %v8635_v44 }
 0x114   : > { %7855 = vmatpush3.msra.mxu0 %v9939_v29  ;;  %8658 = vrcp.f32 %v913_v42 }
 0x115   : > { %7856 = vmatprep.subr.mxu0 %v9933_v26  ;;  %8660 = vrcp.f32 %v908_v28 }
 0x116   : > { %v8637_v31 = vpop.eup %8636  ;;  %7857 = vmatpush3.msra.mxu0 %v9933_v26  ;;  %8662 = vrcp.f32 %v911_v49  ;;  %v13365_v49 = vmov 0  }
 0x117   : > { %v8639_v46 = vpop.eup %8638  ;;  %7858 = vmatprep.subr.mxu0 %v9935_v27  ;;  %v1110_v47 = vmul.f32 0.0, %v8637_v31  ;;  %8664 = vrcp.f32 %v906_v51  ;;  %8609 = vset.pattern.permute.xlu1 %v13365_v49 }
 0x118   : > { %v8641_v29 = vpop.eup %8640  ;;  %7859 = vmatpush3.msra.mxu0 %v9935_v27  ;;  %v909_v27 = vadd.f32 1.0, %v8639_v46  ;;  %8608 = vset.pattern.permute.xlu0 %v13365_v49 }
 0x119   : > { %v8643_v50 = vpop.eup %8642  ;;  %1155 = vrot.lane.b32.xlu1 %v1110_v47, %s9717_s24  ;;  %7861 = vmatmul.mubr.f32.vlgmr.msra.gmra.mxu0 %v9998_v45  ;;  %v1109_v53 = vmul.f32 0.0, %v8641_v29  ;;  %v10083_v47 = vpop.f32.mrf.mxu0 }
 0x11a   : > { %v8645_v26 = vpop.eup %8644  ;;  %7863 = vmatprep.mubr.f32.mxu0 %v10002_v48  ;;  %7940 = vmatprep.subr.mxu0 %v9824_v0  ;;  %8666 = vrcp.f32 %v909_v27  ;;  %v907_v63 = vadd.f32 1.0, %v8643_v50  ;;  %13448 = vst [vmem:[#allocation5_spill] sm:$0xff] %v10083_v47 }
 0x11b   : > { %v8647_v52 = vpop.eup %8646  ;;  %v1112_v54 = vmul.f32 0.0, %v8645_v26  ;;  %7941 = vmatpush3.msra.mxu0 %v9824_v0  ;;  %8668 = vrcp.f32 %v904_v59  ;;  %v10087_v26 = vpop.f32.mrf.mxu0 }
 0x11c   : > { %v8649_v56 = vpop.eup %8648  ;;  %7942 = vmatprep.subr.mxu0 %v9829_v1  ;;  %v1107_v61 = vmul.f32 0.0, %v8647_v52  ;;  %8670 = vrcp.f32 %v907_v63  ;;  %13449 = vst [vmem:[#allocation6_spill] sm:$0xff] %v10087_v26 }
 0x11d   : > { %1153 = vrot.lane.b32.xlu1 %v1109_v53, %s9717_s24  ;;  %1159 = vrot.lane.b32.xlu0 %v1112_v54, %s9717_s24  ;;  %v8651_v58 = vpop.eup %8650  ;;  %v1111_v0 = vmul.f32 0.0, %v8649_v56  ;;  %v10089_v52 = vpop.f32.mrf.mxu0 }
 0x11e   : > { %7864 = vmatmul.mubr.f32.gmra.mxu0 %v10010_v55  ;;  %v8653_v60 = vpop.eup %8652  ;;  %v905_v10 = vadd.f32 1.0, %v8651_v58  ;;  %13450 = vst [vmem:[#allocation7_spill] sm:$0xff] %v10089_v52 }
 0x11f   : > { %7866 = vmatprep.mubr.f32.mxu0 %v10014_v57  ;;  %7943 = vmatpush3.msra.mxu0 %v9829_v1  ;;  %v8655_v5 = vpop.eup %8654  ;;  %v1105_v8 = vmul.f32 0.0, %v8653_v60  ;;  %v10034_v1 = vld [vmem:[%s9923_s17 + $0x38] sm:$0xff]  ;;  %v10091_v27 = vpop.f32.mrf.mxu0 }
 0x120   : > { %7944 = vmatprep.subr.mxu0 %v9837_v3  ;;  %v8657_v7 = vpop.eup %8656  ;;  %v1108_v9 = vmul.f32 0.0, %v8655_v5  ;;  %8672 = vrcp.f32 %v905_v10  ;;  %13451 = vst [vmem:[#allocation8_spill] sm:$0xff] %v10091_v27 }
 0x121   : > { %1149 = vrot.lane.b32.xlu1 %v1107_v61, %s9717_s24  ;;  %1157 = vrot.lane.b32.xlu0 %v1111_v0, %s9717_s24  ;;  %v8659_v11 = vpop.eup %8658  ;;  %v1103_v14 = vmul.f32 0.0, %v8657_v7  ;;  %v10093_v59 = vpop.f32.mrf.mxu0 }
 0x122   : > { %7867 = vmatmul.mubr.f32.gmra.mxu0 %v10022_v62  ;;  %v8661_v13 = vpop.eup %8660  ;;  %v1106_v15 = vmul.f32 0.0, %v8659_v11  ;;  %13452 = vst [vmem:[#allocation9_spill] sm:$0xff] %v10093_v59 }
 0x123   : > { %7869 = vmatprep.mubr.f32.mxu0 %v10026_v6  ;;  %7945 = vmatpush3.msra.mxu0 %v9837_v3  ;;  %v8663_v3 = vpop.eup %8662  ;;  %v1101_v19 = vmul.f32 0.0, %v8661_v13  ;;  %v10095_v61 = vpop.f32.mrf.mxu0 }
 0x124   : > { %7946 = vmatprep.subr.mxu0 %v9844_v4  ;;  %v8665_v18 = vpop.eup %8664  ;;  %v1104_v20 = vmul.f32 0.0, %v8663_v3  ;;  %13453 = vst [vmem:[#allocation10_spill] sm:$0xff] %v10095_v61 }
 0x125   : > { %1145 = vrot.lane.b32.xlu1 %v1105_v8, %s9717_s24  ;;  %1151 = vrot.lane.b32.xlu0 %v1108_v9, %s9717_s24  ;;  %v1099_v24 = vmul.f32 0.0, %v8665_v18  ;;  %v10097_v63 = vpop.f32.mrf.mxu0 }
 0x126   : > { %7870 = vmatmul.mubr.f32.gmra.mxu0 %v10034_v1  ;;  %13454 = vst [vmem:[#allocation11_spill] sm:$0xff] %v10097_v63 }
 0x127   : > { %7872 = vmatprep.mubr.f32.mxu0 %v10038_v12  ;;  %7947 = vmatpush3.msra.mxu0 %v9844_v4  ;;  %v8667_v22 = vpop.eup %8666  ;;  %v10060_v4 = vld [vmem:[%s9923_s17 + $0x60] sm:$0xff]  ;;  %v10101_v5 = vpop.f32.mrf.mxu0 }
 0x128   : > { %v8669_v23 = vpop.eup %8668  ;;  %v1102_v34 = vmul.f32 0.0, %v8667_v22  ;;  %13455 = vst [vmem:[#allocation12_spill] sm:$0xff] %v10101_v5 }
 0x129   : > { %1141 = vrot.lane.b32.xlu1 %v1103_v14, %s9717_s24  ;;  %1147 = vrot.lane.b32.xlu0 %v1106_v15, %s9717_s24  ;;  %v8671_v36 = vpop.eup %8670  ;;  %v1097_v32 = vmul.f32 0.0, %v8669_v23  ;;  %v10105_v7 = vpop.f32.mrf.mxu0 }
 0x12a   : > { %7873 = vmatmul.mubr.f32.gmra.mxu0 %v10046_v16  ;;  %v1100_v39 = vmul.f32 0.0, %v8671_v36  ;;  %13456 = vst [vmem:[#allocation13_spill] sm:$0xff] %v10105_v7 }
 0x12b   : > { %7875 = vmatprep.mubr.f32.mxu0 %v10050_v17  ;;  %v10109_v8 = vpop.f32.mrf.mxu0 }
 0x12c   : > { %13457 = vst [vmem:[#allocation14_spill] sm:$0xff] %v10109_v8 }
 0x12d   : > { %1137 = vrot.lane.b32.xlu1 %v1101_v19, %s9717_s24  ;;  %1143 = vrot.lane.b32.xlu0 %v1104_v20, %s9717_s24  ;;  %v8673_v33 = vpop.eup %8672 }
 0x12e   : > { %7876 = vmatmul.mubr.f32.gmra.mxu0 %v10057_v21  ;;  %v1098_v41 = vmul.f32 0.0, %v8673_v33 }
 0x12f   : > { %7878 = vmatprep.mubr.f32.mxu0 %v10060_v4 }
 0x131   : > { %1133 = vrot.lane.b32.xlu1 %v1099_v24, %s9717_s24  ;;  %1139 = vrot.lane.b32.xlu0 %v1102_v34, %s9717_s24 }
 0x132   : > { %7879 = vmatmul.mubr.f32.gmra.mxu0 %v10067_v35 }
 0x133   : > { %7881 = vmatprep.mubr.f32.mxu0 %v10070_v38 }
 0x135   : > { %1129 = vrot.lane.b32.xlu1 %v1097_v32, %s9717_s24  ;;  %1135 = vrot.lane.b32.xlu0 %v1100_v39, %s9717_s24 }
 0x136   : > { %7882 = vmatmul.mubr.f32.gmra.mxu0 %v10077_v40 }
 0x139   : > { %1131 = vrot.lane.b32.xlu0 %v1098_v41, %s9717_s24 }
 0x18b   : > { %v1156_v30 = vpop.permute.xlu1 %1155 }
 0x18f   : > { %v1154_v42 = vpop.permute.xlu1 %1153  ;;  %v1160_v43 = vpop.permute.xlu0 %1159 }
 0x190   : > { %7884 = vmatprep.subr.mxu1 %v1160_v43 }
 0x191   : > { %7885 = vmatpush3.msra.mxu1 %v1160_v43 }
 0x193   : > { %v1150_v44 = vpop.permute.xlu1 %1149  ;;  %v1158_v31 = vpop.permute.xlu0 %1157 }
 0x194   : > { %7886 = vmatprep.subr.mxu1 %v1158_v31 }
 0x195   : > { %7887 = vmatpush3.msra.mxu1 %v1158_v31 }
 0x196   : > { %7888 = vmatprep.subr.mxu1 %v1156_v30 }
 0x197   : > { %v1146_v28 = vpop.permute.xlu1 %1145  ;;  %7889 = vmatpush3.msra.mxu1 %v1156_v30  ;;  %v1152_v46 = vpop.permute.xlu0 %1151 }
 0x198   : > { %7890 = vmatprep.subr.mxu1 %v1154_v42 }
 0x199   : > { %7891 = vmatpush3.msra.mxu1 %v1154_v42 }
 0x19a   : > { %7892 = vmatprep.subr.mxu1 %v1152_v46 }
 0x19b   : > { %7893 = vmatpush3.msra.mxu1 %v1152_v46  ;;  %v1148_v29 = vpop.permute.xlu0 %1147  ;;  %v1142_v50 = vpop.permute.xlu1 %1141 }
 0x19c   : > { %7894 = vmatprep.subr.mxu1 %v1150_v44 }
 0x19d   : > { %7895 = vmatpush3.msra.mxu1 %v1150_v44 }
 0x19e   : > { %7896 = vmatprep.subr.mxu1 %v1148_v29 }
 0x19f   : > { %7897 = vmatpush3.msra.mxu1 %v1148_v29  ;;  %v1144_v51 = vpop.permute.xlu0 %1143  ;;  %v1138_v53 = vpop.permute.xlu1 %1137 }
 0x1a0   : > { %7898 = vmatprep.subr.mxu1 %v1146_v28 }
 0x1a1   : > { %7899 = vmatpush3.msra.mxu1 %v1146_v28 }
 0x1a2   : > { %7900 = vmatprep.subr.mxu1 %v1144_v51 }
 0x1a3   : > { %7901 = vmatpush3.msra.mxu1 %v1144_v51  ;;  %v1140_v54 = vpop.permute.xlu0 %1139  ;;  %v1134_v58 = vpop.permute.xlu1 %1133 }
 0x1a4   : > { %7902 = vmatprep.subr.mxu1 %v1142_v50 }
 0x1a5   : > { %7903 = vmatpush3.msra.mxu1 %v1142_v50 }
 0x1a6   : > { %7904 = vmatprep.subr.mxu1 %v1140_v54 }
 0x1a7   : > { %7905 = vmatpush3.msra.mxu1 %v1140_v54  ;;  %v1136_v56 = vpop.permute.xlu0 %1135  ;;  %v1130_v0 = vpop.permute.xlu1 %1129 }
 0x1a8   : > { %7906 = vmatprep.subr.mxu1 %v1138_v53 }
 0x1a9   : > { %7907 = vmatpush3.msra.mxu1 %v1138_v53 }
 0x1aa   : > { %7908 = vmatprep.subr.mxu1 %v1136_v56 }
 0x1ab   : > { %7909 = vmatpush3.msra.mxu1 %v1136_v56  ;;  %v1132_v60 = vpop.permute.xlu0 %1131 }
 0x1ac   : > { %7910 = vmatprep.subr.mxu1 %v1134_v58 }
 0x1ad   : > { %7911 = vmatpush3.msra.mxu1 %v1134_v58 }
 0x1ae   : > { %7912 = vmatprep.subr.mxu1 %v1132_v60 }
 0x1af   : > { %7913 = vmatpush3.msra.mxu1 %v1132_v60 }
 0x1b0   : > { %7914 = vmatprep.subr.mxu1 %v1130_v0 }
 0x1b1   : > { %7915 = vmatpush3.msra.mxu1 %v1130_v0 }
 0x1b2   : > { %7917 = vmatmul.mubr.f32.vlgmr.msra.gmra.mxu1 %v9998_v45  ;;  %v10113_v45 = vpop.f32.mrf.mxu0 }
 0x1b3   : > { %7919 = vmatprep.mubr.f32.mxu1 %v10002_v48  ;;  %13458 = vst [vmem:[#allocation15_spill] sm:$0xff] %v10113_v45 }
 0x1b4   : > { %v10117_v48 = vpop.f32.mrf.mxu0 }
 0x1b5   : > { %13459 = vst [vmem:[#allocation16_spill] sm:$0xff] %v10117_v48 }
 0x1b6   : > { %7920 = vmatmul.mubr.f32.gmra.mxu1 %v10010_v55  ;;  %v10121_v55 = vpop.f32.mrf.mxu0 }
 0x1b7   : > { %7922 = vmatprep.mubr.f32.mxu1 %v10014_v57  ;;  %13460 = vst [vmem:[#allocation17_spill] sm:$0xff] %v10121_v55 }
 0x1b8   : > { %v10125_v57 = vpop.f32.mrf.mxu0 }
 0x1b9   : > { %13461 = vst [vmem:[#allocation18_spill] sm:$0xff] %v10125_v57 }
 0x1ba   : > { %7923 = vmatmul.mubr.f32.gmra.mxu1 %v10022_v62  ;;  %v10129_v62 = vpop.f32.mrf.mxu0 }
 0x1bb   : > { %7925 = vmatprep.mubr.f32.mxu1 %v10026_v6  ;;  %13462 = vst [vmem:[#allocation19_spill] sm:$0xff] %v10129_v62 }
 0x1bc   : > { %v10131_v6 = vpop.f32.mrf.mxu0 }
 0x1bd   : > { %13463 = vst [vmem:[#allocation20_spill] sm:$0xff] %v10131_v6 }
 0x1be   : > { %7926 = vmatmul.mubr.f32.gmra.mxu1 %v10034_v1 }
 0x1bf   : > { %7928 = vmatprep.mubr.f32.mxu1 %v10038_v12 }
 0x1c2   : > { %7929 = vmatmul.mubr.f32.gmra.mxu1 %v10046_v16 }
 0x1c3   : > { %7931 = vmatprep.mubr.f32.mxu1 %v10050_v17 }
 0x1c6   : > { %7932 = vmatmul.mubr.f32.gmra.mxu1 %v10057_v21 }
 0x1c7   : > { %7934 = vmatprep.mubr.f32.mxu1 %v10060_v4 }
 0x1ca   : > { %7935 = vmatmul.mubr.f32.gmra.mxu1 %v10067_v35 }
 0x1cb   : > { %7937 = vmatprep.mubr.f32.mxu1 %v10070_v38 }
 0x1ce   : > { %7938 = vmatmul.mubr.f32.gmra.mxu1 %v10077_v40 }
 0x1cf   : > { %8004 = vmatprep.mubr.f32.mxu1 %v9929_v25 }
 0x1d9   : > { %v7862_v9 = vpop.f32.mrf.mxu0 }
 0x1da   : > { %v1323_v1 = vadd.f32 %v7862_v9, %v10083_v47 }
 0x1db   : > { %v1018_v10 = vpop.f32.mrf.mxu0 }
 0x1dc   : > { %v10135_v11 = vadd.f32 %v9954_v37, %v1323_v1  ;;  %v1322_v12 = vadd.f32 %v1018_v10, %v10087_v26 }
 0x1de   : > { %8674 = vtanh.f32 %v10135_v11  ;;  %v10140_v13 = vadd.f32 %v9954_v37, %v1322_v12  ;;  %v7865_v14 = vpop.f32.mrf.mxu0 }
 0x1df   : > { %v1325_v25 = vadd.f32 %v7865_v14, %v10089_v52 }
 0x1e0   : > { %v1028_v15 = vpop.f32.mrf.mxu0  ;;  %8676 = vtanh.f32 %v10140_v13 }
 0x1e1   : > { %v10145_v16 = vadd.f32 %v9954_v37, %v1325_v25  ;;  %v1324_v3 = vadd.f32 %v1028_v15, %v10091_v27 }
 0x1e2   : > { %v7868_v17 = vpop.f32.mrf.mxu0 }
 0x1e3   : > { %8678 = vtanh.f32 %v10145_v16  ;;  %v10150_v18 = vadd.f32 %v9954_v37, %v1324_v3  ;;  %v1327_v19 = vadd.f32 %v7868_v17, %v10093_v59 }
 0x1e4   : > { %v1038_v20 = vpop.f32.mrf.mxu0 }
 0x1e5   : > { %v10154_v21 = vadd.f32 %v9954_v37, %v1327_v19  ;;  %v1326_v22 = vadd.f32 %v1038_v20, %v10095_v61  ;;  %8680 = vtanh.f32 %v10150_v18 }
 0x1e6   : > { %v7871_v4 = vpop.f32.mrf.mxu0 }
 0x1e7   : > { %v10159_v23 = vadd.f32 %v9954_v37, %v1326_v22  ;;  %v1329_v24 = vadd.f32 %v7871_v4, %v10097_v63  ;;  %8682 = vtanh.f32 %v10154_v21 }
 0x1e8   : > { %v1048_v34 = vpop.f32.mrf.mxu0 }
 0x1e9   : > { %v10164_v35 = vadd.f32 %v9954_v37, %v1329_v24  ;;  %v1328_v36 = vadd.f32 %v1048_v34, %v10101_v5  ;;  %8684 = vtanh.f32 %v10159_v23 }
 0x1ea   : > { %v7874_v38 = vpop.f32.mrf.mxu0 }
 0x1eb   : > { %v8675_v32 = vpop.eup %8674  ;;  %v10169_v39 = vadd.f32 %v9954_v37, %v1328_v36  ;;  %v1331_v40 = vadd.f32 %v7874_v38, %v10105_v7  ;;  %8686 = vtanh.f32 %v10164_v35  ;;  %v404_v36 = vld [vmem:[%s10229_s29 + $0x8] sm:$0xff] }
 0x1ec   : > { %v1058_v33 = vpop.f32.mrf.mxu0  ;;  %1484 = vrot.lane.b32.xlu1 %v8675_v32, %s9719_s25  ;;  %vm1659_vm1 = vcmp.gt.f32.partialorder %v404_v36, 0.0  ;;  %v403_v32 = vld [vmem:[%s10229_s29] sm:$0xff]  ;;  %v417_v36 = vld [vmem:[%s10229_s29 + $0x70] sm:$0xff] }
 0x1ed   : > { %v8677_v41 = vpop.eup %8676  ;;  %8688 = vtanh.f32 %v10169_v39  ;;  %v1330_v30 = vadd.f32 %v1058_v33, %v10109_v8  ;;  %v10177_v43 = vadd.f32 %v9954_v37, %v1331_v40  ;;  %v1675_v33 = vsel %vm1659_vm1, 1, %v13365_v49 }
 0x1ee   : > { %v7877_v42 = vpop.f32.mrf.mxu0  ;;  %1482 = vrot.lane.b32.xlu0 %v8677_v41, %s9719_s25  ;;  %vm1658_vm2 = vcmp.gt.f32.partialorder %v403_v32, 0.0  ;;  %vm1672_vm15 = vcmp.gt.f32.partialorder %v417_v36, 0.0  ;;  %v7087_v32 = vmul.f32 -1.442695, %v10135_v11  ;;  %v7091_v11 = vmul.f32 -1.442695, %v10154_v21 }
 0x1ef   : > { %v10182_v28 = vadd.f32 %v9954_v37, %v1330_v30  ;;  %v1333_v46 = vadd.f32 %v7877_v42, %v10113_v45  ;;  %8690 = vtanh.f32 %v10177_v43  ;;  %v405_v30 = vld [vmem:[%s10229_s29 + $0x10] sm:$0xff]  ;;  %v1674_v42 = vsel %vm1658_vm2, 1, %v13365_v49 }
 0x1f0   : > { %v8679_v44 = vpop.eup %8678  ;;  %v1068_v31 = vpop.f32.mrf.mxu0  ;;  %vm1660_vm3 = vcmp.gt.f32.partialorder %v405_v30, 0.0  ;;  %v7089_v30 = vmul.f32 -1.442695, %v10145_v16  ;;  %v7095_v21 = vmul.f32 -1.442695, %v10177_v43 }
 0x1f1   : > { %1488 = vrot.lane.b32.xlu1 %v8679_v44, %s9719_s25  ;;  %8692 = vtanh.f32 %v10182_v28  ;;  %v10189_v53 = vadd.f32 %v9954_v37, %v1333_v46  ;;  %v1332_v54 = vadd.f32 %v1068_v31, %v10117_v48  ;;  %v406_v44 = vld [vmem:[%s10229_s29 + $0x18] sm:$0xff]  ;;  %v1676_v31 = vsel %vm1660_vm3, 1, %v13365_v49  ;;  %v407_v46 = vld [vmem:[%s10229_s29 + $0x20] sm:$0xff] }
 0x1f2   : > { %v8681_v29 = vpop.eup %8680  ;;  %v7880_v50 = vpop.f32.mrf.mxu0  ;;  %vm1661_vm4 = vcmp.gt.f32.partialorder %v406_v44, 0.0  ;;  %vm1662_vm5 = vcmp.gt.f32.partialorder %v407_v46, 0.0  ;;  %v7088_v44 = vmul.f32 -1.442695, %v10150_v18 }
 0x1f3   : > { %1486 = vrot.lane.b32.xlu0 %v8681_v29, %s9719_s25  ;;  %8694 = vtanh.f32 %v10189_v53  ;;  %v10196_v0 = vadd.f32 %v9954_v37, %v1332_v54  ;;  %v1335_v9 = vadd.f32 %v7880_v50, %v10121_v55  ;;  %v1677_v29 = vsel %vm1661_vm4, 1, %v13365_v49  ;;  %v408_v50 = vld [vmem:[%s10229_s29 + $0x28] sm:$0xff]  ;;  %v409_v54 = vld [vmem:[%s10229_s29 + $0x30] sm:$0xff] }
 0x1f4   : > { %v8683_v51 = vpop.eup %8682  ;;  %v1078_v58 = vpop.f32.mrf.mxu0  ;;  %vm1663_vm6 = vcmp.gt.f32.partialorder %v408_v50, 0.0  ;;  %vm1664_vm7 = vcmp.gt.f32.partialorder %v409_v54, 0.0  ;;  %v7093_v50 = vmul.f32 -1.442695, %v10164_v35 }
 0x1f5   : > { %1492 = vrot.lane.b32.xlu1 %v8683_v51, %s9719_s25  ;;  %v1334_v12 = vadd.f32 %v1078_v58, %v10125_v57  ;;  %8696 = vtanh.f32 %v10196_v0  ;;  %v10204_v14 = vadd.f32 %v9954_v37, %v1335_v9  ;;  %v1678_v51 = vsel %vm1662_vm5, 1, %v13365_v49  ;;  %v410_v58 = vld [vmem:[%s10229_s29 + $0x38] sm:$0xff]  ;;  %v411_v9 = vld [vmem:[%s10229_s29 + $0x40] sm:$0xff] }
 0x1f6   : > { %v8685_v56 = vpop.eup %8684  ;;  %v7883_v10 = vpop.f32.mrf.mxu0  ;;  %vm1665_vm8 = vcmp.gt.f32.partialorder %v410_v58, 0.0  ;;  %vm1666_vm9 = vcmp.gt.f32.partialorder %v411_v9, 0.0 }
 0x1f7   : > { %1490 = vrot.lane.b32.xlu0 %v8685_v56, %s9719_s25  ;;  %v1337_v25 = vadd.f32 %v7883_v10, %v10129_v62  ;;  %v10208_v17 = vadd.f32 %v9954_v37, %v1334_v12  ;;  %8698 = vtanh.f32 %v10204_v14  ;;  %v1679_v56 = vsel %vm1663_vm6, 1, %v13365_v49  ;;  %v412_v10 = vld [vmem:[%s10229_s29 + $0x48] sm:$0xff] }
 0x1f8   : > { %v8687_v60 = vpop.eup %8686  ;;  %v1088_v15 = vpop.f32.mrf.mxu0  ;;  %v1682_v12 = vsel %vm1666_vm9, 1, %v13365_v49  ;;  %vm1667_vm10 = vcmp.gt.f32.partialorder %v412_v10, 0.0  ;;  %v7094_v10 = vmul.f32 -1.442695, %v10182_v28 }
 0x1f9   : > { %1496 = vrot.lane.b32.xlu1 %v8687_v60, %s9719_s25  ;;  %v1336_v19 = vadd.f32 %v1088_v15, %v10131_v6  ;;  %v10214_v22 = vadd.f32 %v9954_v37, %v1337_v25  ;;  %8700 = vtanh.f32 %v10208_v17  ;;  %v1680_v60 = vsel %vm1664_vm7, 1, %v13365_v49  ;;  %v413_v25 = vld [vmem:[%s10229_s29 + $0x50] sm:$0xff] }
 0x1fa   : > { %v8689_v1 = vpop.eup %8688  ;;  %v1683_v15 = vsel %vm1667_vm10, 1, %v13365_v49  ;;  %vm1668_vm11 = vcmp.gt.f32.partialorder %v413_v25, 0.0 }
 0x1fb   : > { %1494 = vrot.lane.b32.xlu0 %v8689_v1, %s9719_s25  ;;  %v10219_v4 = vadd.f32 %v9954_v37, %v1336_v19  ;;  %8702 = vtanh.f32 %v10214_v22  ;;  %v1681_v1 = vsel %vm1665_vm8, 1, %v13365_v49  ;;  %v1684_v19 = vsel %vm1668_vm11, 1, %v13365_v49 }
 0x1fc   : > { %v8691_v3 = vpop.eup %8690 }
 0x1fd   : > { %1500 = vrot.lane.b32.xlu1 %v8691_v3, %s9719_s25  ;;  %8704 = vtanh.f32 %v10219_v4  ;;  %v414_v3 = vld [vmem:[%s10229_s29 + $0x58] sm:$0xff] }
 0x1fe   : > { %v8693_v20 = vpop.eup %8692  ;;  %vm1669_vm12 = vcmp.gt.f32.partialorder %v414_v3, 0.0  ;;  %8706 = vpow2.f32 %v7087_v32 }
 0x1ff   : > { %1498 = vrot.lane.b32.xlu0 %v8693_v20, %s9719_s25  ;;  %v415_v20 = vld [vmem:[%s10229_s29 + $0x60] sm:$0xff] }
 0x200   : > { %v8695_v24 = vpop.eup %8694  ;;  %vm1670_vm13 = vcmp.gt.f32.partialorder %v415_v20, 0.0 }
 0x201   : > { %1504 = vrot.lane.b32.xlu1 %v8695_v24, %s9719_s25  ;;  %v1685_v24 = vsel %vm1669_vm12, 1, %v13365_v49 }
 0x202   : > { %v8697_v34 = vpop.eup %8696 }
 0x203   : > { %1502 = vrot.lane.b32.xlu0 %v8697_v34, %s9719_s25  ;;  %v416_v34 = vld [vmem:[%s10229_s29 + $0x68] sm:$0xff] }
 0x204   : > { %v8699_v37 = vpop.eup %8698  ;;  %vm1671_vm14 = vcmp.gt.f32.partialorder %v416_v34, 0.0 }
 0x205   : > { %1508 = vrot.lane.b32.xlu1 %v8699_v37, %s9719_s25  ;;  %v1686_v37 = vsel %vm1670_vm13, 1, %v13365_v49 }
 0x206   : > { %v8701_v38 = vpop.eup %8700 }
 0x207   : > { %1506 = vrot.lane.b32.xlu0 %v8701_v38, %s9719_s25  ;;  %v1687_v38 = vsel %vm1671_vm14, 1, %v13365_v49 }
 0x208   : > { %v8703_v40 = vpop.eup %8702 }
 0x209   : > { %1512 = vrot.lane.b32.xlu1 %v8703_v40, %s9719_s25  ;;  %v418_v40 = vld [vmem:[%s10229_s29 + $0x78] sm:$0xff] }
 0x20a   : > { %v8705_v41 = vpop.eup %8704  ;;  %vm1673_vm1 = vcmp.gt.f32.partialorder %v418_v40, 0.0 }
 0x20b   : > { %1510 = vrot.lane.b32.xlu0 %v8705_v41, %s9719_s25  ;;  %v1688_v41 = vsel %vm1672_vm15, 1, %v13365_v49 }
 0x20d   : > { %1694 = vperm.xlu1 %8609, %v1675_v33   ;;  %v7086_v33 = vmul.f32 -1.442695, %v10140_v13  ;;  %v7090_v13 = vmul.f32 -1.442695, %v10159_v23  ;;  %v7101_v23 = vmul.f32 -1.442695, %v10214_v22 }
 0x20f   : > { %1691 = vperm.xlu0 %8608, %v1674_v42   ;;  %8708 = vpow2.f32 %v7086_v33  ;;  %v1689_v42 = vsel %vm1673_vm1, 1, %v13365_v49 }
 0x210   : > { %8710 = vpow2.f32 %v7089_v30 }
 0x211   : > { %8712 = vpow2.f32 %v7088_v44 }
 0x212   : > { %8714 = vpow2.f32 %v7091_v11 }
 0x213   : > { %1697 = vperm.xlu0 %8608, %v1676_v31   ;;  %v8707_v31 = vpop.eup %8706  ;;  %8716 = vpow2.f32 %v7090_v13 }
 0x217   : > { %1700 = vperm.xlu0 %8608, %v1677_v29   ;;  %v1403_v29 = vadd.f32 1.0, %v8707_v31 }
 0x219   : > { %8718 = vrcp.f32 %v1403_v29 }
 0x21a   : > { %8720 = vpow2.f32 %v7093_v50 }
 0x21b   : > { %1703 = vperm.xlu0 %8608, %v1678_v51  }
 0x21c   : > { %v8709_v46 = vpop.eup %8708 }
 0x21d   : > { %v1402_v16 = vadd.f32 1.0, %v8709_v46  ;;  %v8711_v54 = vpop.eup %8710 }
 0x21e   : > { %v1405_v18 = vadd.f32 1.0, %v8711_v54  ;;  %v8713_v58 = vpop.eup %8712 }
 0x21f   : > { %1706 = vperm.xlu0 %8608, %v1679_v56   ;;  %v7092_v56 = vmul.f32 -1.442695, %v10169_v39  ;;  %8722 = vrcp.f32 %v1402_v16  ;;  %v1404_v9 = vadd.f32 1.0, %v8713_v58  ;;  %v8715_v35 = vpop.eup %8714 }
 0x220   : > { %v8717_v25 = vpop.eup %8716  ;;  %v1407_v39 = vadd.f32 1.0, %v8715_v35 }
 0x221   : > { %8724 = vpow2.f32 %v7092_v56  ;;  %v1406_v22 = vadd.f32 1.0, %v8717_v25 }
 0x222   : > { %8726 = vrcp.f32 %v1405_v18 }
 0x223   : > { %1709 = vperm.xlu0 %8608, %v1680_v60   ;;  %8728 = vpow2.f32 %v7095_v21  ;;  %v7098_v21 = vmul.f32 -1.442695, %v10208_v17 }
 0x224   : > { %8730 = vpow2.f32 %v7101_v23 }
 0x225   : > { %8732 = vrcp.f32 %v1404_v9 }
 0x226   : > { %8734 = vpow2.f32 %v7094_v10  ;;  %v10279_v3 = vpop.eup %8718 }
 0x227   : > { %1712 = vperm.xlu0 %8608, %v1681_v1   ;;  %8736 = vrcp.f32 %v1407_v39 }
 0x22b   : > { %1715 = vperm.xlu0 %8608, %v1682_v12  }
 0x22f   : > { %1718 = vperm.xlu0 %8608, %v1683_v15   ;;  %v7097_v15 = vmul.f32 -1.442695, %v10189_v53 }
 0x231   : > { %8738 = vpow2.f32 %v7097_v15  ;;  %v7100_v15 = vmul.f32 -1.442695, %v10219_v4 }
 0x232   : > { %8740 = vrcp.f32 %v1406_v22 }
 0x233   : > { %1721 = vperm.xlu0 %8608, %v1684_v19   ;;  %v8721_v19 = vpop.eup %8720 }
 0x234   : > { %v1409_v53 = vadd.f32 1.0, %v8721_v19 }
 0x237   : > { %1724 = vperm.xlu0 %8608, %v1685_v24   ;;  %v10282_v24 = vpop.eup %8722 }
 0x238   : > { %v8725_v40 = vpop.eup %8724 }
 0x239   : > { %v10293_v30 = vpop.eup %8726  ;;  %v1408_v13 = vadd.f32 1.0, %v8725_v40 }
 0x23a   : > { %v8729_v44 = vpop.eup %8728 }
 0x23b   : > { %1727 = vperm.xlu0 %8608, %v1686_v37   ;;  %v7096_v37 = vmul.f32 -1.442695, %v10196_v0  ;;  %v7099_v0 = vmul.f32 -1.442695, %v10204_v14  ;;  %v8731_v31 = vpop.eup %8730  ;;  %v1411_v16 = vadd.f32 1.0, %v8729_v44 }
 0x23c   : > { %v1417_v56 = vadd.f32 1.0, %v8731_v31 }
 0x23f   : > { %1730 = vperm.xlu0 %8608, %v1687_v38  }
 0x243   : > { %1733 = vperm.xlu0 %8608, %v1688_v41  }
 0x247   : > { %1736 = vperm.xlu0 %8608, %v1689_v42  }
 0x25e   : > { %v1485_v51 = vpop.permute.xlu1 %1484 }
 0x25f   : > { %v1531_v20 = vmul.f32 %v10279_v3, %v1485_v51  ;;  %v10302_v51 = vpop.eup %8732 }
 0x260   : > { %v1483_v1 = vpop.permute.xlu0 %1482  ;;  %v8735_v58 = vpop.eup %8734 }
 0x261   : > { %v1530_v36 = vmul.f32 %v10282_v24, %v1483_v1  ;;  %v10309_v9 = vpop.eup %8736  ;;  %v1410_v10 = vadd.f32 1.0, %v8735_v58 }
 0x262   : > { %v8739_v39 = vpop.eup %8738 }
 0x263   : > { %v1489_v60 = vpop.permute.xlu1 %1488 }
 0x264   : > { %v1533_v11 = vmul.f32 %v10293_v30, %v1489_v60 }
 0x265   : > { %v1487_v43 = vpop.permute.xlu0 %1486 }
 0x266   : > { %v1532_v14 = vmul.f32 %v10302_v51, %v1487_v43  ;;  %v10315_v43 = vpop.eup %8740 }
 0x267   : > { %v1493_v12 = vpop.permute.xlu1 %1492 }
 0x268   : > { %v1535_v25 = vmul.f32 %v10309_v9, %v1493_v12 }
 0x269   : > { %v1491_v33 = vpop.permute.xlu0 %1490 }
 0x26b   : > { %v10284_v34 = vpop.permute.xlu1 %1496 }
 0x26d   : > { %v1495_v18 = vpop.permute.xlu0 %1494 }
 0x26f   : > { %v10297_v46 = vpop.permute.xlu1 %1500 }
 0x271   : > { %v1499_v22 = vpop.permute.xlu0 %1498 }
 0x272   : > { %v7918_v28 = vpop.f32.mrf.mxu1 }
 0x273   : > { %v10288_v38 = vadd.f32 %v7918_v28, %v1531_v20  ;;  %v10311_v1 = vpop.permute.xlu1 %1504 }
 0x274   : > { %v1243_v32 = vpop.f32.mrf.mxu1 }
 0x275   : > { %8742 = vtanh.f32 %v10288_v38  ;;  %v10291_v41 = vadd.f32 %v1530_v36, %v1243_v32  ;;  %v1413_v36 = vadd.f32 1.0, %v8739_v39 }
 0x276   : > { %v7921_v42 = vpop.f32.mrf.mxu1  ;;  %8744 = vpow2.f32 %v7096_v37  ;;  %v1534_v37 = vmul.f32 %v10315_v43, %v1491_v33  ;;  %v1503_v33 = vpop.permute.xlu0 %1502 }
 0x277   : > { %8746 = vrcp.f32 %v1409_v53  ;;  %v10300_v50 = vadd.f32 %v7921_v42, %v1533_v11  ;;  %v10322_v53 = vpop.permute.xlu1 %1508 }
 0x278   : > { %v1253_v29 = vpop.f32.mrf.mxu1  ;;  %8748 = vtanh.f32 %v10291_v41 }
 0x279   : > { %8750 = vpow2.f32 %v7099_v0  ;;  %v10307_v23 = vadd.f32 %v1532_v14, %v1253_v29 }
 0x27a   : > { %v7924_v54 = vpop.f32.mrf.mxu1  ;;  %8752 = vrcp.f32 %v1408_v13 }
 0x27b   : > { %8754 = vtanh.f32 %v10300_v50  ;;  %v10318_v19 = vadd.f32 %v7924_v54, %v1535_v25  ;;  %v1513_v14 = vpop.permute.xlu1 %1512 }
 0x27c   : > { %v1263_v60 = vpop.f32.mrf.mxu1  ;;  %8756 = vrcp.f32 %v1411_v16 }
 0x27d   : > { %8758 = vrcp.f32 %v1417_v56  ;;  %v10327_v40 = vadd.f32 %v1534_v37, %v1263_v60 }
 0x27e   : > { %v7927_v35 = vpop.f32.mrf.mxu1  ;;  %8760 = vpow2.f32 %v7098_v21 }
 0x27f   : > { %8762 = vtanh.f32 %v10307_v23 }
 0x280   : > { %v1273_v17 = vpop.f32.mrf.mxu1  ;;  %8764 = vrcp.f32 %v1410_v10 }
 0x281   : > { %8766 = vpow2.f32 %v7100_v15  ;;  %v1507_v15 = vpop.permute.xlu0 %1506 }
 0x282   : > { %v8743_v20 = vpop.eup %8742  ;;  %v7930_v28 = vpop.f32.mrf.mxu1  ;;  %8768 = vtanh.f32 %v10318_v19 }
 0x283   : > { %1596 = vrot.lane.b32.xlu1 %v8743_v20, %s9717_s24  ;;  %v8745_v12 = vpop.eup %8744  ;;  %8770 = vrcp.f32 %v1413_v36 }
 0x284   : > { %v1283_v4 = vpop.f32.mrf.mxu1  ;;  %v10324_v32 = vpop.eup %8746  ;;  %v1412_v31 = vadd.f32 1.0, %v8745_v12  ;;  %8772 = vtanh.f32 %v10327_v40 }
 0x285   : > { %v8749_v42 = vpop.eup %8748  ;;  %v1537_v0 = vmul.f32 %v10324_v32, %v10284_v34 }
 0x286   : > { %v7933_v44 = vpop.f32.mrf.mxu1  ;;  %v8751_v11 = vpop.eup %8750  ;;  %8774 = vrcp.f32 %v1412_v31 }
 0x287   : > { %1594 = vrot.lane.b32.xlu1 %v8749_v42, %s9717_s24  ;;  %v10332_v29 = vpop.eup %8752  ;;  %v10335_v16 = vadd.f32 %v7927_v35, %v1537_v0  ;;  %v1415_v34 = vadd.f32 1.0, %v8751_v11 }
 0x288   : > { %v1293_v13 = vpop.f32.mrf.mxu1  ;;  %v8755_v54 = vpop.eup %8754  ;;  %v1536_v56 = vmul.f32 %v10332_v29, %v1495_v18 }
 0x289   : > { %v10338_v21 = vpop.eup %8756  ;;  %8776 = vtanh.f32 %v10335_v16 }
 0x28a   : > { %v7936_v58 = vpop.f32.mrf.mxu1  ;;  %v10341_v60 = vpop.eup %8758  ;;  %v10343_v10 = vadd.f32 %v1536_v56, %v1273_v17  ;;  %8778 = vrcp.f32 %v1415_v34  ;;  %v1539_v37 = vmul.f32 %v10338_v21, %v10297_v46 }
 0x28b   : > { %1600 = vrot.lane.b32.xlu1 %v8755_v54, %s9717_s24  ;;  %v8761_v39 = vpop.eup %8760  ;;  %v1545_v35 = vmul.f32 %v10341_v60, %v1513_v14  ;;  %v1511_v54 = vpop.permute.xlu0 %1510 }
 0x28c   : > { %v1303_v25 = vpop.f32.mrf.mxu1  ;;  %v8763_v18 = vpop.eup %8762  ;;  %v1414_v17 = vadd.f32 1.0, %v8761_v39  ;;  %8780 = vtanh.f32 %v10343_v10  ;;  %v10355_v0 = vadd.f32 %v7930_v28, %v1539_v37 }
 0x28d   : > { %v10352_v36 = vpop.eup %8764 }
 0x28e   : > { %v7939_v20 = vpop.f32.mrf.mxu1  ;;  %v8767_v42 = vpop.eup %8766  ;;  %v1538_v31 = vmul.f32 %v10352_v36, %v1499_v22 }
 0x28f   : > { %v10349_v12 = vadd.f32 %v7939_v20, %v1545_v35  ;;  %1598 = vrot.lane.b32.xlu1 %v8763_v18, %s9717_s24  ;;  %v8769_v11 = vpop.eup %8768  ;;  %v1416_v46 = vadd.f32 1.0, %v8767_v42  ;;  %v10367_v39 = vpop.permute.xlu0 %1691 }
 0x290   : > { %v10360_v56 = vpop.eup %8770  ;;  %v10363_v14 = vadd.f32 %v1538_v31, %v1283_v4  ;;  %vm1738_vm4 = vcmp.eq.s32.totalorder %v10367_v39, 1 }
 0x291   : > { %8782 = vtanh.f32 %v10349_v12  ;;  %v8773_v34 = vpop.eup %8772  ;;  %v1541_v28 = vmul.f32 %v10360_v56, %v10311_v1 }
 0x292   : > { %8784 = vrcp.f32 %v1414_v17 }
 0x293   : > { %1604 = vrot.lane.b32.xlu1 %v8769_v11, %s9717_s24  ;;  %8786 = vtanh.f32 %v10355_v0  ;;  %v10370_v22 = vpop.eup %8774  ;;  %v10373_v35 = vadd.f32 %v7933_v44, %v1541_v28  ;;  %v10376_v4 = vpop.permute.xlu0 %1697 }
 0x294   : > { %8788 = vrcp.f32 %v1416_v46  ;;  %v1540_v20 = vmul.f32 %v10370_v22, %v1503_v33  ;;  %vm1740_vm6 = vcmp.eq.s32.totalorder %v10376_v4, 1 }
 0x295   : > { %8790 = vtanh.f32 %v10363_v14 }
 0x296   : > { %v8777_v18 = vpop.eup %8776  ;;  %8792 = vtanh.f32 %v10373_v35  ;;  %v10382_v17 = vadd.f32 %v1540_v20, %v1293_v13  ;;  %v1313_v20 = vpop.f32.mrf.mxu1 }
 0x297   : > { %1602 = vrot.lane.b32.xlu1 %v8773_v34, %s9717_s24  ;;  %v10379_v37 = vpop.eup %8778  ;;  %v10386_v44 = vpop.permute.xlu0 %1700 }
 0x298   : > { %v1543_v11 = vmul.f32 %v10379_v37, %v10322_v53  ;;  %8794 = vtanh.f32 %v10382_v17  ;;  %vm1741_vm5 = vcmp.eq.s32.totalorder %v10386_v44, 1 }
 0x299   : > { %v8781_v1 = vpop.eup %8780 }
 0x29a   : > { %v10393_v31 = vadd.f32 %v7936_v58, %v1543_v11 }
 0x29b   : > { %1608 = vrot.lane.b32.xlu1 %v8777_v18, %s9717_s24  ;;  %v10396_v34 = vpop.permute.xlu0 %1703 }
 0x29c   : > { %8796 = vtanh.f32 %v10393_v31  ;;  %vm1742_vm7 = vcmp.eq.s32.totalorder %v10396_v34, 1 }
 0x29e   : > { %v8783_v42 = vpop.eup %8782 }
 0x29f   : > { %1606 = vrot.lane.b32.xlu1 %v8781_v1, %s9717_s24  ;;  %1624 = vrot.lane.b32.xlu0 %v8783_v42, %s9717_s24  ;;  %v10390_v33 = vpop.eup %8784  ;;  %v1707_v42 = vpop.permute.xlu0 %1706 }
 0x2a0   : > { %v8787_v46 = vpop.eup %8786  ;;  %v1542_v13 = vmul.f32 %v10390_v33, %v1507_v15  ;;  %vm1743_vm2 = vcmp.eq.s32.totalorder %v1707_v42, 1 }
 0x2a1   : > { %v10399_v53 = vpop.eup %8788  ;;  %v10411_v15 = vsel %vm1743_vm2, %v10318_v19, 0.0  ;;  %v10421_v19 = vpop.permute.xlu1 %1694 }
 0x2a2   : > { %v10402_v28 = vadd.f32 %v1542_v13, %v1303_v25  ;;  %v8791_v18 = vpop.eup %8790  ;;  %v1544_v1 = vmul.f32 %v10399_v53, %v1511_v54  ;;  %vm1739_vm3 = vcmp.eq.s32.totalorder %v10421_v19, 1 }
 0x2a3   : > { %1612 = vrot.lane.b32.xlu1 %v8787_v46, %s9717_s24  ;;  %v8793_v11 = vpop.eup %8792 }
 0x2a4   : > { %8798 = vtanh.f32 %v10402_v28  ;;  %v10407_v58 = vadd.f32 %v1544_v1, %v1313_v20 }
 0x2a5   : > { %v8795_v25 = vpop.eup %8794 }
 0x2a6   : > { %8800 = vtanh.f32 %v10407_v58 }
 0x2a7   : > { %1610 = vrot.lane.b32.xlu1 %v8791_v18, %s9717_s24  ;;  %v10419_v18 = vpop.permute.xlu0 %1709 }
 0x2a8   : > { %vm1744_vm9 = vcmp.eq.s32.totalorder %v10419_v18, 1 }
 0x2a9   : > { %v8797_v54 = vpop.eup %8796 }
 0x2ab   : > { %1616 = vrot.lane.b32.xlu1 %v8793_v11, %s9717_s24  ;;  %v10423_v20 = vpop.permute.xlu0 %1712 }
 0x2ac   : > { %vm1745_vm8 = vcmp.eq.s32.totalorder %v10423_v20, 1 }
 0x2af   : > { %1614 = vrot.lane.b32.xlu1 %v8795_v25, %s9717_s24  ;;  %v10427_v25 = vpop.permute.xlu0 %1715 }
 0x2b0   : > { %vm1746_vm11 = vcmp.eq.s32.totalorder %v10427_v25, 1 }
 0x2b1   : > { %v8799_v46 = vpop.eup %8798 }
 0x2b3   : > { %1620 = vrot.lane.b32.xlu1 %v8797_v54, %s9717_s24  ;;  %v8801_v13 = vpop.eup %8800 }
 0x2b7   : > { %1618 = vrot.lane.b32.xlu1 %v8799_v46, %s9717_s24 }
 0x2bb   : > { %1622 = vrot.lane.b32.xlu1 %v8801_v13, %s9717_s24 }
 0x2f5   : > { %v1597_v1 = vpop.permute.xlu1 %1596 }
 0x2f6   : > { %v1643_v11 = vmul.f32 %v10279_v3, %v1597_v1  ;;  %v10441_v1 = vpop.permute.xlu0 %1718 }
 0x2f7   : > { %vm1747_vm10 = vcmp.eq.s32.totalorder %v10441_v1, 1 }
 0x2f8   : > { %v10431_v54 = vsel %vm1739_vm3, %v1643_v11, 0.0 }
 0x2f9   : > { %v1595_v46 = vpop.permute.xlu1 %1594  ;;  %1804 = vrot.lane.b32.xlu0 %v10431_v54, %s9720_s21 }
 0x2fa   : > { %v1642_v13 = vmul.f32 %v10282_v24, %v1595_v46 }
 0x2fc   : > { %v10439_v3 = vsel %vm1738_vm4, %v1642_v13, 0.0  ;;  %v10455_v13 = vpop.permute.xlu0 %1721 }
 0x2fd   : > { %13464 = vst [vmem:[#allocation21_spill] sm:$0xff] %v10439_v3  ;;  %v1601_v2 = vpop.permute.xlu1 %1600  ;;  %1802 = vrot.lane.b32.xlu1 %v10439_v3, %s9720_s21  ;;  %vm1748_vm13 = vcmp.eq.s32.totalorder %v10455_v13, 1 }
 0x2fe   : > { %v1645_v11 = vmul.f32 %v10293_v30, %v1601_v2 }
 0x300   : > { %v10449_v49 = vsel %vm1741_vm5, %v1645_v11, 0.0 }
 0x301   : > { %13465 = vst [vmem:[#allocation22_spill] sm:$0xff] %v10449_v49  ;;  %v1599_v24 = vpop.permute.xlu1 %1598  ;;  %1808 = vrot.lane.b32.xlu0 %v10449_v49, %s9720_s21  ;;  %v10467_v49 = vpop.permute.xlu0 %1724 }
 0x302   : > { %v1644_v46 = vmul.f32 %v10302_v51, %v1599_v24  ;;  %vm1749_vm12 = vcmp.eq.s32.totalorder %v10467_v49, 1  ;;  %v10607_v49 = vsel %vm1742_vm7, %v10327_v40, 0.0  ;;  %v10630_v40 = vsel %vm1738_vm4, %v10291_v41, 0.0 }
 0x303   : > { %13472 = vst [vmem:[#allocation29_spill] sm:$0xff] %v10607_v49  ;;  %13475 = vst [vmem:[#allocation32_spill] sm:$0xff] %v10630_v40 }
 0x304   : > { %v10459_v3 = vsel %vm1740_vm6, %v1644_v46, 0.0 }
 0x305   : > { %13466 = vst [vmem:[#allocation23_spill] sm:$0xff] %v10459_v3  ;;  %v1605_v2 = vpop.permute.xlu1 %1604  ;;  %1806 = vrot.lane.b32.xlu1 %v10459_v3, %s9720_s21  ;;  %v1728_v42 = vpop.permute.xlu0 %1727 }
 0x306   : > { %v1647_v30 = vmul.f32 %v10309_v9, %v1605_v2  ;;  %vm1750_vm15 = vcmp.eq.s32.totalorder %v1728_v42, 1 }
 0x307   : > { %v10554_v42 = vsel %vm1750_vm15, %v10402_v28, 0.0 }
 0x308   : > { %v10465_v11 = vsel %vm1743_vm2, %v1647_v30, 0.0 }
 0x309   : > { %v1603_v51 = vpop.permute.xlu1 %1602  ;;  %1812 = vrot.lane.b32.xlu0 %v10465_v11, %s9720_s21 }
 0x30a   : > { %v1646_v24 = vmul.f32 %v10315_v43, %v1603_v51 }
 0x30c   : > { %v10475_v46 = vsel %vm1742_vm7, %v1646_v24, 0.0 }
 0x30d   : > { %v1609_v3 = vpop.permute.xlu1 %1608  ;;  %1810 = vrot.lane.b32.xlu1 %v10475_v46, %s9720_s21 }
 0x30e   : > { %v1649_v9 = vmul.f32 %v10324_v32, %v1609_v3  ;;  %v1731_v32 = vpop.permute.xlu0 %1730 }
 0x30f   : > { %vm1751_vm14 = vcmp.eq.s32.totalorder %v1731_v32, 1 }
 0x310   : > { %v10483_v2 = vsel %vm1745_vm8, %v1649_v9, 0.0 }
 0x311   : > { %13467 = vst [vmem:[#allocation24_spill] sm:$0xff] %v10483_v2  ;;  %v1607_v43 = vpop.permute.xlu1 %1606  ;;  %1816 = vrot.lane.b32.xlu0 %v10483_v2, %s9720_s21 }
 0x312   : > { %v1648_v30 = vmul.f32 %v10332_v29, %v1607_v43 }
 0x314   : > { %v10491_v51 = vsel %vm1744_vm9, %v1648_v30, 0.0  ;;  %v1734_v30 = vpop.permute.xlu0 %1733 }
 0x315   : > { %13468 = vst [vmem:[#allocation25_spill] sm:$0xff] %v10491_v51  ;;  %v1613_v3 = vpop.permute.xlu1 %1612  ;;  %1814 = vrot.lane.b32.xlu1 %v10491_v51, %s9720_s21  ;;  %vm1752_vm2 = vcmp.eq.s32.totalorder %v1734_v30, 1  ;;  %v10665_v30 = vld [vmem:[%s9923_s17] sm:$0xff] }
 0x316   : > { %v1651_v24 = vmul.f32 %v10338_v21, %v1613_v3 }
 0x318   : > { %v10499_v9 = vsel %vm1747_vm10, %v1651_v24, 0.0 }
 0x319   : > { %13469 = vst [vmem:[#allocation26_spill] sm:$0xff] %v10499_v9  ;;  %v1611_v29 = vpop.permute.xlu1 %1610  ;;  %1820 = vrot.lane.b32.xlu0 %v10499_v9, %s9720_s21 }
 0x31a   : > { %v1650_v43 = vmul.f32 %v10352_v36, %v1611_v29  ;;  %v1737_v36 = vpop.permute.xlu0 %1736 }
 0x31b   : > { %vm1753_vm1 = vcmp.eq.s32.totalorder %v1737_v36, 1 }
 0x31c   : > { %v10507_v51 = vsel %vm1746_vm11, %v1650_v43, 0.0 }
 0x31d   : > { %13470 = vst [vmem:[#allocation27_spill] sm:$0xff] %v10507_v51  ;;  %v1617_v21 = vpop.permute.xlu1 %1616  ;;  %1818 = vrot.lane.b32.xlu1 %v10507_v51, %s9720_s21 }
 0x31e   : > { %v1653_v3 = vmul.f32 %v10360_v56, %v1617_v21  ;;  %v1625_v56 = vpop.permute.xlu0 %1624 }
 0x31f   : > { %v1657_v9 = vmul.f32 %v10341_v60, %v1625_v56  ;;  %v10545_v56 = vsel %vm1752_vm2, %v10407_v58, 0.0  ;;  %v10570_v58 = vsel %vm1751_vm14, %v10393_v31, 0.0  ;;  %v10593_v31 = vsel %vm1744_vm9, %v10343_v10, 0.0 }
 0x320   : > { %v10515_v24 = vsel %vm1749_vm12, %v1653_v3, 0.0  ;;  %v10612_v10 = vsel %vm1745_vm8, %v10335_v16, 0.0  ;;  %v10635_v16 = vsel %vm1741_vm5, %v10300_v50, 0.0 }
 0x321   : > { %13471 = vst [vmem:[#allocation28_spill] sm:$0xff] %v10515_v24  ;;  %v1615_v29 = vpop.permute.xlu1 %1614  ;;  %1824 = vrot.lane.b32.xlu0 %v10515_v24, %s9720_s21  ;;  %13473 = vst [vmem:[#allocation30_spill] sm:$0xff] %v10612_v10 }
 0x322   : > { %v1652_v43 = vmul.f32 %v10370_v22, %v1615_v29  ;;  %13476 = vst [vmem:[#allocation33_spill] sm:$0xff] %v10635_v16 }
 0x324   : > { %v10523_v51 = vsel %vm1748_vm13, %v1652_v43, 0.0  ;;  %v10535_v43 = vsel %vm1753_vm1, %v1657_v9, 0.0  ;;  %v10557_v9 = vsel %vm1753_vm1, %v10349_v12, 0.0  ;;  %v10579_v12 = vsel %vm1746_vm11, %v10363_v14, 0.0 }
 0x325   : > { %v1621_v21 = vpop.permute.xlu1 %1620  ;;  %1822 = vrot.lane.b32.xlu1 %v10523_v51, %s9720_s21  ;;  %v10598_v14 = vsel %vm1747_vm10, %v10355_v0, 0.0  ;;  %v10621_v0 = vsel %vm1740_vm6, %v10307_v23, 0.0  ;;  %v10644_v23 = vsel %vm1739_vm3, %v10288_v38, 0.0 }
 0x326   : > { %v1655_v3 = vmul.f32 %v10379_v37, %v1621_v21  ;;  %13474 = vst [vmem:[#allocation31_spill] sm:$0xff] %v10621_v0  ;;  %13477 = vst [vmem:[#allocation34_spill] sm:$0xff] %v10644_v23 }
 0x328   : > { %v10530_v24 = vsel %vm1751_vm14, %v1655_v3, 0.0 }
 0x329   : > { %v1619_v22 = vpop.permute.xlu1 %1618  ;;  %1828 = vrot.lane.b32.xlu0 %v10530_v24, %s9720_s21 }
 0x32a   : > { %v1654_v29 = vmul.f32 %v10390_v33, %v1619_v22 }
 0x32c   : > { %v10537_v2 = vsel %vm1750_vm15, %v1654_v29, 0.0 }
 0x32d   : > { %1832 = vrot.lane.b32.xlu0 %v10535_v43, %s9720_s21  ;;  %1826 = vrot.lane.b32.xlu1 %v10537_v2, %s9720_s21  ;;  %v1623_v60 = vpop.permute.xlu1 %1622 }
 0x32e   : > { %v1656_v37 = vmul.f32 %v10399_v53, %v1623_v60  ;;  %v10566_v53 = vsel %vm1748_vm13, %v10382_v17, 0.0  ;;  %v10584_v17 = vsel %vm1749_vm12, %v10373_v35, 0.0 }
 0x330   : > { %v10547_v33 = vsel %vm1752_vm2, %v1656_v37, 0.0 }
 0x331   : > { %2312 = vrot.lane.b32.xlu0 %v10545_v56, %s9720_s21  ;;  %1830 = vrot.lane.b32.xlu1 %v10547_v33, %s9720_s21 }
 0x335   : > { %2308 = vrot.lane.b32.xlu0 %v10554_v42, %s9720_s21  ;;  %2314 = vrot.lane.b32.xlu1 %v10557_v9, %s9720_s21 }
 0x339   : > { %2304 = vrot.lane.b32.xlu0 %v10566_v53, %s9720_s21  ;;  %2310 = vrot.lane.b32.xlu1 %v10570_v58, %s9720_s21 }
 0x33d   : > { %2300 = vrot.lane.b32.xlu0 %v10579_v12, %s9720_s21  ;;  %2306 = vrot.lane.b32.xlu1 %v10584_v17, %s9720_s21 }
 0x341   : > { %2296 = vrot.lane.b32.xlu0 %v10593_v31, %s9720_s21  ;;  %2302 = vrot.lane.b32.xlu1 %v10598_v14, %s9720_s21 }
 0x345   : > { %2292 = vrot.lane.b32.xlu0 %v10607_v49, %s9720_s21  ;;  %2298 = vrot.lane.b32.xlu1 %v10612_v10, %s9720_s21 }
 0x349   : > { %2288 = vrot.lane.b32.xlu0 %v10621_v0, %s9720_s21  ;;  %2294 = vrot.lane.b32.xlu1 %v10411_v15, %s9720_s21 }
 0x34d   : > { %2284 = vrot.lane.b32.xlu0 %v10630_v40, %s9720_s21  ;;  %2290 = vrot.lane.b32.xlu1 %v10635_v16, %s9720_s21 }
 0x351   : > { %2286 = vrot.lane.b32.xlu1 %v10644_v23, %s9720_s21 }
 0x36b   : > { %v1805_v39 = vpop.permute.xlu0 %1804 }
 0x36f   : > { %v1803_v41 = vpop.permute.xlu1 %1802 }
 0x370   : > { %7948 = vmatprep.mubr.msk.f32.mxu0 %vm492_vm0, %v1803_v41 }
 0x371   : > { %7949 = vmatmul.mubr.msk.f32.vlgmr.msra.gmra.mxu0 %vm492_vm0, %v1805_v39 }
 0x373   : > { %v1809_v35 = vpop.permute.xlu0 %1808 }
 0x377   : > { %v1807_v50 = vpop.permute.xlu1 %1806 }
 0x378   : > { %7951 = vmatprep.mubr.msk.f32.mxu0 %vm492_vm0, %v1807_v50 }
 0x379   : > { %7952 = vmatmul.mubr.msk.f32.gmra.mxu0 %vm492_vm0, %v1809_v35 }
 0x37b   : > { %v1813_v44 = vpop.permute.xlu0 %1812 }
 0x37f   : > { %v1811_v4 = vpop.permute.xlu1 %1810 }
 0x380   : > { %7954 = vmatprep.mubr.msk.f32.mxu0 %vm492_vm0, %v1811_v4 }
 0x381   : > { %7955 = vmatmul.mubr.msk.f32.gmra.mxu0 %vm492_vm0, %v1813_v44 }
 0x383   : > { %v1817_v34 = vpop.permute.xlu0 %1816 }
 0x387   : > { %v1815_v38 = vpop.permute.xlu1 %1814 }
 0x388   : > { %7957 = vmatprep.mubr.msk.f32.mxu0 %vm492_vm0, %v1815_v38  ;;  %v10687_v38 = vld [vmem:[%s13358_s5] ss:$0 sm:$0xff] }
 0x389   : > { %7958 = vmatmul.mubr.msk.f32.gmra.mxu0 %vm492_vm0, %v1817_v34 }
 0x38b   : > { %v1821_v18 = vpop.permute.xlu0 %1820 }
 0x38f   : > { %v1819_v28 = vpop.permute.xlu1 %1818 }
 0x390   : > { %7960 = vmatprep.mubr.msk.f32.mxu0 %vm492_vm0, %v1819_v28 }
 0x391   : > { %7961 = vmatmul.mubr.msk.f32.gmra.mxu0 %vm492_vm0, %v1821_v18 }
 0x393   : > { %v1825_v20 = vpop.permute.xlu0 %1824 }
 0x397   : > { %v1823_v19 = vpop.permute.xlu1 %1822 }
 0x398   : > { %7963 = vmatprep.mubr.msk.f32.mxu0 %vm492_vm0, %v1823_v19 }
 0x399   : > { %7964 = vmatmul.mubr.msk.f32.gmra.mxu0 %vm492_vm0, %v1825_v20 }
 0x39b   : > { %v1829_v25 = vpop.permute.xlu0 %1828 }
 0x39f   : > { %v1827_v1 = vpop.permute.xlu1 %1826  ;;  %v1833_v32 = vpop.permute.xlu0 %1832 }
 0x3a0   : > { %7966 = vmatprep.mubr.msk.f32.mxu0 %vm492_vm0, %v1827_v1 }
 0x3a1   : > { %7967 = vmatmul.mubr.msk.f32.gmra.mxu0 %vm492_vm0, %v1829_v25 }
 0x3a3   : > { %v1831_v13 = vpop.permute.xlu1 %1830 }
 0x3a4   : > { %7969 = vmatprep.mubr.msk.f32.mxu0 %vm492_vm0, %v1831_v13 }
 0x3a5   : > { %7970 = vmatmul.mubr.msk.f32.gmra.mxu0 %vm492_vm0, %v1833_v32 }
 0x3a6   : > { %8060 = vmatprep.mubr.f32.mxu0 %v10665_v30 }
 0x431   : > { %v10668_v36 = vpop.f32.mrf.mxu0 }
 0x433   : > { %v10670_v21 = vpop.f32.mrf.mxu0 }
 0x439   : > { %v10672_v3 = vpop.f32.mrf.mxu0 }
 0x43b   : > { %v10674_v22 = vpop.f32.mrf.mxu0 }
 0x441   : > { %v10676_v29 = vpop.f32.mrf.mxu0 }
 0x443   : > { %v10678_v60 = vpop.f32.mrf.mxu0 }
 0x449   : > { %v10680_v37 = vpop.f32.mrf.mxu0 }
 0x44b   : > { %v10682_v41 = vpop.f32.mrf.mxu0 }
 0x451   : > { %v7962_v39 = vpop.f32.mrf.mxu0 }
 0x452   : > { %v2020_v40 = vadd.f32 %v10687_v38, %v7962_v39 }
 0x453   : > { %v1972_v50 = vpop.f32.mrf.mxu0 }
 0x459   : > { %v7965_v35 = vpop.f32.mrf.mxu0 }
 0x45a   : > { %v2022_v28 = vadd.f32 %v10687_v38, %v7965_v35 }
 0x45b   : > { %v1982_v4 = vpop.f32.mrf.mxu0 }
 0x45c   : > { %v2021_v1 = vadd.f32 %v10687_v38, %v1982_v4  ;;  %v7129_v23 = vmul.f32 -1.442695, %v2022_v28  ;;  %v2018_v28 = vadd.f32 %v10687_v38, %v10680_v37 }
 0x45e   : > { %v7128_v49 = vmul.f32 -1.442695, %v2021_v1 }
 0x461   : > { %v7968_v44 = vpop.f32.mrf.mxu0 }
 0x462   : > { %v2024_v34 = vadd.f32 %v10687_v38, %v7968_v44 }
 0x463   : > { %v1992_v18 = vpop.f32.mrf.mxu0 }
 0x464   : > { %v7131_v19 = vmul.f32 -1.442695, %v2024_v34  ;;  %v2023_v20 = vadd.f32 %v10687_v38, %v1992_v18  ;;  %v2019_v34 = vadd.f32 %v10687_v38, %v1972_v50 }
 0x465   : > { %v7971_v25 = vpop.f32.mrf.mxu0 }
 0x466   : > { %v7130_v13 = vmul.f32 -1.442695, %v2023_v20  ;;  %v2026_v32 = vadd.f32 %v10687_v38, %v7971_v25  ;;  %7972 = vmatprep.subr.mxu1 %v7971_v25  ;;  %8802 = vpow2.f32 %v7131_v19  ;;  %v7127_v19 = vmul.f32 -1.442695, %v2020_v40 }
 0x467   : > { %v2002_v16 = vpop.f32.mrf.mxu0  ;;  %7973 = vmatpush3.msra.mxu1 %v7971_v25  ;;  %v2017_v25 = vadd.f32 %v10687_v38, %v10682_v41  ;;  %v2015_v40 = vadd.f32 %v10687_v38, %v10678_v60 }
 0x468   : > { %v7133_v0 = vmul.f32 -1.442695, %v2026_v32  ;;  %v2025_v10 = vadd.f32 %v10687_v38, %v2002_v16  ;;  %7974 = vmatprep.subr.mxu1 %v2002_v16  ;;  %8804 = vpow2.f32 %v7130_v13  ;;  %v7126_v13 = vmul.f32 -1.442695, %v2019_v34 }
 0x469   : > { %7975 = vmatpush3.msra.mxu1 %v2002_v16  ;;  %v7125_v16 = vmul.f32 -1.442695, %v2018_v28  ;;  %v7122_v1 = vmul.f32 -1.442695, %v2015_v40 }
 0x46a   : > { %8806 = vpow2.f32 %v7133_v0  ;;  %v7132_v20 = vmul.f32 -1.442695, %v2025_v10  ;;  %7976 = vmatprep.subr.mxu1 %v7968_v44  ;;  %v2014_v0 = vadd.f32 %v10687_v38, %v10672_v3  ;;  %v2016_v10 = vadd.f32 %v10687_v38, %v10676_v29 }
 0x46b   : > { %8808 = vpow2.f32 %v7129_v23  ;;  %7977 = vmatpush3.msra.mxu1 %v7968_v44  ;;  %v7124_v23 = vmul.f32 -1.442695, %v2017_v25  ;;  %v2315_v25 = vpop.permute.xlu1 %2314 }
 0x46c   : > { %8810 = vpow2.f32 %v7132_v20  ;;  %7978 = vmatprep.subr.mxu1 %v1992_v18  ;;  %v7121_v44 = vmul.f32 -1.442695, %v2014_v0 }
 0x46d   : > { %7979 = vmatpush3.msra.mxu1 %v1992_v18  ;;  %8812 = vpow2.f32 %v7128_v49  ;;  %v7123_v18 = vmul.f32 -1.442695, %v2016_v10 }
 0x46e   : > { %7980 = vmatprep.subr.mxu1 %v7965_v35  ;;  %8814 = vpow2.f32 %v7127_v19 }
 0x46f   : > { %7981 = vmatpush3.msra.mxu1 %v7965_v35  ;;  %8816 = vpow2.f32 %v7126_v13  ;;  %v2013_v35 = vadd.f32 %v10687_v38, %v10674_v22 }
 0x470   : > { %7982 = vmatprep.subr.mxu1 %v1982_v4  ;;  %8818 = vpow2.f32 %v7125_v16  ;;  %v10718_v16 = vpop.permute.xlu0 %2312 }
 0x471   : > { %7983 = vmatpush3.msra.mxu1 %v1982_v4  ;;  %8820 = vpow2.f32 %v7124_v23  ;;  %v2012_v4 = vadd.f32 %v10687_v38, %v10668_v36  ;;  %v7120_v13 = vmul.f32 -1.442695, %v2013_v35  ;;  %v2311_v35 = vpop.permute.xlu1 %2310 }
 0x472   : > { %7984 = vmatprep.subr.mxu1 %v7962_v39  ;;  %8822 = vpow2.f32 %v7121_v44 }
 0x473   : > { %7985 = vmatpush3.msra.mxu1 %v7962_v39  ;;  %v8803_v49 = vpop.eup %8802  ;;  %8824 = vpow2.f32 %v7123_v18  ;;  %v7119_v40 = vmul.f32 -1.442695, %v2012_v4 }
 0x474   : > { %7986 = vmatprep.subr.mxu1 %v1972_v50  ;;  %v2088_v20 = vadd.f32 1.0, %v8803_v49  ;;  %8826 = vpow2.f32 %v7122_v1 }
 0x475   : > { %7987 = vmatpush3.msra.mxu1 %v1972_v50  ;;  %v8805_v32 = vpop.eup %8804  ;;  %v2011_v50 = vadd.f32 %v10687_v38, %v10670_v21 }
 0x476   : > { %7988 = vmatprep.subr.mxu1 %v10680_v37  ;;  %v2087_v0 = vadd.f32 1.0, %v8805_v32  ;;  %v10726_v32 = vpop.permute.xlu0 %2308 }
 0x477   : > { %v8807_v34 = vpop.eup %8806  ;;  %7989 = vmatpush3.msra.mxu1 %v10680_v37  ;;  %v7118_v49 = vmul.f32 -1.442695, %v2011_v50 }
 0x478   : > { %v8809_v39 = vpop.eup %8808  ;;  %v2090_v28 = vadd.f32 1.0, %v8807_v34  ;;  %7990 = vmatprep.subr.mxu1 %v10682_v41 }
 0x479   : > { %v8811_v19 = vpop.eup %8810  ;;  %7991 = vmatpush3.msra.mxu1 %v10682_v41  ;;  %v2086_v23 = vadd.f32 1.0, %v8809_v39  ;;  %v2307_v39 = vpop.permute.xlu1 %2306 }
 0x47a   : > { %8828 = vrcp.f32 %v2090_v28  ;;  %v2089_v10 = vadd.f32 1.0, %v8811_v19  ;;  %7992 = vmatprep.subr.mxu1 %v10676_v29  ;;  %v8813_v37 = vpop.eup %8812  ;;  %v10734_v19 = vld [vmem:[%s9923_s17 + $0x8] sm:$0xff] }
 0x47b   : > { %8830 = vrcp.f32 %v2088_v20  ;;  %7993 = vmatpush3.msra.mxu1 %v10676_v29  ;;  %v8815_v44 = vpop.eup %8814  ;;  %v2085_v41 = vadd.f32 1.0, %v8813_v37 }
 0x47c   : > { %8832 = vrcp.f32 %v2089_v10  ;;  %7994 = vmatprep.subr.mxu1 %v10678_v60  ;;  %v8817_v18 = vpop.eup %8816  ;;  %v2084_v1 = vadd.f32 1.0, %v8815_v44 }
 0x47d   : > { %8834 = vpow2.f32 %v7120_v13  ;;  %7995 = vmatpush3.msra.mxu1 %v10678_v60  ;;  %v8819_v29 = vpop.eup %8818  ;;  %v2083_v60 = vadd.f32 1.0, %v8817_v18  ;;  %v2305_v13 = vpop.permute.xlu0 %2304 }
 0x47e   : > { %8836 = vrcp.f32 %v2087_v0  ;;  %7996 = vmatprep.subr.mxu1 %v10672_v3  ;;  %v8821_v34 = vpop.eup %8820  ;;  %v10741_v0 = vld [vmem:[%s9923_s17 + $0x10] sm:$0xff] }
 0x47f   : > { %8838 = vpow2.f32 %v7119_v40  ;;  %7997 = vmatpush3.msra.mxu1 %v10672_v3  ;;  %v8823_v4 = vpop.eup %8822  ;;  %v2082_v3 = vadd.f32 1.0, %v8819_v29  ;;  %v9579_v40 = vld [vmem:[%s13357_s4 + $0x10] sm:$0xff]  ;;  %v10754_v29 = vld [vmem:[%s9923_s17 + $0x20] sm:$0xff] }
 0x480   : > { %8840 = vrcp.f32 %v2086_v23  ;;  %7998 = vmatprep.subr.mxu1 %v10674_v22  ;;  %v8825_v20 = vpop.eup %8824 }
 0x481   : > { %8842 = vpow2.f32 %v7118_v49  ;;  %7999 = vmatpush3.msra.mxu1 %v10674_v22  ;;  %v8827_v28 = vpop.eup %8826  ;;  %v2081_v22 = vadd.f32 1.0, %v8821_v34  ;;  %v2080_v10 = vadd.f32 1.0, %v8825_v20 }
 0x482   : > { %8844 = vrcp.f32 %v2085_v41  ;;  %8000 = vmatprep.subr.mxu1 %v10668_v36  ;;  %v2079_v49 = vadd.f32 1.0, %v8827_v28  ;;  %v10748_v41 = vld [vmem:[%s9923_s17 + $0x18] sm:$0xff]  ;;  %v2301_v28 = vpop.permute.xlu0 %2300 }
 0x483   : > { %8001 = vmatpush3.msra.mxu1 %v10668_v36  ;;  %8846 = vrcp.f32 %v2084_v1  ;;  %v9577_v36 = vld [vmem:[%s13357_s4 + $0x18] sm:$0xff] }
 0x484   : > { %8002 = vmatprep.subr.mxu1 %v10670_v21  ;;  %8848 = vrcp.f32 %v2083_v60  ;;  %v9582_v60 = vld [vmem:[%s13357_s4 + $0x8] sm:$0xff] }
 0x485   : > { %8003 = vmatpush3.msra.mxu1 %v10670_v21  ;;  %8850 = vrcp.f32 %v2082_v3  ;;  %v2078_v3 = vadd.f32 1.0, %v8823_v4 }
 0x486   : > { %8005 = vmatmul.mubr.f32.vlgmr.msra.gmra.mxu1 %v10734_v19  ;;  %8084 = vmatprep.subr.mxu1 %v9577_v36  ;;  %8852 = vrcp.f32 %v2081_v22  ;;  %v9583_v22 = vld [vmem:[%s13357_s4] sm:$0xff] }
 0x487   : > { %v8829_v50 = vpop.eup %8828  ;;  %8007 = vmatprep.mubr.f32.mxu1 %v10741_v0  ;;  %8085 = vmatpush3.msra.mxu1 %v9577_v36  ;;  %8854 = vrcp.f32 %v2080_v10 }
 0x488   : > { %v8831_v21 = vpop.eup %8830  ;;  %v2347_v37 = vmul.f32 %v8829_v50, %v2315_v25  ;;  %8086 = vmatprep.subr.mxu1 %v9579_v40  ;;  %v2303_v25 = vpop.permute.xlu1 %2302  ;;  %8856 = vrcp.f32 %v2079_v49 }
 0x489   : > { %v8833_v23 = vpop.eup %8832  ;;  %8087 = vmatpush3.msra.mxu1 %v9579_v40  ;;  %v2345_v20 = vmul.f32 %v8831_v21, %v2311_v35  ;;  %v10771_v21 = vld [vmem:[%s9923_s17 + $0x30] sm:$0xff]  ;;  %8858 = vrcp.f32 %v2078_v3 }
 0x48a   : > { %v8835_v44 = vpop.eup %8834  ;;  %8008 = vmatmul.mubr.f32.gmra.mxu1 %v10748_v41  ;;  %2394 = vrot.lane.b32.xlu1 %v2347_v37, %s9717_s24  ;;  %v2346_v18 = vmul.f32 %v8833_v23, %v10718_v16  ;;  %v10765_v37 = vld [vmem:[%s9923_s17 + $0x28] sm:$0xff] }
 0x48b   : > { %v8837_v1 = vpop.eup %8836  ;;  %8010 = vmatprep.mubr.f32.mxu1 %v10754_v29  ;;  %8088 = vmatprep.subr.mxu1 %v9582_v60  ;;  %v2077_v50 = vadd.f32 1.0, %v8835_v44 }
 0x48c   : > { %v8839_v34 = vpop.eup %8838  ;;  %2392 = vrot.lane.b32.xlu0 %v2346_v18, %s9717_s24  ;;  %8089 = vmatpush3.msra.mxu1 %v9582_v60  ;;  %v2344_v35 = vmul.f32 %v8837_v1, %v10726_v32  ;;  %v2299_v44 = vpop.permute.xlu1 %2298  ;;  %v10776_v18 = vld [vmem:[%s9923_s17 + $0x38] sm:$0xff] }
 0x48d   : > { %v8841_v16 = vpop.eup %8840  ;;  %8090 = vmatprep.subr.mxu1 %v9583_v22  ;;  %v2076_v10 = vadd.f32 1.0, %v8839_v34  ;;  %8860 = vrcp.f32 %v2077_v50  ;;  %v2297_v60 = vpop.permute.xlu0 %2296  ;;  %v10781_v34 = vld [vmem:[%s9923_s17 + $0x40] sm:$0xff] }
 0x48e   : > { %v8843_v36 = vpop.eup %8842  ;;  %8011 = vmatmul.mubr.f32.gmra.mxu1 %v10765_v37  ;;  %2390 = vrot.lane.b32.xlu1 %v2345_v20, %s9717_s24  ;;  %v2343_v40 = vmul.f32 %v8841_v16, %v2307_v39  ;;  %v10786_v20 = vld [vmem:[%s9923_s17 + $0x48] sm:$0xff] }
 0x48f   : > { %v8845_v4 = vpop.eup %8844  ;;  %8013 = vmatprep.mubr.f32.mxu1 %v10771_v21  ;;  %8091 = vmatpush3.msra.mxu1 %v9583_v22  ;;  %v2075_v49 = vadd.f32 1.0, %v8843_v36  ;;  %8862 = vrcp.f32 %v2076_v10  ;;  %v10791_v36 = vld [vmem:[%s9923_s17 + $0x50] sm:$0xff] }
 0x490   : > { %2388 = vrot.lane.b32.xlu0 %v2344_v35, %s9717_s24  ;;  %v8847_v23 = vpop.eup %8846  ;;  %v2342_v32 = vmul.f32 %v8845_v4, %v2305_v13  ;;  %v2295_v22 = vpop.permute.xlu1 %2294  ;;  %v10796_v4 = vld [vmem:[%s9923_s17 + $0x58] sm:$0xff] }
 0x491   : > { %v8849_v1 = vpop.eup %8848  ;;  %v2341_v39 = vmul.f32 %v8847_v23, %v2303_v25  ;;  %8864 = vrcp.f32 %v2075_v49  ;;  %v2293_v35 = vpop.permute.xlu0 %2292 }
 0x492   : > { %8014 = vmatmul.mubr.f32.gmra.mxu1 %v10776_v18  ;;  %2386 = vrot.lane.b32.xlu1 %v2343_v40, %s9717_s24  ;;  %v8851_v3 = vpop.eup %8850  ;;  %v2340_v13 = vmul.f32 %v8849_v1, %v2301_v28  ;;  %v10801_v40 = vld [vmem:[%s9923_s17 + $0x60] sm:$0xff] }
 0x493   : > { %8016 = vmatprep.mubr.f32.mxu1 %v10781_v34  ;;  %v8853_v16 = vpop.eup %8852  ;;  %v2339_v25 = vmul.f32 %v8851_v3, %v2299_v44  ;;  %v10811_v3 = vld [vmem:[%s9923_s17 + $0x70] sm:$0xff] }
 0x494   : > { %2384 = vrot.lane.b32.xlu0 %v2342_v32, %s9717_s24  ;;  %v8855_v50 = vpop.eup %8854  ;;  %v2338_v28 = vmul.f32 %v8853_v16, %v2297_v60  ;;  %v2291_v49 = vpop.permute.xlu1 %2290  ;;  %v10806_v32 = vld [vmem:[%s9923_s17 + $0x68] sm:$0xff] }
 0x495   : > { %v8857_v10 = vpop.eup %8856  ;;  %v2337_v23 = vmul.f32 %v8855_v50, %v2295_v22  ;;  %v2289_v60 = vpop.permute.xlu0 %2288  ;;  %v10816_v22 = vld [vmem:[%s9923_s17 + $0x78] sm:$0xff] }
 0x496   : > { %8017 = vmatmul.mubr.f32.gmra.mxu1 %v10786_v20  ;;  %2382 = vrot.lane.b32.xlu1 %v2341_v39, %s9717_s24  ;;  %v8859_v44 = vpop.eup %8858  ;;  %v2336_v1 = vmul.f32 %v8857_v10, %v2293_v35 }
 0x497   : > { %8019 = vmatprep.mubr.f32.mxu1 %v10791_v36 }
 0x498   : > { %2380 = vrot.lane.b32.xlu0 %v2340_v13, %s9717_s24  ;;  %v2335_v13 = vmul.f32 %v8859_v44, %v2291_v49 }
 0x499   : > { %v2285_v10 = vpop.permute.xlu0 %2284 }
 0x49a   : > { %8020 = vmatmul.mubr.f32.gmra.mxu1 %v10796_v4  ;;  %2378 = vrot.lane.b32.xlu1 %v2339_v25, %s9717_s24  ;;  %v8861_v39 = vpop.eup %8860 }
 0x49b   : > { %8022 = vmatprep.mubr.f32.mxu1 %v10801_v40  ;;  %v2334_v25 = vmul.f32 %v8861_v39, %v2289_v60 }
 0x49c   : > { %2376 = vrot.lane.b32.xlu0 %v2338_v28, %s9717_s24  ;;  %v8863_v16 = vpop.eup %8862  ;;  %v2287_v28 = vpop.permute.xlu1 %2286 }
 0x49d   : > { %v2333_v35 = vmul.f32 %v8863_v16, %v2287_v28 }
 0x49e   : > { %8023 = vmatmul.mubr.f32.gmra.mxu1 %v10806_v32  ;;  %2374 = vrot.lane.b32.xlu1 %v2337_v23, %s9717_s24  ;;  %v8865_v50 = vpop.eup %8864 }
 0x49f   : > { %8025 = vmatprep.mubr.f32.mxu1 %v10811_v3  ;;  %v2332_v23 = vmul.f32 %v8865_v50, %v2285_v10 }
 0x4a0   : > { %2372 = vrot.lane.b32.xlu0 %v2336_v1, %s9717_s24 }
 0x4a2   : > { %8026 = vmatmul.mubr.f32.gmra.mxu1 %v10816_v22  ;;  %2370 = vrot.lane.b32.xlu1 %v2335_v13, %s9717_s24 }
 0x4a4   : > { %2368 = vrot.lane.b32.xlu0 %v2334_v25, %s9717_s24 }
 0x4a6   : > { %2366 = vrot.lane.b32.xlu1 %v2333_v35, %s9717_s24 }
 0x4a8   : > { %2364 = vrot.lane.b32.xlu0 %v2332_v23, %s9717_s24 }
 0x4fc   : > { %v2395_v44 = vpop.permute.xlu1 %2394 }
 0x4fd   : > { %8028 = vmatprep.subr.mxu0 %v2395_v44 }
 0x4fe   : > { %v2393_v49 = vpop.permute.xlu0 %2392  ;;  %8029 = vmatpush3.msra.mxu0 %v2395_v44 }
 0x4ff   : > { %8030 = vmatprep.subr.mxu0 %v2393_v49 }
 0x500   : > { %8031 = vmatpush3.msra.mxu0 %v2393_v49  ;;  %v2391_v1 = vpop.permute.xlu1 %2390 }
 0x501   : > { %8032 = vmatprep.subr.mxu0 %v2391_v1 }
 0x502   : > { %v2389_v39 = vpop.permute.xlu0 %2388  ;;  %8033 = vmatpush3.msra.mxu0 %v2391_v1 }
 0x503   : > { %8034 = vmatprep.subr.mxu0 %v2389_v39 }
 0x504   : > { %8035 = vmatpush3.msra.mxu0 %v2389_v39  ;;  %v2387_v60 = vpop.permute.xlu1 %2386 }
 0x505   : > { %8036 = vmatprep.subr.mxu0 %v2387_v60 }
 0x506   : > { %v2385_v13 = vpop.permute.xlu0 %2384  ;;  %8037 = vmatpush3.msra.mxu0 %v2387_v60 }
 0x507   : > { %8038 = vmatprep.subr.mxu0 %v2385_v13 }
 0x508   : > { %8039 = vmatpush3.msra.mxu0 %v2385_v13  ;;  %v2383_v16 = vpop.permute.xlu1 %2382 }
 0x509   : > { %8040 = vmatprep.subr.mxu0 %v2383_v16 }
 0x50a   : > { %v2381_v25 = vpop.permute.xlu0 %2380  ;;  %8041 = vmatpush3.msra.mxu0 %v2383_v16 }
 0x50b   : > { %8042 = vmatprep.subr.mxu0 %v2381_v25 }
 0x50c   : > { %8043 = vmatpush3.msra.mxu0 %v2381_v25  ;;  %v2379_v50 = vpop.permute.xlu1 %2378 }
 0x50d   : > { %8044 = vmatprep.subr.mxu0 %v2379_v50 }
 0x50e   : > { %v2377_v28 = vpop.permute.xlu0 %2376  ;;  %8045 = vmatpush3.msra.mxu0 %v2379_v50 }
 0x50f   : > { %8046 = vmatprep.subr.mxu0 %v2377_v28 }
 0x510   : > { %8047 = vmatpush3.msra.mxu0 %v2377_v28  ;;  %v2375_v35 = vpop.permute.xlu1 %2374 }
 0x511   : > { %8048 = vmatprep.subr.mxu0 %v2375_v35 }
 0x512   : > { %v2373_v10 = vpop.permute.xlu0 %2372  ;;  %8049 = vmatpush3.msra.mxu0 %v2375_v35 }
 0x513   : > { %8050 = vmatprep.subr.mxu0 %v2373_v10 }
 0x514   : > { %8051 = vmatpush3.msra.mxu0 %v2373_v10  ;;  %v2371_v23 = vpop.permute.xlu1 %2370 }
 0x515   : > { %8052 = vmatprep.subr.mxu0 %v2371_v23 }
 0x516   : > { %v2369_v44 = vpop.permute.xlu0 %2368  ;;  %8053 = vmatpush3.msra.mxu0 %v2371_v23 }
 0x517   : > { %8054 = vmatprep.subr.mxu0 %v2369_v44 }
 0x518   : > { %8055 = vmatpush3.msra.mxu0 %v2369_v44  ;;  %v2367_v49 = vpop.permute.xlu1 %2366 }
 0x519   : > { %8056 = vmatprep.subr.mxu0 %v2367_v49 }
 0x51a   : > { %v2365_v1 = vpop.permute.xlu0 %2364  ;;  %8057 = vmatpush3.msra.mxu0 %v2367_v49 }
 0x51b   : > { %8058 = vmatprep.subr.mxu0 %v2365_v1 }
 0x51c   : > { %8059 = vmatpush3.msra.mxu0 %v2365_v1 }
 0x51d   : > { %8061 = vmatmul.mubr.f32.vlgmr.msra.gmra.mxu0 %v10734_v19 }
 0x51e   : > { %8063 = vmatprep.mubr.f32.mxu0 %v10741_v0 }
 0x521   : > { %8064 = vmatmul.mubr.f32.gmra.mxu0 %v10748_v41 }
 0x522   : > { %8066 = vmatprep.mubr.f32.mxu0 %v10754_v29 }
 0x525   : > { %8067 = vmatmul.mubr.f32.gmra.mxu0 %v10765_v37 }
 0x526   : > { %8069 = vmatprep.mubr.f32.mxu0 %v10771_v21 }
 0x529   : > { %8070 = vmatmul.mubr.f32.gmra.mxu0 %v10776_v18 }
 0x52a   : > { %8072 = vmatprep.mubr.f32.mxu0 %v10781_v34 }
 0x52d   : > { %8073 = vmatmul.mubr.f32.gmra.mxu0 %v10786_v20 }
 0x52e   : > { %8075 = vmatprep.mubr.f32.mxu0 %v10791_v36 }
 0x531   : > { %8076 = vmatmul.mubr.f32.gmra.mxu0 %v10796_v4 }
 0x532   : > { %8078 = vmatprep.mubr.f32.mxu0 %v10801_v40 }
 0x535   : > { %8079 = vmatmul.mubr.f32.gmra.mxu0 %v10806_v32 }
 0x536   : > { %8081 = vmatprep.mubr.f32.mxu0 %v10811_v3 }
 0x539   : > { %8082 = vmatmul.mubr.f32.gmra.mxu0 %v10816_v22 }
 0x53a   : > { %8148 = vmatprep.mubr.f32.mxu0 %v10665_v30 }
 0x546   : > { %v8006_v19 = vpop.f32.mrf.mxu1 }
 0x547   : > { %v2558_v0 = vadd.f32 %v8006_v19, %v10083_v47  ;;  %v13480_v47 = vld [vmem:[#allocation21_spill] sm:$0xff] }
 0x548   : > { %v2189_v41 = vpop.f32.mrf.mxu1 }
 0x549   : > { %v10841_v29 = vadd.f32 %v10687_v38, %v2558_v0  ;;  %v2557_v37 = vadd.f32 %v2189_v41, %v10087_v26 }
 0x54a   : > { %v8009_v21 = vpop.f32.mrf.mxu1 }
 0x54b   : > { %8866 = vtanh.f32 %v10841_v29  ;;  %v10846_v18 = vadd.f32 %v10687_v38, %v2557_v37  ;;  %v2560_v34 = vadd.f32 %v8009_v21, %v10089_v52 }
 0x54c   : > { %v2199_v20 = vpop.f32.mrf.mxu1 }
 0x54d   : > { %v10850_v30 = vadd.f32 %v10687_v38, %v2560_v34  ;;  %v2559_v36 = vadd.f32 %v2199_v20, %v10091_v27  ;;  %8868 = vtanh.f32 %v10846_v18 }
 0x54e   : > { %v8012_v4 = vpop.f32.mrf.mxu1 }
 0x54f   : > { %v10855_v40 = vadd.f32 %v10687_v38, %v2559_v36  ;;  %v2562_v32 = vadd.f32 %v8012_v4, %v10093_v59  ;;  %8870 = vtanh.f32 %v10850_v30 }
 0x550   : > { %v2209_v3 = vpop.f32.mrf.mxu1 }
 0x551   : > { %v10860_v22 = vadd.f32 %v10687_v38, %v2562_v32  ;;  %v2561_v39 = vadd.f32 %v2209_v3, %v10095_v61  ;;  %8872 = vtanh.f32 %v10855_v40 }
 0x552   : > { %v8015_v60 = vpop.f32.mrf.mxu1 }
 0x553   : > { %v10865_v13 = vadd.f32 %v10687_v38, %v2561_v39  ;;  %v2564_v16 = vadd.f32 %v8015_v60, %v10097_v63  ;;  %8874 = vtanh.f32 %v10860_v22 }
 0x554   : > { %v2219_v25 = vpop.f32.mrf.mxu1 }
 0x555   : > { %v10870_v50 = vadd.f32 %v10687_v38, %v2564_v16  ;;  %v2563_v28 = vadd.f32 %v2219_v25, %v10101_v5  ;;  %8876 = vtanh.f32 %v10865_v13 }
 0x556   : > { %v8018_v35 = vpop.f32.mrf.mxu1 }
 0x557   : > { %v10875_v10 = vadd.f32 %v10687_v38, %v2563_v28  ;;  %v2566_v23 = vadd.f32 %v8018_v35, %v10105_v7  ;;  %8878 = vtanh.f32 %v10870_v50 }
 0x558   : > { %v8867_v44 = vpop.eup %8866  ;;  %v2229_v49 = vpop.f32.mrf.mxu1 }
 0x559   : > { %v10880_v1 = vadd.f32 %v10687_v38, %v2566_v23  ;;  %2719 = vrot.lane.b32.xlu0 %v8867_v44, %s9719_s25  ;;  %8880 = vtanh.f32 %v10875_v10  ;;  %v2565_v19 = vadd.f32 %v2229_v49, %v10109_v8 }
 0x55a   : > { %v8021_v0 = vpop.f32.mrf.mxu1  ;;  %v8869_v41 = vpop.eup %8868 }
 0x55b   : > { %8882 = vtanh.f32 %v10880_v1  ;;  %2717 = vrot.lane.b32.xlu1 %v8869_v41, %s9719_s25  ;;  %v10888_v34 = vadd.f32 %v10687_v38, %v2565_v19  ;;  %v2568_v20 = vadd.f32 %v8021_v0, %v10113_v45 }
 0x55c   : > { %v2239_v37 = vpop.f32.mrf.mxu1  ;;  %v8871_v21 = vpop.eup %8870 }
 0x55d   : > { %2723 = vrot.lane.b32.xlu0 %v8871_v21, %s9719_s25  ;;  %8884 = vtanh.f32 %v10888_v34  ;;  %v10895_v3 = vadd.f32 %v10687_v38, %v2568_v20  ;;  %v2567_v39 = vadd.f32 %v2239_v37, %v10117_v48 }
 0x55e   : > { %v8873_v36 = vpop.eup %8872  ;;  %v8024_v4 = vpop.f32.mrf.mxu1 }
 0x55f   : > { %2721 = vrot.lane.b32.xlu1 %v8873_v36, %s9719_s25  ;;  %v2570_v28 = vadd.f32 %v8024_v4, %v10121_v55  ;;  %8886 = vtanh.f32 %v10895_v3  ;;  %v10903_v35 = vadd.f32 %v10687_v38, %v2567_v39 }
 0x560   : > { %v8875_v32 = vpop.eup %8874  ;;  %v2249_v16 = vpop.f32.mrf.mxu1 }
 0x561   : > { %2727 = vrot.lane.b32.xlu0 %v8875_v32, %s9719_s25  ;;  %v10908_v19 = vadd.f32 %v10687_v38, %v2570_v28  ;;  %v2569_v0 = vadd.f32 %v2249_v16, %v10125_v57  ;;  %8888 = vtanh.f32 %v10903_v35 }
 0x562   : > { %v8877_v60 = vpop.eup %8876  ;;  %v8027_v44 = vpop.f32.mrf.mxu1 }
 0x563   : > { %2725 = vrot.lane.b32.xlu1 %v8877_v60, %s9719_s25  ;;  %v2572_v41 = vadd.f32 %v8027_v44, %v10129_v62  ;;  %8890 = vtanh.f32 %v10908_v19  ;;  %v10916_v21 = vadd.f32 %v10687_v38, %v2569_v0  ;;  %v421_v44 = vld [vmem:[%s10229_s29 + $0x90] sm:$0xff] }
 0x564   : > { %v8879_v25 = vpop.eup %8878  ;;  %v2259_v37 = vpop.f32.mrf.mxu1  ;;  %vm2895_vm5 = vcmp.gt.f32.partialorder %v421_v44, 0.0 }
 0x565   : > { %2731 = vrot.lane.b32.xlu0 %v8879_v25, %s9719_s25  ;;  %v2571_v20 = vadd.f32 %v2259_v37, %v10131_v6  ;;  %v10920_v4 = vadd.f32 %v10687_v38, %v2572_v41  ;;  %8892 = vtanh.f32 %v10916_v21  ;;  %v420_v25 = vld [vmem:[%s10229_s29 + $0x88] sm:$0xff]  ;;  %v422_v37 = vld [vmem:[%s10229_s29 + $0x98] sm:$0xff] }
 0x566   : > { %v8881_v23 = vpop.eup %8880  ;;  %vm2894_vm3 = vcmp.gt.f32.partialorder %v420_v25, 0.0  ;;  %vm2896_vm6 = vcmp.gt.f32.partialorder %v422_v37, 0.0  ;;  %v428_v37 = vld [vmem:[%s10229_s29 + $0xc8] sm:$0xff] }
 0x567   : > { %2729 = vrot.lane.b32.xlu1 %v8881_v23, %s9719_s25  ;;  %v10925_v32 = vadd.f32 %v10687_v38, %v2571_v20  ;;  %8894 = vtanh.f32 %v10920_v4  ;;  %v419_v38 = vld [vmem:[%s10229_s29 + $0x80] sm:$0xff]  ;;  %vm2902_vm12 = vcmp.gt.f32.partialorder %v428_v37, 0.0  ;;  %v7135_v37 = vmul.f32 -1.442695, %v10841_v29 }
 0x568   : > { %v8883_v49 = vpop.eup %8882  ;;  %vm2893_vm4 = vcmp.gt.f32.partialorder %v419_v38, 0.0 }
 0x569   : > { %2735 = vrot.lane.b32.xlu0 %v8883_v49, %s9719_s25  ;;  %8896 = vtanh.f32 %v10925_v32  ;;  %v13478_v49 = vmov 0  }
 0x56a   : > { %v8885_v36 = vpop.eup %8884  ;;  %v2910_v0 = vsel %vm2894_vm3, 1, %v13478_v49  ;;  %v2909_v20 = vsel %vm2893_vm4, 1, %v13478_v49  ;;  %8898 = vpow2.f32 %v7135_v37 }
 0x56b   : > { %2733 = vrot.lane.b32.xlu1 %v8885_v36, %s9719_s25  ;;  %v2911_v36 = vsel %vm2895_vm5, 1, %v13478_v49 }
 0x56c   : > { %v8887_v39 = vpop.eup %8886 }
 0x56d   : > { %2739 = vrot.lane.b32.xlu0 %v8887_v39, %s9719_s25  ;;  %v423_v39 = vld [vmem:[%s10229_s29 + $0xa0] sm:$0xff] }
 0x56e   : > { %v8889_v60 = vpop.eup %8888  ;;  %vm2897_vm7 = vcmp.gt.f32.partialorder %v423_v39, 0.0  ;;  %v2918_v39 = vsel %vm2902_vm12, 1, %v13478_v49 }
 0x56f   : > { %2737 = vrot.lane.b32.xlu1 %v8889_v60, %s9719_s25  ;;  %v2912_v60 = vsel %vm2896_vm6, 1, %v13478_v49  ;;  %v2913_v25 = vsel %vm2897_vm7, 1, %v13478_v49 }
 0x570   : > { %v8891_v16 = vpop.eup %8890 }
 0x571   : > { %2743 = vrot.lane.b32.xlu0 %v8891_v16, %s9719_s25  ;;  %v424_v16 = vld [vmem:[%s10229_s29 + $0xa8] sm:$0xff] }
 0x572   : > { %v8893_v28 = vpop.eup %8892  ;;  %vm2898_vm8 = vcmp.gt.f32.partialorder %v424_v16, 0.0 }
 0x573   : > { %2741 = vrot.lane.b32.xlu1 %v8893_v28, %s9719_s25  ;;  %v425_v28 = vld [vmem:[%s10229_s29 + $0xb0] sm:$0xff]  ;;  %v2914_v38 = vsel %vm2898_vm8, 1, %v13478_v49 }
 0x574   : > { %v8895_v23 = vpop.eup %8894  ;;  %vm2899_vm9 = vcmp.gt.f32.partialorder %v425_v28, 0.0 }
 0x575   : > { %2747 = vrot.lane.b32.xlu0 %v8895_v23, %s9719_s25  ;;  %v426_v23 = vld [vmem:[%s10229_s29 + $0xb8] sm:$0xff]  ;;  %v2915_v44 = vsel %vm2899_vm9, 1, %v13478_v49 }
 0x576   : > { %v8897_v41 = vpop.eup %8896  ;;  %vm2900_vm10 = vcmp.gt.f32.partialorder %v426_v23, 0.0 }
 0x577   : > { %2745 = vrot.lane.b32.xlu1 %v8897_v41, %s9719_s25  ;;  %v2916_v41 = vsel %vm2900_vm10, 1, %v13478_v49  ;;  %v8899_v29 = vpop.eup %8898 }
 0x579   : > { %2929 = vperm.xlu0 %8608, %v2910_v0   ;;  %v427_v0 = vld [vmem:[%s10229_s29 + $0xc0] sm:$0xff] }
 0x57a   : > { %vm2901_vm11 = vcmp.gt.f32.partialorder %v427_v0, 0.0 }
 0x57b   : > { %2926 = vperm.xlu1 %8609, %v2909_v20   ;;  %v2917_v20 = vsel %vm2901_vm11, 1, %v13478_v49 }
 0x57d   : > { %2932 = vperm.xlu0 %8608, %v2911_v36   ;;  %v429_v36 = vld [vmem:[%s10229_s29 + $0xd0] sm:$0xff] }
 0x57e   : > { %vm2903_vm13 = vcmp.gt.f32.partialorder %v429_v36, 0.0  ;;  %v7134_v36 = vmul.f32 -1.442695, %v10846_v18  ;;  %v2638_v18 = vadd.f32 1.0, %v8899_v29 }
 0x57f   : > { %v2919_v16 = vsel %vm2903_vm13, 1, %v13478_v49 }
 0x580   : > { %8900 = vpow2.f32 %v7134_v36 }
 0x581   : > { %2935 = vperm.xlu0 %8608, %v2912_v60   ;;  %v430_v60 = vld [vmem:[%s10229_s29 + $0xd8] sm:$0xff] }
 0x582   : > { %vm2904_vm14 = vcmp.gt.f32.partialorder %v430_v60, 0.0  ;;  %v7137_v60 = vmul.f32 -1.442695, %v10850_v30  ;;  %v7140_v30 = vmul.f32 -1.442695, %v10875_v10 }
 0x583   : > { %v2920_v28 = vsel %vm2904_vm14, 1, %v13478_v49 }
 0x584   : > { %8902 = vpow2.f32 %v7137_v60 }
 0x585   : > { %2938 = vperm.xlu0 %8608, %v2913_v25   ;;  %v431_v25 = vld [vmem:[%s10229_s29 + $0xe0] sm:$0xff] }
 0x586   : > { %vm2905_vm15 = vcmp.gt.f32.partialorder %v431_v25, 0.0  ;;  %v7139_v25 = vmul.f32 -1.442695, %v10860_v22  ;;  %v7143_v22 = vmul.f32 -1.442695, %v10880_v1 }
 0x587   : > { %v2921_v23 = vsel %vm2905_vm15, 1, %v13478_v49 }
 0x589   : > { %2941 = vperm.xlu0 %8608, %v2914_v38   ;;  %v432_v38 = vld [vmem:[%s10229_s29 + $0xe8] sm:$0xff] }
 0x58a   : > { %vm2906_vm1 = vcmp.gt.f32.partialorder %v432_v38, 0.0 }
 0x58b   : > { %v2922_v0 = vsel %vm2906_vm1, 1, %v13478_v49 }
 0x58d   : > { %2944 = vperm.xlu0 %8608, %v2915_v44   ;;  %v433_v44 = vld [vmem:[%s10229_s29 + $0xf0] sm:$0xff]  ;;  %v8901_v38 = vpop.eup %8900 }
 0x58e   : > { %vm2907_vm2 = vcmp.gt.f32.partialorder %v433_v44, 0.0 }
 0x591   : > { %2947 = vperm.xlu0 %8608, %v2916_v41   ;;  %v434_v41 = vld [vmem:[%s10229_s29 + $0xf8] sm:$0xff] }
 0x592   : > { %vm2908_vm3 = vcmp.gt.f32.partialorder %v434_v41, 0.0  ;;  %v8903_v41 = vpop.eup %8902 }
 0x595   : > { %2950 = vperm.xlu0 %8608, %v2917_v20   ;;  %v2923_v20 = vsel %vm2907_vm2, 1, %v13478_v49 }
 0x599   : > { %2953 = vperm.xlu0 %8608, %v2918_v39   ;;  %v2924_v39 = vsel %vm2908_vm3, 1, %v13478_v49 }
 0x59d   : > { %2956 = vperm.xlu0 %8608, %v2919_v16   ;;  %v7136_v16 = vmul.f32 -1.442695, %v10855_v40  ;;  %v2640_v40 = vadd.f32 1.0, %v8903_v41 }
 0x59f   : > { %8904 = vpow2.f32 %v7136_v16 }
 0x5a0   : > { %8906 = vpow2.f32 %v7139_v25  ;;  %v7145_v25 = vmul.f32 -1.442695, %v10895_v3 }
 0x5a1   : > { %2959 = vperm.xlu0 %8608, %v2920_v28   ;;  %v7138_v28 = vmul.f32 -1.442695, %v10865_v13  ;;  %v7149_v13 = vmul.f32 -1.442695, %v10920_v4 }
 0x5a3   : > { %8908 = vpow2.f32 %v7138_v28 }
 0x5a4   : > { %8910 = vrcp.f32 %v2638_v18 }
 0x5a5   : > { %2962 = vperm.xlu0 %8608, %v2921_v23   ;;  %v7141_v23 = vmul.f32 -1.442695, %v10870_v50  ;;  %v7142_v50 = vmul.f32 -1.442695, %v10888_v34 }
 0x5a7   : > { %8912 = vpow2.f32 %v7141_v23 }
 0x5a9   : > { %2965 = vperm.xlu0 %8608, %v2922_v0   ;;  %v2637_v0 = vadd.f32 1.0, %v8901_v38 }
 0x5ab   : > { %8914 = vrcp.f32 %v2637_v0  ;;  %v7144_v0 = vmul.f32 -1.442695, %v10903_v35 }
 0x5ac   : > { %v8905_v37 = vpop.eup %8904  ;;  %8916 = vpow2.f32 %v7140_v30 }
 0x5ad   : > { %2968 = vperm.xlu0 %8608, %v2923_v20   ;;  %8918 = vrcp.f32 %v2640_v40  ;;  %v2639_v36 = vadd.f32 1.0, %v8905_v37 }
 0x5ae   : > { %8920 = vpow2.f32 %v7143_v22 }
 0x5af   : > { %8922 = vpow2.f32 %v7149_v13 }
 0x5b0   : > { %8924 = vrcp.f32 %v2639_v36 }
 0x5b1   : > { %2971 = vperm.xlu0 %8608, %v2924_v39   ;;  %v8907_v39 = vpop.eup %8906  ;;  %8926 = vpow2.f32 %v7142_v50 }
 0x5b2   : > { %v8909_v16 = vpop.eup %8908  ;;  %v2642_v10 = vadd.f32 1.0, %v8907_v39  ;;  %v7147_v39 = vmul.f32 -1.442695, %v10908_v19 }
 0x5b3   : > { %v10979_v29 = vpop.eup %8910  ;;  %v2641_v1 = vadd.f32 1.0, %v8909_v16 }
 0x5b4   : > { %v8913_v4 = vpop.eup %8912  ;;  %8928 = vrcp.f32 %v2642_v10 }
 0x5b5   : > { %8930 = vpow2.f32 %v7145_v25  ;;  %v2644_v3 = vadd.f32 1.0, %v8913_v4 }
 0x5b6   : > { %8932 = vrcp.f32 %v2641_v1 }
 0x5b8   : > { %v10982_v18 = vpop.eup %8914 }
 0x5b9   : > { %v8917_v37 = vpop.eup %8916 }
 0x5ba   : > { %v2643_v10 = vadd.f32 1.0, %v8917_v37 }
 0x5cb   : > { %v2720_v44 = vpop.permute.xlu0 %2719 }
 0x5cc   : > { %v2766_v38 = vmul.f32 %v10979_v29, %v2720_v44  ;;  %v10993_v44 = vpop.eup %8918 }
 0x5cd   : > { %v2718_v28 = vpop.permute.xlu1 %2717  ;;  %v8921_v36 = vpop.eup %8920 }
 0x5ce   : > { %v2765_v41 = vmul.f32 %v10982_v18, %v2718_v28  ;;  %v8923_v16 = vpop.eup %8922 }
 0x5cf   : > { %v2724_v20 = vpop.permute.xlu0 %2723  ;;  %v11002_v4 = vpop.eup %8924 }
 0x5d0   : > { %v2768_v35 = vmul.f32 %v10993_v44, %v2724_v20  ;;  %v8927_v20 = vpop.eup %8926 }
 0x5d1   : > { %v2722_v50 = vpop.permute.xlu1 %2721  ;;  %v11009_v37 = vpop.eup %8928 }
 0x5d2   : > { %v2767_v19 = vmul.f32 %v11002_v4, %v2722_v50  ;;  %v8931_v50 = vpop.eup %8930 }
 0x5d3   : > { %v2728_v60 = vpop.permute.xlu0 %2727  ;;  %v11015_v49 = vpop.eup %8932 }
 0x5d7   : > { %v10984_v23 = vpop.permute.xlu0 %2731 }
 0x5db   : > { %v10997_v25 = vpop.permute.xlu0 %2735 }
 0x5dd   : > { %v8062_v34 = vpop.f32.mrf.mxu0 }
 0x5de   : > { %v10988_v30 = vadd.f32 %v8062_v34, %v2766_v38  ;;  %v2646_v38 = vadd.f32 1.0, %v8921_v36 }
 0x5df   : > { %v2478_v40 = vpop.f32.mrf.mxu0 }
 0x5e0   : > { %8934 = vtanh.f32 %v10988_v30  ;;  %v10991_v22 = vadd.f32 %v2765_v41, %v2478_v40  ;;  %v7146_v41 = vmul.f32 -1.442695, %v10916_v21  ;;  %v2726_v21 = vpop.permute.xlu1 %2725 }
 0x5e1   : > { %v8065_v13 = vpop.f32.mrf.mxu0  ;;  %8936 = vpow2.f32 %v7144_v0  ;;  %v2652_v0 = vadd.f32 1.0, %v8923_v16  ;;  %v7148_v16 = vmul.f32 -1.442695, %v10925_v32 }
 0x5e2   : > { %8938 = vrcp.f32 %v2644_v3  ;;  %v11000_v28 = vadd.f32 %v8065_v13, %v2768_v35  ;;  %v11011_v13 = vpop.permute.xlu0 %2739  ;;  %v2645_v35 = vadd.f32 1.0, %v8927_v20  ;;  %v2769_v20 = vmul.f32 %v11015_v49, %v2726_v21 }
 0x5e3   : > { %v2488_v1 = vpop.f32.mrf.mxu0  ;;  %8940 = vtanh.f32 %v10991_v22 }
 0x5e4   : > { %8942 = vpow2.f32 %v7147_v39  ;;  %v11007_v40 = vadd.f32 %v2767_v19, %v2488_v1  ;;  %v2770_v39 = vmul.f32 %v11009_v37, %v2728_v60  ;;  %v2730_v21 = vpop.permute.xlu1 %2729 }
 0x5e5   : > { %v8068_v34 = vpop.f32.mrf.mxu0  ;;  %8944 = vrcp.f32 %v2643_v10 }
 0x5e6   : > { %8946 = vtanh.f32 %v11000_v28  ;;  %v11018_v1 = vadd.f32 %v8068_v34, %v2770_v39 }
 0x5e7   : > { %v2498_v3 = vpop.f32.mrf.mxu0  ;;  %8948 = vrcp.f32 %v2646_v38 }
 0x5e8   : > { %8950 = vrcp.f32 %v2652_v0  ;;  %v2648_v0 = vadd.f32 1.0, %v8931_v50  ;;  %v11027_v62 = vadd.f32 %v2769_v20, %v2498_v3 }
 0x5e9   : > { %v8071_v36 = vpop.f32.mrf.mxu0  ;;  %8952 = vpow2.f32 %v7146_v41  ;;  %v11022_v41 = vpop.permute.xlu0 %2743 }
 0x5ea   : > { %8954 = vtanh.f32 %v11007_v40 }
 0x5eb   : > { %v2508_v10 = vpop.f32.mrf.mxu0  ;;  %8956 = vrcp.f32 %v2645_v35 }
 0x5ec   : > { %8958 = vpow2.f32 %v7148_v16 }
 0x5ed   : > { %v8935_v38 = vpop.eup %8934  ;;  %v8074_v19 = vpop.f32.mrf.mxu0  ;;  %8960 = vtanh.f32 %v11018_v1 }
 0x5ee   : > { %2831 = vrot.lane.b32.xlu1 %v8935_v38, %s9717_s24  ;;  %v8937_v60 = vpop.eup %8936  ;;  %8962 = vrcp.f32 %v2648_v0  ;;  %v2748_v48 = vpop.permute.xlu0 %2747 }
 0x5ef   : > { %v2518_v32 = vpop.f32.mrf.mxu0  ;;  %v11024_v6 = vpop.eup %8938  ;;  %v2647_v50 = vadd.f32 1.0, %v8937_v60  ;;  %8964 = vtanh.f32 %v11027_v62 }
 0x5f0   : > { %v8941_v34 = vpop.eup %8940  ;;  %v2772_v35 = vmul.f32 %v11024_v6, %v10984_v23 }
 0x5f1   : > { %v8077_v39 = vpop.f32.mrf.mxu0  ;;  %v8943_v38 = vpop.eup %8942  ;;  %8966 = vrcp.f32 %v2647_v50 }
 0x5f2   : > { %2829 = vrot.lane.b32.xlu1 %v8941_v34, %s9717_s24  ;;  %v11032_v57 = vpop.eup %8944  ;;  %v11035_v55 = vadd.f32 %v8071_v36, %v2772_v35  ;;  %v2650_v23 = vadd.f32 1.0, %v8943_v38  ;;  %v2734_v50 = vpop.permute.xlu1 %2733 }
 0x5f3   : > { %v2528_v16 = vpop.f32.mrf.mxu0  ;;  %v8947_v3 = vpop.eup %8946  ;;  %v2771_v20 = vmul.f32 %v11032_v57, %v2730_v21 }
 0x5f4   : > { %v11038_v8 = vpop.eup %8948  ;;  %8968 = vtanh.f32 %v11035_v55 }
 0x5f5   : > { %v8080_v45 = vpop.f32.mrf.mxu0  ;;  %v11041_v34 = vpop.eup %8950  ;;  %v11043_v60 = vadd.f32 %v2771_v20, %v2508_v10  ;;  %8970 = vrcp.f32 %v2650_v23  ;;  %v2774_v5 = vmul.f32 %v11038_v8, %v10997_v25 }
 0x5f6   : > { %2835 = vrot.lane.b32.xlu1 %v8947_v3, %s9717_s24  ;;  %v8953_v7 = vpop.eup %8952  ;;  %v2780_v36 = vmul.f32 %v11041_v34, %v2748_v48 }
 0x5f7   : > { %v2538_v0 = vpop.f32.mrf.mxu0  ;;  %v8955_v35 = vpop.eup %8954  ;;  %v2649_v10 = vadd.f32 1.0, %v8953_v7  ;;  %8972 = vtanh.f32 %v11043_v60  ;;  %v11055_v48 = vadd.f32 %v8074_v19, %v2774_v5 }
 0x5f8   : > { %v11052_v3 = vpop.eup %8956  ;;  %v2738_v19 = vpop.permute.xlu1 %2737 }
 0x5f9   : > { %v8083_v21 = vpop.f32.mrf.mxu0  ;;  %v8959_v20 = vpop.eup %8958  ;;  %v2773_v23 = vmul.f32 %v11052_v3, %v2734_v50 }
 0x5fa   : > { %v11049_v38 = vadd.f32 %v8083_v21, %v2780_v36  ;;  %2833 = vrot.lane.b32.xlu1 %v8955_v35, %s9717_s24  ;;  %v8961_v63 = vpop.eup %8960  ;;  %v2651_v25 = vadd.f32 1.0, %v8959_v20  ;;  %v11065_v35 = vpop.permute.xlu0 %2929 }
 0x5fb   : > { %v11060_v36 = vpop.eup %8962  ;;  %v11063_v7 = vadd.f32 %v2773_v23, %v2518_v32  ;;  %v2548_v26 = vpop.f32.mrf.mxu0  ;;  %vm2974_vm5 = vcmp.eq.s32.totalorder %v11065_v35, 1 }
 0x5fc   : > { %8974 = vtanh.f32 %v11049_v38  ;;  %v8965_v21 = vpop.eup %8964  ;;  %v2776_v5 = vmul.f32 %v11060_v36, %v11011_v13  ;;  %v2742_v59 = vpop.permute.xlu1 %2741 }
 0x5fd   : > { %8976 = vrcp.f32 %v2649_v10 }
 0x5fe   : > { %2839 = vrot.lane.b32.xlu1 %v8961_v63, %s9717_s24  ;;  %8978 = vtanh.f32 %v11055_v48  ;;  %v11070_v50 = vpop.eup %8966  ;;  %v11073_v63 = vadd.f32 %v8077_v39, %v2776_v5  ;;  %v11075_v10 = vpop.permute.xlu0 %2932 }
 0x5ff   : > { %8980 = vrcp.f32 %v2651_v25  ;;  %v2775_v20 = vmul.f32 %v11070_v50, %v2738_v19  ;;  %vm2975_vm8 = vcmp.eq.s32.totalorder %v11075_v10, 1 }
 0x600   : > { %8982 = vtanh.f32 %v11063_v7  ;;  %v2746_v27 = vpop.permute.xlu1 %2745 }
 0x601   : > { %v8969_v32 = vpop.eup %8968  ;;  %8984 = vtanh.f32 %v11073_v63  ;;  %v11082_v25 = vadd.f32 %v2775_v20, %v2528_v16 }
 0x602   : > { %2837 = vrot.lane.b32.xlu1 %v8965_v21, %s9717_s24  ;;  %v11079_v23 = vpop.eup %8970  ;;  %v11084_v21 = vpop.permute.xlu0 %2935 }
 0x603   : > { %v2778_v39 = vmul.f32 %v11079_v23, %v11022_v41  ;;  %8986 = vtanh.f32 %v11082_v25  ;;  %vm2976_vm7 = vcmp.eq.s32.totalorder %v11084_v21, 1 }
 0x604   : > { %v8973_v13 = vpop.eup %8972 }
 0x605   : > { %v11093_v19 = vadd.f32 %v8080_v45, %v2778_v39 }
 0x606   : > { %2843 = vrot.lane.b32.xlu1 %v8969_v32, %s9717_s24  ;;  %v11095_v32 = vpop.permute.xlu0 %2938 }
 0x607   : > { %8988 = vtanh.f32 %v11093_v19  ;;  %vm2977_vm9 = vcmp.eq.s32.totalorder %v11095_v32, 1 }
 0x609   : > { %v8975_v61 = vpop.eup %8974 }
 0x60a   : > { %2859 = vrot.lane.b32.xlu0 %v8975_v61, %s9717_s24  ;;  %2841 = vrot.lane.b32.xlu1 %v8973_v13, %s9717_s24  ;;  %v11090_v5 = vpop.eup %8976  ;;  %v2942_v41 = vpop.permute.xlu0 %2941 }
 0x60b   : > { %v8979_v16 = vpop.eup %8978  ;;  %v2777_v20 = vmul.f32 %v11090_v5, %v2742_v59  ;;  %vm2978_vm4 = vcmp.eq.s32.totalorder %v2942_v41, 1 }
 0x60c   : > { %v11099_v52 = vpop.eup %8980  ;;  %v11109_v59 = vsel %vm2978_vm4, %v11018_v1, %v10411_v15 }
 0x60d   : > { %v11102_v61 = vadd.f32 %v2777_v20, %v2538_v0  ;;  %v8983_v13 = vpop.eup %8982  ;;  %v2779_v45 = vmul.f32 %v11099_v52, %v2746_v27 }
 0x60e   : > { %2847 = vrot.lane.b32.xlu1 %v8979_v16, %s9717_s24  ;;  %v8985_v16 = vpop.eup %8984  ;;  %v11120_v1 = vpop.permute.xlu0 %2944 }
 0x60f   : > { %8990 = vtanh.f32 %v11102_v61  ;;  %v11112_v39 = vadd.f32 %v2779_v45, %v2548_v26  ;;  %v11122_v26 = vpop.permute.xlu1 %2926  ;;  %vm2979_vm11 = vcmp.eq.s32.totalorder %v11120_v1, 1 }
 0x610   : > { %v8987_v0 = vpop.eup %8986  ;;  %vm2973_vm6 = vcmp.eq.s32.totalorder %v11122_v26, 1 }
 0x611   : > { %8992 = vtanh.f32 %v11112_v39 }
 0x612   : > { %2845 = vrot.lane.b32.xlu1 %v8983_v13, %s9717_s24  ;;  %v11124_v13 = vpop.permute.xlu0 %2947 }
 0x613   : > { %vm2980_vm10 = vcmp.eq.s32.totalorder %v11124_v13, 1 }
 0x614   : > { %v8989_v27 = vpop.eup %8988 }
 0x616   : > { %2851 = vrot.lane.b32.xlu1 %v8985_v16, %s9717_s24 }
 0x61a   : > { %2849 = vrot.lane.b32.xlu1 %v8987_v0, %s9717_s24  ;;  %v11128_v0 = vpop.permute.xlu0 %2950 }
 0x61b   : > { %vm2981_vm13 = vcmp.eq.s32.totalorder %v11128_v0, 1 }
 0x61c   : > { %v8991_v20 = vpop.eup %8990 }
 0x61e   : > { %2855 = vrot.lane.b32.xlu1 %v8989_v27, %s9717_s24  ;;  %v8993_v15 = vpop.eup %8992 }
 0x622   : > { %2853 = vrot.lane.b32.xlu1 %v8991_v20, %s9717_s24 }
 0x626   : > { %2857 = vrot.lane.b32.xlu1 %v8993_v15, %s9717_s24 }
 0x660   : > { %v2832_v45 = vpop.permute.xlu1 %2831 }
 0x661   : > { %v2878_v16 = vmul.f32 %v10979_v29, %v2832_v45  ;;  %v11144_v45 = vpop.permute.xlu0 %2953 }
 0x662   : > { %vm2982_vm12 = vcmp.eq.s32.totalorder %v11144_v45, 1 }
 0x663   : > { %v11133_v27 = vsel %vm2974_vm5, %v2878_v16, %v10431_v54 }
 0x664   : > { %13479 = vst [vmem:[#allocation35_spill] sm:$0xff] %v11133_v27  ;;  %3039 = vrot.lane.b32.xlu0 %v11133_v27, %s9720_s21  ;;  %v2830_v20 = vpop.permute.xlu1 %2829  ;;  %v13482_v27 = vld [vmem:[#allocation22_spill] sm:$0xff] }
 0x665   : > { %v2877_v15 = vmul.f32 %v10982_v18, %v2830_v20 }
 0x667   : > { %v11142_v29 = vsel %vm2973_vm6, %v2877_v15, %v13480_v47  ;;  %v11159_v15 = vpop.permute.xlu0 %2956 }
 0x668   : > { %13481 = vst [vmem:[#allocation21_spill] sm:$0xff] %v11142_v29  ;;  %3037 = vrot.lane.b32.xlu1 %v11142_v29, %s9720_s21  ;;  %v2836_v54 = vpop.permute.xlu1 %2835  ;;  %v13484_v29 = vld [vmem:[#allocation23_spill] sm:$0xff]  ;;  %vm2983_vm15 = vcmp.eq.s32.totalorder %v11159_v15, 1 }
 0x669   : > { %v2880_v16 = vmul.f32 %v10993_v44, %v2836_v54  ;;  %v11397_v15 = vld [vmem:[%s9923_s17] sm:$0xff] }
 0x66b   : > { %v11153_v18 = vsel %vm2976_vm7, %v2880_v16, %v13482_v27 }
 0x66c   : > { %13483 = vst [vmem:[#allocation22_spill] sm:$0xff] %v11153_v18  ;;  %3043 = vrot.lane.b32.xlu0 %v11153_v18, %s9720_s21  ;;  %v2834_v47 = vpop.permute.xlu1 %2833 }
 0x66d   : > { %v2879_v20 = vmul.f32 %v11002_v4, %v2834_v47  ;;  %v11173_v4 = vpop.permute.xlu0 %2959 }
 0x66e   : > { %vm2984_vm14 = vcmp.eq.s32.totalorder %v11173_v4, 1 }
 0x66f   : > { %v11164_v44 = vsel %vm2975_vm8, %v2879_v20, %v13484_v29  ;;  %v13485_v20 = vld [vmem:[#allocation24_spill] sm:$0xff] }
 0x670   : > { %3041 = vrot.lane.b32.xlu1 %v11164_v44, %s9720_s21  ;;  %v2840_v27 = vpop.permute.xlu1 %2839 }
 0x671   : > { %v2882_v54 = vmul.f32 %v11009_v37, %v2840_v27  ;;  %v2963_v41 = vpop.permute.xlu0 %2962 }
 0x672   : > { %vm2985_vm2 = vcmp.eq.s32.totalorder %v2963_v41, 1 }
 0x673   : > { %v11171_v16 = vsel %vm2978_vm4, %v2882_v54, %v10465_v11 }
 0x674   : > { %3047 = vrot.lane.b32.xlu0 %v11171_v16, %s9720_s21  ;;  %v2838_v47 = vpop.permute.xlu1 %2837 }
 0x675   : > { %v2881_v18 = vmul.f32 %v11015_v49, %v2838_v47  ;;  %v2966_v54 = vpop.permute.xlu0 %2965 }
 0x676   : > { %vm2986_vm1 = vcmp.eq.s32.totalorder %v2966_v54, 1 }
 0x677   : > { %v11182_v29 = vsel %vm2977_vm9, %v2881_v18, %v10475_v46  ;;  %v13486_v18 = vld [vmem:[#allocation25_spill] sm:$0xff] }
 0x678   : > { %3045 = vrot.lane.b32.xlu1 %v11182_v29, %s9720_s21  ;;  %v2844_v11 = vpop.permute.xlu1 %2843 }
 0x679   : > { %v2884_v37 = vmul.f32 %v11024_v6, %v2844_v11 }
 0x67b   : > { %v11191_v49 = vsel %vm2980_vm10, %v2884_v37, %v13485_v20  ;;  %v13487_v37 = vld [vmem:[#allocation26_spill] sm:$0xff] }
 0x67c   : > { %3051 = vrot.lane.b32.xlu0 %v11191_v49, %s9720_s21  ;;  %v2842_v27 = vpop.permute.xlu1 %2841 }
 0x67d   : > { %v2883_v46 = vmul.f32 %v11032_v57, %v2842_v27 }
 0x67f   : > { %v11200_v6 = vsel %vm2979_vm11, %v2883_v46, %v13486_v18  ;;  %v2969_v46 = vpop.permute.xlu0 %2968  ;;  %v13489_v18 = vld [vmem:[#allocation27_spill] sm:$0xff] }
 0x680   : > { %3049 = vrot.lane.b32.xlu1 %v11200_v6, %s9720_s21  ;;  %v2848_v47 = vpop.permute.xlu1 %2847  ;;  %vm2987_vm4 = vcmp.eq.s32.totalorder %v2969_v46, 1 }
 0x681   : > { %v2886_v11 = vmul.f32 %v11038_v8, %v2848_v47 }
 0x683   : > { %v11209_v57 = vsel %vm2982_vm12, %v2886_v11, %v13487_v37  ;;  %v13490_v37 = vld [vmem:[#allocation28_spill] sm:$0xff] }
 0x684   : > { %13488 = vst [vmem:[#allocation23_spill] sm:$0xff] %v11209_v57  ;;  %3055 = vrot.lane.b32.xlu0 %v11209_v57, %s9720_s21  ;;  %v2846_v20 = vpop.permute.xlu1 %2845 }
 0x685   : > { %v2885_v27 = vmul.f32 %v11052_v3, %v2846_v20  ;;  %v2972_v20 = vpop.permute.xlu0 %2971 }
 0x686   : > { %vm2988_vm3 = vcmp.eq.s32.totalorder %v2972_v20, 1 }
 0x687   : > { %v11218_v8 = vsel %vm2981_vm13, %v2885_v27, %v13489_v18 }
 0x688   : > { %3053 = vrot.lane.b32.xlu1 %v11218_v8, %s9720_s21  ;;  %v2852_v47 = vpop.permute.xlu1 %2851 }
 0x689   : > { %v2888_v11 = vmul.f32 %v11060_v36, %v2852_v47  ;;  %v2860_v18 = vpop.permute.xlu0 %2859 }
 0x68b   : > { %v11227_v3 = vsel %vm2984_vm14, %v2888_v11, %v13490_v37  ;;  %v2892_v37 = vmul.f32 %v11041_v34, %v2860_v18 }
 0x68c   : > { %3059 = vrot.lane.b32.xlu0 %v11227_v3, %s9720_s21  ;;  %v2850_v57 = vpop.permute.xlu1 %2849 }
 0x68d   : > { %v2887_v27 = vmul.f32 %v11070_v50, %v2850_v57 }
 0x68f   : > { %v11236_v36 = vsel %vm2983_vm15, %v2887_v27, %v10523_v51  ;;  %v11250_v27 = vsel %vm2988_vm3, %v2892_v37, %v10535_v43 }
 0x690   : > { %3057 = vrot.lane.b32.xlu1 %v11236_v36, %s9720_s21  ;;  %v2856_v47 = vpop.permute.xlu1 %2855 }
 0x691   : > { %v2890_v11 = vmul.f32 %v11079_v23, %v2856_v47 }
 0x693   : > { %v11244_v50 = vsel %vm2986_vm1, %v2890_v11, %v10530_v24 }
 0x694   : > { %3063 = vrot.lane.b32.xlu0 %v11244_v50, %s9720_s21  ;;  %v2854_v57 = vpop.permute.xlu1 %2853 }
 0x695   : > { %v2889_v51 = vmul.f32 %v11090_v5, %v2854_v57  ;;  %v11262_v5 = vsel %vm2987_vm4, %v11112_v39, %v10545_v56  ;;  %v11287_v56 = vsel %vm2983_vm15, %v11082_v25, %v10566_v53  ;;  %v11318_v53 = vsel %vm2979_vm11, %v11043_v60, %v10593_v31  ;;  %v13492_v31 = vld [vmem:[#allocation30_spill] sm:$0xff] }
 0x696   : > { %v11340_v60 = vsel %vm2980_vm10, %v11035_v55, %v13492_v31  ;;  %v13496_v55 = vld [vmem:[#allocation32_spill] sm:$0xff] }
 0x697   : > { %v11253_v23 = vsel %vm2985_vm2, %v2889_v51, %v10537_v2  ;;  %v11273_v2 = vsel %vm2985_vm2, %v11102_v61, %v10554_v42  ;;  %v11302_v42 = vsel %vm2981_vm13, %v11063_v7, %v10579_v12  ;;  %v13491_v12 = vld [vmem:[#allocation29_spill] sm:$0xff]  ;;  %13493 = vst [vmem:[#allocation24_spill] sm:$0xff] %v11340_v60 }
 0x698   : > { %3067 = vrot.lane.b32.xlu0 %v11250_v27, %s9720_s21  ;;  %3061 = vrot.lane.b32.xlu1 %v11253_v23, %s9720_s21  ;;  %v2858_v24 = vpop.permute.xlu1 %2857 }
 0x699   : > { %v2891_v34 = vmul.f32 %v11099_v52, %v2858_v24  ;;  %v11277_v52 = vsel %vm2988_vm3, %v11049_v38, %v10557_v9  ;;  %v11308_v9 = vsel %vm2984_vm14, %v11073_v63, %v10584_v17  ;;  %v11334_v17 = vsel %vm2977_vm9, %v11027_v62, %v13491_v12  ;;  %v11419_v12 = vld [vmem:[%s13358_s5] ss:$0 sm:$0xff] }
 0x69a   : > { %v11360_v62 = vsel %vm2973_vm6, %v10991_v22, %v13496_v55 }
 0x69b   : > { %v11265_v43 = vsel %vm2987_vm4, %v2891_v34, %v10547_v33  ;;  %v11292_v33 = vsel %vm2986_vm1, %v11093_v19, %v10570_v58  ;;  %v11324_v58 = vsel %vm2982_vm12, %v11055_v48, %v10598_v14  ;;  %v13494_v14 = vld [vmem:[#allocation31_spill] sm:$0xff]  ;;  %13497 = vst [vmem:[#allocation26_spill] sm:$0xff] %v11360_v62  ;;  %v13498_v48 = vld [vmem:[#allocation33_spill] sm:$0xff] }
 0x69c   : > { %3547 = vrot.lane.b32.xlu0 %v11262_v5, %s9720_s21  ;;  %3065 = vrot.lane.b32.xlu1 %v11265_v43, %s9720_s21  ;;  %v11350_v38 = vsel %vm2975_vm8, %v11007_v40, %v13494_v14  ;;  %v11366_v7 = vsel %vm2976_vm7, %v11000_v28, %v13498_v48  ;;  %v13500_v40 = vld [vmem:[#allocation34_spill] sm:$0xff] }
 0x69d   : > { %13495 = vst [vmem:[#allocation25_spill] sm:$0xff] %v11350_v38  ;;  %13499 = vst [vmem:[#allocation27_spill] sm:$0xff] %v11366_v7  ;;  %v11376_v63 = vsel %vm2974_vm5, %v10988_v30, %v13500_v40 }
 0x69e   : > { %13501 = vst [vmem:[#allocation28_spill] sm:$0xff] %v11376_v63 }
 0x6a0   : > { %3543 = vrot.lane.b32.xlu0 %v11273_v2, %s9720_s21  ;;  %3549 = vrot.lane.b32.xlu1 %v11277_v52, %s9720_s21 }
 0x6a4   : > { %3539 = vrot.lane.b32.xlu0 %v11287_v56, %s9720_s21  ;;  %3545 = vrot.lane.b32.xlu1 %v11292_v33, %s9720_s21 }
 0x6a8   : > { %3535 = vrot.lane.b32.xlu0 %v11302_v42, %s9720_s21  ;;  %3541 = vrot.lane.b32.xlu1 %v11308_v9, %s9720_s21 }
 0x6ac   : > { %3531 = vrot.lane.b32.xlu0 %v11318_v53, %s9720_s21  ;;  %3537 = vrot.lane.b32.xlu1 %v11324_v58, %s9720_s21 }
 0x6b0   : > { %3527 = vrot.lane.b32.xlu0 %v11334_v17, %s9720_s21  ;;  %3533 = vrot.lane.b32.xlu1 %v11340_v60, %s9720_s21  ;;  %v13527_v60 = vld [vmem:[#allocation21_spill] sm:$0xff] }
 0x6b4   : > { %3523 = vrot.lane.b32.xlu0 %v11350_v38, %s9720_s21  ;;  %3529 = vrot.lane.b32.xlu1 %v11109_v59, %s9720_s21 }
 0x6b8   : > { %3519 = vrot.lane.b32.xlu0 %v11360_v62, %s9720_s21  ;;  %3525 = vrot.lane.b32.xlu1 %v11366_v7, %s9720_s21 }
 0x6bc   : > { %3521 = vrot.lane.b32.xlu1 %v11376_v63, %s9720_s21 }
 0x6d6   : > { %v3040_v10 = vpop.permute.xlu0 %3039 }
 0x6da   : > { %v3038_v22 = vpop.permute.xlu1 %3037 }
 0x6db   : > { %8092 = vmatprep.mubr.msk.f32.mxu1 %vm492_vm0, %v3038_v22 }
 0x6dc   : > { %8093 = vmatmul.mubr.msk.f32.vlgmr.msra.gmra.mxu1 %vm492_vm0, %v3040_v10 }
 0x6de   : > { %v3044_v25 = vpop.permute.xlu0 %3043 }
 0x6e2   : > { %v3042_v28 = vpop.permute.xlu1 %3041 }
 0x6e3   : > { %8095 = vmatprep.mubr.msk.f32.mxu1 %vm492_vm0, %v3042_v28 }
 0x6e4   : > { %8096 = vmatmul.mubr.msk.f32.gmra.mxu1 %vm492_vm0, %v3044_v25 }
 0x6e6   : > { %v3048_v19 = vpop.permute.xlu0 %3047 }
 0x6ea   : > { %v3046_v21 = vpop.permute.xlu1 %3045 }
 0x6eb   : > { %8098 = vmatprep.mubr.msk.f32.mxu1 %vm492_vm0, %v3046_v21 }
 0x6ec   : > { %8099 = vmatmul.mubr.msk.f32.gmra.mxu1 %vm492_vm0, %v3048_v19 }
 0x6ee   : > { %v3052_v35 = vpop.permute.xlu0 %3051 }
 0x6f2   : > { %v3050_v30 = vpop.permute.xlu1 %3049 }
 0x6f3   : > { %8101 = vmatprep.mubr.msk.f32.mxu1 %vm492_vm0, %v3050_v30 }
 0x6f4   : > { %8102 = vmatmul.mubr.msk.f32.gmra.mxu1 %vm492_vm0, %v3052_v35 }
 0x6f6   : > { %v3056_v61 = vpop.permute.xlu0 %3055 }
 0x6fa   : > { %v3054_v32 = vpop.permute.xlu1 %3053 }
 0x6fb   : > { %8104 = vmatprep.mubr.msk.f32.mxu1 %vm492_vm0, %v3054_v32 }
 0x6fc   : > { %8105 = vmatmul.mubr.msk.f32.gmra.mxu1 %vm492_vm0, %v3056_v61 }
 0x6fe   : > { %v3060_v1 = vpop.permute.xlu0 %3059 }
 0x702   : > { %v3058_v39 = vpop.permute.xlu1 %3057 }
 0x703   : > { %8107 = vmatprep.mubr.msk.f32.mxu1 %vm492_vm0, %v3058_v39 }
 0x704   : > { %8108 = vmatmul.mubr.msk.f32.gmra.mxu1 %vm492_vm0, %v3060_v1 }
 0x706   : > { %v3064_v26 = vpop.permute.xlu0 %3063 }
 0x70a   : > { %v3062_v13 = vpop.permute.xlu1 %3061  ;;  %v3068_v45 = vpop.permute.xlu0 %3067 }
 0x70b   : > { %8110 = vmatprep.mubr.msk.f32.mxu1 %vm492_vm0, %v3062_v13 }
 0x70c   : > { %8111 = vmatmul.mubr.msk.f32.gmra.mxu1 %vm492_vm0, %v3064_v26 }
 0x70e   : > { %v3066_v0 = vpop.permute.xlu1 %3065 }
 0x70f   : > { %8113 = vmatprep.mubr.msk.f32.mxu1 %vm492_vm0, %v3066_v0 }
 0x710   : > { %8114 = vmatmul.mubr.msk.f32.gmra.mxu1 %vm492_vm0, %v3068_v45 }
 0x711   : > { %8204 = vmatprep.mubr.f32.mxu1 %v11397_v15 }
 0x79c   : > { %v11400_v4 = vpop.f32.mrf.mxu1 }
 0x79e   : > { %v11402_v41 = vpop.f32.mrf.mxu1 }
 0x7a4   : > { %v11404_v54 = vpop.f32.mrf.mxu1 }
 0x7a6   : > { %v11406_v46 = vpop.f32.mrf.mxu1 }
 0x7ac   : > { %v11408_v20 = vpop.f32.mrf.mxu1 }
 0x7ae   : > { %v11410_v18 = vpop.f32.mrf.mxu1 }
 0x7b4   : > { %v11412_v47 = vpop.f32.mrf.mxu1 }
 0x7b5   : > { %v3253_v26 = vadd.f32 %v11419_v12, %v11412_v47 }
 0x7b6   : > { %v11414_v11 = vpop.f32.mrf.mxu1 }
 0x7b7   : > { %v3252_v0 = vadd.f32 %v11419_v12, %v11414_v11 }
 0x7bc   : > { %v8106_v37 = vpop.f32.mrf.mxu1 }
 0x7bd   : > { %v3255_v30 = vadd.f32 %v11419_v12, %v8106_v37 }
 0x7be   : > { %v3207_v57 = vpop.f32.mrf.mxu1 }
 0x7bf   : > { %v3254_v61 = vadd.f32 %v11419_v12, %v3207_v57  ;;  %v7175_v13 = vmul.f32 -1.442695, %v3255_v30 }
 0x7c1   : > { %v7174_v45 = vmul.f32 -1.442695, %v3254_v61 }
 0x7c4   : > { %v8109_v51 = vpop.f32.mrf.mxu1 }
 0x7c5   : > { %v3257_v14 = vadd.f32 %v11419_v12, %v8109_v51 }
 0x7c6   : > { %v3217_v24 = vpop.f32.mrf.mxu1 }
 0x7c7   : > { %v3256_v10 = vadd.f32 %v11419_v12, %v3217_v24  ;;  %v7177_v21 = vmul.f32 -1.442695, %v3257_v14  ;;  %v7173_v14 = vmul.f32 -1.442695, %v3253_v26  ;;  %v11450_v26 = vpop.permute.xlu0 %3547 }
 0x7c9   : > { %v7176_v39 = vmul.f32 -1.442695, %v3256_v10 }
 0x7cc   : > { %v8112_v34 = vpop.f32.mrf.mxu1 }
 0x7cd   : > { %v3259_v31 = vadd.f32 %v11419_v12, %v8112_v34 }
 0x7ce   : > { %v3227_v55 = vpop.f32.mrf.mxu1 }
 0x7cf   : > { %v7179_v48 = vmul.f32 -1.442695, %v3259_v31  ;;  %v3258_v40 = vadd.f32 %v11419_v12, %v3227_v55  ;;  %v3249_v31 = vadd.f32 %v11419_v12, %v11404_v54 }
 0x7d0   : > { %v8115_v22 = vpop.f32.mrf.mxu1 }
 0x7d1   : > { %v7178_v28 = vmul.f32 -1.442695, %v3258_v40  ;;  %v3261_v25 = vadd.f32 %v11419_v12, %v8115_v22  ;;  %8116 = vmatprep.subr.mxu0 %v8115_v22  ;;  %8994 = vpow2.f32 %v7179_v48  ;;  %v3250_v48 = vadd.f32 %v11419_v12, %v11410_v18 }
 0x7d2   : > { %v3237_v19 = vpop.f32.mrf.mxu1  ;;  %8117 = vmatpush3.msra.mxu0 %v8115_v22  ;;  %v7169_v40 = vmul.f32 -1.442695, %v3249_v31 }
 0x7d3   : > { %v7181_v35 = vmul.f32 -1.442695, %v3261_v25  ;;  %v3260_v32 = vadd.f32 %v11419_v12, %v3237_v19  ;;  %8118 = vmatprep.subr.mxu0 %v3237_v19  ;;  %8996 = vpow2.f32 %v7178_v28  ;;  %v7170_v28 = vmul.f32 -1.442695, %v3250_v48 }
 0x7d4   : > { %8119 = vmatpush3.msra.mxu0 %v3237_v19 }
 0x7d5   : > { %8998 = vpow2.f32 %v7181_v35  ;;  %v7180_v1 = vmul.f32 -1.442695, %v3260_v32  ;;  %8120 = vmatprep.subr.mxu0 %v8112_v34  ;;  %v3550_v32 = vpop.permute.xlu1 %3549 }
 0x7d6   : > { %9000 = vpow2.f32 %v7177_v21  ;;  %8121 = vmatpush3.msra.mxu0 %v8112_v34  ;;  %v3251_v34 = vadd.f32 %v11419_v12, %v11408_v20 }
 0x7d7   : > { %9002 = vpow2.f32 %v7180_v1  ;;  %8122 = vmatprep.subr.mxu0 %v3227_v55 }
 0x7d8   : > { %8123 = vmatpush3.msra.mxu0 %v3227_v55  ;;  %9004 = vpow2.f32 %v7176_v39  ;;  %v7172_v55 = vmul.f32 -1.442695, %v3252_v0  ;;  %v7171_v10 = vmul.f32 -1.442695, %v3251_v34 }
 0x7d9   : > { %8124 = vmatprep.subr.mxu0 %v8109_v51  ;;  %9006 = vpow2.f32 %v7175_v13 }
 0x7da   : > { %8125 = vmatpush3.msra.mxu0 %v8109_v51  ;;  %9008 = vpow2.f32 %v7174_v45  ;;  %v3248_v51 = vadd.f32 %v11419_v12, %v11406_v46 }
 0x7db   : > { %8126 = vmatprep.subr.mxu0 %v3217_v24  ;;  %9010 = vpow2.f32 %v7173_v14  ;;  %v3546_v14 = vpop.permute.xlu1 %3545 }
 0x7dc   : > { %8127 = vmatpush3.msra.mxu0 %v3217_v24  ;;  %9012 = vpow2.f32 %v7172_v55  ;;  %v3247_v24 = vadd.f32 %v11419_v12, %v11400_v4  ;;  %v7168_v61 = vmul.f32 -1.442695, %v3248_v51  ;;  %v11458_v55 = vpop.permute.xlu0 %3543 }
 0x7dd   : > { %8128 = vmatprep.subr.mxu0 %v8106_v37  ;;  %9014 = vpow2.f32 %v7169_v40 }
 0x7de   : > { %8129 = vmatpush3.msra.mxu0 %v8106_v37  ;;  %v8995_v22 = vpop.eup %8994  ;;  %9016 = vpow2.f32 %v7171_v10  ;;  %v7167_v13 = vmul.f32 -1.442695, %v3247_v24 }
 0x7df   : > { %8130 = vmatprep.subr.mxu0 %v3207_v57  ;;  %v3323_v19 = vadd.f32 1.0, %v8995_v22  ;;  %9018 = vpow2.f32 %v7170_v28  ;;  %v3542_v51 = vpop.permute.xlu1 %3541 }
 0x7e0   : > { %8131 = vmatpush3.msra.mxu0 %v3207_v57  ;;  %v8997_v25 = vpop.eup %8996  ;;  %v3246_v57 = vadd.f32 %v11419_v12, %v11402_v41  ;;  %v3540_v24 = vpop.permute.xlu0 %3539 }
 0x7e1   : > { %8132 = vmatprep.subr.mxu0 %v11412_v47  ;;  %v3322_v39 = vadd.f32 1.0, %v8997_v25  ;;  %v11466_v25 = vld [vmem:[%s9923_s17 + $0x8] sm:$0xff] }
 0x7e2   : > { %v8999_v21 = vpop.eup %8998  ;;  %8133 = vmatpush3.msra.mxu0 %v11412_v47  ;;  %v7166_v31 = vmul.f32 -1.442695, %v3246_v57 }
 0x7e3   : > { %v9001_v37 = vpop.eup %9000  ;;  %v3325_v30 = vadd.f32 1.0, %v8999_v21  ;;  %8134 = vmatprep.subr.mxu0 %v11414_v11 }
 0x7e4   : > { %v9003_v35 = vpop.eup %9002  ;;  %8135 = vmatpush3.msra.mxu0 %v11414_v11  ;;  %v3321_v0 = vadd.f32 1.0, %v9001_v37 }
 0x7e5   : > { %9020 = vrcp.f32 %v3325_v30  ;;  %v3324_v1 = vadd.f32 1.0, %v9003_v35  ;;  %8136 = vmatprep.subr.mxu0 %v11408_v20  ;;  %v9005_v47 = vpop.eup %9004  ;;  %v9600_v35 = vld [vmem:[%s13357_s4 + $0x10] sm:$0xff] }
 0x7e6   : > { %9022 = vrcp.f32 %v3323_v19  ;;  %8137 = vmatpush3.msra.mxu0 %v11408_v20  ;;  %v9007_v45 = vpop.eup %9006  ;;  %v3320_v11 = vadd.f32 1.0, %v9005_v47  ;;  %v11473_v19 = vld [vmem:[%s9923_s17 + $0x10] sm:$0xff] }
 0x7e7   : > { %9024 = vrcp.f32 %v3324_v1  ;;  %8138 = vmatprep.subr.mxu0 %v11410_v18  ;;  %v9009_v34 = vpop.eup %9008  ;;  %v3319_v48 = vadd.f32 1.0, %v9007_v45  ;;  %v11480_v1 = vld [vmem:[%s9923_s17 + $0x18] sm:$0xff]  ;;  %v9603_v45 = vld [vmem:[%s13357_s4 + $0x8] sm:$0xff] }
 0x7e8   : > { %9026 = vpow2.f32 %v7168_v61  ;;  %8139 = vmatpush3.msra.mxu0 %v11410_v18  ;;  %v9011_v20 = vpop.eup %9010  ;;  %v3318_v18 = vadd.f32 1.0, %v9009_v34 }
 0x7e9   : > { %9028 = vrcp.f32 %v3322_v39  ;;  %8140 = vmatprep.subr.mxu0 %v11404_v54  ;;  %v9013_v40 = vpop.eup %9012 }
 0x7ea   : > { %9030 = vpow2.f32 %v7167_v13  ;;  %8141 = vmatpush3.msra.mxu0 %v11404_v54  ;;  %v9015_v22 = vpop.eup %9014  ;;  %v3317_v54 = vadd.f32 1.0, %v9011_v20  ;;  %v9604_v20 = vld [vmem:[%s13357_s4] sm:$0xff] }
 0x7eb   : > { %9032 = vrcp.f32 %v3321_v0  ;;  %8142 = vmatprep.subr.mxu0 %v11406_v46  ;;  %v9017_v10 = vpop.eup %9016  ;;  %v11486_v0 = vld [vmem:[%s9923_s17 + $0x20] sm:$0xff] }
 0x7ec   : > { %9034 = vpow2.f32 %v7166_v31  ;;  %8143 = vmatpush3.msra.mxu0 %v11406_v46  ;;  %v9019_v28 = vpop.eup %9018  ;;  %v3316_v46 = vadd.f32 1.0, %v9013_v40  ;;  %v3315_v37 = vadd.f32 1.0, %v9017_v10  ;;  %v11503_v10 = vld [vmem:[%s9923_s17 + $0x30] sm:$0xff] }
 0x7ed   : > { %9036 = vrcp.f32 %v3320_v11  ;;  %8144 = vmatprep.subr.mxu0 %v11400_v4  ;;  %v3314_v39 = vadd.f32 1.0, %v9019_v28  ;;  %v3313_v11 = vadd.f32 1.0, %v9015_v22 }
 0x7ee   : > { %8145 = vmatpush3.msra.mxu0 %v11400_v4  ;;  %9038 = vrcp.f32 %v3319_v48  ;;  %v9598_v4 = vld [vmem:[%s13357_s4 + $0x18] sm:$0xff]  ;;  %v3536_v48 = vpop.permute.xlu0 %3535 }
 0x7ef   : > { %8146 = vmatprep.subr.mxu0 %v11402_v41  ;;  %9040 = vrcp.f32 %v3318_v18 }
 0x7f0   : > { %8147 = vmatpush3.msra.mxu0 %v11402_v41  ;;  %9042 = vrcp.f32 %v3317_v54  ;;  %v11497_v54 = vld [vmem:[%s9923_s17 + $0x28] sm:$0xff] }
 0x7f1   : > { %8149 = vmatmul.mubr.f32.vlgmr.msra.gmra.mxu0 %v11466_v25  ;;  %8228 = vmatprep.subr.mxu0 %v9598_v4  ;;  %9044 = vrcp.f32 %v3316_v46 }
 0x7f2   : > { %v9021_v21 = vpop.eup %9020  ;;  %8151 = vmatprep.mubr.f32.mxu0 %v11473_v19  ;;  %8229 = vmatpush3.msra.mxu0 %v9598_v4  ;;  %9046 = vrcp.f32 %v3315_v37  ;;  %v11508_v37 = vld [vmem:[%s9923_s17 + $0x38] sm:$0xff] }
 0x7f3   : > { %v9023_v41 = vpop.eup %9022  ;;  %v3582_v30 = vmul.f32 %v9021_v21, %v3550_v32  ;;  %8230 = vmatprep.subr.mxu0 %v9600_v35  ;;  %v3538_v32 = vpop.permute.xlu1 %3537  ;;  %9048 = vrcp.f32 %v3314_v39  ;;  %v11518_v39 = vld [vmem:[%s9923_s17 + $0x48] sm:$0xff] }
 0x7f4   : > { %v9025_v57 = vpop.eup %9024  ;;  %8231 = vmatpush3.msra.mxu0 %v9600_v35  ;;  %v3580_v34 = vmul.f32 %v9023_v41, %v3546_v14  ;;  %9050 = vrcp.f32 %v3313_v11  ;;  %v3532_v35 = vpop.permute.xlu0 %3531 }
 0x7f5   : > { %v9027_v61 = vpop.eup %9026  ;;  %8152 = vmatmul.mubr.f32.gmra.mxu0 %v11480_v1  ;;  %3629 = vrot.lane.b32.xlu1 %v3582_v30, %s9717_s24  ;;  %v3581_v47 = vmul.f32 %v9025_v57, %v11450_v26  ;;  %v11513_v57 = vld [vmem:[%s9923_s17 + $0x40] sm:$0xff] }
 0x7f6   : > { %v9029_v13 = vpop.eup %9028  ;;  %8154 = vmatprep.mubr.f32.mxu0 %v11486_v0  ;;  %8232 = vmatprep.subr.mxu0 %v9603_v45  ;;  %v3312_v40 = vadd.f32 1.0, %v9027_v61 }
 0x7f7   : > { %v9031_v31 = vpop.eup %9030  ;;  %3627 = vrot.lane.b32.xlu0 %v3581_v47, %s9717_s24  ;;  %8233 = vmatpush3.msra.mxu0 %v9603_v45  ;;  %v3579_v14 = vmul.f32 %v9029_v13, %v11458_v55  ;;  %v3534_v21 = vpop.permute.xlu1 %3533  ;;  %v11523_v45 = vld [vmem:[%s9923_s17 + $0x50] sm:$0xff] }
 0x7f8   : > { %v9033_v26 = vpop.eup %9032  ;;  %8234 = vmatprep.subr.mxu0 %v9604_v20  ;;  %v3311_v28 = vadd.f32 1.0, %v9031_v31  ;;  %9052 = vrcp.f32 %v3312_v40  ;;  %v3528_v11 = vpop.permute.xlu0 %3527 }
 0x7f9   : > { %v9035_v18 = vpop.eup %9034  ;;  %8155 = vmatmul.mubr.f32.gmra.mxu0 %v11497_v54  ;;  %3625 = vrot.lane.b32.xlu1 %v3580_v34, %s9717_s24  ;;  %v3578_v46 = vmul.f32 %v9033_v26, %v3542_v51  ;;  %v11528_v34 = vld [vmem:[%s9923_s17 + $0x58] sm:$0xff] }
 0x7fa   : > { %v9037_v22 = vpop.eup %9036  ;;  %8157 = vmatprep.mubr.f32.mxu0 %v11503_v10  ;;  %8235 = vmatpush3.msra.mxu0 %v9604_v20  ;;  %v3310_v41 = vadd.f32 1.0, %v9035_v18  ;;  %9054 = vrcp.f32 %v3311_v28  ;;  %v11533_v20 = vld [vmem:[%s9923_s17 + $0x60] sm:$0xff] }
 0x7fb   : > { %3623 = vrot.lane.b32.xlu0 %v3579_v14, %s9717_s24  ;;  %v9039_v4 = vpop.eup %9038  ;;  %v3577_v55 = vmul.f32 %v9037_v22, %v3540_v24  ;;  %v3530_v13 = vpop.permute.xlu1 %3529  ;;  %v11538_v22 = vld [vmem:[%s9923_s17 + $0x68] sm:$0xff] }
 0x7fc   : > { %v9041_v30 = vpop.eup %9040  ;;  %v3576_v51 = vmul.f32 %v9039_v4, %v3538_v32  ;;  %9056 = vrcp.f32 %v3310_v41  ;;  %v3524_v4 = vpop.permute.xlu0 %3523 }
 0x7fd   : > { %8158 = vmatmul.mubr.f32.gmra.mxu0 %v11508_v37  ;;  %3621 = vrot.lane.b32.xlu1 %v3578_v46, %s9717_s24  ;;  %v9043_v61 = vpop.eup %9042  ;;  %v3575_v24 = vmul.f32 %v9041_v30, %v3536_v48  ;;  %v11548_v30 = vld [vmem:[%s9923_s17 + $0x78] sm:$0xff] }
 0x7fe   : > { %8160 = vmatprep.mubr.f32.mxu0 %v11513_v57  ;;  %v9045_v47 = vpop.eup %9044  ;;  %v3574_v32 = vmul.f32 %v9043_v61, %v3534_v21  ;;  %v11543_v21 = vld [vmem:[%s9923_s17 + $0x70] sm:$0xff] }
 0x7ff   : > { %3619 = vrot.lane.b32.xlu0 %v3577_v55, %s9717_s24  ;;  %v9047_v31 = vpop.eup %9046  ;;  %v3573_v26 = vmul.f32 %v9045_v47, %v3532_v35  ;;  %v3526_v14 = vpop.permute.xlu1 %3525 }
 0x800   : > { %v9049_v48 = vpop.eup %9048  ;;  %v3572_v18 = vmul.f32 %v9047_v31, %v3530_v13  ;;  %v3520_v47 = vpop.permute.xlu0 %3519 }
 0x801   : > { %8161 = vmatmul.mubr.f32.gmra.mxu0 %v11518_v39  ;;  %3617 = vrot.lane.b32.xlu1 %v3576_v51, %s9717_s24  ;;  %v9051_v40 = vpop.eup %9050  ;;  %v3571_v28 = vmul.f32 %v9049_v48, %v3528_v11 }
 0x802   : > { %8163 = vmatprep.mubr.f32.mxu0 %v11523_v45  ;;  %v3570_v41 = vmul.f32 %v9051_v40, %v3526_v14 }
 0x803   : > { %3615 = vrot.lane.b32.xlu0 %v3575_v24, %s9717_s24  ;;  %v3522_v61 = vpop.permute.xlu1 %3521 }
 0x805   : > { %8164 = vmatmul.mubr.f32.gmra.mxu0 %v11528_v34  ;;  %3613 = vrot.lane.b32.xlu1 %v3574_v32, %s9717_s24  ;;  %v9053_v46 = vpop.eup %9052 }
 0x806   : > { %8166 = vmatprep.mubr.f32.mxu0 %v11533_v20  ;;  %v3569_v35 = vmul.f32 %v9053_v46, %v3524_v4 }
 0x807   : > { %3611 = vrot.lane.b32.xlu0 %v3573_v26, %s9717_s24  ;;  %v9055_v55 = vpop.eup %9054 }
 0x808   : > { %v3568_v24 = vmul.f32 %v9055_v55, %v3522_v61 }
 0x809   : > { %8167 = vmatmul.mubr.f32.gmra.mxu0 %v11538_v22  ;;  %3609 = vrot.lane.b32.xlu1 %v3572_v18, %s9717_s24  ;;  %v9057_v51 = vpop.eup %9056 }
 0x80a   : > { %8169 = vmatprep.mubr.f32.mxu0 %v11543_v21  ;;  %v3567_v13 = vmul.f32 %v9057_v51, %v3520_v47  ;;  %v13506_v47 = vld [vmem:[#allocation9_spill] sm:$0xff] }
 0x80b   : > { %3607 = vrot.lane.b32.xlu0 %v3571_v28, %s9717_s24 }
 0x80d   : > { %8170 = vmatmul.mubr.f32.gmra.mxu0 %v11548_v30  ;;  %3605 = vrot.lane.b32.xlu1 %v3570_v41, %s9717_s24 }
 0x80f   : > { %3603 = vrot.lane.b32.xlu0 %v3569_v35, %s9717_s24 }
 0x811   : > { %3601 = vrot.lane.b32.xlu1 %v3568_v24, %s9717_s24 }
 0x813   : > { %3599 = vrot.lane.b32.xlu0 %v3567_v13, %s9717_s24 }
 0x867   : > { %v3630_v32 = vpop.permute.xlu1 %3629 }
 0x868   : > { %8172 = vmatprep.subr.mxu1 %v3630_v32 }
 0x869   : > { %v3628_v31 = vpop.permute.xlu0 %3627  ;;  %8173 = vmatpush3.msra.mxu1 %v3630_v32 }
 0x86a   : > { %8174 = vmatprep.subr.mxu1 %v3628_v31 }
 0x86b   : > { %8175 = vmatpush3.msra.mxu1 %v3628_v31  ;;  %v3626_v11 = vpop.permute.xlu1 %3625 }
 0x86c   : > { %8176 = vmatprep.subr.mxu1 %v3626_v11 }
 0x86d   : > { %v3624_v26 = vpop.permute.xlu0 %3623  ;;  %8177 = vmatpush3.msra.mxu1 %v3626_v11  ;;  %v13507_v11 = vld [vmem:[#allocation10_spill] sm:$0xff] }
 0x86e   : > { %8178 = vmatprep.subr.mxu1 %v3624_v26 }
 0x86f   : > { %8179 = vmatpush3.msra.mxu1 %v3624_v26  ;;  %v3622_v48 = vpop.permute.xlu1 %3621 }
 0x870   : > { %8180 = vmatprep.subr.mxu1 %v3622_v48 }
 0x871   : > { %v3620_v18 = vpop.permute.xlu0 %3619  ;;  %8181 = vmatpush3.msra.mxu1 %v3622_v48 }
 0x872   : > { %8182 = vmatprep.subr.mxu1 %v3620_v18 }
 0x873   : > { %8183 = vmatpush3.msra.mxu1 %v3620_v18  ;;  %v3618_v40 = vpop.permute.xlu1 %3617 }
 0x874   : > { %8184 = vmatprep.subr.mxu1 %v3618_v40 }
 0x875   : > { %v3616_v14 = vpop.permute.xlu0 %3615  ;;  %8185 = vmatpush3.msra.mxu1 %v3618_v40  ;;  %v13508_v40 = vld [vmem:[#allocation11_spill] sm:$0xff] }
 0x876   : > { %8186 = vmatprep.subr.mxu1 %v3616_v14 }
 0x877   : > { %8187 = vmatpush3.msra.mxu1 %v3616_v14  ;;  %v3614_v28 = vpop.permute.xlu1 %3613 }
 0x878   : > { %8188 = vmatprep.subr.mxu1 %v3614_v28 }
 0x879   : > { %v3612_v46 = vpop.permute.xlu0 %3611  ;;  %8189 = vmatpush3.msra.mxu1 %v3614_v28 }
 0x87a   : > { %8190 = vmatprep.subr.mxu1 %v3612_v46 }
 0x87b   : > { %8191 = vmatpush3.msra.mxu1 %v3612_v46  ;;  %v3610_v4 = vpop.permute.xlu1 %3609 }
 0x87c   : > { %8192 = vmatprep.subr.mxu1 %v3610_v4 }
 0x87d   : > { %v3608_v41 = vpop.permute.xlu0 %3607  ;;  %8193 = vmatpush3.msra.mxu1 %v3610_v4  ;;  %v13509_v4 = vld [vmem:[#allocation12_spill] sm:$0xff] }
 0x87e   : > { %8194 = vmatprep.subr.mxu1 %v3608_v41 }
 0x87f   : > { %8195 = vmatpush3.msra.mxu1 %v3608_v41  ;;  %v3606_v55 = vpop.permute.xlu1 %3605 }
 0x880   : > { %8196 = vmatprep.subr.mxu1 %v3606_v55 }
 0x881   : > { %v3604_v35 = vpop.permute.xlu0 %3603  ;;  %8197 = vmatpush3.msra.mxu1 %v3606_v55 }
 0x882   : > { %8198 = vmatprep.subr.mxu1 %v3604_v35 }
 0x883   : > { %8199 = vmatpush3.msra.mxu1 %v3604_v35  ;;  %v3602_v51 = vpop.permute.xlu1 %3601 }
 0x884   : > { %8200 = vmatprep.subr.mxu1 %v3602_v51 }
 0x885   : > { %v3600_v61 = vpop.permute.xlu0 %3599  ;;  %8201 = vmatpush3.msra.mxu1 %v3602_v51  ;;  %v13510_v51 = vld [vmem:[#allocation13_spill] sm:$0xff] }
 0x886   : > { %8202 = vmatprep.subr.mxu1 %v3600_v61 }
 0x887   : > { %8203 = vmatpush3.msra.mxu1 %v3600_v61 }
 0x888   : > { %8205 = vmatmul.mubr.f32.vlgmr.msra.gmra.mxu1 %v11466_v25 }
 0x889   : > { %8207 = vmatprep.mubr.f32.mxu1 %v11473_v19  ;;  %v13502_v19 = vld [vmem:[#allocation5_spill] sm:$0xff] }
 0x88c   : > { %8208 = vmatmul.mubr.f32.gmra.mxu1 %v11480_v1 }
 0x88d   : > { %8210 = vmatprep.mubr.f32.mxu1 %v11486_v0 }
 0x890   : > { %8211 = vmatmul.mubr.f32.gmra.mxu1 %v11497_v54 }
 0x891   : > { %8213 = vmatprep.mubr.f32.mxu1 %v11503_v10  ;;  %v13503_v10 = vld [vmem:[#allocation6_spill] sm:$0xff] }
 0x894   : > { %8214 = vmatmul.mubr.f32.gmra.mxu1 %v11508_v37 }
 0x895   : > { %8216 = vmatprep.mubr.f32.mxu1 %v11513_v57 }
 0x898   : > { %8217 = vmatmul.mubr.f32.gmra.mxu1 %v11518_v39 }
 0x899   : > { %8219 = vmatprep.mubr.f32.mxu1 %v11523_v45  ;;  %v13504_v45 = vld [vmem:[#allocation7_spill] sm:$0xff] }
 0x89c   : > { %8220 = vmatmul.mubr.f32.gmra.mxu1 %v11528_v34 }
 0x89d   : > { %8222 = vmatprep.mubr.f32.mxu1 %v11533_v20 }
 0x8a0   : > { %8223 = vmatmul.mubr.f32.gmra.mxu1 %v11538_v22  ;;  %v13505_v22 = vld [vmem:[#allocation8_spill] sm:$0xff] }
 0x8a1   : > { %8225 = vmatprep.mubr.f32.mxu1 %v11543_v21 }
 0x8a4   : > { %8226 = vmatmul.mubr.f32.gmra.mxu1 %v11548_v30 }
 0x8a5   : > { %8292 = vmatprep.mubr.f32.mxu1 %v11397_v15 }
 0x8b1   : > { %v8150_v25 = vpop.f32.mrf.mxu0 }
 0x8b2   : > { %v3793_v1 = vadd.f32 %v8150_v25, %v13502_v19 }
 0x8b3   : > { %v3424_v0 = vpop.f32.mrf.mxu0 }
 0x8b4   : > { %v11573_v54 = vadd.f32 %v11419_v12, %v3793_v1  ;;  %v3792_v37 = vadd.f32 %v3424_v0, %v13503_v10 }
 0x8b5   : > { %v8153_v57 = vpop.f32.mrf.mxu0 }
 0x8b6   : > { %9058 = vtanh.f32 %v11573_v54  ;;  %v11578_v39 = vadd.f32 %v11419_v12, %v3792_v37  ;;  %v3795_v34 = vadd.f32 %v8153_v57, %v13504_v45  ;;  %v13511_v37 = vld [vmem:[#allocation14_spill] sm:$0xff] }
 0x8b7   : > { %v3434_v20 = vpop.f32.mrf.mxu0 }
 0x8b8   : > { %v11582_v15 = vadd.f32 %v11419_v12, %v3795_v34  ;;  %v3794_v21 = vadd.f32 %v3434_v20, %v13505_v22  ;;  %9060 = vtanh.f32 %v11578_v39 }
 0x8b9   : > { %v8156_v30 = vpop.f32.mrf.mxu0 }
 0x8ba   : > { %v11587_v24 = vadd.f32 %v11419_v12, %v3794_v21  ;;  %v3797_v13 = vadd.f32 %v8156_v30, %v13506_v47  ;;  %9062 = vtanh.f32 %v11582_v15 }
 0x8bb   : > { %v3444_v32 = vpop.f32.mrf.mxu0 }
 0x8bc   : > { %v11592_v31 = vadd.f32 %v11419_v12, %v3797_v13  ;;  %v3796_v26 = vadd.f32 %v3444_v32, %v13507_v11  ;;  %9064 = vtanh.f32 %v11587_v24  ;;  %v13512_v32 = vld [vmem:[#allocation15_spill] sm:$0xff] }
 0x8bd   : > { %v8159_v48 = vpop.f32.mrf.mxu0 }
 0x8be   : > { %v11597_v18 = vadd.f32 %v11419_v12, %v3796_v26  ;;  %v3799_v14 = vadd.f32 %v8159_v48, %v13508_v40  ;;  %9066 = vtanh.f32 %v11592_v31 }
 0x8bf   : > { %v3454_v28 = vpop.f32.mrf.mxu0 }
 0x8c0   : > { %v11602_v46 = vadd.f32 %v11419_v12, %v3799_v14  ;;  %v3798_v41 = vadd.f32 %v3454_v28, %v13509_v4  ;;  %9068 = vtanh.f32 %v11597_v18 }
 0x8c1   : > { %v8162_v55 = vpop.f32.mrf.mxu0 }
 0x8c2   : > { %v11607_v35 = vadd.f32 %v11419_v12, %v3798_v41  ;;  %v3801_v61 = vadd.f32 %v8162_v55, %v13510_v51  ;;  %9070 = vtanh.f32 %v11602_v46  ;;  %v13513_v55 = vld [vmem:[#allocation16_spill] sm:$0xff] }
 0x8c3   : > { %v9059_v25 = vpop.eup %9058  ;;  %v3464_v1 = vpop.f32.mrf.mxu0 }
 0x8c4   : > { %v11612_v0 = vadd.f32 %v11419_v12, %v3801_v61  ;;  %3954 = vrot.lane.b32.xlu0 %v9059_v25, %s9719_s25  ;;  %9072 = vtanh.f32 %v11607_v35  ;;  %v3800_v57 = vadd.f32 %v3464_v1, %v13511_v37 }
 0x8c5   : > { %v8165_v34 = vpop.f32.mrf.mxu0  ;;  %v9061_v20 = vpop.eup %9060 }
 0x8c6   : > { %9074 = vtanh.f32 %v11612_v0  ;;  %3952 = vrot.lane.b32.xlu1 %v9061_v20, %s9719_s25  ;;  %v11620_v13 = vadd.f32 %v11419_v12, %v3800_v57  ;;  %v3803_v26 = vadd.f32 %v8165_v34, %v13512_v32  ;;  %v13514_v34 = vld [vmem:[#allocation17_spill] sm:$0xff] }
 0x8c7   : > { %v3474_v21 = vpop.f32.mrf.mxu0  ;;  %v9063_v30 = vpop.eup %9062 }
 0x8c8   : > { %3958 = vrot.lane.b32.xlu0 %v9063_v30, %s9719_s25  ;;  %9076 = vtanh.f32 %v11620_v13  ;;  %v11627_v41 = vadd.f32 %v11419_v12, %v3803_v26  ;;  %v3802_v61 = vadd.f32 %v3474_v21, %v13513_v55  ;;  %v13515_v55 = vld [vmem:[#allocation18_spill] sm:$0xff] }
 0x8c9   : > { %v9065_v48 = vpop.eup %9064  ;;  %v8168_v14 = vpop.f32.mrf.mxu0 }
 0x8ca   : > { %3956 = vrot.lane.b32.xlu1 %v9065_v48, %s9719_s25  ;;  %v3805_v20 = vadd.f32 %v8168_v14, %v13514_v34  ;;  %9078 = vtanh.f32 %v11627_v41  ;;  %v11635_v30 = vadd.f32 %v11419_v12, %v3802_v61  ;;  %v13516_v14 = vld [vmem:[#allocation19_spill] sm:$0xff] }
 0x8cb   : > { %v9067_v28 = vpop.eup %9066  ;;  %v3484_v1 = vpop.f32.mrf.mxu0 }
 0x8cc   : > { %3962 = vrot.lane.b32.xlu0 %v9067_v28, %s9719_s25  ;;  %v11640_v28 = vadd.f32 %v11419_v12, %v3805_v20  ;;  %9080 = vtanh.f32 %v11635_v30 }
 0x8cd   : > { %v9069_v25 = vpop.eup %9068  ;;  %v8171_v48 = vpop.f32.mrf.mxu0 }
 0x8ce   : > { %3960 = vrot.lane.b32.xlu1 %v9069_v25, %s9719_s25  ;;  %v3804_v25 = vadd.f32 %v3484_v1, %v13515_v55  ;;  %v3807_v34 = vadd.f32 %v8171_v48, %v13516_v14  ;;  %9082 = vtanh.f32 %v11640_v28  ;;  %v439_v14 = vld [vmem:[%s10229_s29 + $0x120] sm:$0xff]  ;;  %v450_v55 = vld [vmem:[%s10229_s29 + $0x178] sm:$0xff] }
 0x8cf   : > { %v9071_v57 = vpop.eup %9070  ;;  %v3494_v61 = vpop.f32.mrf.mxu0  ;;  %vm4132_vm9 = vcmp.gt.f32.partialorder %v439_v14, 0.0 }
 0x8d0   : > { %3966 = vrot.lane.b32.xlu0 %v9071_v57, %s9719_s25  ;;  %v11648_v57 = vadd.f32 %v11419_v12, %v3804_v25  ;;  %v11652_v20 = vadd.f32 %v11419_v12, %v3807_v34 }
 0x8d1   : > { %v9073_v26 = vpop.eup %9072 }
 0x8d2   : > { %3964 = vrot.lane.b32.xlu1 %v9073_v26, %s9719_s25  ;;  %v13517_v26 = vld [vmem:[#allocation20_spill] sm:$0xff]  ;;  %9084 = vtanh.f32 %v11648_v57 }
 0x8d3   : > { %v9075_v21 = vpop.eup %9074  ;;  %v3806_v32 = vadd.f32 %v3494_v61, %v13517_v26  ;;  %9086 = vtanh.f32 %v11652_v20  ;;  %v437_v61 = vld [vmem:[%s10229_s29 + $0x110] sm:$0xff] }
 0x8d4   : > { %3970 = vrot.lane.b32.xlu0 %v9075_v21, %s9719_s25  ;;  %vm4130_vm7 = vcmp.gt.f32.partialorder %v437_v61, 0.0 }
 0x8d5   : > { %v9077_v37 = vpop.eup %9076  ;;  %v11657_v1 = vadd.f32 %v11419_v12, %v3806_v32  ;;  %v435_v12 = vld [vmem:[%s10229_s29 + $0x100] sm:$0xff] }
 0x8d6   : > { %3968 = vrot.lane.b32.xlu1 %v9077_v37, %s9719_s25  ;;  %v436_v37 = vld [vmem:[%s10229_s29 + $0x108] sm:$0xff]  ;;  %vm4128_vm6 = vcmp.gt.f32.partialorder %v435_v12, 0.0 }
 0x8d7   : > { %v9079_v48 = vpop.eup %9078  ;;  %9088 = vtanh.f32 %v11657_v1  ;;  %vm4129_vm5 = vcmp.gt.f32.partialorder %v436_v37, 0.0  ;;  %v440_v12 = vld [vmem:[%s10229_s29 + $0x128] sm:$0xff] }
 0x8d8   : > { %3974 = vrot.lane.b32.xlu0 %v9079_v48, %s9719_s25  ;;  %v13518_v48 = vmov 0   ;;  %vm4133_vm10 = vcmp.gt.f32.partialorder %v440_v12, 0.0 }
 0x8d9   : > { %v9081_v21 = vpop.eup %9080  ;;  %v4145_v26 = vsel %vm4129_vm5, 1, %v13518_v48  ;;  %v4146_v37 = vsel %vm4130_vm7, 1, %v13518_v48  ;;  %v4148_v61 = vsel %vm4132_vm9, 1, %v13518_v48  ;;  %vm4143_vm5 = vcmp.gt.f32.partialorder %v450_v55, 0.0 }
 0x8da   : > { %3972 = vrot.lane.b32.xlu1 %v9081_v21, %s9719_s25 }
 0x8db   : > { %v9083_v34 = vpop.eup %9082 }
 0x8dc   : > { %3978 = vrot.lane.b32.xlu0 %v9083_v34, %s9719_s25  ;;  %v438_v34 = vld [vmem:[%s10229_s29 + $0x118] sm:$0xff] }
 0x8dd   : > { %vm4131_vm8 = vcmp.gt.f32.partialorder %v438_v34, 0.0  ;;  %v442_v34 = vld [vmem:[%s10229_s29 + $0x138] sm:$0xff] }
 0x8de   : > { %vm4135_vm12 = vcmp.gt.f32.partialorder %v442_v34, 0.0 }
 0x8df   : > { %v9085_v25 = vpop.eup %9084  ;;  %v4151_v14 = vsel %vm4135_vm12, 1, %v13518_v48 }
 0x8e0   : > { %3976 = vrot.lane.b32.xlu1 %v9085_v25, %s9719_s25  ;;  %v9087_v32 = vpop.eup %9086  ;;  %v4144_v25 = vsel %vm4128_vm6, 1, %v13518_v48 }
 0x8e1   : > { %3982 = vrot.lane.b32.xlu0 %v9087_v32, %s9719_s25  ;;  %v4147_v32 = vsel %vm4131_vm8, 1, %v13518_v48 }
 0x8e4   : > { %v9089_v21 = vpop.eup %9088 }
 0x8e5   : > { %3980 = vrot.lane.b32.xlu1 %v9089_v21, %s9719_s25  ;;  %4164 = vperm.xlu0 %8608, %v4145_v26   ;;  %v441_v26 = vld [vmem:[%s10229_s29 + $0x130] sm:$0xff]  ;;  %v4149_v21 = vsel %vm4133_vm10, 1, %v13518_v48 }
 0x8e6   : > { %vm4134_vm11 = vcmp.gt.f32.partialorder %v441_v26, 0.0 }
 0x8e9   : > { %4161 = vperm.xlu1 %8609, %v4144_v25   ;;  %4167 = vperm.xlu0 %8608, %v4146_v37   ;;  %v4150_v25 = vsel %vm4134_vm11, 1, %v13518_v48  ;;  %v443_v37 = vld [vmem:[%s10229_s29 + $0x140] sm:$0xff] }
 0x8ea   : > { %vm4136_vm13 = vcmp.gt.f32.partialorder %v443_v37, 0.0 }
 0x8eb   : > { %v4152_v12 = vsel %vm4136_vm13, 1, %v13518_v48 }
 0x8ed   : > { %4170 = vperm.xlu0 %8608, %v4147_v32   ;;  %v444_v32 = vld [vmem:[%s10229_s29 + $0x148] sm:$0xff] }
 0x8ee   : > { %vm4137_vm14 = vcmp.gt.f32.partialorder %v444_v32, 0.0 }
 0x8ef   : > { %v4153_v26 = vsel %vm4137_vm14, 1, %v13518_v48 }
 0x8f1   : > { %4173 = vperm.xlu0 %8608, %v4148_v61   ;;  %v445_v61 = vld [vmem:[%s10229_s29 + $0x150] sm:$0xff] }
 0x8f2   : > { %vm4138_vm15 = vcmp.gt.f32.partialorder %v445_v61, 0.0 }
 0x8f3   : > { %v4154_v34 = vsel %vm4138_vm15, 1, %v13518_v48 }
 0x8f5   : > { %4176 = vperm.xlu0 %8608, %v4149_v21   ;;  %v446_v21 = vld [vmem:[%s10229_s29 + $0x158] sm:$0xff] }
 0x8f6   : > { %vm4139_vm1 = vcmp.gt.f32.partialorder %v446_v21, 0.0 }
 0x8f7   : > { %v4155_v37 = vsel %vm4139_vm1, 1, %v13518_v48 }
 0x8f9   : > { %4179 = vperm.xlu0 %8608, %v4150_v25   ;;  %v447_v25 = vld [vmem:[%s10229_s29 + $0x160] sm:$0xff] }
 0x8fa   : > { %vm4140_vm2 = vcmp.gt.f32.partialorder %v447_v25, 0.0  ;;  %v4159_v25 = vsel %vm4143_vm5, 1, %v13518_v48 }
 0x8fb   : > { %v4156_v32 = vsel %vm4140_vm2, 1, %v13518_v48 }
 0x8fd   : > { %4182 = vperm.xlu0 %8608, %v4151_v14   ;;  %v448_v14 = vld [vmem:[%s10229_s29 + $0x168] sm:$0xff] }
 0x8fe   : > { %vm4141_vm3 = vcmp.gt.f32.partialorder %v448_v14, 0.0  ;;  %v7184_v14 = vmul.f32 -1.442695, %v11587_v24 }
 0x8ff   : > { %v4157_v61 = vsel %vm4141_vm3, 1, %v13518_v48 }
 0x901   : > { %4185 = vperm.xlu0 %8608, %v4152_v12   ;;  %v449_v12 = vld [vmem:[%s10229_s29 + $0x170] sm:$0xff] }
 0x902   : > { %vm4142_vm4 = vcmp.gt.f32.partialorder %v449_v12, 0.0  ;;  %v7186_v12 = vmul.f32 -1.442695, %v11597_v18  ;;  %v7197_v18 = vmul.f32 -1.442695, %v11652_v20 }
 0x903   : > { %v4158_v21 = vsel %vm4142_vm4, 1, %v13518_v48 }
 0x905   : > { %4188 = vperm.xlu0 %8608, %v4153_v26   ;;  %v7183_v26 = vmul.f32 -1.442695, %v11573_v54 }
 0x907   : > { %9090 = vpow2.f32 %v7183_v26 }
 0x909   : > { %4191 = vperm.xlu0 %8608, %v4154_v34   ;;  %v7182_v34 = vmul.f32 -1.442695, %v11578_v39 }
 0x90b   : > { %9092 = vpow2.f32 %v7182_v34 }
 0x90d   : > { %4194 = vperm.xlu0 %8608, %v4155_v37   ;;  %v7185_v37 = vmul.f32 -1.442695, %v11582_v15  ;;  %v7188_v15 = vmul.f32 -1.442695, %v11607_v35 }
 0x90f   : > { %9094 = vpow2.f32 %v7185_v37 }
 0x910   : > { %9096 = vpow2.f32 %v7184_v14 }
 0x911   : > { %4197 = vperm.xlu0 %8608, %v4156_v32   ;;  %v7187_v32 = vmul.f32 -1.442695, %v11592_v31  ;;  %v7191_v31 = vmul.f32 -1.442695, %v11612_v0 }
 0x913   : > { %9098 = vpow2.f32 %v7187_v32 }
 0x914   : > { %v9091_v54 = vpop.eup %9090  ;;  %9100 = vpow2.f32 %v7186_v12 }
 0x915   : > { %4200 = vperm.xlu0 %8608, %v4157_v61   ;;  %v3873_v39 = vadd.f32 1.0, %v9091_v54  ;;  %v7189_v61 = vmul.f32 -1.442695, %v11602_v46  ;;  %v7190_v46 = vmul.f32 -1.442695, %v11620_v13 }
 0x917   : > { %9102 = vrcp.f32 %v3873_v39 }
 0x918   : > { %v9093_v55 = vpop.eup %9092  ;;  %9104 = vpow2.f32 %v7189_v61 }
 0x919   : > { %4203 = vperm.xlu0 %8608, %v4158_v21   ;;  %v3872_v21 = vadd.f32 1.0, %v9093_v55  ;;  %v7193_v55 = vmul.f32 -1.442695, %v11627_v41 }
 0x91b   : > { %9106 = vrcp.f32 %v3872_v21 }
 0x91c   : > { %v9095_v34 = vpop.eup %9094  ;;  %9108 = vpow2.f32 %v7188_v15 }
 0x91d   : > { %4206 = vperm.xlu0 %8608, %v4159_v25   ;;  %v3875_v24 = vadd.f32 1.0, %v9095_v34  ;;  %v9097_v25 = vpop.eup %9096 }
 0x91e   : > { %v3874_v14 = vadd.f32 1.0, %v9097_v25 }
 0x91f   : > { %9110 = vrcp.f32 %v3875_v24  ;;  %v7192_v24 = vmul.f32 -1.442695, %v11635_v30 }
 0x920   : > { %v9099_v32 = vpop.eup %9098  ;;  %9112 = vpow2.f32 %v7191_v31 }
 0x921   : > { %9114 = vpow2.f32 %v7197_v18  ;;  %v9101_v12 = vpop.eup %9100  ;;  %v3877_v35 = vadd.f32 1.0, %v9099_v32 }
 0x922   : > { %9116 = vrcp.f32 %v3874_v14  ;;  %v3876_v0 = vadd.f32 1.0, %v9101_v12 }
 0x923   : > { %9118 = vpow2.f32 %v7190_v46 }
 0x924   : > { %v11711_v39 = vpop.eup %9102  ;;  %9120 = vrcp.f32 %v3877_v35  ;;  %v7195_v35 = vmul.f32 -1.442695, %v11640_v28 }
 0x925   : > { %v9105_v20 = vpop.eup %9104  ;;  %9122 = vpow2.f32 %v7193_v55 }
 0x926   : > { %9124 = vrcp.f32 %v3876_v0  ;;  %v3879_v41 = vadd.f32 1.0, %v9105_v20 }
 0x928   : > { %v11714_v34 = vpop.eup %9106 }
 0x929   : > { %v9109_v14 = vpop.eup %9108 }
 0x92a   : > { %v3878_v0 = vadd.f32 1.0, %v9109_v14 }
 0x936   : > { %v3955_v26 = vpop.permute.xlu0 %3954 }
 0x937   : > { %v4001_v21 = vmul.f32 %v11711_v39, %v3955_v26  ;;  %v11725_v26 = vpop.eup %9110 }
 0x938   : > { %v3953_v61 = vpop.permute.xlu1 %3952  ;;  %v9113_v12 = vpop.eup %9112 }
 0x939   : > { %v4000_v25 = vmul.f32 %v11714_v34, %v3953_v61  ;;  %v9115_v61 = vpop.eup %9114 }
 0x93a   : > { %v3959_v37 = vpop.permute.xlu0 %3958 }
 0x93b   : > { %v4003_v30 = vmul.f32 %v11725_v26, %v3959_v37 }
 0x93c   : > { %v3957_v55 = vpop.permute.xlu1 %3956 }
 0x93e   : > { %v3963_v54 = vpop.permute.xlu0 %3962 }
 0x942   : > { %v11716_v15 = vpop.permute.xlu0 %3966 }
 0x946   : > { %v11729_v20 = vpop.permute.xlu0 %3970 }
 0x948   : > { %v8206_v13 = vpop.f32.mrf.mxu1 }
 0x949   : > { %v11720_v31 = vadd.f32 %v8206_v13, %v4001_v21 }
 0x94a   : > { %v3713_v18 = vpop.f32.mrf.mxu1 }
 0x94b   : > { %13519 = vst [vmem:[#allocation29_spill] sm:$0xff] %v11720_v31  ;;  %9126 = vtanh.f32 %v11720_v31  ;;  %v11723_v32 = vadd.f32 %v4000_v25, %v3713_v18  ;;  %v11734_v25 = vpop.eup %9116  ;;  %v3881_v18 = vadd.f32 1.0, %v9113_v12 }
 0x94c   : > { %v8209_v46 = vpop.f32.mrf.mxu1  ;;  %9128 = vpow2.f32 %v7192_v24  ;;  %v3887_v24 = vadd.f32 1.0, %v9115_v61  ;;  %v4002_v28 = vmul.f32 %v11734_v25, %v3957_v55  ;;  %v9119_v37 = vpop.eup %9118  ;;  %v7196_v61 = vmul.f32 -1.442695, %v11657_v1 }
 0x94d   : > { %13520 = vst [vmem:[#allocation30_spill] sm:$0xff] %v11723_v32  ;;  %9130 = vrcp.f32 %v3879_v41  ;;  %v11732_v13 = vadd.f32 %v8209_v46, %v4003_v30  ;;  %v7194_v41 = vmul.f32 -1.442695, %v11648_v57  ;;  %v11741_v4 = vpop.eup %9120  ;;  %v11743_v46 = vpop.permute.xlu0 %3974  ;;  %v3880_v30 = vadd.f32 1.0, %v9119_v37 }
 0x94e   : > { %v3723_v21 = vpop.f32.mrf.mxu1  ;;  %9132 = vtanh.f32 %v11723_v32  ;;  %v9123_v55 = vpop.eup %9122 }
 0x94f   : > { %13521 = vst [vmem:[#allocation31_spill] sm:$0xff] %v11732_v13  ;;  %9134 = vpow2.f32 %v7195_v35  ;;  %v11739_v51 = vadd.f32 %v4002_v28, %v3723_v21  ;;  %v4005_v35 = vmul.f32 %v11741_v4, %v3963_v54  ;;  %v3961_v57 = vpop.permute.xlu1 %3960  ;;  %v11747_v40 = vpop.eup %9124 }
 0x950   : > { %v8212_v48 = vpop.f32.mrf.mxu1  ;;  %9136 = vrcp.f32 %v3878_v0  ;;  %v4004_v37 = vmul.f32 %v11747_v40, %v3961_v57 }
 0x951   : > { %9138 = vtanh.f32 %v11732_v13  ;;  %13522 = vst [vmem:[#allocation32_spill] sm:$0xff] %v11739_v51  ;;  %v11750_v21 = vadd.f32 %v8212_v48, %v4005_v35 }
 0x952   : > { %v3733_v14 = vpop.f32.mrf.mxu1  ;;  %9140 = vrcp.f32 %v3881_v18 }
 0x953   : > { %9142 = vrcp.f32 %v3887_v24  ;;  %v3883_v24 = vadd.f32 1.0, %v9123_v55  ;;  %v11759_v47 = vadd.f32 %v4004_v37, %v3733_v14  ;;  %v3965_v57 = vpop.permute.xlu1 %3964 }
 0x954   : > { %v8215_v12 = vpop.f32.mrf.mxu1  ;;  %9144 = vpow2.f32 %v7194_v41  ;;  %v11754_v41 = vpop.permute.xlu0 %3978 }
 0x955   : > { %9146 = vtanh.f32 %v11739_v51 }
 0x956   : > { %v3743_v0 = vpop.f32.mrf.mxu1  ;;  %9148 = vrcp.f32 %v3880_v30 }
 0x957   : > { %9150 = vpow2.f32 %v7196_v61 }
 0x958   : > { %v9127_v18 = vpop.eup %9126  ;;  %v8218_v28 = vpop.f32.mrf.mxu1  ;;  %9152 = vtanh.f32 %v11750_v21 }
 0x959   : > { %4066 = vrot.lane.b32.xlu1 %v9127_v18, %s9717_s24  ;;  %v9129_v54 = vpop.eup %9128  ;;  %9154 = vrcp.f32 %v3883_v24  ;;  %v3983_v10 = vpop.permute.xlu0 %3982 }
 0x95a   : > { %v3753_v1 = vpop.f32.mrf.mxu1  ;;  %v11756_v11 = vpop.eup %9130  ;;  %v3882_v55 = vadd.f32 1.0, %v9129_v54  ;;  %9156 = vtanh.f32 %v11759_v47 }
 0x95b   : > { %v9133_v48 = vpop.eup %9132  ;;  %v4007_v30 = vmul.f32 %v11756_v11, %v11716_v15 }
 0x95c   : > { %v8221_v35 = vpop.f32.mrf.mxu1  ;;  %v9135_v18 = vpop.eup %9134  ;;  %9158 = vrcp.f32 %v3882_v55 }
 0x95d   : > { %4064 = vrot.lane.b32.xlu1 %v9133_v48, %s9717_s24  ;;  %v11764_v22 = vpop.eup %9136  ;;  %v11767_v45 = vadd.f32 %v8215_v12, %v4007_v30  ;;  %v3885_v15 = vadd.f32 1.0, %v9135_v18  ;;  %v3969_v55 = vpop.permute.xlu1 %3968 }
 0x95e   : > { %v3763_v61 = vpop.f32.mrf.mxu1  ;;  %v9139_v14 = vpop.eup %9138  ;;  %v4006_v37 = vmul.f32 %v11764_v22, %v3965_v57 }
 0x95f   : > { %13523 = vst [vmem:[#allocation33_spill] sm:$0xff] %v11767_v45  ;;  %v11770_v31 = vpop.eup %9140  ;;  %9160 = vtanh.f32 %v11767_v45 }
 0x960   : > { %v8224_v19 = vpop.f32.mrf.mxu1  ;;  %v11773_v48 = vpop.eup %9142  ;;  %v11775_v54 = vadd.f32 %v4006_v37, %v3743_v0  ;;  %9162 = vrcp.f32 %v3885_v15  ;;  %v4009_v13 = vmul.f32 %v11770_v31, %v11729_v20 }
 0x961   : > { %4070 = vrot.lane.b32.xlu1 %v9139_v14, %s9717_s24  ;;  %v9145_v63 = vpop.eup %9144  ;;  %v4015_v12 = vmul.f32 %v11773_v48, %v3983_v10 }
 0x962   : > { %v3773_v24 = vpop.f32.mrf.mxu1  ;;  %v9147_v30 = vpop.eup %9146  ;;  %v3884_v0 = vadd.f32 1.0, %v9145_v63  ;;  %9164 = vtanh.f32 %v11775_v54  ;;  %v11787_v10 = vadd.f32 %v8218_v28, %v4009_v13 }
 0x963   : > { %v11784_v14 = vpop.eup %9148  ;;  %v3973_v28 = vpop.permute.xlu1 %3972 }
 0x964   : > { %v8227_v57 = vpop.f32.mrf.mxu1  ;;  %v9151_v37 = vpop.eup %9150  ;;  %v4008_v15 = vmul.f32 %v11784_v14, %v3969_v55 }
 0x965   : > { %v11781_v18 = vadd.f32 %v8227_v57, %v4015_v12  ;;  %4068 = vrot.lane.b32.xlu1 %v9147_v30, %s9717_s24  ;;  %v9153_v7 = vpop.eup %9152  ;;  %v3886_v20 = vadd.f32 1.0, %v9151_v37  ;;  %v11797_v30 = vpop.permute.xlu0 %4164 }
 0x966   : > { %v11792_v12 = vpop.eup %9154  ;;  %v11795_v63 = vadd.f32 %v4008_v15, %v3753_v1  ;;  %v3783_v45 = vpop.f32.mrf.mxu1  ;;  %vm4209_vm7 = vcmp.eq.s32.totalorder %v11797_v30, 1 }
 0x967   : > { %9166 = vtanh.f32 %v11781_v18  ;;  %v9157_v57 = vpop.eup %9156  ;;  %v4011_v13 = vmul.f32 %v11792_v12, %v11743_v46  ;;  %v3977_v62 = vpop.permute.xlu1 %3976 }
 0x968   : > { %9168 = vrcp.f32 %v3884_v0 }
 0x969   : > { %4074 = vrot.lane.b32.xlu1 %v9153_v7, %s9717_s24  ;;  %9170 = vtanh.f32 %v11787_v10  ;;  %v11802_v55 = vpop.eup %9158  ;;  %v11805_v7 = vadd.f32 %v8221_v35, %v4011_v13  ;;  %v11807_v0 = vpop.permute.xlu0 %4167 }
 0x96a   : > { %9172 = vrcp.f32 %v3886_v20  ;;  %v4010_v37 = vmul.f32 %v11802_v55, %v3973_v28  ;;  %vm4210_vm10 = vcmp.eq.s32.totalorder %v11807_v0, 1  ;;  %v13544_v0 = vld [vmem:[#allocation28_spill] sm:$0xff] }
 0x96b   : > { %9174 = vtanh.f32 %v11795_v63  ;;  %v3981_v51 = vpop.permute.xlu1 %3980 }
 0x96c   : > { %v9161_v1 = vpop.eup %9160  ;;  %9176 = vtanh.f32 %v11805_v7  ;;  %v11814_v20 = vadd.f32 %v4010_v37, %v3763_v61 }
 0x96d   : > { %4072 = vrot.lane.b32.xlu1 %v9157_v57, %s9717_s24  ;;  %v11811_v15 = vpop.eup %9162  ;;  %v11816_v57 = vpop.permute.xlu0 %4170 }
 0x96e   : > { %v4013_v35 = vmul.f32 %v11811_v15, %v11754_v41  ;;  %9178 = vtanh.f32 %v11814_v20  ;;  %vm4211_vm9 = vcmp.eq.s32.totalorder %v11816_v57, 1 }
 0x96f   : > { %v9165_v46 = vpop.eup %9164 }
 0x970   : > { %v11825_v28 = vadd.f32 %v8224_v19, %v4013_v35 }
 0x971   : > { %4078 = vrot.lane.b32.xlu1 %v9161_v1, %s9717_s24  ;;  %v11827_v1 = vpop.permute.xlu0 %4173 }
 0x972   : > { %9180 = vtanh.f32 %v11825_v28  ;;  %vm4212_vm11 = vcmp.eq.s32.totalorder %v11827_v1, 1 }
 0x974   : > { %v9167_v32 = vpop.eup %9166 }
 0x975   : > { %4094 = vrot.lane.b32.xlu0 %v9167_v32, %s9717_s24  ;;  %4076 = vrot.lane.b32.xlu1 %v9165_v46, %s9717_s24  ;;  %v11822_v13 = vpop.eup %9168  ;;  %v4177_v41 = vpop.permute.xlu0 %4176 }
 0x976   : > { %v9171_v61 = vpop.eup %9170  ;;  %v4012_v37 = vmul.f32 %v11822_v13, %v3977_v62  ;;  %vm4213_vm6 = vcmp.eq.s32.totalorder %v4177_v41, 1 }
 0x977   : > { %v11831_v38 = vpop.eup %9172  ;;  %v11841_v62 = vsel %vm4213_vm6, %v11750_v21, %v11109_v59 }
 0x978   : > { %v11834_v32 = vadd.f32 %v4012_v37, %v3773_v24  ;;  %v9175_v46 = vpop.eup %9174  ;;  %v4014_v19 = vmul.f32 %v11831_v38, %v3981_v51  ;;  %13524 = vst [vmem:[#allocation34_spill] sm:$0xff] %v11841_v62 }
 0x979   : > { %4082 = vrot.lane.b32.xlu1 %v9171_v61, %s9717_s24  ;;  %v9177_v61 = vpop.eup %9176  ;;  %v11852_v21 = vpop.permute.xlu0 %4179 }
 0x97a   : > { %9182 = vtanh.f32 %v11834_v32  ;;  %v11844_v35 = vadd.f32 %v4014_v19, %v3783_v45  ;;  %v11854_v45 = vpop.permute.xlu1 %4161  ;;  %vm4214_vm13 = vcmp.eq.s32.totalorder %v11852_v21, 1 }
 0x97b   : > { %v9179_v24 = vpop.eup %9178  ;;  %vm4208_vm8 = vcmp.eq.s32.totalorder %v11854_v45, 1 }
 0x97c   : > { %9184 = vtanh.f32 %v11844_v35 }
 0x97d   : > { %4080 = vrot.lane.b32.xlu1 %v9175_v46, %s9717_s24  ;;  %v11856_v46 = vpop.permute.xlu0 %4182 }
 0x97e   : > { %vm4215_vm12 = vcmp.eq.s32.totalorder %v11856_v46, 1 }
 0x97f   : > { %v9181_v51 = vpop.eup %9180 }
 0x981   : > { %4086 = vrot.lane.b32.xlu1 %v9177_v61, %s9717_s24 }
 0x985   : > { %4084 = vrot.lane.b32.xlu1 %v9179_v24, %s9717_s24  ;;  %v11860_v24 = vpop.permute.xlu0 %4185 }
 0x986   : > { %vm4216_vm15 = vcmp.eq.s32.totalorder %v11860_v24, 1 }
 0x987   : > { %v9183_v37 = vpop.eup %9182 }
 0x989   : > { %4090 = vrot.lane.b32.xlu1 %v9181_v51, %s9717_s24  ;;  %v9185_v59 = vpop.eup %9184  ;;  %v13525_v51 = vld [vmem:[#allocation35_spill] sm:$0xff] }
 0x98d   : > { %4088 = vrot.lane.b32.xlu1 %v9183_v37, %s9717_s24 }
 0x991   : > { %4092 = vrot.lane.b32.xlu1 %v9185_v59, %s9717_s24 }
 0x9cb   : > { %v4067_v19 = vpop.permute.xlu1 %4066 }
 0x9cc   : > { %v4113_v61 = vmul.f32 %v11711_v39, %v4067_v19  ;;  %v11876_v19 = vpop.permute.xlu0 %4188 }
 0x9cd   : > { %vm4217_vm14 = vcmp.eq.s32.totalorder %v11876_v19, 1 }
 0x9ce   : > { %v11865_v37 = vsel %vm4209_vm7, %v4113_v61, %v13525_v51 }
 0x9cf   : > { %13526 = vst [vmem:[#allocation35_spill] sm:$0xff] %v11865_v37  ;;  %4274 = vrot.lane.b32.xlu0 %v11865_v37, %s9720_s21  ;;  %v4065_v59 = vpop.permute.xlu1 %4064  ;;  %v13528_v37 = vld [vmem:[#allocation22_spill] sm:$0xff] }
 0x9d0   : > { %v4112_v62 = vmul.f32 %v11714_v34, %v4065_v59  ;;  %v11891_v59 = vpop.permute.xlu0 %4191 }
 0x9d1   : > { %vm4218_vm2 = vcmp.eq.s32.totalorder %v11891_v59, 1 }
 0x9d2   : > { %v11874_v39 = vsel %vm4208_vm8, %v4112_v62, %v13527_v60 }
 0x9d3   : > { %4272 = vrot.lane.b32.xlu1 %v11874_v39, %s9720_s21  ;;  %v4071_v61 = vpop.permute.xlu1 %4070 }
 0x9d4   : > { %v4115_v51 = vmul.f32 %v11725_v26, %v4071_v61 }
 0x9d6   : > { %v11885_v34 = vsel %vm4211_vm9, %v4115_v51, %v13528_v37 }
 0x9d7   : > { %13529 = vst [vmem:[#allocation21_spill] sm:$0xff] %v11885_v34  ;;  %4278 = vrot.lane.b32.xlu0 %v11885_v34, %s9720_s21  ;;  %v4069_v60 = vpop.permute.xlu1 %4068 }
 0x9d8   : > { %v4114_v62 = vmul.f32 %v11734_v25, %v4069_v60  ;;  %v11905_v25 = vpop.permute.xlu0 %4194 }
 0x9d9   : > { %vm4219_vm1 = vcmp.eq.s32.totalorder %v11905_v25, 1 }
 0x9da   : > { %v11896_v26 = vsel %vm4210_vm10, %v4114_v62, %v11164_v44 }
 0x9db   : > { %4276 = vrot.lane.b32.xlu1 %v11896_v26, %s9720_s21  ;;  %v4075_v37 = vpop.permute.xlu1 %4074 }
 0x9dc   : > { %v4117_v61 = vmul.f32 %v11741_v4, %v4075_v37  ;;  %v4198_v41 = vpop.permute.xlu0 %4197 }
 0x9dd   : > { %vm4220_vm4 = vcmp.eq.s32.totalorder %v4198_v41, 1 }
 0x9de   : > { %v11903_v51 = vsel %vm4213_vm6, %v4117_v61, %v11171_v16  ;;  %v13530_v61 = vld [vmem:[#allocation23_spill] sm:$0xff] }
 0x9df   : > { %4282 = vrot.lane.b32.xlu0 %v11903_v51, %s9720_s21  ;;  %v4073_v60 = vpop.permute.xlu1 %4072 }
 0x9e0   : > { %v4116_v34 = vmul.f32 %v11747_v40, %v4073_v60 }
 0x9e2   : > { %v11914_v44 = vsel %vm4212_vm11, %v4116_v34, %v11182_v29  ;;  %v4201_v34 = vpop.permute.xlu0 %4200 }
 0x9e3   : > { %4280 = vrot.lane.b32.xlu1 %v11914_v44, %s9720_s21  ;;  %v4079_v16 = vpop.permute.xlu1 %4078  ;;  %vm4221_vm3 = vcmp.eq.s32.totalorder %v4201_v34, 1 }
 0x9e4   : > { %v4119_v4 = vmul.f32 %v11756_v11, %v4079_v16 }
 0x9e6   : > { %v11923_v40 = vsel %vm4215_vm12, %v4119_v4, %v11191_v49  ;;  %v4204_v16 = vpop.permute.xlu0 %4203 }
 0x9e7   : > { %4286 = vrot.lane.b32.xlu0 %v11923_v40, %s9720_s21  ;;  %v4077_v62 = vpop.permute.xlu1 %4076  ;;  %vm4222_vm6 = vcmp.eq.s32.totalorder %v4204_v16, 1 }
 0x9e8   : > { %v4118_v29 = vmul.f32 %v11764_v22, %v4077_v62 }
 0x9ea   : > { %v11932_v11 = vsel %vm4214_vm13, %v4118_v29, %v11200_v6  ;;  %v4207_v29 = vpop.permute.xlu0 %4206 }
 0x9eb   : > { %4284 = vrot.lane.b32.xlu1 %v11932_v11, %s9720_s21  ;;  %v4083_v37 = vpop.permute.xlu1 %4082  ;;  %vm4223_vm5 = vcmp.eq.s32.totalorder %v4207_v29, 1 }
 0x9ec   : > { %v4121_v49 = vmul.f32 %v11770_v31, %v4083_v37 }
 0x9ee   : > { %v11941_v22 = vsel %vm4217_vm14, %v4121_v49, %v13530_v61  ;;  %v4095_v49 = vpop.permute.xlu0 %4094 }
 0x9ef   : > { %4290 = vrot.lane.b32.xlu0 %v11941_v22, %s9720_s21  ;;  %v4081_v60 = vpop.permute.xlu1 %4080 }
 0x9f0   : > { %v4120_v6 = vmul.f32 %v11784_v14, %v4081_v60  ;;  %v4127_v60 = vmul.f32 %v11773_v48, %v4095_v49  ;;  %v12129_v49 = vld [vmem:[%s9923_s17] sm:$0xff] }
 0x9f2   : > { %v11950_v31 = vsel %vm4216_vm15, %v4120_v6, %v11218_v8 }
 0x9f3   : > { %4288 = vrot.lane.b32.xlu1 %v11950_v31, %s9720_s21  ;;  %v4087_v4 = vpop.permute.xlu1 %4086 }
 0x9f4   : > { %v4123_v62 = vmul.f32 %v11792_v12, %v4087_v4  ;;  %v11982_v4 = vsel %vm4223_vm5, %v4127_v60, %v11250_v27 }
 0x9f6   : > { %v11959_v14 = vsel %vm4219_vm1, %v4123_v62, %v11227_v3 }
 0x9f7   : > { %4294 = vrot.lane.b32.xlu0 %v11959_v14, %s9720_s21  ;;  %v4085_v37 = vpop.permute.xlu1 %4084 }
 0x9f8   : > { %v4122_v8 = vmul.f32 %v11802_v55, %v4085_v37 }
 0x9fa   : > { %v11968_v12 = vsel %vm4218_vm2, %v4122_v8, %v11236_v36 }
 0x9fb   : > { %4292 = vrot.lane.b32.xlu1 %v11968_v12, %s9720_s21  ;;  %v4091_v3 = vpop.permute.xlu1 %4090 }
 0x9fc   : > { %v4125_v61 = vmul.f32 %v11811_v15, %v4091_v3 }
 0x9fe   : > { %v11976_v55 = vsel %vm4221_vm3, %v4125_v61, %v11244_v50 }
 0x9ff   : > { %4298 = vrot.lane.b32.xlu0 %v11976_v55, %s9720_s21  ;;  %v4089_v6 = vpop.permute.xlu1 %4088 }
 0xa00   : > { %v4124_v36 = vmul.f32 %v11822_v13, %v4089_v6  ;;  %v11994_v13 = vsel %vm4222_vm6, %v11844_v35, %v11262_v5  ;;  %v12019_v5 = vsel %vm4218_vm2, %v11814_v20, %v11287_v56  ;;  %v12050_v56 = vsel %vm4214_vm13, %v11775_v54, %v11318_v53  ;;  %v13532_v53 = vld [vmem:[#allocation33_spill] sm:$0xff]  ;;  %v13541_v20 = vld [vmem:[#allocation27_spill] sm:$0xff] }
 0xa02   : > { %v11985_v15 = vsel %vm4220_vm4, %v4124_v36, %v11253_v23  ;;  %v12005_v23 = vsel %vm4220_vm4, %v11834_v32, %v11273_v2  ;;  %v12034_v2 = vsel %vm4216_vm15, %v11795_v63, %v11302_v42  ;;  %v12066_v42 = vsel %vm4212_vm11, %v11759_v47, %v11334_v17  ;;  %v13537_v17 = vld [vmem:[#allocation34_spill] sm:$0xff]  ;;  %v13545_v32 = vld [vmem:[#allocation29_spill] sm:$0xff] }
 0xa03   : > { %4302 = vrot.lane.b32.xlu0 %v11982_v4, %s9720_s21  ;;  %4296 = vrot.lane.b32.xlu1 %v11985_v15, %s9720_s21  ;;  %v4093_v50 = vpop.permute.xlu1 %4092  ;;  %v13538_v47 = vld [vmem:[#allocation26_spill] sm:$0xff]  ;;  %v12108_v35 = vsel %vm4209_vm7, %v13545_v32, %v13544_v0 }
 0xa04   : > { %v4126_v48 = vmul.f32 %v11831_v38, %v4093_v50  ;;  %v12009_v38 = vsel %vm4223_vm5, %v11781_v18, %v11277_v52  ;;  %v12040_v52 = vsel %vm4219_vm1, %v11805_v7, %v11308_v9  ;;  %v13531_v9 = vld [vmem:[#allocation24_spill] sm:$0xff]  ;;  %v13539_v63 = vld [vmem:[#allocation30_spill] sm:$0xff] }
 0xa05   : > { %v12072_v54 = vsel %vm4215_vm12, %v13532_v53, %v13531_v9  ;;  %v13535_v18 = vld [vmem:[#allocation32_spill] sm:$0xff]  ;;  %v12092_v7 = vsel %vm4208_vm8, %v13539_v63, %v13538_v47 }
 0xa06   : > { %v11997_v27 = vsel %vm4222_vm6, %v4126_v48, %v11265_v43  ;;  %v12024_v43 = vsel %vm4221_vm3, %v11825_v28, %v11292_v33  ;;  %v12056_v33 = vsel %vm4217_vm14, %v11787_v10, %v11324_v58  ;;  %13533 = vst [vmem:[#allocation22_spill] sm:$0xff] %v12072_v54  ;;  %v13534_v58 = vld [vmem:[#allocation25_spill] sm:$0xff]  ;;  %13540 = vst [vmem:[#allocation24_spill] sm:$0xff] %v12092_v7  ;;  %v13542_v28 = vld [vmem:[#allocation31_spill] sm:$0xff] }
 0xa07   : > { %4782 = vrot.lane.b32.xlu0 %v11994_v13, %s9720_s21  ;;  %4300 = vrot.lane.b32.xlu1 %v11997_v27, %s9720_s21  ;;  %v12082_v10 = vsel %vm4210_vm10, %v13535_v18, %v13534_v58  ;;  %v12098_v1 = vsel %vm4211_vm9, %v13542_v28, %v13541_v20  ;;  %13546 = vst [vmem:[#allocation25_spill] sm:$0xff] %v12108_v35  ;;  %v12151_v20 = vld [vmem:[%s13358_s5] ss:$0 sm:$0xff] }
 0xa08   : > { %13536 = vst [vmem:[#allocation23_spill] sm:$0xff] %v12082_v10  ;;  %13543 = vst [vmem:[#allocation33_spill] sm:$0xff] %v12098_v1 }
 0xa0b   : > { %4778 = vrot.lane.b32.xlu0 %v12005_v23, %s9720_s21  ;;  %4784 = vrot.lane.b32.xlu1 %v12009_v38, %s9720_s21 }
 0xa0f   : > { %4774 = vrot.lane.b32.xlu0 %v12019_v5, %s9720_s21  ;;  %4780 = vrot.lane.b32.xlu1 %v12024_v43, %s9720_s21 }
 0xa13   : > { %4770 = vrot.lane.b32.xlu0 %v12034_v2, %s9720_s21  ;;  %4776 = vrot.lane.b32.xlu1 %v12040_v52, %s9720_s21 }
 0xa17   : > { %4766 = vrot.lane.b32.xlu0 %v12050_v56, %s9720_s21  ;;  %4772 = vrot.lane.b32.xlu1 %v12056_v33, %s9720_s21 }
 0xa1b   : > { %4762 = vrot.lane.b32.xlu0 %v12066_v42, %s9720_s21  ;;  %4768 = vrot.lane.b32.xlu1 %v12072_v54, %s9720_s21 }
 0xa1f   : > { %4758 = vrot.lane.b32.xlu0 %v12082_v10, %s9720_s21  ;;  %4764 = vrot.lane.b32.xlu1 %v13537_v17, %s9720_s21 }
 0xa23   : > { %4754 = vrot.lane.b32.xlu0 %v12092_v7, %s9720_s21  ;;  %4760 = vrot.lane.b32.xlu1 %v12098_v1, %s9720_s21 }
 0xa27   : > { %4756 = vrot.lane.b32.xlu1 %v12108_v35, %s9720_s21 }
 0xa41   : > { %v4275_v45 = vpop.permute.xlu0 %4274 }
 0xa45   : > { %v4273_v21 = vpop.permute.xlu1 %4272 }
 0xa46   : > { %8236 = vmatprep.mubr.msk.f32.mxu0 %vm492_vm0, %v4273_v21 }
 0xa47   : > { %8237 = vmatmul.mubr.msk.f32.vlgmr.msra.gmra.mxu0 %vm492_vm0, %v4275_v45 }
 0xa49   : > { %v4279_v46 = vpop.permute.xlu0 %4278 }
 0xa4d   : > { %v4277_v57 = vpop.permute.xlu1 %4276 }
 0xa4e   : > { %8239 = vmatprep.mubr.msk.f32.mxu0 %vm492_vm0, %v4277_v57 }
 0xa4f   : > { %8240 = vmatmul.mubr.msk.f32.gmra.mxu0 %vm492_vm0, %v4279_v46 }
 0xa51   : > { %v4283_v19 = vpop.permute.xlu0 %4282 }
 0xa55   : > { %v4281_v24 = vpop.permute.xlu1 %4280 }
 0xa56   : > { %8242 = vmatprep.mubr.msk.f32.mxu0 %vm492_vm0, %v4281_v24 }
 0xa57   : > { %8243 = vmatmul.mubr.msk.f32.gmra.mxu0 %vm492_vm0, %v4283_v19 }
 0xa59   : > { %v4287_v59 = vpop.permute.xlu0 %4286 }
 0xa5d   : > { %v4285_v30 = vpop.permute.xlu1 %4284 }
 0xa5e   : > { %8245 = vmatprep.mubr.msk.f32.mxu0 %vm492_vm0, %v4285_v30 }
 0xa5f   : > { %8246 = vmatmul.mubr.msk.f32.gmra.mxu0 %vm492_vm0, %v4287_v59 }
 0xa61   : > { %v4291_v41 = vpop.permute.xlu0 %4290 }
 0xa65   : > { %v4289_v25 = vpop.permute.xlu1 %4288 }
 0xa66   : > { %8248 = vmatprep.mubr.msk.f32.mxu0 %vm492_vm0, %v4289_v25 }
 0xa67   : > { %8249 = vmatmul.mubr.msk.f32.gmra.mxu0 %vm492_vm0, %v4291_v41 }
 0xa69   : > { %v4295_v16 = vpop.permute.xlu0 %4294 }
 0xa6d   : > { %v4293_v34 = vpop.permute.xlu1 %4292 }
 0xa6e   : > { %8251 = vmatprep.mubr.msk.f32.mxu0 %vm492_vm0, %v4293_v34 }
 0xa6f   : > { %8252 = vmatmul.mubr.msk.f32.gmra.mxu0 %vm492_vm0, %v4295_v16 }
 0xa71   : > { %v4299_v62 = vpop.permute.xlu0 %4298 }
 0xa75   : > { %v4297_v29 = vpop.permute.xlu1 %4296  ;;  %v4303_v8 = vpop.permute.xlu0 %4302 }
 0xa76   : > { %8254 = vmatprep.mubr.msk.f32.mxu0 %vm492_vm0, %v4297_v29 }
 0xa77   : > { %8255 = vmatmul.mubr.msk.f32.gmra.mxu0 %vm492_vm0, %v4299_v62 }
 0xa79   : > { %v4301_v37 = vpop.permute.xlu1 %4300 }
 0xa7a   : > { %8257 = vmatprep.mubr.msk.f32.mxu0 %vm492_vm0, %v4301_v37 }
 0xa7b   : > { %8258 = vmatmul.mubr.msk.f32.gmra.mxu0 %vm492_vm0, %v4303_v8 }
 0xa7c   : > { %8348 = vmatprep.mubr.f32.mxu0 %v12129_v49 }
 0xb07   : > { %v12132_v3 = vpop.f32.mrf.mxu0 }
 0xb09   : > { %v12134_v61 = vpop.f32.mrf.mxu0 }
 0xb0f   : > { %v12136_v60 = vpop.f32.mrf.mxu0 }
 0xb11   : > { %v12138_v6 = vpop.f32.mrf.mxu0 }
 0xb17   : > { %v12140_v36 = vpop.f32.mrf.mxu0 }
 0xb19   : > { %v12142_v50 = vpop.f32.mrf.mxu0 }
 0xb1f   : > { %v12144_v48 = vpop.f32.mrf.mxu0 }
 0xb20   : > { %v4488_v37 = vadd.f32 %v12151_v20, %v12144_v48 }
 0xb21   : > { %v12146_v9 = vpop.f32.mrf.mxu0 }
 0xb27   : > { %v8250_v53 = vpop.f32.mrf.mxu0 }
 0xb28   : > { %v4490_v25 = vadd.f32 %v12151_v20, %v8250_v53 }
 0xb29   : > { %v4442_v58 = vpop.f32.mrf.mxu0 }
 0xb2a   : > { %v4489_v16 = vadd.f32 %v12151_v20, %v4442_v58  ;;  %v7223_v8 = vmul.f32 -1.442695, %v4490_v25 }
 0xb2f   : > { %v8253_v18 = vpop.f32.mrf.mxu0 }
 0xb30   : > { %v4492_v0 = vadd.f32 %v12151_v20, %v8253_v18 }
 0xb31   : > { %v4452_v47 = vpop.f32.mrf.mxu0 }
 0xb32   : > { %v4491_v46 = vadd.f32 %v12151_v20, %v4452_v47  ;;  %v7225_v30 = vmul.f32 -1.442695, %v4492_v0  ;;  %v7222_v0 = vmul.f32 -1.442695, %v4489_v16 }
 0xb34   : > { %v7224_v62 = vmul.f32 -1.442695, %v4491_v46 }
 0xb37   : > { %v8256_v63 = vpop.f32.mrf.mxu0 }
 0xb38   : > { %v4494_v28 = vadd.f32 %v12151_v20, %v8256_v63 }
 0xb39   : > { %v4462_v32 = vpop.f32.mrf.mxu0 }
 0xb3a   : > { %v7227_v21 = vmul.f32 -1.442695, %v4494_v28  ;;  %v4493_v45 = vadd.f32 %v12151_v20, %v4462_v32  ;;  %v4487_v28 = vadd.f32 %v12151_v20, %v12146_v9 }
 0xb3b   : > { %v8259_v57 = vpop.f32.mrf.mxu0 }
 0xb3c   : > { %v7226_v24 = vmul.f32 -1.442695, %v4493_v45  ;;  %v4496_v19 = vadd.f32 %v12151_v20, %v8259_v57  ;;  %8260 = vmatprep.subr.mxu1 %v8259_v57  ;;  %9186 = vpow2.f32 %v7227_v21  ;;  %v4484_v21 = vadd.f32 %v12151_v20, %v12136_v60 }
 0xb3d   : > { %v4472_v59 = vpop.f32.mrf.mxu0  ;;  %8261 = vmatpush3.msra.mxu1 %v8259_v57  ;;  %v7221_v45 = vmul.f32 -1.442695, %v4488_v37  ;;  %v4485_v57 = vadd.f32 %v12151_v20, %v12142_v50 }
 0xb3e   : > { %v7229_v41 = vmul.f32 -1.442695, %v4496_v19  ;;  %v4495_v34 = vadd.f32 %v12151_v20, %v4472_v59  ;;  %8262 = vmatprep.subr.mxu1 %v4472_v59  ;;  %9188 = vpow2.f32 %v7226_v24  ;;  %v7217_v46 = vmul.f32 -1.442695, %v4484_v21 }
 0xb3f   : > { %8263 = vmatpush3.msra.mxu1 %v4472_v59 }
 0xb40   : > { %9190 = vpow2.f32 %v7229_v41  ;;  %v7228_v29 = vmul.f32 -1.442695, %v4495_v34  ;;  %8264 = vmatprep.subr.mxu1 %v8256_v63 }
 0xb41   : > { %9192 = vpow2.f32 %v7225_v30  ;;  %8265 = vmatpush3.msra.mxu1 %v8256_v63  ;;  %v4486_v63 = vadd.f32 %v12151_v20, %v12140_v36  ;;  %v7218_v30 = vmul.f32 -1.442695, %v4485_v57 }
 0xb42   : > { %9194 = vpow2.f32 %v7228_v29  ;;  %8266 = vmatprep.subr.mxu1 %v4462_v32 }
 0xb43   : > { %8267 = vmatpush3.msra.mxu1 %v4462_v32  ;;  %9196 = vpow2.f32 %v7224_v62  ;;  %v7220_v32 = vmul.f32 -1.442695, %v4487_v28  ;;  %v7219_v19 = vmul.f32 -1.442695, %v4486_v63  ;;  %v4785_v62 = vpop.permute.xlu1 %4784  ;;  %v12182_v28 = vpop.permute.xlu0 %4782 }
 0xb44   : > { %8268 = vmatprep.subr.mxu1 %v8253_v18  ;;  %9198 = vpow2.f32 %v7223_v8 }
 0xb45   : > { %8269 = vmatpush3.msra.mxu1 %v8253_v18  ;;  %9200 = vpow2.f32 %v7222_v0  ;;  %v4483_v18 = vadd.f32 %v12151_v20, %v12138_v6 }
 0xb46   : > { %8270 = vmatprep.subr.mxu1 %v4452_v47  ;;  %9202 = vpow2.f32 %v7221_v45 }
 0xb47   : > { %8271 = vmatpush3.msra.mxu1 %v4452_v47  ;;  %9204 = vpow2.f32 %v7220_v32  ;;  %v4482_v47 = vadd.f32 %v12151_v20, %v12132_v3  ;;  %v7216_v29 = vmul.f32 -1.442695, %v4483_v18  ;;  %v4781_v32 = vpop.permute.xlu1 %4780 }
 0xb48   : > { %8272 = vmatprep.subr.mxu1 %v8250_v53  ;;  %9206 = vpow2.f32 %v7217_v46 }
 0xb49   : > { %8273 = vmatpush3.msra.mxu1 %v8250_v53  ;;  %v9187_v24 = vpop.eup %9186  ;;  %9208 = vpow2.f32 %v7219_v19  ;;  %v7215_v0 = vmul.f32 -1.442695, %v4482_v47  ;;  %v12198_v47 = vld [vmem:[%s9923_s17 + $0x8] sm:$0xff] }
 0xb4a   : > { %8274 = vmatprep.subr.mxu1 %v4442_v58  ;;  %v4558_v41 = vadd.f32 1.0, %v9187_v24  ;;  %9210 = vpow2.f32 %v7218_v30  ;;  %v12190_v24 = vpop.permute.xlu0 %4778 }
 0xb4b   : > { %8275 = vmatpush3.msra.mxu1 %v4442_v58  ;;  %v9189_v59 = vpop.eup %9188  ;;  %v4481_v58 = vadd.f32 %v12151_v20, %v12134_v61 }
 0xb4c   : > { %8276 = vmatprep.subr.mxu1 %v12144_v48  ;;  %v4557_v37 = vadd.f32 1.0, %v9189_v59  ;;  %v4777_v59 = vpop.permute.xlu1 %4776 }
 0xb4d   : > { %v9191_v25 = vpop.eup %9190  ;;  %8277 = vmatpush3.msra.mxu1 %v12144_v48  ;;  %v7214_v45 = vmul.f32 -1.442695, %v4481_v58 }
 0xb4e   : > { %v9193_v53 = vpop.eup %9192  ;;  %v4560_v34 = vadd.f32 1.0, %v9191_v25  ;;  %8278 = vmatprep.subr.mxu1 %v12146_v9 }
 0xb4f   : > { %v9195_v16 = vpop.eup %9194  ;;  %8279 = vmatpush3.msra.mxu1 %v12146_v9  ;;  %v4556_v21 = vadd.f32 1.0, %v9193_v53  ;;  %v4775_v53 = vpop.permute.xlu0 %4774 }
 0xb50   : > { %9212 = vrcp.f32 %v4560_v34  ;;  %v4559_v8 = vadd.f32 1.0, %v9195_v16  ;;  %8280 = vmatprep.subr.mxu1 %v12140_v36  ;;  %v9197_v48 = vpop.eup %9196  ;;  %v12205_v34 = vld [vmem:[%s9923_s17 + $0x10] sm:$0xff] }
 0xb51   : > { %9214 = vrcp.f32 %v4558_v41  ;;  %8281 = vmatpush3.msra.mxu1 %v12140_v36  ;;  %v9199_v63 = vpop.eup %9198  ;;  %v4555_v9 = vadd.f32 1.0, %v9197_v48 }
 0xb52   : > { %9216 = vrcp.f32 %v4559_v8  ;;  %8282 = vmatprep.subr.mxu1 %v12142_v50  ;;  %v9201_v57 = vpop.eup %9200  ;;  %v4554_v46 = vadd.f32 1.0, %v9199_v63 }
 0xb53   : > { %9218 = vpow2.f32 %v7216_v29  ;;  %8283 = vmatpush3.msra.mxu1 %v12142_v50  ;;  %v9203_v36 = vpop.eup %9202  ;;  %v4553_v50 = vadd.f32 1.0, %v9201_v57  ;;  %v9621_v29 = vld [vmem:[%s13357_s4 + $0x10] sm:$0xff] }
 0xb54   : > { %9220 = vrcp.f32 %v4557_v37  ;;  %8284 = vmatprep.subr.mxu1 %v12136_v60  ;;  %v9205_v19 = vpop.eup %9204 }
 0xb55   : > { %9222 = vpow2.f32 %v7215_v0  ;;  %8285 = vmatpush3.msra.mxu1 %v12136_v60  ;;  %v9207_v18 = vpop.eup %9206  ;;  %v4552_v60 = vadd.f32 1.0, %v9203_v36  ;;  %v12212_v0 = vld [vmem:[%s9923_s17 + $0x18] sm:$0xff] }
 0xb56   : > { %9224 = vrcp.f32 %v4556_v21  ;;  %8286 = vmatprep.subr.mxu1 %v12138_v6  ;;  %v9209_v30 = vpop.eup %9208 }
 0xb57   : > { %9226 = vpow2.f32 %v7214_v45  ;;  %8287 = vmatpush3.msra.mxu1 %v12138_v6  ;;  %v9211_v25 = vpop.eup %9210  ;;  %v4551_v6 = vadd.f32 1.0, %v9205_v19  ;;  %v4550_v16 = vadd.f32 1.0, %v9209_v30  ;;  %v12218_v45 = vld [vmem:[%s9923_s17 + $0x20] sm:$0xff] }
 0xb58   : > { %9228 = vrcp.f32 %v4555_v9  ;;  %8288 = vmatprep.subr.mxu1 %v12132_v3  ;;  %v4549_v48 = vadd.f32 1.0, %v9211_v25  ;;  %v9624_v9 = vld [vmem:[%s13357_s4 + $0x8] sm:$0xff]  ;;  %v9625_v19 = vld [vmem:[%s13357_s4] sm:$0xff] }
 0xb59   : > { %8289 = vmatpush3.msra.mxu1 %v12132_v3  ;;  %9230 = vrcp.f32 %v4554_v46  ;;  %v9619_v3 = vld [vmem:[%s13357_s4 + $0x18] sm:$0xff]  ;;  %v4548_v46 = vadd.f32 1.0, %v9207_v18  ;;  %v12229_v25 = vld [vmem:[%s9923_s17 + $0x28] sm:$0xff] }
 0xb5a   : > { %8290 = vmatprep.subr.mxu1 %v12134_v61  ;;  %9232 = vrcp.f32 %v4553_v50  ;;  %v4771_v50 = vpop.permute.xlu0 %4770 }
 0xb5b   : > { %8291 = vmatpush3.msra.mxu1 %v12134_v61  ;;  %9234 = vrcp.f32 %v4552_v60 }
 0xb5c   : > { %8293 = vmatmul.mubr.f32.vlgmr.msra.gmra.mxu1 %v12198_v47  ;;  %8372 = vmatprep.subr.mxu1 %v9619_v3  ;;  %9236 = vrcp.f32 %v4551_v6  ;;  %v12235_v6 = vld [vmem:[%s9923_s17 + $0x30] sm:$0xff] }
 0xb5d   : > { %v9213_v41 = vpop.eup %9212  ;;  %8295 = vmatprep.mubr.f32.mxu1 %v12205_v34  ;;  %8373 = vmatpush3.msra.mxu1 %v9619_v3  ;;  %9238 = vrcp.f32 %v4550_v16 }
 0xb5e   : > { %v9215_v61 = vpop.eup %9214  ;;  %v4817_v58 = vmul.f32 %v9213_v41, %v4785_v62  ;;  %8374 = vmatprep.subr.mxu1 %v9621_v29  ;;  %v4773_v62 = vpop.permute.xlu1 %4772  ;;  %9240 = vrcp.f32 %v4549_v48  ;;  %v12245_v48 = vld [vmem:[%s9923_s17 + $0x40] sm:$0xff] }
 0xb5f   : > { %v9217_v37 = vpop.eup %9216  ;;  %8375 = vmatpush3.msra.mxu1 %v9621_v29  ;;  %v4815_v36 = vmul.f32 %v9215_v61, %v4781_v32  ;;  %9242 = vrcp.f32 %v4548_v46  ;;  %v12240_v29 = vld [vmem:[%s9923_s17 + $0x38] sm:$0xff]  ;;  %v12255_v46 = vld [vmem:[%s9923_s17 + $0x50] sm:$0xff] }
 0xb60   : > { %v9219_v8 = vpop.eup %9218  ;;  %8296 = vmatmul.mubr.f32.gmra.mxu1 %v12212_v0  ;;  %4864 = vrot.lane.b32.xlu1 %v4817_v58, %s9717_s24  ;;  %v4816_v21 = vmul.f32 %v9217_v37, %v12182_v28 }
 0xb61   : > { %v9221_v63 = vpop.eup %9220  ;;  %8298 = vmatprep.mubr.f32.mxu1 %v12218_v45  ;;  %8376 = vmatprep.subr.mxu1 %v9624_v9  ;;  %v4547_v30 = vadd.f32 1.0, %v9219_v8  ;;  %v4767_v8 = vpop.permute.xlu0 %4766 }
 0xb62   : > { %v9223_v57 = vpop.eup %9222  ;;  %4862 = vrot.lane.b32.xlu0 %v4816_v21, %s9717_s24  ;;  %8377 = vmatpush3.msra.mxu1 %v9624_v9  ;;  %v4814_v32 = vmul.f32 %v9221_v63, %v12190_v24  ;;  %v4769_v16 = vpop.permute.xlu1 %4768  ;;  %v12250_v63 = vld [vmem:[%s9923_s17 + $0x48] sm:$0xff] }
 0xb63   : > { %v9225_v28 = vpop.eup %9224  ;;  %8378 = vmatprep.subr.mxu1 %v9625_v19  ;;  %v4546_v3 = vadd.f32 1.0, %v9223_v57  ;;  %9244 = vrcp.f32 %v4547_v30  ;;  %v12265_v30 = vld [vmem:[%s9923_s17 + $0x60] sm:$0xff] }
 0xb64   : > { %v9227_v60 = vpop.eup %9226  ;;  %8299 = vmatmul.mubr.f32.gmra.mxu1 %v12229_v25  ;;  %4860 = vrot.lane.b32.xlu1 %v4815_v36, %s9717_s24  ;;  %v4813_v41 = vmul.f32 %v9225_v28, %v4777_v59 }
 0xb65   : > { %v9229_v18 = vpop.eup %9228  ;;  %8301 = vmatprep.mubr.f32.mxu1 %v12235_v6  ;;  %8379 = vmatpush3.msra.mxu1 %v9625_v19  ;;  %v4545_v58 = vadd.f32 1.0, %v9227_v60  ;;  %9246 = vrcp.f32 %v4546_v3  ;;  %v4763_v28 = vpop.permute.xlu0 %4762  ;;  %v12260_v19 = vld [vmem:[%s9923_s17 + $0x58] sm:$0xff] }
 0xb66   : > { %4858 = vrot.lane.b32.xlu0 %v4814_v32, %s9717_s24  ;;  %v9231_v61 = vpop.eup %9230  ;;  %v4812_v24 = vmul.f32 %v9229_v18, %v4775_v53  ;;  %v4765_v57 = vpop.permute.xlu1 %4764 }
 0xb67   : > { %v9233_v37 = vpop.eup %9232  ;;  %v4811_v59 = vmul.f32 %v9231_v61, %v4773_v62  ;;  %9248 = vrcp.f32 %v4545_v58 }
 0xb68   : > { %8302 = vmatmul.mubr.f32.gmra.mxu1 %v12240_v29  ;;  %4856 = vrot.lane.b32.xlu1 %v4813_v41, %s9717_s24  ;;  %v9235_v21 = vpop.eup %9234  ;;  %v4810_v53 = vmul.f32 %v9233_v37, %v4771_v50  ;;  %v12270_v41 = vld [vmem:[%s9923_s17 + $0x68] sm:$0xff] }
 0xb69   : > { %8304 = vmatprep.mubr.f32.mxu1 %v12245_v48  ;;  %v9237_v9 = vpop.eup %9236  ;;  %v4809_v62 = vmul.f32 %v9235_v21, %v4769_v16  ;;  %v4759_v58 = vpop.permute.xlu0 %4758 }
 0xb6a   : > { %4854 = vrot.lane.b32.xlu0 %v4812_v24, %s9717_s24  ;;  %v9239_v36 = vpop.eup %9238  ;;  %v4808_v50 = vmul.f32 %v9237_v9, %v4767_v8  ;;  %v4761_v3 = vpop.permute.xlu1 %4760  ;;  %v12275_v24 = vld [vmem:[%s9923_s17 + $0x70] sm:$0xff] }
 0xb6b   : > { %v9241_v60 = vpop.eup %9240  ;;  %v4807_v32 = vmul.f32 %v9239_v36, %v4765_v57 }
 0xb6c   : > { %8305 = vmatmul.mubr.f32.gmra.mxu1 %v12250_v63  ;;  %4852 = vrot.lane.b32.xlu1 %v4811_v59, %s9717_s24  ;;  %v9243_v18 = vpop.eup %9242  ;;  %v4806_v61 = vmul.f32 %v9241_v60, %v4763_v28  ;;  %v12280_v59 = vld [vmem:[%s9923_s17 + $0x78] sm:$0xff] }
 0xb6d   : > { %8307 = vmatprep.mubr.f32.mxu1 %v12255_v46  ;;  %v4805_v37 = vmul.f32 %v9243_v18, %v4761_v3 }
 0xb6e   : > { %4850 = vrot.lane.b32.xlu0 %v4810_v53, %s9717_s24  ;;  %v4757_v9 = vpop.permute.xlu1 %4756 }
 0xb70   : > { %8308 = vmatmul.mubr.f32.gmra.mxu1 %v12260_v19  ;;  %4848 = vrot.lane.b32.xlu1 %v4809_v62, %s9717_s24  ;;  %v9245_v16 = vpop.eup %9244  ;;  %v4755_v62 = vpop.permute.xlu0 %4754 }
 0xb71   : > { %8310 = vmatprep.mubr.f32.mxu1 %v12265_v30  ;;  %v4804_v21 = vmul.f32 %v9245_v16, %v4759_v58 }
 0xb72   : > { %4846 = vrot.lane.b32.xlu0 %v4808_v50, %s9717_s24  ;;  %v9247_v8 = vpop.eup %9246 }
 0xb73   : > { %v4803_v57 = vmul.f32 %v9247_v8, %v4757_v9 }
 0xb74   : > { %8311 = vmatmul.mubr.f32.gmra.mxu1 %v12270_v41  ;;  %4844 = vrot.lane.b32.xlu1 %v4807_v32, %s9717_s24  ;;  %v9249_v53 = vpop.eup %9248 }
 0xb75   : > { %8313 = vmatprep.mubr.f32.mxu1 %v12275_v24  ;;  %v4802_v36 = vmul.f32 %v9249_v53, %v4755_v62 }
 0xb76   : > { %4842 = vrot.lane.b32.xlu0 %v4806_v61, %s9717_s24 }
 0xb78   : > { %8314 = vmatmul.mubr.f32.gmra.mxu1 %v12280_v59  ;;  %4840 = vrot.lane.b32.xlu1 %v4805_v37, %s9717_s24 }
 0xb7a   : > { %4838 = vrot.lane.b32.xlu0 %v4804_v21, %s9717_s24 }
 0xb7c   : > { %4836 = vrot.lane.b32.xlu1 %v4803_v57, %s9717_s24 }
 0xb7e   : > { %4834 = vrot.lane.b32.xlu0 %v4802_v36, %s9717_s24 }
 0xbd2   : > { %v4865_v28 = vpop.permute.xlu1 %4864 }
 0xbd3   : > { %8316 = vmatprep.subr.mxu0 %v4865_v28 }
 0xbd4   : > { %v4863_v50 = vpop.permute.xlu0 %4862  ;;  %8317 = vmatpush3.msra.mxu0 %v4865_v28  ;;  %v13551_v28 = vld [vmem:[#allocation9_spill] sm:$0xff] }
 0xbd5   : > { %8318 = vmatprep.subr.mxu0 %v4863_v50 }
 0xbd6   : > { %8319 = vmatpush3.msra.mxu0 %v4863_v50  ;;  %v4861_v60 = vpop.permute.xlu1 %4860 }
 0xbd7   : > { %8320 = vmatprep.subr.mxu0 %v4861_v60 }
 0xbd8   : > { %v4859_v32 = vpop.permute.xlu0 %4858  ;;  %8321 = vmatpush3.msra.mxu0 %v4861_v60 }
 0xbd9   : > { %8322 = vmatprep.subr.mxu0 %v4859_v32 }
 0xbda   : > { %8323 = vmatpush3.msra.mxu0 %v4859_v32  ;;  %v4857_v18 = vpop.permute.xlu1 %4856 }
 0xbdb   : > { %8324 = vmatprep.subr.mxu0 %v4857_v18 }
 0xbdc   : > { %v4855_v3 = vpop.permute.xlu0 %4854  ;;  %8325 = vmatpush3.msra.mxu0 %v4857_v18  ;;  %v13552_v18 = vld [vmem:[#allocation10_spill] sm:$0xff] }
 0xbdd   : > { %8326 = vmatprep.subr.mxu0 %v4855_v3 }
 0xbde   : > { %8327 = vmatpush3.msra.mxu0 %v4855_v3  ;;  %v4853_v61 = vpop.permute.xlu1 %4852 }
 0xbdf   : > { %8328 = vmatprep.subr.mxu0 %v4853_v61 }
 0xbe0   : > { %v4851_v16 = vpop.permute.xlu0 %4850  ;;  %8329 = vmatpush3.msra.mxu0 %v4853_v61 }
 0xbe1   : > { %8330 = vmatprep.subr.mxu0 %v4851_v16 }
 0xbe2   : > { %8331 = vmatpush3.msra.mxu0 %v4851_v16  ;;  %v4849_v58 = vpop.permute.xlu1 %4848 }
 0xbe3   : > { %8332 = vmatprep.subr.mxu0 %v4849_v58 }
 0xbe4   : > { %v4847_v37 = vpop.permute.xlu0 %4846  ;;  %8333 = vmatpush3.msra.mxu0 %v4849_v58  ;;  %v13553_v58 = vld [vmem:[#allocation11_spill] sm:$0xff] }
 0xbe5   : > { %8334 = vmatprep.subr.mxu0 %v4847_v37 }
 0xbe6   : > { %8335 = vmatpush3.msra.mxu0 %v4847_v37  ;;  %v4845_v8 = vpop.permute.xlu1 %4844 }
 0xbe7   : > { %8336 = vmatprep.subr.mxu0 %v4845_v8 }
 0xbe8   : > { %v4843_v21 = vpop.permute.xlu0 %4842  ;;  %8337 = vmatpush3.msra.mxu0 %v4845_v8 }
 0xbe9   : > { %8338 = vmatprep.subr.mxu0 %v4843_v21 }
 0xbea   : > { %8339 = vmatpush3.msra.mxu0 %v4843_v21  ;;  %v4841_v53 = vpop.permute.xlu1 %4840 }
 0xbeb   : > { %8340 = vmatprep.subr.mxu0 %v4841_v53 }
 0xbec   : > { %v4839_v9 = vpop.permute.xlu0 %4838  ;;  %8341 = vmatpush3.msra.mxu0 %v4841_v53  ;;  %v13554_v53 = vld [vmem:[#allocation12_spill] sm:$0xff] }
 0xbed   : > { %8342 = vmatprep.subr.mxu0 %v4839_v9 }
 0xbee   : > { %8343 = vmatpush3.msra.mxu0 %v4839_v9  ;;  %v4837_v57 = vpop.permute.xlu1 %4836 }
 0xbef   : > { %8344 = vmatprep.subr.mxu0 %v4837_v57 }
 0xbf0   : > { %v4835_v62 = vpop.permute.xlu0 %4834  ;;  %8345 = vmatpush3.msra.mxu0 %v4837_v57 }
 0xbf1   : > { %8346 = vmatprep.subr.mxu0 %v4835_v62 }
 0xbf2   : > { %8347 = vmatpush3.msra.mxu0 %v4835_v62 }
 0xbf3   : > { %8349 = vmatmul.mubr.f32.vlgmr.msra.gmra.mxu0 %v12198_v47 }
 0xbf4   : > { %8351 = vmatprep.mubr.f32.mxu0 %v12205_v34  ;;  %v13547_v34 = vld [vmem:[#allocation5_spill] sm:$0xff] }
 0xbf7   : > { %8352 = vmatmul.mubr.f32.gmra.mxu0 %v12212_v0 }
 0xbf8   : > { %8354 = vmatprep.mubr.f32.mxu0 %v12218_v45 }
 0xbfb   : > { %8355 = vmatmul.mubr.f32.gmra.mxu0 %v12229_v25 }
 0xbfc   : > { %8357 = vmatprep.mubr.f32.mxu0 %v12235_v6  ;;  %v13548_v6 = vld [vmem:[#allocation6_spill] sm:$0xff] }
 0xbff   : > { %8358 = vmatmul.mubr.f32.gmra.mxu0 %v12240_v29 }
 0xc00   : > { %8360 = vmatprep.mubr.f32.mxu0 %v12245_v48 }
 0xc03   : > { %8361 = vmatmul.mubr.f32.gmra.mxu0 %v12250_v63 }
 0xc04   : > { %8363 = vmatprep.mubr.f32.mxu0 %v12255_v46  ;;  %v13549_v46 = vld [vmem:[#allocation7_spill] sm:$0xff] }
 0xc07   : > { %8364 = vmatmul.mubr.f32.gmra.mxu0 %v12260_v19 }
 0xc08   : > { %8366 = vmatprep.mubr.f32.mxu0 %v12265_v30 }
 0xc0b   : > { %8367 = vmatmul.mubr.f32.gmra.mxu0 %v12270_v41  ;;  %v13550_v41 = vld [vmem:[#allocation8_spill] sm:$0xff] }
 0xc0c   : > { %8369 = vmatprep.mubr.f32.mxu0 %v12275_v24 }
 0xc0f   : > { %8370 = vmatmul.mubr.f32.gmra.mxu0 %v12280_v59 }
 0xc10   : > { %8436 = vmatprep.mubr.f32.mxu0 %v12129_v49 }
 0xc1c   : > { %v8294_v47 = vpop.f32.mrf.mxu1 }
 0xc1d   : > { %v5028_v0 = vadd.f32 %v8294_v47, %v13547_v34  ;;  %v13555_v47 = vld [vmem:[#allocation13_spill] sm:$0xff] }
 0xc1e   : > { %v4659_v45 = vpop.f32.mrf.mxu1 }
 0xc1f   : > { %v12305_v25 = vadd.f32 %v12151_v20, %v5028_v0  ;;  %v5027_v29 = vadd.f32 %v4659_v45, %v13548_v6 }
 0xc20   : > { %v8297_v48 = vpop.f32.mrf.mxu1 }
 0xc21   : > { %9250 = vtanh.f32 %v12305_v25  ;;  %v12310_v63 = vadd.f32 %v12151_v20, %v5027_v29  ;;  %v5030_v19 = vadd.f32 %v8297_v48, %v13549_v46 }
 0xc22   : > { %v4669_v30 = vpop.f32.mrf.mxu1 }
 0xc23   : > { %v12314_v49 = vadd.f32 %v12151_v20, %v5030_v19  ;;  %v5029_v24 = vadd.f32 %v4669_v30, %v13550_v41  ;;  %9252 = vtanh.f32 %v12310_v63  ;;  %v13556_v19 = vld [vmem:[#allocation14_spill] sm:$0xff] }
 0xc24   : > { %v8300_v59 = vpop.f32.mrf.mxu1  ;;  %v13560_v41 = vld [vmem:[#allocation18_spill] sm:$0xff] }
 0xc25   : > { %v12319_v36 = vadd.f32 %v12151_v20, %v5029_v24  ;;  %v5032_v50 = vadd.f32 %v8300_v59, %v13551_v28  ;;  %9254 = vtanh.f32 %v12314_v49 }
 0xc26   : > { %v4679_v60 = vpop.f32.mrf.mxu1 }
 0xc27   : > { %v12324_v32 = vadd.f32 %v12151_v20, %v5032_v50  ;;  %v5031_v3 = vadd.f32 %v4679_v60, %v13552_v18  ;;  %9256 = vtanh.f32 %v12319_v36 }
 0xc28   : > { %v8303_v61 = vpop.f32.mrf.mxu1 }
 0xc29   : > { %v12329_v16 = vadd.f32 %v12151_v20, %v5031_v3  ;;  %v5034_v37 = vadd.f32 %v8303_v61, %v13553_v58  ;;  %9258 = vtanh.f32 %v12324_v32  ;;  %v13557_v61 = vld [vmem:[#allocation15_spill] sm:$0xff] }
 0xc2a   : > { %v4689_v8 = vpop.f32.mrf.mxu1  ;;  %v455_v58 = vld [vmem:[%s10229_s29 + $0x1a0] sm:$0xff] }
 0xc2b   : > { %v12334_v21 = vadd.f32 %v12151_v20, %v5034_v37  ;;  %v5033_v9 = vadd.f32 %v4689_v8, %v13554_v53  ;;  %9260 = vtanh.f32 %v12329_v16  ;;  %vm5367_vm11 = vcmp.gt.f32.partialorder %v455_v58, 0.0 }
 0xc2c   : > { %v8306_v57 = vpop.f32.mrf.mxu1 }
 0xc2d   : > { %v12339_v62 = vadd.f32 %v12151_v20, %v5033_v9  ;;  %v5036_v0 = vadd.f32 %v8306_v57, %v13555_v47  ;;  %9262 = vtanh.f32 %v12334_v21 }
 0xc2e   : > { %v9251_v45 = vpop.eup %9250  ;;  %v4699_v29 = vpop.f32.mrf.mxu1 }
 0xc2f   : > { %v12344_v48 = vadd.f32 %v12151_v20, %v5036_v0  ;;  %5189 = vrot.lane.b32.xlu0 %v9251_v45, %s9719_s25  ;;  %9264 = vtanh.f32 %v12339_v62  ;;  %v5035_v30 = vadd.f32 %v4699_v29, %v13556_v19  ;;  %v13558_v45 = vld [vmem:[#allocation16_spill] sm:$0xff]  ;;  %v466_v19 = vld [vmem:[%s10229_s29 + $0x1f8] sm:$0xff] }
 0xc30   : > { %v8309_v24 = vpop.f32.mrf.mxu1  ;;  %v9253_v59 = vpop.eup %9252 }
 0xc31   : > { %9266 = vtanh.f32 %v12344_v48  ;;  %5187 = vrot.lane.b32.xlu1 %v9253_v59, %s9719_s25  ;;  %v12352_v3 = vadd.f32 %v12151_v20, %v5035_v30  ;;  %v5038_v37 = vadd.f32 %v8309_v24, %v13557_v61 }
 0xc32   : > { %v4709_v50 = vpop.f32.mrf.mxu1  ;;  %v9255_v60 = vpop.eup %9254 }
 0xc33   : > { %5193 = vrot.lane.b32.xlu0 %v9255_v60, %s9719_s25  ;;  %9268 = vtanh.f32 %v12352_v3  ;;  %v12359_v0 = vadd.f32 %v12151_v20, %v5038_v37  ;;  %v5037_v29 = vadd.f32 %v4709_v50, %v13558_v45  ;;  %v13559_v60 = vld [vmem:[#allocation17_spill] sm:$0xff] }
 0xc34   : > { %v9257_v8 = vpop.eup %9256  ;;  %v8312_v9 = vpop.f32.mrf.mxu1 }
 0xc35   : > { %5191 = vrot.lane.b32.xlu1 %v9257_v8, %s9719_s25  ;;  %v5040_v6 = vadd.f32 %v8312_v9, %v13559_v60  ;;  %9270 = vtanh.f32 %v12359_v0  ;;  %v12367_v8 = vadd.f32 %v12151_v20, %v5037_v29  ;;  %v13561_v9 = vld [vmem:[#allocation19_spill] sm:$0xff] }
 0xc36   : > { %v9259_v57 = vpop.eup %9258  ;;  %v4719_v59 = vpop.f32.mrf.mxu1 }
 0xc37   : > { %5197 = vrot.lane.b32.xlu0 %v9259_v57, %s9719_s25  ;;  %v12372_v57 = vadd.f32 %v12151_v20, %v5040_v6  ;;  %9272 = vtanh.f32 %v12367_v8 }
 0xc38   : > { %v9261_v30 = vpop.eup %9260  ;;  %v8315_v34 = vpop.f32.mrf.mxu1 }
 0xc39   : > { %5195 = vrot.lane.b32.xlu1 %v9261_v30, %s9719_s25  ;;  %v5039_v30 = vadd.f32 %v4719_v59, %v13560_v41  ;;  %v5042_v46 = vadd.f32 %v8315_v34, %v13561_v9  ;;  %9274 = vtanh.f32 %v12372_v57 }
 0xc3a   : > { %v9263_v24 = vpop.eup %9262  ;;  %v4729_v29 = vpop.f32.mrf.mxu1 }
 0xc3b   : > { %5201 = vrot.lane.b32.xlu0 %v9263_v24, %s9719_s25  ;;  %v12380_v24 = vadd.f32 %v12151_v20, %v5039_v30  ;;  %v12384_v6 = vadd.f32 %v12151_v20, %v5042_v46 }
 0xc3c   : > { %v9265_v37 = vpop.eup %9264 }
 0xc3d   : > { %5199 = vrot.lane.b32.xlu1 %v9265_v37, %s9719_s25  ;;  %v13562_v37 = vld [vmem:[#allocation20_spill] sm:$0xff]  ;;  %9276 = vtanh.f32 %v12380_v24 }
 0xc3e   : > { %v9267_v50 = vpop.eup %9266  ;;  %v5041_v18 = vadd.f32 %v4729_v29, %v13562_v37  ;;  %9278 = vtanh.f32 %v12384_v6  ;;  %v453_v29 = vld [vmem:[%s10229_s29 + $0x190] sm:$0xff] }
 0xc3f   : > { %5205 = vrot.lane.b32.xlu0 %v9267_v50, %s9719_s25  ;;  %vm5365_vm9 = vcmp.gt.f32.partialorder %v453_v29, 0.0 }
 0xc40   : > { %v9269_v28 = vpop.eup %9268  ;;  %v12389_v34 = vadd.f32 %v12151_v20, %v5041_v18  ;;  %v451_v20 = vld [vmem:[%s10229_s29 + $0x180] sm:$0xff] }
 0xc41   : > { %5203 = vrot.lane.b32.xlu1 %v9269_v28, %s9719_s25  ;;  %v452_v28 = vld [vmem:[%s10229_s29 + $0x188] sm:$0xff]  ;;  %vm5363_vm8 = vcmp.gt.f32.partialorder %v451_v20, 0.0 }
 0xc42   : > { %v9271_v59 = vpop.eup %9270  ;;  %9280 = vtanh.f32 %v12389_v34  ;;  %vm5364_vm7 = vcmp.gt.f32.partialorder %v452_v28, 0.0  ;;  %v456_v20 = vld [vmem:[%s10229_s29 + $0x1a8] sm:$0xff] }
 0xc43   : > { %5209 = vrot.lane.b32.xlu0 %v9271_v59, %s9719_s25  ;;  %v13563_v59 = vmov 0   ;;  %vm5368_vm12 = vcmp.gt.f32.partialorder %v456_v20, 0.0 }
 0xc44   : > { %v9273_v50 = vpop.eup %9272  ;;  %v5380_v53 = vsel %vm5364_vm7, 1, %v13563_v59  ;;  %v5381_v28 = vsel %vm5365_vm9, 1, %v13563_v59  ;;  %v5383_v29 = vsel %vm5367_vm11, 1, %v13563_v59  ;;  %vm5378_vm7 = vcmp.gt.f32.partialorder %v466_v19, 0.0 }
 0xc45   : > { %5207 = vrot.lane.b32.xlu1 %v9273_v50, %s9719_s25 }
 0xc46   : > { %v9275_v46 = vpop.eup %9274 }
 0xc47   : > { %5213 = vrot.lane.b32.xlu0 %v9275_v46, %s9719_s25  ;;  %v454_v46 = vld [vmem:[%s10229_s29 + $0x198] sm:$0xff] }
 0xc48   : > { %vm5366_vm10 = vcmp.gt.f32.partialorder %v454_v46, 0.0  ;;  %v458_v46 = vld [vmem:[%s10229_s29 + $0x1b8] sm:$0xff] }
 0xc49   : > { %vm5370_vm14 = vcmp.gt.f32.partialorder %v458_v46, 0.0 }
 0xc4a   : > { %v9277_v30 = vpop.eup %9276  ;;  %v5386_v58 = vsel %vm5370_vm14, 1, %v13563_v59 }
 0xc4b   : > { %5211 = vrot.lane.b32.xlu1 %v9277_v30, %s9719_s25  ;;  %v9279_v18 = vpop.eup %9278  ;;  %v5379_v30 = vsel %vm5363_vm8, 1, %v13563_v59 }
 0xc4c   : > { %5217 = vrot.lane.b32.xlu0 %v9279_v18, %s9719_s25  ;;  %v5382_v18 = vsel %vm5366_vm10, 1, %v13563_v59 }
 0xc4f   : > { %v9281_v50 = vpop.eup %9280 }
 0xc50   : > { %5215 = vrot.lane.b32.xlu1 %v9281_v50, %s9719_s25  ;;  %5399 = vperm.xlu0 %8608, %v5380_v53   ;;  %v457_v53 = vld [vmem:[%s10229_s29 + $0x1b0] sm:$0xff]  ;;  %v5384_v50 = vsel %vm5368_vm12, 1, %v13563_v59 }
 0xc51   : > { %vm5369_vm13 = vcmp.gt.f32.partialorder %v457_v53, 0.0 }
 0xc54   : > { %5396 = vperm.xlu1 %8609, %v5379_v30   ;;  %5402 = vperm.xlu0 %8608, %v5381_v28   ;;  %v5385_v30 = vsel %vm5369_vm13, 1, %v13563_v59  ;;  %v459_v28 = vld [vmem:[%s10229_s29 + $0x1c0] sm:$0xff] }
 0xc55   : > { %vm5371_vm15 = vcmp.gt.f32.partialorder %v459_v28, 0.0 }
 0xc56   : > { %v5387_v20 = vsel %vm5371_vm15, 1, %v13563_v59 }
 0xc58   : > { %5405 = vperm.xlu0 %8608, %v5382_v18   ;;  %v460_v18 = vld [vmem:[%s10229_s29 + $0x1c8] sm:$0xff] }
 0xc59   : > { %vm5372_vm1 = vcmp.gt.f32.partialorder %v460_v18, 0.0 }
 0xc5a   : > { %v5388_v53 = vsel %vm5372_vm1, 1, %v13563_v59 }
 0xc5c   : > { %5408 = vperm.xlu0 %8608, %v5383_v29   ;;  %v461_v29 = vld [vmem:[%s10229_s29 + $0x1d0] sm:$0xff] }
 0xc5d   : > { %vm5373_vm2 = vcmp.gt.f32.partialorder %v461_v29, 0.0 }
 0xc5e   : > { %v5389_v46 = vsel %vm5373_vm2, 1, %v13563_v59 }
 0xc60   : > { %5411 = vperm.xlu0 %8608, %v5384_v50   ;;  %v462_v50 = vld [vmem:[%s10229_s29 + $0x1d8] sm:$0xff] }
 0xc61   : > { %vm5374_vm3 = vcmp.gt.f32.partialorder %v462_v50, 0.0 }
 0xc62   : > { %v5390_v28 = vsel %vm5374_vm3, 1, %v13563_v59 }
 0xc64   : > { %5414 = vperm.xlu0 %8608, %v5385_v30   ;;  %v463_v30 = vld [vmem:[%s10229_s29 + $0x1e0] sm:$0xff] }
 0xc65   : > { %vm5375_vm4 = vcmp.gt.f32.partialorder %v463_v30, 0.0  ;;  %v5394_v30 = vsel %vm5378_vm7, 1, %v13563_v59 }
 0xc66   : > { %v5391_v18 = vsel %vm5375_vm4, 1, %v13563_v59 }
 0xc68   : > { %5417 = vperm.xlu0 %8608, %v5386_v58   ;;  %v464_v58 = vld [vmem:[%s10229_s29 + $0x1e8] sm:$0xff] }
 0xc69   : > { %vm5376_vm5 = vcmp.gt.f32.partialorder %v464_v58, 0.0  ;;  %v7232_v58 = vmul.f32 -1.442695, %v12319_v36 }
 0xc6a   : > { %v5392_v29 = vsel %vm5376_vm5, 1, %v13563_v59 }
 0xc6c   : > { %5420 = vperm.xlu0 %8608, %v5387_v20   ;;  %v465_v20 = vld [vmem:[%s10229_s29 + $0x1f0] sm:$0xff] }
 0xc6d   : > { %vm5377_vm6 = vcmp.gt.f32.partialorder %v465_v20, 0.0  ;;  %v7234_v20 = vmul.f32 -1.442695, %v12329_v16  ;;  %v7245_v16 = vmul.f32 -1.442695, %v12384_v6 }
 0xc6e   : > { %v5393_v50 = vsel %vm5377_vm6, 1, %v13563_v59 }
 0xc70   : > { %5423 = vperm.xlu0 %8608, %v5388_v53   ;;  %v7231_v53 = vmul.f32 -1.442695, %v12305_v25 }
 0xc72   : > { %9282 = vpow2.f32 %v7231_v53 }
 0xc74   : > { %5426 = vperm.xlu0 %8608, %v5389_v46   ;;  %v7230_v46 = vmul.f32 -1.442695, %v12310_v63 }
 0xc76   : > { %9284 = vpow2.f32 %v7230_v46 }
 0xc78   : > { %5429 = vperm.xlu0 %8608, %v5390_v28   ;;  %v7233_v28 = vmul.f32 -1.442695, %v12314_v49  ;;  %v7236_v49 = vmul.f32 -1.442695, %v12339_v62 }
 0xc7a   : > { %9286 = vpow2.f32 %v7233_v28 }
 0xc7b   : > { %9288 = vpow2.f32 %v7232_v58 }
 0xc7c   : > { %5432 = vperm.xlu0 %8608, %v5391_v18   ;;  %v7235_v18 = vmul.f32 -1.442695, %v12324_v32  ;;  %v7239_v32 = vmul.f32 -1.442695, %v12344_v48 }
 0xc7e   : > { %9290 = vpow2.f32 %v7235_v18 }
 0xc7f   : > { %v9283_v25 = vpop.eup %9282  ;;  %9292 = vpow2.f32 %v7234_v20 }
 0xc80   : > { %5435 = vperm.xlu0 %8608, %v5392_v29   ;;  %v5108_v63 = vadd.f32 1.0, %v9283_v25  ;;  %v7237_v29 = vmul.f32 -1.442695, %v12334_v21  ;;  %v7238_v21 = vmul.f32 -1.442695, %v12352_v3 }
 0xc82   : > { %9294 = vrcp.f32 %v5108_v63 }
 0xc83   : > { %v9285_v19 = vpop.eup %9284  ;;  %9296 = vpow2.f32 %v7237_v29 }
 0xc84   : > { %5438 = vperm.xlu0 %8608, %v5393_v50   ;;  %v5107_v50 = vadd.f32 1.0, %v9285_v19  ;;  %v7241_v19 = vmul.f32 -1.442695, %v12359_v0 }
 0xc86   : > { %9298 = vrcp.f32 %v5107_v50 }
 0xc87   : > { %v9287_v46 = vpop.eup %9286  ;;  %9300 = vpow2.f32 %v7236_v49 }
 0xc88   : > { %5441 = vperm.xlu0 %8608, %v5394_v30   ;;  %v5110_v36 = vadd.f32 1.0, %v9287_v46  ;;  %v9289_v30 = vpop.eup %9288 }
 0xc89   : > { %v5109_v58 = vadd.f32 1.0, %v9289_v30 }
 0xc8a   : > { %9302 = vrcp.f32 %v5110_v36  ;;  %v7240_v36 = vmul.f32 -1.442695, %v12367_v8 }
 0xc8b   : > { %v9291_v18 = vpop.eup %9290  ;;  %9304 = vpow2.f32 %v7239_v32 }
 0xc8c   : > { %9306 = vpow2.f32 %v7245_v16  ;;  %v9293_v20 = vpop.eup %9292  ;;  %v5112_v62 = vadd.f32 1.0, %v9291_v18 }
 0xc8d   : > { %9308 = vrcp.f32 %v5109_v58  ;;  %v5111_v48 = vadd.f32 1.0, %v9293_v20 }
 0xc8e   : > { %9310 = vpow2.f32 %v7238_v21 }
 0xc8f   : > { %v12443_v63 = vpop.eup %9294  ;;  %9312 = vrcp.f32 %v5112_v62  ;;  %v7243_v62 = vmul.f32 -1.442695, %v12372_v57 }
 0xc90   : > { %v9297_v6 = vpop.eup %9296  ;;  %9314 = vpow2.f32 %v7241_v19 }
 0xc91   : > { %9316 = vrcp.f32 %v5111_v48  ;;  %v5114_v0 = vadd.f32 1.0, %v9297_v6 }
 0xc93   : > { %v12446_v46 = vpop.eup %9298 }
 0xc94   : > { %v9301_v58 = vpop.eup %9300 }
 0xc95   : > { %v5113_v48 = vadd.f32 1.0, %v9301_v58 }
 0xca1   : > { %v5190_v53 = vpop.permute.xlu0 %5189 }
 0xca2   : > { %v5236_v50 = vmul.f32 %v12443_v63, %v5190_v53  ;;  %v12457_v53 = vpop.eup %9302 }
 0xca3   : > { %v5188_v29 = vpop.permute.xlu1 %5187  ;;  %v9305_v20 = vpop.eup %9304 }
 0xca4   : > { %v5235_v30 = vmul.f32 %v12446_v46, %v5188_v29  ;;  %v9307_v29 = vpop.eup %9306 }
 0xca5   : > { %v5194_v28 = vpop.permute.xlu0 %5193 }
 0xca6   : > { %v5238_v8 = vmul.f32 %v12457_v53, %v5194_v28 }
 0xca7   : > { %v5192_v19 = vpop.permute.xlu1 %5191 }
 0xca9   : > { %v5198_v25 = vpop.permute.xlu0 %5197 }
 0xcad   : > { %v12448_v49 = vpop.permute.xlu0 %5201 }
 0xcb1   : > { %v12461_v6 = vpop.permute.xlu0 %5205 }
 0xcb3   : > { %v8350_v3 = vpop.f32.mrf.mxu0 }
 0xcb4   : > { %v12452_v32 = vadd.f32 %v8350_v3, %v5236_v50 }
 0xcb5   : > { %v4948_v16 = vpop.f32.mrf.mxu0 }
 0xcb6   : > { %13564 = vst [vmem:[#allocation32_spill] sm:$0xff] %v12452_v32  ;;  %9318 = vtanh.f32 %v12452_v32  ;;  %v12455_v18 = vadd.f32 %v5235_v30, %v4948_v16  ;;  %v12466_v30 = vpop.eup %9308  ;;  %v5116_v16 = vadd.f32 1.0, %v9305_v20 }
 0xcb7   : > { %v8353_v21 = vpop.f32.mrf.mxu0  ;;  %9320 = vpow2.f32 %v7240_v36  ;;  %v5122_v36 = vadd.f32 1.0, %v9307_v29  ;;  %v5237_v57 = vmul.f32 %v12466_v30, %v5192_v19  ;;  %v9311_v28 = vpop.eup %9310  ;;  %v7244_v29 = vmul.f32 -1.442695, %v12389_v34 }
 0xcb8   : > { %13565 = vst [vmem:[#allocation34_spill] sm:$0xff] %v12455_v18  ;;  %9322 = vrcp.f32 %v5114_v0  ;;  %v12464_v3 = vadd.f32 %v8353_v21, %v5238_v8  ;;  %v7242_v0 = vmul.f32 -1.442695, %v12380_v24  ;;  %v12473_v45 = vpop.eup %9312  ;;  %v12475_v21 = vpop.permute.xlu0 %5209  ;;  %v5115_v8 = vadd.f32 1.0, %v9311_v28 }
 0xcb9   : > { %v4958_v50 = vpop.f32.mrf.mxu0  ;;  %9324 = vtanh.f32 %v12455_v18  ;;  %v9315_v19 = vpop.eup %9314 }
 0xcba   : > { %13566 = vst [vmem:[#allocation26_spill] sm:$0xff] %v12464_v3  ;;  %9326 = vpow2.f32 %v7243_v62  ;;  %v12471_v47 = vadd.f32 %v5237_v57, %v4958_v50  ;;  %v5240_v62 = vmul.f32 %v12473_v45, %v5198_v25  ;;  %v5196_v24 = vpop.permute.xlu1 %5195  ;;  %v12479_v61 = vpop.eup %9316 }
 0xcbb   : > { %v8356_v59 = vpop.f32.mrf.mxu0  ;;  %9328 = vrcp.f32 %v5113_v48  ;;  %v5239_v28 = vmul.f32 %v12479_v61, %v5196_v24 }
 0xcbc   : > { %9330 = vtanh.f32 %v12464_v3  ;;  %13567 = vst [vmem:[#allocation30_spill] sm:$0xff] %v12471_v47  ;;  %v12482_v50 = vadd.f32 %v8356_v59, %v5240_v62 }
 0xcbd   : > { %v4968_v58 = vpop.f32.mrf.mxu0  ;;  %9332 = vrcp.f32 %v5116_v16 }
 0xcbe   : > { %9334 = vrcp.f32 %v5122_v36  ;;  %v5118_v36 = vadd.f32 1.0, %v9315_v19  ;;  %v12491_v60 = vadd.f32 %v5239_v28, %v4968_v58  ;;  %v5200_v24 = vpop.permute.xlu1 %5199 }
 0xcbf   : > { %v8359_v20 = vpop.f32.mrf.mxu0  ;;  %9336 = vpow2.f32 %v7242_v0  ;;  %v12486_v0 = vpop.permute.xlu0 %5213 }
 0xcc0   : > { %9338 = vtanh.f32 %v12471_v47  ;;  %13568 = vst [vmem:[#allocation27_spill] sm:$0xff] %v12491_v60 }
 0xcc1   : > { %v4978_v48 = vpop.f32.mrf.mxu0  ;;  %9340 = vrcp.f32 %v5115_v8 }
 0xcc2   : > { %9342 = vpow2.f32 %v7244_v29 }
 0xcc3   : > { %v9319_v16 = vpop.eup %9318  ;;  %v8362_v57 = vpop.f32.mrf.mxu0  ;;  %9344 = vtanh.f32 %v12482_v50 }
 0xcc4   : > { %5301 = vrot.lane.b32.xlu1 %v9319_v16, %s9717_s24  ;;  %v9321_v25 = vpop.eup %9320  ;;  %9346 = vrcp.f32 %v5118_v36  ;;  %v5218_v32 = vpop.permute.xlu0 %5217 }
 0xcc5   : > { %v4988_v34 = vpop.f32.mrf.mxu0  ;;  %v12488_v41 = vpop.eup %9322  ;;  %v5117_v19 = vadd.f32 1.0, %v9321_v25  ;;  %9348 = vtanh.f32 %v12491_v60 }
 0xcc6   : > { %v9325_v59 = vpop.eup %9324  ;;  %v5242_v8 = vmul.f32 %v12488_v41, %v12448_v49 }
 0xcc7   : > { %v8365_v62 = vpop.f32.mrf.mxu0  ;;  %v9327_v16 = vpop.eup %9326  ;;  %9350 = vrcp.f32 %v5117_v19 }
 0xcc8   : > { %5299 = vrot.lane.b32.xlu1 %v9325_v59, %s9717_s24  ;;  %v12496_v37 = vpop.eup %9328  ;;  %v12499_v9 = vadd.f32 %v8359_v20, %v5242_v8  ;;  %v5120_v49 = vadd.f32 1.0, %v9327_v16  ;;  %v5204_v19 = vpop.permute.xlu1 %5203 }
 0xcc9   : > { %v4998_v29 = vpop.f32.mrf.mxu0  ;;  %v9331_v58 = vpop.eup %9330  ;;  %v5241_v28 = vmul.f32 %v12496_v37, %v5200_v24 }
 0xcca   : > { %13569 = vst [vmem:[#allocation31_spill] sm:$0xff] %v12499_v9  ;;  %v12502_v3 = vpop.eup %9332  ;;  %9352 = vtanh.f32 %v12499_v9 }
 0xccb   : > { %v8368_v35 = vpop.f32.mrf.mxu0  ;;  %v12505_v59 = vpop.eup %9334  ;;  %v12507_v25 = vadd.f32 %v5241_v28, %v4978_v48  ;;  %9354 = vrcp.f32 %v5120_v49  ;;  %v5244_v18 = vmul.f32 %v12502_v3, %v12461_v6 }
 0xccc   : > { %5305 = vrot.lane.b32.xlu1 %v9331_v58, %s9717_s24  ;;  %v9337_v1 = vpop.eup %9336  ;;  %v5250_v20 = vmul.f32 %v12505_v59, %v5218_v32 }
 0xccd   : > { %v5008_v36 = vpop.f32.mrf.mxu0  ;;  %v9339_v8 = vpop.eup %9338  ;;  %v5119_v48 = vadd.f32 1.0, %v9337_v1  ;;  %9356 = vtanh.f32 %v12507_v25  ;;  %v12519_v32 = vadd.f32 %v8362_v57, %v5244_v18 }
 0xcce   : > { %v12516_v58 = vpop.eup %9340  ;;  %v5208_v57 = vpop.permute.xlu1 %5207 }
 0xccf   : > { %v8371_v24 = vpop.f32.mrf.mxu0  ;;  %v9343_v28 = vpop.eup %9342  ;;  %v5243_v49 = vmul.f32 %v12516_v58, %v5204_v19 }
 0xcd0   : > { %v12513_v16 = vadd.f32 %v8371_v24, %v5250_v20  ;;  %5303 = vrot.lane.b32.xlu1 %v9339_v8, %s9717_s24  ;;  %v9345_v7 = vpop.eup %9344  ;;  %v5121_v6 = vadd.f32 1.0, %v9343_v28  ;;  %v12529_v8 = vpop.permute.xlu0 %5399 }
 0xcd1   : > { %v12524_v20 = vpop.eup %9346  ;;  %v12527_v1 = vadd.f32 %v5243_v49, %v4988_v34  ;;  %v5018_v60 = vpop.f32.mrf.mxu0  ;;  %vm5444_vm9 = vcmp.eq.s32.totalorder %v12529_v8, 1 }
 0xcd2   : > { %9358 = vtanh.f32 %v12513_v16  ;;  %v9349_v24 = vpop.eup %9348  ;;  %v5246_v18 = vmul.f32 %v12524_v20, %v12475_v21  ;;  %v5212_v10 = vpop.permute.xlu1 %5211 }
 0xcd3   : > { %9360 = vrcp.f32 %v5119_v48 }
 0xcd4   : > { %5309 = vrot.lane.b32.xlu1 %v9345_v7, %s9717_s24  ;;  %9362 = vtanh.f32 %v12519_v32  ;;  %v12534_v19 = vpop.eup %9350  ;;  %v12537_v7 = vadd.f32 %v8365_v62, %v5246_v18  ;;  %v12539_v48 = vpop.permute.xlu0 %5402 }
 0xcd5   : > { %9364 = vrcp.f32 %v5121_v6  ;;  %v5245_v28 = vmul.f32 %v12534_v19, %v5208_v57  ;;  %vm5445_vm12 = vcmp.eq.s32.totalorder %v12539_v48, 1  ;;  %v13585_v48 = vld [vmem:[#allocation25_spill] sm:$0xff] }
 0xcd6   : > { %9366 = vtanh.f32 %v12527_v1  ;;  %v5216_v9 = vpop.permute.xlu1 %5215 }
 0xcd7   : > { %v9353_v34 = vpop.eup %9352  ;;  %9368 = vtanh.f32 %v12537_v7  ;;  %v12546_v6 = vadd.f32 %v5245_v28, %v4998_v29 }
 0xcd8   : > { %5307 = vrot.lane.b32.xlu1 %v9349_v24, %s9717_s24  ;;  %v12543_v49 = vpop.eup %9354  ;;  %v12548_v24 = vpop.permute.xlu0 %5405 }
 0xcd9   : > { %v5248_v62 = vmul.f32 %v12543_v49, %v12486_v0  ;;  %9370 = vtanh.f32 %v12546_v6  ;;  %vm5446_vm11 = vcmp.eq.s32.totalorder %v12548_v24, 1 }
 0xcda   : > { %v9357_v21 = vpop.eup %9356 }
 0xcdb   : > { %v12557_v57 = vadd.f32 %v8368_v35, %v5248_v62 }
 0xcdc   : > { %5313 = vrot.lane.b32.xlu1 %v9353_v34, %s9717_s24  ;;  %v12559_v34 = vpop.permute.xlu0 %5408 }
 0xcdd   : > { %9372 = vtanh.f32 %v12557_v57  ;;  %vm5447_vm13 = vcmp.eq.s32.totalorder %v12559_v34, 1  ;;  %v13584_v34 = vld [vmem:[#allocation26_spill] sm:$0xff] }
 0xcdf   : > { %v9359_v47 = vpop.eup %9358 }
 0xce0   : > { %5329 = vrot.lane.b32.xlu0 %v9359_v47, %s9717_s24  ;;  %5311 = vrot.lane.b32.xlu1 %v9357_v21, %s9717_s24  ;;  %v12554_v18 = vpop.eup %9360  ;;  %v5412_v0 = vpop.permute.xlu0 %5411 }
 0xce1   : > { %v9363_v29 = vpop.eup %9362  ;;  %v5247_v28 = vmul.f32 %v12554_v18, %v5212_v10  ;;  %vm5448_vm8 = vcmp.eq.s32.totalorder %v5412_v0, 1 }
 0xce2   : > { %v12563_v54 = vpop.eup %9364  ;;  %v12573_v10 = vsel %vm5448_vm8, %v12482_v50, %v13537_v17 }
 0xce3   : > { %v12566_v47 = vadd.f32 %v5247_v28, %v5008_v36  ;;  %v9367_v21 = vpop.eup %9366  ;;  %v5249_v35 = vmul.f32 %v12563_v54, %v5216_v9  ;;  %13570 = vst [vmem:[#allocation28_spill] sm:$0xff] %v12573_v10 }
 0xce4   : > { %5317 = vrot.lane.b32.xlu1 %v9363_v29, %s9717_s24  ;;  %v9369_v29 = vpop.eup %9368  ;;  %v12584_v50 = vpop.permute.xlu0 %5414 }
 0xce5   : > { %9374 = vtanh.f32 %v12566_v47  ;;  %v12576_v62 = vadd.f32 %v5249_v35, %v5018_v60  ;;  %v12586_v60 = vpop.permute.xlu1 %5396  ;;  %vm5449_vm15 = vcmp.eq.s32.totalorder %v12584_v50, 1 }
 0xce6   : > { %v9371_v36 = vpop.eup %9370  ;;  %vm5443_vm10 = vcmp.eq.s32.totalorder %v12586_v60, 1 }
 0xce7   : > { %9376 = vtanh.f32 %v12576_v62 }
 0xce8   : > { %5315 = vrot.lane.b32.xlu1 %v9367_v21, %s9717_s24  ;;  %v12588_v21 = vpop.permute.xlu0 %5417 }
 0xce9   : > { %vm5450_vm14 = vcmp.eq.s32.totalorder %v12588_v21, 1 }
 0xcea   : > { %v9373_v9 = vpop.eup %9372 }
 0xcec   : > { %5321 = vrot.lane.b32.xlu1 %v9369_v29, %s9717_s24 }
 0xcf0   : > { %5319 = vrot.lane.b32.xlu1 %v9371_v36, %s9717_s24  ;;  %v12592_v36 = vpop.permute.xlu0 %5420 }
 0xcf1   : > { %vm5451_vm2 = vcmp.eq.s32.totalorder %v12592_v36, 1 }
 0xcf2   : > { %v9375_v28 = vpop.eup %9374 }
 0xcf4   : > { %5325 = vrot.lane.b32.xlu1 %v9373_v9, %s9717_s24  ;;  %v9377_v17 = vpop.eup %9376  ;;  %v13571_v9 = vld [vmem:[#allocation35_spill] sm:$0xff] }
 0xcf8   : > { %5323 = vrot.lane.b32.xlu1 %v9375_v28, %s9717_s24 }
 0xcfc   : > { %5327 = vrot.lane.b32.xlu1 %v9377_v17, %s9717_s24 }
 0xd36   : > { %v5302_v35 = vpop.permute.xlu1 %5301 }
 0xd37   : > { %v5348_v29 = vmul.f32 %v12443_v63, %v5302_v35  ;;  %v12608_v35 = vpop.permute.xlu0 %5423 }
 0xd38   : > { %vm5452_vm1 = vcmp.eq.s32.totalorder %v12608_v35, 1 }
 0xd39   : > { %v12597_v28 = vsel %vm5444_vm9, %v5348_v29, %v13571_v9 }
 0xd3a   : > { %13572 = vst [vmem:[#allocation29_spill] sm:$0xff] %v12597_v28  ;;  %5509 = vrot.lane.b32.xlu0 %v12597_v28, %s9720_s21  ;;  %v5300_v17 = vpop.permute.xlu1 %5299  ;;  %v13574_v28 = vld [vmem:[#allocation21_spill] sm:$0xff] }
 0xd3b   : > { %v5347_v10 = vmul.f32 %v12446_v46, %v5300_v17  ;;  %v12623_v17 = vpop.permute.xlu0 %5426 }
 0xd3c   : > { %vm5453_vm4 = vcmp.eq.s32.totalorder %v12623_v17, 1 }
 0xd3d   : > { %v12606_v63 = vsel %vm5443_vm10, %v5347_v10, %v11874_v39 }
 0xd3e   : > { %13573 = vst [vmem:[#allocation35_spill] sm:$0xff] %v12606_v63  ;;  %5507 = vrot.lane.b32.xlu1 %v12606_v63, %s9720_s21  ;;  %v5306_v29 = vpop.permute.xlu1 %5305 }
 0xd3f   : > { %v5350_v9 = vmul.f32 %v12457_v53, %v5306_v29 }
 0xd41   : > { %v12617_v46 = vsel %vm5446_vm11, %v5350_v9, %v13574_v28 }
 0xd42   : > { %5513 = vrot.lane.b32.xlu0 %v12617_v46, %s9720_s21  ;;  %v5304_v39 = vpop.permute.xlu1 %5303 }
 0xd43   : > { %v5349_v10 = vmul.f32 %v12466_v30, %v5304_v39  ;;  %v12637_v30 = vpop.permute.xlu0 %5429 }
 0xd44   : > { %vm5454_vm3 = vcmp.eq.s32.totalorder %v12637_v30, 1 }
 0xd45   : > { %v12628_v53 = vsel %vm5445_vm12, %v5349_v10, %v11896_v26 }
 0xd46   : > { %5511 = vrot.lane.b32.xlu1 %v12628_v53, %s9720_s21  ;;  %v5310_v28 = vpop.permute.xlu1 %5309 }
 0xd47   : > { %v5352_v29 = vmul.f32 %v12473_v45, %v5310_v28  ;;  %v5433_v0 = vpop.permute.xlu0 %5432 }
 0xd48   : > { %vm5455_vm6 = vcmp.eq.s32.totalorder %v5433_v0, 1 }
 0xd49   : > { %v12635_v9 = vsel %vm5448_vm8, %v5352_v29, %v11903_v51 }
 0xd4a   : > { %5517 = vrot.lane.b32.xlu0 %v12635_v9, %s9720_s21  ;;  %v5308_v39 = vpop.permute.xlu1 %5307 }
 0xd4b   : > { %v5351_v63 = vmul.f32 %v12479_v61, %v5308_v39 }
 0xd4d   : > { %v12646_v26 = vsel %vm5447_vm13, %v5351_v63, %v11914_v44  ;;  %v5436_v63 = vpop.permute.xlu0 %5435 }
 0xd4e   : > { %5515 = vrot.lane.b32.xlu1 %v12646_v26, %s9720_s21  ;;  %v5314_v51 = vpop.permute.xlu1 %5313  ;;  %vm5456_vm5 = vcmp.eq.s32.totalorder %v5436_v63, 1 }
 0xd4f   : > { %v5354_v45 = vmul.f32 %v12488_v41, %v5314_v51 }
 0xd51   : > { %v12655_v61 = vsel %vm5450_vm14, %v5354_v45, %v11923_v40  ;;  %v5439_v39 = vpop.permute.xlu0 %5438 }
 0xd52   : > { %5521 = vrot.lane.b32.xlu0 %v12655_v61, %s9720_s21  ;;  %v5312_v10 = vpop.permute.xlu1 %5311  ;;  %vm5457_vm8 = vcmp.eq.s32.totalorder %v5439_v39, 1 }
 0xd53   : > { %v5353_v44 = vmul.f32 %v12496_v37, %v5312_v10 }
 0xd55   : > { %v12664_v41 = vsel %vm5449_vm15, %v5353_v44, %v11932_v11  ;;  %v5442_v45 = vpop.permute.xlu0 %5441 }
 0xd56   : > { %5519 = vrot.lane.b32.xlu1 %v12664_v41, %s9720_s21  ;;  %v5318_v28 = vpop.permute.xlu1 %5317  ;;  %vm5458_vm7 = vcmp.eq.s32.totalorder %v5442_v45, 1 }
 0xd57   : > { %v5356_v40 = vmul.f32 %v12502_v3, %v5318_v28 }
 0xd59   : > { %v12673_v37 = vsel %vm5452_vm1, %v5356_v40, %v11941_v22  ;;  %v5330_v44 = vpop.permute.xlu0 %5329 }
 0xd5a   : > { %5525 = vrot.lane.b32.xlu0 %v12673_v37, %s9720_s21  ;;  %v5316_v29 = vpop.permute.xlu1 %5315  ;;  %v5362_v40 = vmul.f32 %v12505_v59, %v5330_v44 }
 0xd5b   : > { %v5355_v11 = vmul.f32 %v12516_v58, %v5316_v29 }
 0xd5d   : > { %v12682_v3 = vsel %vm5451_vm2, %v5355_v11, %v11950_v31  ;;  %v12714_v11 = vsel %vm5458_vm7, %v5362_v40, %v11982_v4  ;;  %v5487_v4 = vsel %vm5455_vm6, %v12566_v47, %v12005_v23  ;;  %v5483_v23 = vsel %vm5451_vm2, %v12527_v1, %v12034_v2  ;;  %v13575_v2 = vld [vmem:[#allocation27_spill] sm:$0xff] }
 0xd5e   : > { %5523 = vrot.lane.b32.xlu1 %v12682_v3, %s9720_s21  ;;  %v5322_v51 = vpop.permute.xlu1 %5321 }
 0xd5f   : > { %v5358_v22 = vmul.f32 %v12524_v20, %v5322_v51 }
 0xd61   : > { %v12691_v58 = vsel %vm5454_vm3, %v5358_v22, %v11959_v14 }
 0xd62   : > { %5529 = vrot.lane.b32.xlu0 %v12691_v58, %s9720_s21  ;;  %v5320_v10 = vpop.permute.xlu1 %5319 }
 0xd63   : > { %v5357_v31 = vmul.f32 %v12534_v19, %v5320_v10 }
 0xd65   : > { %v12700_v20 = vsel %vm5453_vm4, %v5357_v31, %v11968_v12 }
 0xd66   : > { %5527 = vrot.lane.b32.xlu1 %v12700_v20, %s9720_s21  ;;  %v5326_v14 = vpop.permute.xlu1 %5325 }
 0xd67   : > { %v5360_v28 = vmul.f32 %v12543_v49, %v5326_v14  ;;  %v9637_v14 = vld [vmem:[%s9923_s17] sm:$0xff] }
 0xd69   : > { %v12708_v19 = vsel %vm5456_vm5, %v5360_v28, %v11976_v55 }
 0xd6a   : > { %5533 = vrot.lane.b32.xlu0 %v12708_v19, %s9720_s21  ;;  %v5324_v29 = vpop.permute.xlu1 %5323 }
 0xd6b   : > { %v5359_v12 = vmul.f32 %v12554_v18, %v5324_v29  ;;  %v5489_v18 = vsel %vm5457_vm8, %v12576_v62, %v11994_v13  ;;  %v5485_v13 = vsel %vm5453_vm4, %v12546_v6, %v12019_v5  ;;  %v5481_v5 = vsel %vm5449_vm15, %v12507_v25, %v12050_v56  ;;  %v13578_v56 = vld [vmem:[#allocation23_spill] sm:$0xff]  ;;  %v13586_v62 = vld [vmem:[#allocation32_spill] sm:$0xff] }
 0xd6c   : > { %v5476_v50 = vsel %vm5444_vm9, %v13586_v62, %v13585_v48 }
 0xd6d   : > { %v12717_v49 = vsel %vm5455_vm6, %v5359_v12, %v11985_v15  ;;  %v5490_v15 = vsel %vm5458_vm7, %v12513_v16, %v12009_v38  ;;  %v5486_v38 = vsel %vm5454_vm3, %v12537_v7, %v12040_v52  ;;  %v5479_v52 = vsel %vm5447_vm13, %v13575_v2, %v12066_v42  ;;  %v13577_v16 = vld [vmem:[#allocation31_spill] sm:$0xff]  ;;  %v13581_v42 = vld [vmem:[#allocation24_spill] sm:$0xff]  ;;  %v13582_v7 = vld [vmem:[#allocation34_spill] sm:$0xff] }
 0xd6e   : > { %5537 = vrot.lane.b32.xlu0 %v12714_v11, %s9720_s21  ;;  %5531 = vrot.lane.b32.xlu1 %v12717_v49, %s9720_s21  ;;  %v5328_v55 = vpop.permute.xlu1 %5327  ;;  %v5475_v6 = vsel %vm5443_vm10, %v13582_v7, %v13581_v42 }
 0xd6f   : > { %v5361_v59 = vmul.f32 %v12563_v54, %v5328_v55  ;;  %v13576_v54 = vld [vmem:[#allocation22_spill] sm:$0xff] }
 0xd70   : > { %v5482_v1 = vsel %vm5450_vm14, %v13577_v16, %v13576_v54 }
 0xd71   : > { %v12727_v0 = vsel %vm5457_vm8, %v5361_v59, %v11997_v27  ;;  %v5488_v27 = vsel %vm5456_vm5, %v12557_v57, %v12024_v43  ;;  %v5484_v43 = vsel %vm5452_vm1, %v12519_v32, %v12056_v33  ;;  %v13579_v33 = vld [vmem:[#allocation30_spill] sm:$0xff]  ;;  %v13580_v32 = vld [vmem:[#allocation28_spill] sm:$0xff]  ;;  %v13583_v57 = vld [vmem:[#allocation33_spill] sm:$0xff] }
 0xd72   : > { %6017 = vrot.lane.b32.xlu0 %v5489_v18, %s9720_s21  ;;  %5535 = vrot.lane.b32.xlu1 %v12727_v0, %s9720_s21  ;;  %v5477_v25 = vsel %vm5445_vm12, %v13579_v33, %v13578_v56  ;;  %v5478_v47 = vsel %vm5446_vm11, %v13584_v34, %v13583_v57 }
 0xd76   : > { %6013 = vrot.lane.b32.xlu0 %v5487_v4, %s9720_s21  ;;  %6019 = vrot.lane.b32.xlu1 %v5490_v15, %s9720_s21 }
 0xd7a   : > { %6009 = vrot.lane.b32.xlu0 %v5485_v13, %s9720_s21  ;;  %6015 = vrot.lane.b32.xlu1 %v5488_v27, %s9720_s21 }
 0xd7e   : > { %6005 = vrot.lane.b32.xlu0 %v5483_v23, %s9720_s21  ;;  %6011 = vrot.lane.b32.xlu1 %v5486_v38, %s9720_s21 }
 0xd82   : > { %6001 = vrot.lane.b32.xlu0 %v5481_v5, %s9720_s21  ;;  %6007 = vrot.lane.b32.xlu1 %v5484_v43, %s9720_s21  ;;  %v12835_v5 = vld [vmem:[%s13358_s5] ss:$0 sm:$0xff] }
 0xd86   : > { %5997 = vrot.lane.b32.xlu0 %v5479_v52, %s9720_s21  ;;  %6003 = vrot.lane.b32.xlu1 %v5482_v1, %s9720_s21 }
 0xd8a   : > { %5993 = vrot.lane.b32.xlu0 %v5477_v25, %s9720_s21  ;;  %5999 = vrot.lane.b32.xlu1 %v13580_v32, %s9720_s21 }
 0xd8e   : > { %5989 = vrot.lane.b32.xlu0 %v5475_v6, %s9720_s21  ;;  %5995 = vrot.lane.b32.xlu1 %v5478_v47, %s9720_s21 }
 0xd92   : > { %5991 = vrot.lane.b32.xlu1 %v5476_v50, %s9720_s21 }
 0xdac   : > { %v5510_v36 = vpop.permute.xlu0 %5509 }
 0xdb0   : > { %v5508_v21 = vpop.permute.xlu1 %5507 }
 0xdb1   : > { %8380 = vmatprep.mubr.msk.f32.mxu1 %vm492_vm0, %v5508_v21 }
 0xdb2   : > { %8381 = vmatmul.mubr.msk.f32.vlgmr.msra.gmra.mxu1 %vm492_vm0, %v5510_v36 }
 0xdb4   : > { %v5514_v24 = vpop.permute.xlu0 %5513 }
 0xdb8   : > { %v5512_v60 = vpop.permute.xlu1 %5511 }
 0xdb9   : > { %8383 = vmatprep.mubr.msk.f32.mxu1 %vm492_vm0, %v5512_v60 }
 0xdba   : > { %8384 = vmatmul.mubr.msk.f32.gmra.mxu1 %vm492_vm0, %v5514_v24 }
 0xdbc   : > { %v5518_v17 = vpop.permute.xlu0 %5517 }
 0xdc0   : > { %v5516_v35 = vpop.permute.xlu1 %5515 }
 0xdc1   : > { %8386 = vmatprep.mubr.msk.f32.mxu1 %vm492_vm0, %v5516_v35 }
 0xdc2   : > { %8387 = vmatmul.mubr.msk.f32.gmra.mxu1 %vm492_vm0, %v5518_v17 }
 0xdc4   : > { %v5522_v30 = vpop.permute.xlu0 %5521 }
 0xdc8   : > { %v5520_v8 = vpop.permute.xlu1 %5519 }
 0xdc9   : > { %8389 = vmatprep.mubr.msk.f32.mxu1 %vm492_vm0, %v5520_v8 }
 0xdca   : > { %8390 = vmatmul.mubr.msk.f32.gmra.mxu1 %vm492_vm0, %v5522_v30 }
 0xdcc   : > { %v5526_v39 = vpop.permute.xlu0 %5525 }
 0xdd0   : > { %v5524_v63 = vpop.permute.xlu1 %5523 }
 0xdd1   : > { %8392 = vmatprep.mubr.msk.f32.mxu1 %vm492_vm0, %v5524_v63 }
 0xdd2   : > { %8393 = vmatmul.mubr.msk.f32.gmra.mxu1 %vm492_vm0, %v5526_v39 }
 0xdd4   : > { %v5530_v22 = vpop.permute.xlu0 %5529 }
 0xdd8   : > { %v5528_v51 = vpop.permute.xlu1 %5527 }
 0xdd9   : > { %8395 = vmatprep.mubr.msk.f32.mxu1 %vm492_vm0, %v5528_v51 }
 0xdda   : > { %8396 = vmatmul.mubr.msk.f32.gmra.mxu1 %vm492_vm0, %v5530_v22 }
 0xddc   : > { %v5534_v45 = vpop.permute.xlu0 %5533 }
 0xde0   : > { %v5532_v10 = vpop.permute.xlu1 %5531  ;;  %v5538_v44 = vpop.permute.xlu0 %5537 }
 0xde1   : > { %8398 = vmatprep.mubr.msk.f32.mxu1 %vm492_vm0, %v5532_v10 }
 0xde2   : > { %8399 = vmatmul.mubr.msk.f32.gmra.mxu1 %vm492_vm0, %v5534_v45 }
 0xde4   : > { %v5536_v31 = vpop.permute.xlu1 %5535 }
 0xde5   : > { %8401 = vmatprep.mubr.msk.f32.mxu1 %vm492_vm0, %v5536_v31 }
 0xde6   : > { %8402 = vmatmul.mubr.msk.f32.gmra.mxu1 %vm492_vm0, %v5538_v44 }
 0xde7   : > { %8492 = vmatprep.mubr.f32.mxu1 %v9637_v14 }
 0xe72   : > { %v12816_v28 = vpop.f32.mrf.mxu1 }
 0xe73   : > { %v5717_v31 = vadd.f32 %v12835_v5, %v12816_v28 }
 0xe74   : > { %v12818_v40 = vpop.f32.mrf.mxu1 }
 0xe7a   : > { %v12820_v29 = vpop.f32.mrf.mxu1 }
 0xe7b   : > { %v5719_v60 = vadd.f32 %v12835_v5, %v12820_v29 }
 0xe7c   : > { %v12822_v12 = vpop.f32.mrf.mxu1 }
 0xe7d   : > { %v7265_v30 = vmul.f32 -1.442695, %v5719_v60  ;;  %v5718_v51 = vadd.f32 %v12835_v5, %v12822_v12 }
 0xe82   : > { %v12824_v55 = vpop.f32.mrf.mxu1 }
 0xe83   : > { %v5721_v24 = vadd.f32 %v12835_v5, %v12824_v55 }
 0xe84   : > { %v12826_v59 = vpop.f32.mrf.mxu1 }
 0xe85   : > { %v5720_v17 = vadd.f32 %v12835_v5, %v12826_v59  ;;  %v7267_v39 = vmul.f32 -1.442695, %v5721_v24 }
 0xe87   : > { %v7266_v22 = vmul.f32 -1.442695, %v5720_v17 }
 0xe8a   : > { %v12828_v18 = vpop.f32.mrf.mxu1 }
 0xe8b   : > { %v5723_v62 = vadd.f32 %v12835_v5, %v12828_v18 }
 0xe8c   : > { %v12830_v4 = vpop.f32.mrf.mxu1 }
 0xe8d   : > { %v5722_v21 = vadd.f32 %v12835_v5, %v12830_v4  ;;  %v7269_v35 = vmul.f32 -1.442695, %v5723_v62  ;;  %v13587_v62 = vmov 0.0  }
 0xe8f   : > { %v7268_v8 = vmul.f32 -1.442695, %v5722_v21  ;;  %v12883_v21 = vld [vmem:[%s9923_s17 + $0x10] sm:$0xff] }
 0xe92   : > { %v8394_v15 = vpop.f32.mrf.mxu1 }
 0xe93   : > { %v5725_v7 = vadd.f32 %v12835_v5, %v8394_v15 }
 0xe94   : > { %v5677_v13 = vpop.f32.mrf.mxu1 }
 0xe95   : > { %v5724_v34 = vadd.f32 %v12835_v5, %v5677_v13  ;;  %v7271_v50 = vmul.f32 -1.442695, %v5725_v7 }
 0xe97   : > { %v7270_v36 = vmul.f32 -1.442695, %v5724_v34 }
 0xe9a   : > { %v8397_v27 = vpop.f32.mrf.mxu1 }
 0xe9b   : > { %v5727_v2 = vadd.f32 %v12835_v5, %v8397_v27 }
 0xe9c   : > { %v5687_v23 = vpop.f32.mrf.mxu1 }
 0xe9d   : > { %v5726_v56 = vadd.f32 %v12835_v5, %v5687_v23  ;;  %v7273_v32 = vmul.f32 -1.442695, %v5727_v2 }
 0xe9f   : > { %v7272_v47 = vmul.f32 -1.442695, %v5726_v56 }
 0xea2   : > { %v8400_v38 = vpop.f32.mrf.mxu1 }
 0xea3   : > { %v5729_v43 = vadd.f32 %v12835_v5, %v8400_v38 }
 0xea4   : > { %v5697_v52 = vpop.f32.mrf.mxu1 }
 0xea5   : > { %v7275_v54 = vmul.f32 -1.442695, %v5729_v43  ;;  %v5728_v16 = vadd.f32 %v12835_v5, %v5697_v52 }
 0xea6   : > { %v8403_v1 = vpop.f32.mrf.mxu1 }
 0xea7   : > { %v7274_v33 = vmul.f32 -1.442695, %v5728_v16  ;;  %v5731_v25 = vadd.f32 %v12835_v5, %v8403_v1  ;;  %8404 = vmatprep.subr.mxu0 %v8403_v1  ;;  %9378 = vpow2.f32 %v7275_v54  ;;  %v7263_v54 = vmul.f32 -1.442695, %v5717_v31 }
 0xea8   : > { %v5707_v42 = vpop.f32.mrf.mxu1  ;;  %8405 = vmatpush3.msra.mxu0 %v8403_v1 }
 0xea9   : > { %v7277_v6 = vmul.f32 -1.442695, %v5731_v25  ;;  %v5730_v57 = vadd.f32 %v12835_v5, %v5707_v42  ;;  %8406 = vmatprep.subr.mxu0 %v5707_v42  ;;  %9380 = vpow2.f32 %v7274_v33 }
 0xeaa   : > { %8407 = vmatpush3.msra.mxu0 %v5707_v42 }
 0xeab   : > { %9382 = vpow2.f32 %v7277_v6  ;;  %v7276_v48 = vmul.f32 -1.442695, %v5730_v57  ;;  %8408 = vmatprep.subr.mxu0 %v8400_v38 }
 0xeac   : > { %9384 = vpow2.f32 %v7273_v32  ;;  %8409 = vmatpush3.msra.mxu0 %v8400_v38  ;;  %v7264_v38 = vmul.f32 -1.442695, %v5718_v51  ;;  %v12892_v51 = vld [vmem:[%s9923_s17 + $0x20] sm:$0xff] }
 0xead   : > { %9386 = vpow2.f32 %v7276_v48  ;;  %8410 = vmatprep.subr.mxu0 %v5697_v52  ;;  %v12878_v48 = vld [vmem:[%s9923_s17 + $0x8] sm:$0xff] }
 0xeae   : > { %8411 = vmatpush3.msra.mxu0 %v5697_v52  ;;  %9388 = vpow2.f32 %v7272_v47  ;;  %v6018_v52 = vpop.permute.xlu0 %6017 }
 0xeaf   : > { %8412 = vmatprep.subr.mxu0 %v8397_v27  ;;  %9390 = vpow2.f32 %v7271_v50 }
 0xeb0   : > { %8413 = vmatpush3.msra.mxu0 %v8397_v27  ;;  %9392 = vpow2.f32 %v7270_v36 }
 0xeb1   : > { %8414 = vmatprep.subr.mxu0 %v5687_v23  ;;  %9394 = vpow2.f32 %v7269_v35 }
 0xeb2   : > { %8415 = vmatpush3.msra.mxu0 %v5687_v23  ;;  %9396 = vpow2.f32 %v7268_v8  ;;  %v6020_v23 = vpop.permute.xlu1 %6019  ;;  %v6014_v42 = vpop.permute.xlu0 %6013  ;;  %v12887_v8 = vld [vmem:[%s9923_s17 + $0x18] sm:$0xff] }
 0xeb3   : > { %8416 = vmatprep.subr.mxu0 %v8394_v15  ;;  %9398 = vpow2.f32 %v7265_v30 }
 0xeb4   : > { %8417 = vmatpush3.msra.mxu0 %v8394_v15  ;;  %v9379_v63 = vpop.eup %9378  ;;  %9400 = vpow2.f32 %v7267_v39 }
 0xeb5   : > { %8418 = vmatprep.subr.mxu0 %v5677_v13  ;;  %v5793_v44 = vadd.f32 1.0, %v9379_v63  ;;  %9402 = vpow2.f32 %v7266_v22 }
 0xeb6   : > { %8419 = vmatpush3.msra.mxu0 %v5677_v13  ;;  %v9381_v45 = vpop.eup %9380  ;;  %v5716_v13 = vadd.f32 %v12835_v5, %v12818_v40  ;;  %v6016_v25 = vpop.permute.xlu1 %6015 }
 0xeb7   : > { %8420 = vmatprep.subr.mxu0 %v12828_v18  ;;  %v5792_v43 = vadd.f32 1.0, %v9381_v45  ;;  %v6010_v50 = vpop.permute.xlu0 %6009 }
 0xeb8   : > { %v9383_v10 = vpop.eup %9382  ;;  %8421 = vmatpush3.msra.mxu0 %v12828_v18  ;;  %v7262_v56 = vmul.f32 -1.442695, %v5716_v13 }
 0xeb9   : > { %v9385_v14 = vpop.eup %9384  ;;  %v5795_v15 = vadd.f32 1.0, %v9383_v10  ;;  %8422 = vmatprep.subr.mxu0 %v12830_v4 }
 0xeba   : > { %v9387_v27 = vpop.eup %9386  ;;  %8423 = vmatpush3.msra.mxu0 %v12830_v4  ;;  %v5791_v16 = vadd.f32 1.0, %v9385_v14  ;;  %v6012_v34 = vpop.permute.xlu1 %6011 }
 0xebb   : > { %9404 = vrcp.f32 %v5795_v15  ;;  %v5794_v2 = vadd.f32 1.0, %v9387_v27  ;;  %8424 = vmatprep.subr.mxu0 %v12824_v55  ;;  %v9389_v18 = vpop.eup %9388  ;;  %v12897_v27 = vld [vmem:[%s9923_s17 + $0x28] sm:$0xff] }
 0xebc   : > { %9406 = vrcp.f32 %v5793_v44  ;;  %8425 = vmatpush3.msra.mxu0 %v12824_v55  ;;  %v9391_v1 = vpop.eup %9390  ;;  %v5790_v4 = vadd.f32 1.0, %v9389_v18  ;;  %v6006_v44 = vpop.permute.xlu0 %6005 }
 0xebd   : > { %9408 = vrcp.f32 %v5794_v2  ;;  %8426 = vmatprep.subr.mxu0 %v12826_v59  ;;  %v9393_v33 = vpop.eup %9392  ;;  %v5789_v32 = vadd.f32 1.0, %v9391_v1 }
 0xebe   : > { %9410 = vpow2.f32 %v7264_v38  ;;  %8427 = vmatpush3.msra.mxu0 %v12826_v59  ;;  %v9395_v55 = vpop.eup %9394  ;;  %v5788_v59 = vadd.f32 1.0, %v9393_v33  ;;  %v6008_v39 = vpop.permute.xlu1 %6007  ;;  %v12902_v38 = vld [vmem:[%s9923_s17 + $0x30] sm:$0xff]  ;;  %v12912_v33 = vld [vmem:[%s9923_s17 + $0x40] sm:$0xff] }
 0xebf   : > { %9412 = vrcp.f32 %v5792_v43  ;;  %8428 = vmatprep.subr.mxu0 %v12820_v29  ;;  %v9397_v7 = vpop.eup %9396 }
 0xec0   : > { %9414 = vpow2.f32 %v7263_v54  ;;  %8429 = vmatpush3.msra.mxu0 %v12820_v29  ;;  %v9399_v6 = vpop.eup %9398  ;;  %v5787_v29 = vadd.f32 1.0, %v9395_v55  ;;  %v12917_v55 = vld [vmem:[%s9923_s17 + $0x48] sm:$0xff] }
 0xec1   : > { %9416 = vrcp.f32 %v5791_v16  ;;  %8430 = vmatprep.subr.mxu0 %v12822_v12  ;;  %v9401_v57 = vpop.eup %9400  ;;  %v5783_v45 = vadd.f32 1.0, %v9399_v6  ;;  %v12907_v16 = vld [vmem:[%s9923_s17 + $0x38] sm:$0xff]  ;;  %v12922_v6 = vld [vmem:[%s9923_s17 + $0x50] sm:$0xff] }
 0xec2   : > { %9418 = vpow2.f32 %v7262_v56  ;;  %8431 = vmatpush3.msra.mxu0 %v12822_v12  ;;  %v9403_v47 = vpop.eup %9402  ;;  %v5786_v12 = vadd.f32 1.0, %v9397_v7  ;;  %v5785_v60 = vadd.f32 1.0, %v9401_v57 }
 0xec3   : > { %9420 = vrcp.f32 %v5790_v4  ;;  %8432 = vmatprep.subr.mxu0 %v12816_v28  ;;  %v5784_v17 = vadd.f32 1.0, %v9403_v47  ;;  %v6002_v4 = vpop.permute.xlu0 %6001  ;;  %v12927_v47 = vld [vmem:[%s9923_s17 + $0x58] sm:$0xff] }
 0xec4   : > { %8433 = vmatpush3.msra.mxu0 %v12816_v28  ;;  %9422 = vrcp.f32 %v5789_v32 }
 0xec5   : > { %8434 = vmatprep.subr.mxu0 %v12818_v40  ;;  %9424 = vrcp.f32 %v5788_v59 }
 0xec6   : > { %8435 = vmatpush3.msra.mxu0 %v12818_v40  ;;  %9426 = vrcp.f32 %v5787_v29 }
 0xec7   : > { %8437 = vmatmul.mubr.f32.vlgmr.msra.gmra.mxu0 %v12878_v48  ;;  %8516 = vmatprep.subr.mxu0 %v13587_v62  ;;  %9428 = vrcp.f32 %v5786_v12 }
 0xec8   : > { %v9405_v28 = vpop.eup %9404  ;;  %8439 = vmatprep.mubr.f32.mxu0 %v12883_v21  ;;  %9430 = vrcp.f32 %v5785_v60 }
 0xec9   : > { %v9407_v36 = vpop.eup %9406  ;;  %v6052_v40 = vmul.f32 %v9405_v28, %v6020_v23  ;;  %9432 = vrcp.f32 %v5784_v17 }
 0xeca   : > { %v9409_v24 = vpop.eup %9408  ;;  %v6050_v10 = vmul.f32 %v9407_v36, %v6016_v25  ;;  %9434 = vrcp.f32 %v5783_v45  ;;  %v12947_v45 = vld [vmem:[%s9923_s17 + $0x78] sm:$0xff] }
 0xecb   : > { %v9411_v35 = vpop.eup %9410  ;;  %8440 = vmatmul.mubr.f32.gmra.mxu0 %v12887_v8  ;;  %6099 = vrot.lane.b32.xlu1 %v6052_v40, %s9717_s24  ;;  %v6051_v30 = vmul.f32 %v9409_v24, %v6018_v52  ;;  %v6004_v52 = vpop.permute.xlu1 %6003  ;;  %v12937_v24 = vld [vmem:[%s9923_s17 + $0x68] sm:$0xff] }
 0xecc   : > { %v9413_v63 = vpop.eup %9412  ;;  %8442 = vmatprep.mubr.f32.mxu0 %v12892_v51  ;;  %v5782_v15 = vadd.f32 1.0, %v9411_v35 }
 0xecd   : > { %v9415_v22 = vpop.eup %9414  ;;  %6097 = vrot.lane.b32.xlu0 %v6051_v30, %s9717_s24  ;;  %v6049_v23 = vmul.f32 %v9413_v63, %v6014_v42  ;;  %v12942_v63 = vld [vmem:[%s9923_s17 + $0x70] sm:$0xff] }
 0xece   : > { %v9417_v31 = vpop.eup %9416  ;;  %v5781_v43 = vadd.f32 1.0, %v9415_v22  ;;  %9436 = vrcp.f32 %v5782_v15 }
 0xecf   : > { %v9419_v14 = vpop.eup %9418  ;;  %8443 = vmatmul.mubr.f32.gmra.mxu0 %v12897_v27  ;;  %6095 = vrot.lane.b32.xlu1 %v6050_v10, %s9717_s24  ;;  %v6048_v2 = vmul.f32 %v9417_v31, %v6012_v34  ;;  %v6000_v7 = vpop.permute.xlu1 %5999 }
 0xed0   : > { %v9421_v13 = vpop.eup %9420  ;;  %8445 = vmatprep.mubr.f32.mxu0 %v12902_v38  ;;  %v5780_v54 = vadd.f32 1.0, %v9419_v14  ;;  %9438 = vrcp.f32 %v5781_v43  ;;  %v5998_v34 = vpop.permute.xlu0 %5997 }
 0xed1   : > { %6093 = vrot.lane.b32.xlu0 %v6049_v23, %s9717_s24  ;;  %v9423_v18 = vpop.eup %9422  ;;  %v6047_v1 = vmul.f32 %v9421_v13, %v6010_v50  ;;  %v12932_v50 = vld [vmem:[%s9923_s17 + $0x60] sm:$0xff]  ;;  %s353_s17 = sand.u32 1, %s9706_s10  }
 0xed2   : > { %v9425_v56 = vpop.eup %9424  ;;  %v6046_v25 = vmul.f32 %v9423_v18, %v6008_v39  ;;  %9440 = vrcp.f32 %v5780_v54 }
 0xed3   : > { %8446 = vmatmul.mubr.f32.gmra.mxu0 %v12907_v16  ;;  %6091 = vrot.lane.b32.xlu1 %v6048_v2, %s9717_s24  ;;  %v9427_v32 = vpop.eup %9426  ;;  %v6045_v42 = vmul.f32 %v9425_v56, %v6006_v44  ;;  %v5996_v40 = vpop.permute.xlu1 %5995 }
 0xed4   : > { %8448 = vmatprep.mubr.f32.mxu0 %v12912_v33  ;;  %v9429_v59 = vpop.eup %9428  ;;  %v6044_v29 = vmul.f32 %v9427_v32, %v6004_v52  ;;  %v5994_v30 = vpop.permute.xlu0 %5993 }
 0xed5   : > { %6089 = vrot.lane.b32.xlu0 %v6047_v1, %s9717_s24  ;;  %v9431_v57 = vpop.eup %9430  ;;  %v6043_v12 = vmul.f32 %v9429_v59, %v6002_v4 }
 0xed6   : > { %v9433_v28 = vpop.eup %9432  ;;  %v6042_v36 = vmul.f32 %v9431_v57, %v6000_v7 }
 0xed7   : > { %8449 = vmatmul.mubr.f32.gmra.mxu0 %v12917_v55  ;;  %6087 = vrot.lane.b32.xlu1 %v6046_v25, %s9717_s24  ;;  %v9435_v60 = vpop.eup %9434  ;;  %v6041_v35 = vmul.f32 %v9433_v28, %v5998_v34  ;;  %v5992_v44 = vpop.permute.xlu1 %5991 }
 0xed8   : > { %8451 = vmatprep.mubr.f32.mxu0 %v12922_v6  ;;  %v6040_v39 = vmul.f32 %v9435_v60, %v5996_v40  ;;  %v5990_v15 = vpop.permute.xlu0 %5989 }
 0xed9   : > { %6085 = vrot.lane.b32.xlu0 %v6045_v42, %s9717_s24 }
 0xedb   : > { %8452 = vmatmul.mubr.f32.gmra.mxu0 %v12927_v47  ;;  %6083 = vrot.lane.b32.xlu1 %v6044_v29, %s9717_s24  ;;  %v9437_v17 = vpop.eup %9436 }
 0xedc   : > { %8454 = vmatprep.mubr.f32.mxu0 %v12932_v50  ;;  %v6039_v10 = vmul.f32 %v9437_v17, %v5994_v30  ;;  %v13590_v17 = vld [vmem:[#allocation17_spill] sm:$0xff] }
 0xedd   : > { %6081 = vrot.lane.b32.xlu0 %v6043_v12, %s9717_s24  ;;  %v9439_v22 = vpop.eup %9438 }
 0xede   : > { %v6038_v14 = vmul.f32 %v9439_v22, %v5992_v44 }
 0xedf   : > { %8455 = vmatmul.mubr.f32.gmra.mxu0 %v12937_v24  ;;  %6079 = vrot.lane.b32.xlu1 %v6042_v36, %s9717_s24  ;;  %v9441_v31 = vpop.eup %9440  ;;  %v13588_v36 = vld [vmem:[#allocation19_spill] sm:$0xff] }
 0xee0   : > { %8457 = vmatprep.mubr.f32.mxu0 %v12942_v63  ;;  %v6037_v23 = vmul.f32 %v9441_v31, %v5990_v15 }
 0xee1   : > { %6077 = vrot.lane.b32.xlu0 %v6041_v35, %s9717_s24 }
 0xee3   : > { %8458 = vmatmul.mubr.f32.gmra.mxu0 %v12947_v45  ;;  %6075 = vrot.lane.b32.xlu1 %v6040_v39, %s9717_s24  ;;  %v13591_v39 = vld [vmem:[#allocation18_spill] sm:$0xff] }
 0xee5   : > { %6073 = vrot.lane.b32.xlu0 %v6039_v10, %s9717_s24  ;;  %v13592_v10 = vld [vmem:[#allocation15_spill] sm:$0xff] }
 0xee7   : > { %6071 = vrot.lane.b32.xlu1 %v6038_v14, %s9717_s24  ;;  %v13593_v14 = vld [vmem:[#allocation16_spill] sm:$0xff] }
 0xee9   : > { %6069 = vrot.lane.b32.xlu0 %v6037_v23, %s9717_s24 }
 0xf3d   : > { %v6100_v13 = vpop.permute.xlu1 %6099 }
 0xf3e   : > { %8460 = vmatprep.subr.mxu1 %v6100_v13 }
 0xf3f   : > { %v6098_v43 = vpop.permute.xlu0 %6097  ;;  %8461 = vmatpush3.msra.mxu1 %v6100_v13  ;;  %v13594_v13 = vld [vmem:[#allocation13_spill] sm:$0xff] }
 0xf40   : > { %8462 = vmatprep.subr.mxu1 %v6098_v43 }
 0xf41   : > { %8463 = vmatpush3.msra.mxu1 %v6098_v43  ;;  %v6096_v2 = vpop.permute.xlu1 %6095 }
 0xf42   : > { %8464 = vmatprep.subr.mxu1 %v6096_v2 }
 0xf43   : > { %v6094_v18 = vpop.permute.xlu0 %6093  ;;  %8465 = vmatpush3.msra.mxu1 %v6096_v2 }
 0xf44   : > { %8466 = vmatprep.subr.mxu1 %v6094_v18 }
 0xf45   : > { %8467 = vmatpush3.msra.mxu1 %v6094_v18  ;;  %v6092_v52 = vpop.permute.xlu1 %6091  ;;  %v13595_v18 = vld [vmem:[#allocation14_spill] sm:$0xff] }
 0xf46   : > { %8468 = vmatprep.subr.mxu1 %v6092_v52 }
 0xf47   : > { %v6090_v54 = vpop.permute.xlu0 %6089  ;;  %8469 = vmatpush3.msra.mxu1 %v6092_v52 }
 0xf48   : > { %8470 = vmatprep.subr.mxu1 %v6090_v54 }
 0xf49   : > { %8471 = vmatpush3.msra.mxu1 %v6090_v54  ;;  %v6088_v1 = vpop.permute.xlu1 %6087 }
 0xf4a   : > { %8472 = vmatprep.subr.mxu1 %v6088_v1 }
 0xf4b   : > { %v6086_v56 = vpop.permute.xlu0 %6085  ;;  %8473 = vmatpush3.msra.mxu1 %v6088_v1  ;;  %v13596_v1 = vld [vmem:[#allocation11_spill] sm:$0xff] }
 0xf4c   : > { %8474 = vmatprep.subr.mxu1 %v6086_v56 }
 0xf4d   : > { %8475 = vmatpush3.msra.mxu1 %v6086_v56  ;;  %v6084_v4 = vpop.permute.xlu1 %6083 }
 0xf4e   : > { %8476 = vmatprep.subr.mxu1 %v6084_v4 }
 0xf4f   : > { %v6082_v25 = vpop.permute.xlu0 %6081  ;;  %8477 = vmatpush3.msra.mxu1 %v6084_v4 }
 0xf50   : > { %8478 = vmatprep.subr.mxu1 %v6082_v25 }
 0xf51   : > { %8479 = vmatpush3.msra.mxu1 %v6082_v25  ;;  %v6080_v32 = vpop.permute.xlu1 %6079  ;;  %v13597_v25 = vld [vmem:[#allocation12_spill] sm:$0xff] }
 0xf52   : > { %8480 = vmatprep.subr.mxu1 %v6080_v32 }
 0xf53   : > { %v6078_v42 = vpop.permute.xlu0 %6077  ;;  %8481 = vmatpush3.msra.mxu1 %v6080_v32 }
 0xf54   : > { %8482 = vmatprep.subr.mxu1 %v6078_v42 }
 0xf55   : > { %8483 = vmatpush3.msra.mxu1 %v6078_v42  ;;  %v6076_v59 = vpop.permute.xlu1 %6075 }
 0xf56   : > { %8484 = vmatprep.subr.mxu1 %v6076_v59 }
 0xf57   : > { %v6074_v7 = vpop.permute.xlu0 %6073  ;;  %8485 = vmatpush3.msra.mxu1 %v6076_v59  ;;  %v13598_v59 = vld [vmem:[#allocation9_spill] sm:$0xff] }
 0xf58   : > { %8486 = vmatprep.subr.mxu1 %v6074_v7 }
 0xf59   : > { %8487 = vmatpush3.msra.mxu1 %v6074_v7  ;;  %v6072_v29 = vpop.permute.xlu1 %6071 }
 0xf5a   : > { %8488 = vmatprep.subr.mxu1 %v6072_v29 }
 0xf5b   : > { %v6070_v57 = vpop.permute.xlu0 %6069  ;;  %8489 = vmatpush3.msra.mxu1 %v6072_v29 }
 0xf5c   : > { %8490 = vmatprep.subr.mxu1 %v6070_v57 }
 0xf5d   : > { %8491 = vmatpush3.msra.mxu1 %v6070_v57 }
 0xf5e   : > { %8493 = vmatmul.mubr.f32.vlgmr.msra.gmra.mxu1 %v12878_v48  ;;  %8551 = vmatprep.subr.mxu1 %v13587_v62 }
 0xf5f   : > { %8495 = vmatprep.mubr.f32.mxu1 %v12883_v21 }
 0xf62   : > { %8496 = vmatmul.mubr.f32.gmra.mxu1 %v12887_v8 }
 0xf63   : > { %8498 = vmatprep.mubr.f32.mxu1 %v12892_v51 }
 0xf66   : > { %8499 = vmatmul.mubr.f32.gmra.mxu1 %v12897_v27 }
 0xf67   : > { %8501 = vmatprep.mubr.f32.mxu1 %v12902_v38 }
 0xf6a   : > { %8502 = vmatmul.mubr.f32.gmra.mxu1 %v12907_v16 }
 0xf6b   : > { %8504 = vmatprep.mubr.f32.mxu1 %v12912_v33 }
 0xf6e   : > { %8505 = vmatmul.mubr.f32.gmra.mxu1 %v12917_v55 }
 0xf6f   : > { %8507 = vmatprep.mubr.f32.mxu1 %v12922_v6 }
 0xf72   : > { %8508 = vmatmul.mubr.f32.gmra.mxu1 %v12927_v47 }
 0xf73   : > { %8510 = vmatprep.mubr.f32.mxu1 %v12932_v50 }
 0xf76   : > { %8511 = vmatmul.mubr.f32.gmra.mxu1 %v12937_v24  ;;  %v13589_v24 = vld [vmem:[#allocation20_spill] sm:$0xff] }
 0xf77   : > { %8513 = vmatprep.mubr.f32.mxu1 %v12942_v63 }
 0xf7a   : > { %8514 = vmatmul.mubr.f32.gmra.mxu1 %v12947_v45 }
 0xf87   : > { %v8438_v48 = vpop.f32.mrf.mxu0 }
 0xf89   : > { %v12970_v21 = vpop.f32.mrf.mxu0 }
 0xf8b   : > { %v8441_v8 = vpop.f32.mrf.mxu0 }
 0xf8d   : > { %v5904_v51 = vpop.f32.mrf.mxu0 }
 0xf8f   : > { %v8444_v27 = vpop.f32.mrf.mxu0 }
 0xf90   : > { %v6267_v7 = vadd.f32 %v8444_v27, %v13598_v59 }
 0xf91   : > { %v5914_v38 = vpop.f32.mrf.mxu0 }
 0xf92   : > { %v13025_v27 = vadd.f32 %v12835_v5, %v6267_v7  ;;  %v479_v7 = vld [vmem:[%s10229_s29 + $0x260] sm:$0xff] }
 0xf93   : > { %v8447_v16 = vpop.f32.mrf.mxu0  ;;  %vm6610_vm12 = vcmp.gt.f32.partialorder %v479_v7, 0.0 }
 0xf94   : > { %v6269_v56 = vadd.f32 %v8447_v16, %v13596_v1  ;;  %v13599_v16 = vld [vmem:[#allocation10_spill] sm:$0xff]  ;;  %v13604_v1 = vmov 0  }
 0xf95   : > { %v5924_v33 = vpop.f32.mrf.mxu0 }
 0xf96   : > { %v6268_v32 = vadd.f32 %v5924_v33, %v13597_v25  ;;  %v13014_v29 = vadd.f32 %v12835_v5, %v6269_v56 }
 0xf97   : > { %v8450_v55 = vpop.f32.mrf.mxu0 }
 0xf98   : > { %v6271_v43 = vadd.f32 %v8450_v55, %v13594_v13  ;;  %v6266_v55 = vadd.f32 %v5914_v38, %v13599_v16  ;;  %v482_v13 = vld [vmem:[%s10229_s29 + $0x278] sm:$0xff] }
 0xf99   : > { %v5934_v6 = vpop.f32.mrf.mxu0  ;;  %vm6613_vm9 = vcmp.gt.f32.partialorder %v482_v13, 0.0  ;;  %v478_v16 = vld [vmem:[%s10229_s29 + $0x258] sm:$0xff]  ;;  %v467_v13 = vld [vmem:[%s10229_s29 + $0x200] sm:$0xff] }
 0xf9a   : > { %v6270_v52 = vadd.f32 %v5934_v6, %v13595_v18  ;;  %v13004_v4 = vadd.f32 %v12835_v5, %v6271_v43  ;;  %v13020_v6 = vadd.f32 %v12835_v5, %v6268_v32  ;;  %v481_v18 = vld [vmem:[%s10229_s29 + $0x270] sm:$0xff]  ;;  %v6629_v56 = vsel %vm6613_vm9, 1, %v13604_v1  ;;  %v480_v32 = vld [vmem:[%s10229_s29 + $0x268] sm:$0xff] }
 0xf9b   : > { %v8453_v34 = vpop.f32.mrf.mxu0  ;;  %vm6612_vm10 = vcmp.gt.f32.partialorder %v481_v18, 0.0  ;;  %vm6611_vm11 = vcmp.gt.f32.partialorder %v480_v32, 0.0  ;;  %vm6609_vm13 = vcmp.gt.f32.partialorder %v478_v16, 0.0  ;;  %vm6598_vm9 = vcmp.gt.f32.partialorder %v467_v13, 0.0 }
 0xf9c   : > { %v6273_v31 = vadd.f32 %v8453_v34, %v13592_v10  ;;  %v13009_v42 = vadd.f32 %v12835_v5, %v6270_v52  ;;  %v13600_v34 = vld [vmem:[#allocation7_spill] sm:$0xff]  ;;  %v6628_v59 = vsel %vm6612_vm10, 1, %v13604_v1  ;;  %v6614_v18 = vsel %vm6598_vm9, 1, %v13604_v1 }
 0xf9d   : > { %v5944_v47 = vpop.f32.mrf.mxu0 }
 0xf9e   : > { %v6272_v15 = vadd.f32 %v5944_v47, %v13593_v14  ;;  %v12994_v2 = vadd.f32 %v12835_v5, %v6273_v31  ;;  %v6265_v47 = vadd.f32 %v8441_v8, %v13600_v34  ;;  %v6625_v34 = vsel %vm6609_vm13, 1, %v13604_v1 }
 0xf9f   : > { %v8456_v12 = vpop.f32.mrf.mxu0 }
 0xfa0   : > { %v6275_v30 = vadd.f32 %v8456_v12, %v13590_v17  ;;  %v12999_v54 = vadd.f32 %v12835_v5, %v6272_v15  ;;  %v7289_v32 = vmul.f32 -1.442695, %v12994_v2 }
 0xfa1   : > { %v5954_v28 = vpop.f32.mrf.mxu0 }
 0xfa2   : > { %v6274_v22 = vadd.f32 %v5954_v28, %v13591_v39  ;;  %v12984_v44 = vadd.f32 %v12835_v5, %v6275_v30  ;;  %v13601_v28 = vld [vmem:[#allocation8_spill] sm:$0xff]  ;;  %v7288_v7 = vmul.f32 -1.442695, %v12999_v54 }
 0xfa3   : > { %v8459_v50 = vpop.f32.mrf.mxu0  ;;  %v6264_v38 = vadd.f32 %v5904_v51, %v13601_v28  ;;  %v475_v28 = vld [vmem:[%s10229_s29 + $0x240] sm:$0xff] }
 0xfa4   : > { %v6277_v60 = vadd.f32 %v8459_v50, %v13588_v36  ;;  %v12989_v23 = vadd.f32 %v12835_v5, %v6274_v22  ;;  %v13032_v50 = vadd.f32 %v12835_v5, %v6266_v55  ;;  %v6626_v55 = vsel %vm6610_vm12, 1, %v13604_v1 }
 0xfa5   : > { %v5964_v40 = vpop.f32.mrf.mxu0  ;;  %v13045_v17 = vadd.f32 %v12835_v5, %v6264_v38  ;;  %vm6606_vm1 = vcmp.gt.f32.partialorder %v475_v28, 0.0 }
 0xfa6   : > { %v6276_v35 = vadd.f32 %v5964_v40, %v13589_v24  ;;  %v12976_v63 = vadd.f32 %v12835_v5, %v6277_v60  ;;  %v13602_v60 = vld [vmem:[#allocation5_spill] sm:$0xff]  ;;  %v13037_v40 = vadd.f32 %v12835_v5, %v6265_v47  ;;  %v476_v47 = vld [vmem:[%s10229_s29 + $0x248] sm:$0xff] }
 0xfa7   : > { %v6263_v8 = vadd.f32 %v8438_v48, %v13602_v60  ;;  %vm6607_vm15 = vcmp.gt.f32.partialorder %v476_v47, 0.0  ;;  %v6622_v60 = vsel %vm6606_vm1, 1, %v13604_v1 }
 0xfa8   : > { %v12980_v45 = vadd.f32 %v12835_v5, %v6276_v35  ;;  %9442 = vtanh.f32 %v12976_v63  ;;  %v13603_v35 = vld [vmem:[#allocation6_spill] sm:$0xff]  ;;  %v6623_v38 = vsel %vm6607_vm15, 1, %v13604_v1 }
 0xfa9   : > { %v6262_v51 = vadd.f32 %v12970_v21, %v13603_v35  ;;  %v13049_v48 = vadd.f32 %v12835_v5, %v6263_v8  ;;  %v473_v8 = vld [vmem:[%s10229_s29 + $0x230] sm:$0xff]  ;;  %v472_v35 = vld [vmem:[%s10229_s29 + $0x228] sm:$0xff] }
 0xfaa   : > { %9444 = vtanh.f32 %v12980_v45  ;;  %vm6604_vm3 = vcmp.gt.f32.partialorder %v473_v8, 0.0  ;;  %vm6603_vm4 = vcmp.gt.f32.partialorder %v472_v35, 0.0 }
 0xfab   : > { %9446 = vtanh.f32 %v12984_v44  ;;  %v13055_v22 = vadd.f32 %v12835_v5, %v6262_v51  ;;  %v6620_v51 = vsel %vm6604_vm3, 1, %v13604_v1 }
 0xfac   : > { %9448 = vtanh.f32 %v12989_v23 }
 0xfad   : > { %9450 = vtanh.f32 %v12994_v2 }
 0xfae   : > { %9452 = vtanh.f32 %v12999_v54  ;;  %v7293_v54 = vmul.f32 -1.442695, %v12976_v63 }
 0xfaf   : > { %9454 = vtanh.f32 %v13004_v4 }
 0xfb0   : > { %9456 = vtanh.f32 %v13009_v42 }
 0xfb1   : > { %9458 = vtanh.f32 %v13014_v29 }
 0xfb2   : > { %9460 = vtanh.f32 %v13020_v6 }
 0xfb3   : > { %9462 = vtanh.f32 %v13025_v27 }
 0xfb4   : > { %9464 = vtanh.f32 %v13032_v50 }
 0xfb5   : > { %v9443_v57 = vpop.eup %9442  ;;  %9466 = vtanh.f32 %v13037_v40 }
 0xfb6   : > { %6452 = vrot.lane.b32.xlu1 %v9443_v57, %s9719_s25  ;;  %9468 = vtanh.f32 %v13045_v17  ;;  %v6627_v57 = vsel %vm6611_vm11, 1, %v13604_v1 }
 0xfb7   : > { %v9445_v33 = vpop.eup %9444  ;;  %9470 = vtanh.f32 %v13049_v48 }
 0xfb8   : > { %v9447_v12 = vpop.eup %9446  ;;  %6450 = vrot.lane.b32.xlu0 %v9445_v33, %s9719_s25  ;;  %9472 = vtanh.f32 %v13055_v22  ;;  %v477_v33 = vld [vmem:[%s10229_s29 + $0x250] sm:$0xff] }
 0xfb9   : > { %v9449_v36 = vpop.eup %9448  ;;  %vm6608_vm14 = vcmp.gt.f32.partialorder %v477_v33, 0.0 }
 0xfba   : > { %6448 = vrot.lane.b32.xlu1 %v9447_v12, %s9719_s25  ;;  %v9451_v24 = vpop.eup %9450  ;;  %v6624_v12 = vsel %vm6608_vm14, 1, %v13604_v1 }
 0xfbb   : > { %v9453_v30 = vpop.eup %9452 }
 0xfbc   : > { %6446 = vrot.lane.b32.xlu0 %v9449_v36, %s9719_s25  ;;  %v9455_v39 = vpop.eup %9454  ;;  %v474_v36 = vld [vmem:[%s10229_s29 + $0x238] sm:$0xff] }
 0xfbd   : > { %v9457_v21 = vpop.eup %9456  ;;  %vm6605_vm2 = vcmp.gt.f32.partialorder %v474_v36, 0.0 }
 0xfbe   : > { %6444 = vrot.lane.b32.xlu1 %v9451_v24, %s9719_s25  ;;  %v9459_v10 = vpop.eup %9458  ;;  %v6621_v24 = vsel %vm6605_vm2, 1, %v13604_v1 }
 0xfbf   : > { %v9461_v31 = vpop.eup %9460 }
 0xfc0   : > { %6442 = vrot.lane.b32.xlu0 %v9453_v30, %s9719_s25  ;;  %v9463_v14 = vpop.eup %9462  ;;  %v471_v30 = vld [vmem:[%s10229_s29 + $0x220] sm:$0xff] }
 0xfc1   : > { %v9465_v5 = vpop.eup %9464  ;;  %vm6602_vm5 = vcmp.gt.f32.partialorder %v471_v30, 0.0 }
 0xfc2   : > { %6440 = vrot.lane.b32.xlu1 %v9455_v39, %s9719_s25  ;;  %v9467_v15 = vpop.eup %9466  ;;  %v6619_v39 = vsel %vm6603_vm4, 1, %v13604_v1 }
 0xfc3   : > { %v9469_v43 = vpop.eup %9468 }
 0xfc4   : > { %6438 = vrot.lane.b32.xlu0 %v9457_v21, %s9719_s25  ;;  %v9471_v52 = vpop.eup %9470  ;;  %v470_v21 = vld [vmem:[%s10229_s29 + $0x218] sm:$0xff] }
 0xfc5   : > { %v9473_v25 = vpop.eup %9472  ;;  %vm6601_vm6 = vcmp.gt.f32.partialorder %v470_v21, 0.0 }
 0xfc6   : > { %6436 = vrot.lane.b32.xlu1 %v9459_v10, %s9719_s25  ;;  %v6618_v10 = vsel %vm6602_vm5, 1, %v13604_v1 }
 0xfc8   : > { %6434 = vrot.lane.b32.xlu0 %v9461_v31, %s9719_s25  ;;  %v469_v31 = vld [vmem:[%s10229_s29 + $0x210] sm:$0xff] }
 0xfc9   : > { %vm6600_vm7 = vcmp.gt.f32.partialorder %v469_v31, 0.0 }
 0xfca   : > { %6432 = vrot.lane.b32.xlu1 %v9463_v14, %s9719_s25  ;;  %v6617_v14 = vsel %vm6601_vm6, 1, %v13604_v1 }
 0xfcc   : > { %6430 = vrot.lane.b32.xlu0 %v9465_v5, %s9719_s25  ;;  %v468_v5 = vld [vmem:[%s10229_s29 + $0x208] sm:$0xff] }
 0xfcd   : > { %vm6599_vm8 = vcmp.gt.f32.partialorder %v468_v5, 0.0 }
 0xfce   : > { %6428 = vrot.lane.b32.xlu1 %v9467_v15, %s9719_s25  ;;  %v6616_v15 = vsel %vm6600_vm7, 1, %v13604_v1 }
 0xfd0   : > { %6426 = vrot.lane.b32.xlu0 %v9469_v43, %s9719_s25  ;;  %v6615_v43 = vsel %vm6599_vm8, 1, %v13604_v1  ;;  %v7291_v1 = vmul.f32 -1.442695, %v12984_v44  ;;  %vm9721_vm8 = vmmov 0  }
 0xfd1   : > { %8548 = vmatprep.mubr.msk.f32.mxu0 %vm9721_vm8, %v13587_v62  ;;  %8559 = vmatprep.mubr.msk.f32.mxu1 %vm9721_vm8, %v13587_v62 }
 0xfd2   : > { %6424 = vrot.lane.b32.xlu1 %v9471_v52, %s9719_s25  ;;  %v7287_v52 = vmul.f32 -1.442695, %v13004_v4 }
 0xfd4   : > { %6422 = vrot.lane.b32.xlu0 %v9473_v25, %s9719_s25  ;;  %9474 = vpow2.f32 %v7287_v52  ;;  %s7297_s25 = sshll.u32 %s9794_s13, 7  ;;  %s9660_s13 = scalar_lea.vmem %s9659_s23, 256 }
 0xfd5   : > { %s6958_s14 = scalar_lea.hbm %s13362_s9, %s7297_s25 }
 0xfd6   : > { %6676 = vperm.xlu1 %8609, %v6629_v56   ;;  %v7286_v56 = vmul.f32 -1.442695, %v13009_v42  ;;  %v7290_v42 = vmul.f32 -1.442695, %v12989_v23  ;;  %v7292_v23 = vmul.f32 -1.442695, %v12980_v45 }
 0xfd7   : > { %v7284_v45 = vmul.f32 -1.442695, %v13020_v6 }
 0xfd8   : > { %6673 = vperm.xlu0 %8608, %v6628_v59   ;;  %9476 = vpow2.f32 %v7286_v56 }
 0xfd9   : > { %9478 = vpow2.f32 %v7289_v32 }
 0xfda   : > { %9480 = vpow2.f32 %v7288_v7  ;;  %v7282_v7 = vmul.f32 -1.442695, %v13032_v50 }
 0xfdb   : > { %9482 = vpow2.f32 %v7291_v1 }
 0xfdc   : > { %6670 = vperm.xlu0 %8608, %v6627_v57   ;;  %9484 = vpow2.f32 %v7290_v42 }
 0xfe0   : > { %6667 = vperm.xlu0 %8608, %v6626_v55   ;;  %v7278_v55 = vmul.f32 -1.442695, %v13055_v22  ;;  %v7285_v22 = vmul.f32 -1.442695, %v13014_v29 }
 0xfe1   : > { %v9475_v16 = vpop.eup %9474 }
 0xfe2   : > { %9486 = vpow2.f32 %v7278_v55 }
 0xfe4   : > { %6664 = vperm.xlu0 %8608, %v6625_v34   ;;  %v6351_v34 = vadd.f32 1.0, %v9475_v16 }
 0xfe5   : > { %v9477_v33 = vpop.eup %9476 }
 0xfe6   : > { %v9479_v47 = vpop.eup %9478  ;;  %9488 = vrcp.f32 %v6351_v34 }
 0xfe7   : > { %v6353_v44 = vadd.f32 1.0, %v9479_v47  ;;  %9490 = vpow2.f32 %v7293_v54 }
 0xfe8   : > { %6661 = vperm.xlu0 %8608, %v6624_v12   ;;  %v6350_v12 = vadd.f32 1.0, %v9477_v33 }
 0xfea   : > { %9492 = vrcp.f32 %v6350_v12 }
 0xfeb   : > { %9494 = vrcp.f32 %v6353_v44  ;;  %v7281_v44 = vmul.f32 -1.442695, %v13037_v40 }
 0xfec   : > { %6658 = vperm.xlu0 %8608, %v6623_v38   ;;  %v9481_v38 = vpop.eup %9480  ;;  %9496 = vpow2.f32 %v7292_v23 }
 0xfed   : > { %v6352_v8 = vadd.f32 1.0, %v9481_v38  ;;  %v9483_v35 = vpop.eup %9482  ;;  %9498 = vpow2.f32 %v7285_v22 }
 0xfee   : > { %v6355_v21 = vadd.f32 1.0, %v9483_v35  ;;  %v7280_v35 = vmul.f32 -1.442695, %v13045_v17 }
 0xfef   : > { %9500 = vrcp.f32 %v6352_v8 }
 0xff0   : > { %6655 = vperm.xlu0 %8608, %v6622_v60   ;;  %9502 = vpow2.f32 %v7284_v45 }
 0xff1   : > { %9504 = vrcp.f32 %v6355_v21 }
 0xff4   : > { %6652 = vperm.xlu0 %8608, %v6621_v24  }
 0xff8   : > { %6649 = vperm.xlu0 %8608, %v6620_v51  }
 0xffc   : > { %6646 = vperm.xlu0 %8608, %v6619_v39   ;;  %v9485_v39 = vpop.eup %9484 }
 0xffd   : > { %v9487_v31 = vpop.eup %9486  ;;  %v6354_v13 = vadd.f32 1.0, %v9485_v39 }
 0xffe   : > { %v6342_v52 = vadd.f32 1.0, %v9487_v31  ;;  %v7279_v31 = vmul.f32 -1.442695, %v13049_v48 }
0x1000   : > { %6643 = vperm.xlu0 %8608, %v6618_v10  }
0x1004   : > { %6640 = vperm.xlu0 %8608, %v6617_v14   ;;  %v7283_v14 = vmul.f32 -1.442695, %v13025_v27 }
0x1006   : > { %9506 = vpow2.f32 %v7283_v14 }
0x1007   : > { %9508 = vrcp.f32 %v6354_v13 }
0x1008   : > { %6637 = vperm.xlu0 %8608, %v6616_v15   ;;  %v13137_v15 = vpop.eup %9488 }
0x100c   : > { %6634 = vperm.xlu0 %8608, %v6615_v43  }
0x1010   : > { %6631 = vperm.xlu0 %8608, %v6614_v18   ;;  %v9491_v18 = vpop.eup %9490 }
0x1011   : > { %v13140_v32 = vpop.eup %9492  ;;  %v6357_v42 = vadd.f32 1.0, %v9491_v18 }
0x1012   : > { %v13143_v27 = vpop.eup %9494 }
0x1013   : > { %v9497_v33 = vpop.eup %9496 }
0x1014   : > { %v9499_v12 = vpop.eup %9498  ;;  %v6356_v23 = vadd.f32 1.0, %v9497_v33 }
0x1015   : > { %v13150_v38 = vpop.eup %9500 }
0x1016   : > { %v9503_v21 = vpop.eup %9502 }
0x101e   : > { %v13103_v25 = vpop.f32.mrf.mxu1 }
0x1020   : > { %v13106_v59 = vpop.f32.mrf.mxu1 }
0x1022   : > { %v13109_v57 = vpop.f32.mrf.mxu1 }
0x1024   : > { %v13112_v4 = vpop.f32.mrf.mxu1 }
0x1026   : > { %v13116_v2 = vpop.f32.mrf.mxu1 }
0x1028   : > { %v13119_v28 = vpop.f32.mrf.mxu1  ;;  %v13122_v36 = vpop.permute.xlu1 %6452 }
0x102a   : > { %v13125_v60 = vpop.f32.mrf.mxu1  ;;  %v13127_v63 = vpop.permute.xlu0 %6450 }
0x102c   : > { %v13129_v24 = vpop.permute.xlu1 %6448  ;;  %v13131_v51 = vpop.f32.mrf.mxu1 }
0x102e   : > { %v13134_v30 = vpop.permute.xlu0 %6446  ;;  %v8506_v10 = vpop.f32.mrf.mxu1 }
0x1030   : > { %v6445_v29 = vpop.permute.xlu1 %6444  ;;  %v6223_v56 = vpop.f32.mrf.mxu1 }
0x1031   : > { %v6481_v34 = vmul.f32 %v13143_v27, %v6445_v29  ;;  %v6349_v29 = vadd.f32 1.0, %v9499_v12 }
0x1032   : > { %v6443_v5 = vpop.permute.xlu0 %6442  ;;  %v8509_v47 = vpop.f32.mrf.mxu1 }
0x1033   : > { %v6480_v22 = vmul.f32 %v13150_v38, %v6443_v5  ;;  %v6497_v8 = vadd.f32 %v8509_v47, %v6481_v34  ;;  %v6348_v5 = vadd.f32 1.0, %v9503_v21 }
0x1034   : > { %v6441_v43 = vpop.permute.xlu1 %6440  ;;  %v6233_v45 = vpop.f32.mrf.mxu1 }
0x1035   : > { %v6479_v6 = vmul.f32 %v13137_v15, %v6441_v43  ;;  %v6496_v40 = vadd.f32 %v6480_v22, %v6233_v45 }
0x1036   : > { %v6439_v16 = vpop.permute.xlu0 %6438  ;;  %v8512_v14 = vpop.f32.mrf.mxu1 }
0x1037   : > { %v6495_v1 = vadd.f32 %v8506_v10, %v6479_v6  ;;  %v6478_v55 = vmul.f32 %v13140_v32, %v6439_v16  ;;  %v13156_v10 = vpop.eup %9504 }
0x1038   : > { %v6483_v17 = vmul.f32 %v13156_v10, %v13129_v24  ;;  %v9507_v43 = vpop.eup %9506 }
0x1039   : > { %9510 = vtanh.f32 %v6495_v1  ;;  %v6494_v54 = vadd.f32 %v6478_v55, %v6223_v56  ;;  %v13163_v18 = vpop.eup %9508  ;;  %v6243_v56 = vpop.f32.mrf.mxu1  ;;  %v6347_v48 = vadd.f32 1.0, %v9507_v43 }
0x103a   : > { %9512 = vrcp.f32 %v6342_v52  ;;  %v13148_v50 = vpop.permute.xlu0 %6434  ;;  %v6499_v6 = vadd.f32 %v8512_v14, %v6483_v17  ;;  %v6482_v1 = vmul.f32 %v13163_v18, %v13134_v30 }
0x103b   : > { %9514 = vpow2.f32 %v7282_v7  ;;  %v8515_v47 = vpop.f32.mrf.mxu1 }
0x103c   : > { %9516 = vrcp.f32 %v6357_v42  ;;  %v6498_v33 = vadd.f32 %v6482_v1, %v6243_v56 }
0x103d   : > { %9518 = vtanh.f32 %v6494_v54  ;;  %v6253_v45 = vpop.f32.mrf.mxu1 }
0x103e   : > { %9520 = vpow2.f32 %v7281_v44  ;;  %v13154_v39 = vpop.permute.xlu0 %6430 }
0x103f   : > { %9522 = vrcp.f32 %v6356_v23 }
0x1040   : > { %9524 = vtanh.f32 %v6497_v8 }
0x1041   : > { %9526 = vpow2.f32 %v7280_v35  ;;  %v6437_v35 = vpop.permute.xlu1 %6436 }
0x1042   : > { %9528 = vrcp.f32 %v6349_v29  ;;  %v13161_v13 = vpop.permute.xlu0 %6426 }
0x1043   : > { %9530 = vtanh.f32 %v6496_v40 }
0x1044   : > { %9532 = vpow2.f32 %v7279_v31 }
0x1045   : > { %9534 = vrcp.f32 %v6348_v5  ;;  %v6433_v56 = vpop.permute.xlu1 %6432 }
0x1046   : > { %v9511_v52 = vpop.eup %9510  ;;  %v6423_v16 = vpop.permute.xlu0 %6422  ;;  %9536 = vtanh.f32 %v6499_v6 }
0x1047   : > { %v13165_v7 = vpop.eup %9512  ;;  %6552 = vrot.lane.b32.xlu1 %v9511_v52, %s9717_s24  ;;  %9538 = vrcp.f32 %v6347_v48 }
0x1048   : > { %v9515_v24 = vpop.eup %9514  ;;  %v6470_v42 = vmul.f32 %v13165_v7, %v6423_v16 }
0x1049   : > { %v13171_v55 = vpop.eup %9516  ;;  %v6346_v12 = vadd.f32 1.0, %v9515_v24 }
0x104a   : > { %v9519_v34 = vpop.eup %9518  ;;  %v6486_v54 = vadd.f32 %v6470_v42, %v13106_v59  ;;  %v6485_v44 = vmul.f32 %v13171_v55, %v13122_v36 }
0x104b   : > { %6550 = vrot.lane.b32.xlu1 %v9519_v34, %s9717_s24  ;;  %v9521_v30 = vpop.eup %9520 }
0x104c   : > { %9540 = vtanh.f32 %v6486_v54  ;;  %v13177_v23 = vpop.eup %9522  ;;  %v6501_v22 = vadd.f32 %v8515_v47, %v6485_v44  ;;  %v6345_v21 = vadd.f32 1.0, %v9521_v30  ;;  %v6429_v54 = vpop.permute.xlu1 %6428 }
0x104d   : > { %9542 = vtanh.f32 %v6498_v33  ;;  %v9525_v8 = vpop.eup %9524  ;;  %v6484_v59 = vmul.f32 %v13177_v23, %v13127_v63 }
0x104e   : > { %v9527_v29 = vpop.eup %9526  ;;  %9544 = vrcp.f32 %v6346_v12 }
0x104f   : > { %6556 = vrot.lane.b32.xlu1 %v9525_v8, %s9717_s24  ;;  %v13182_v36 = vpop.eup %9528  ;;  %9546 = vtanh.f32 %v6501_v22  ;;  %v6500_v31 = vadd.f32 %v6484_v59, %v6253_v45  ;;  %v6344_v17 = vadd.f32 1.0, %v9527_v29 }
0x1050   : > { %v6477_v40 = vmul.f32 %v13182_v36, %v6437_v35  ;;  %v9531_v14 = vpop.eup %9530  ;;  %9548 = vrcp.f32 %v6345_v21  ;;  %v6425_v35 = vpop.permute.xlu1 %6424 }
0x1051   : > { %v9533_v5 = vpop.eup %9532  ;;  %9550 = vtanh.f32 %v6500_v31 }
0x1052   : > { %v13186_v43 = vpop.eup %9534  ;;  %v6493_v6 = vadd.f32 %v13125_v60, %v6477_v40  ;;  %v6343_v48 = vadd.f32 1.0, %v9533_v5  ;;  %9552 = vrcp.f32 %v6344_v17 }
0x1053   : > { %6554 = vrot.lane.b32.xlu1 %v9531_v14, %s9717_s24  ;;  %v6476_v63 = vmul.f32 %v13186_v43, %v13148_v50  ;;  %v9537_v52 = vpop.eup %9536  ;;  %v6674_v14 = vpop.permute.xlu0 %6673 }
0x1054   : > { %v13192_v1 = vpop.eup %9538  ;;  %9554 = vtanh.f32 %v6493_v6  ;;  %vm6692_vm11 = vcmp.eq.s32.totalorder %v6674_v14, 1 }
0x1055   : > { %v6492_v24 = vadd.f32 %v6476_v63, %v13131_v51  ;;  %v6475_v42 = vmul.f32 %v13192_v1, %v6433_v56  ;;  %9556 = vrcp.f32 %v6343_v48 }
0x1057   : > { %6560 = vrot.lane.b32.xlu1 %v9537_v52, %s9717_s24  ;;  %9558 = vtanh.f32 %v6492_v24  ;;  %v6491_v50 = vadd.f32 %v13116_v2, %v6475_v42  ;;  %v6671_v5 = vpop.permute.xlu0 %6670  ;;  %v6677_v52 = vpop.permute.xlu1 %6676 }
0x1058   : > { %vm6693_vm10 = vcmp.eq.s32.totalorder %v6677_v52, 1  ;;  %vm6691_vm12 = vcmp.eq.s32.totalorder %v6671_v5, 1 }
0x1059   : > { %v9541_v16 = vpop.eup %9540  ;;  %9560 = vtanh.f32 %v6491_v50 }
0x105a   : > { %v9543_v33 = vpop.eup %9542  ;;  %6534 = vrot.lane.b32.xlu0 %v9541_v16, %s9717_s24 }
0x105b   : > { %6558 = vrot.lane.b32.xlu1 %v9543_v33, %s9717_s24  ;;  %v13198_v60 = vpop.eup %9544  ;;  %v6668_v17 = vpop.permute.xlu0 %6667 }
0x105c   : > { %v6474_v34 = vmul.f32 %v13198_v60, %v13154_v39  ;;  %v9547_v47 = vpop.eup %9546  ;;  %vm6690_vm13 = vcmp.eq.s32.totalorder %v6668_v17, 1 }
0x105d   : > { %v13204_v51 = vpop.eup %9548 }
0x105e   : > { %v6490_v12 = vadd.f32 %v6474_v34, %v13119_v28  ;;  %v6473_v44 = vmul.f32 %v13204_v51, %v6429_v54  ;;  %v9551_v30 = vpop.eup %9550 }
0x105f   : > { %6564 = vrot.lane.b32.xlu1 %v9547_v47, %s9717_s24  ;;  %v13209_v22 = vpop.eup %9552 }
0x1060   : > { %9562 = vtanh.f32 %v6490_v12  ;;  %v6489_v2 = vadd.f32 %v13109_v57, %v6473_v44  ;;  %v6472_v39 = vmul.f32 %v13209_v22, %v13161_v13 }
0x1061   : > { %v9555_v8 = vpop.eup %9554 }
0x1062   : > { %v13215_v45 = vpop.eup %9556  ;;  %9564 = vtanh.f32 %v6489_v2  ;;  %v6488_v28 = vadd.f32 %v6472_v39, %v13112_v4 }
0x1063   : > { %6562 = vrot.lane.b32.xlu1 %v9551_v30, %s9717_s24  ;;  %v6471_v29 = vmul.f32 %v13215_v45, %v6425_v35 }
0x1064   : > { %v9559_v21 = vpop.eup %9558  ;;  %9566 = vtanh.f32 %v6488_v28 }
0x1065   : > { %v6487_v57 = vadd.f32 %v13103_v25, %v6471_v29  ;;  %v6665_v25 = vpop.permute.xlu0 %6664 }
0x1066   : > { %v9561_v59 = vpop.eup %9560  ;;  %vm6689_vm14 = vcmp.eq.s32.totalorder %v6665_v25, 1 }
0x1067   : > { %6548 = vrot.lane.b32.xlu1 %v9555_v8, %s9717_s24  ;;  %9568 = vtanh.f32 %v6487_v57 }
0x1069   : > { %v6662_v6 = vpop.permute.xlu0 %6661 }
0x106a   : > { %vm6688_vm15 = vcmp.eq.s32.totalorder %v6662_v6, 1  ;;  %v6846_v6 = vld [vmem:[%s13359_s6] sm:$0xff] }
0x106b   : > { %6546 = vrot.lane.b32.xlu1 %v9559_v21, %s9717_s24 }
0x106d   : > { %v9563_v13 = vpop.eup %9562  ;;  %v6659_v63 = vpop.permute.xlu0 %6658 }
0x106e   : > { %vm6687_vm1 = vcmp.eq.s32.totalorder %v6659_v63, 1 }
0x106f   : > { %6544 = vrot.lane.b32.xlu1 %v9561_v59, %s9717_s24  ;;  %v9565_v40 = vpop.eup %9564 }
0x1071   : > { %v9567_v31 = vpop.eup %9566  ;;  %v6656_v56 = vpop.permute.xlu0 %6655 }
0x1072   : > { %vm6686_vm2 = vcmp.eq.s32.totalorder %v6656_v56, 1 }
0x1073   : > { %6542 = vrot.lane.b32.xlu1 %v9563_v13, %s9717_s24 }
0x1074   : > { %v9569_v4 = vpop.eup %9568 }
0x1075   : > { %v6653_v24 = vpop.permute.xlu0 %6652 }
0x1076   : > { %vm6685_vm3 = vcmp.eq.s32.totalorder %v6653_v24, 1 }
0x1077   : > { %6540 = vrot.lane.b32.xlu1 %v9565_v40, %s9717_s24 }
0x1079   : > { %v6650_v33 = vpop.permute.xlu0 %6649 }
0x107a   : > { %vm6684_vm4 = vcmp.eq.s32.totalorder %v6650_v33, 1 }
0x107b   : > { %6538 = vrot.lane.b32.xlu1 %v9567_v31, %s9717_s24 }
0x107d   : > { %v6647_v47 = vpop.permute.xlu0 %6646 }
0x107e   : > { %vm6683_vm5 = vcmp.eq.s32.totalorder %v6647_v47, 1 }
0x107f   : > { %6536 = vrot.lane.b32.xlu1 %v9569_v4, %s9717_s24  ;;  %s7047_s24 = sshll.u32 %s353_s17, 3 }
0x1080   : > { %s355_s29 = scalar_lea.vmem [#allocation2], %s7047_s24 }
0x1081   : > { %v13226_v12 = vpop.permute.xlu0 %6643  ;;  %s6960_s26 = sshll.u32 %s355_s29, 4  ;;  %s6961_s26 = int_to_ptr.vmem [resolvable:$true] %s6960_s26 }
0x1082   : > { %vm6682_vm6 = vcmp.eq.s32.totalorder %v13226_v12, 1  ;;  %s9654_s16 = scalar_lea.vmem %s6961_s26, 128  ;;  %p9661_p0 = scmp.lt.s32.totalorder %s6961_s26, %s9659_s23 }
0x1083   : > { %p9655_p11 = scmp.ne.s32.totalorder %s6961_s26, %s9654_s16  ;;  %p9662_p1 = scmp.lt.s32.totalorder %s9660_s13, %s9654_s16 }
0x1085   : > { %v6641_v28 = vpop.permute.xlu0 %6640  ;;  %p9656_p12 = pnand %p9655_p11, %p9811_p5  ;;  %p9663_p2 = por %p9662_p1, %p9661_p0 }
0x1086   : > { %vm6681_vm7 = vcmp.eq.s32.totalorder %v6641_v28, 1 }
0x1087   : > { %p9657_p13 = pneg %p9656_p12 }
0x1089   : > { %p9664_p3 = pnand %p9663_p2, %p9657_p13 }
0x10b9   : > { %v6553_v48 = vpop.permute.xlu1 %6552 }
0x10bd   : > { %v6551_v16 = vpop.permute.xlu1 %6550 }
0x10c1   : > { %v6557_v42 = vpop.permute.xlu1 %6556 }
0x10c2   : > { %v6593_v29 = vmul.f32 %v13143_v27, %v6557_v42 }
0x10c4   : > { %v6705_v59 = vsel %vm6689_vm14, %v6593_v29, %v12691_v58 }
0x10c5   : > { %v6555_v50 = vpop.permute.xlu1 %6554 }
0x10c9   : > { %v6561_v34 = vpop.permute.xlu1 %6560 }
0x10ca   : > { %v6595_v2 = vmul.f32 %v13156_v10, %v6561_v34  ;;  %v6591_v10 = vmul.f32 %v13137_v15, %v6553_v48 }
0x10cc   : > { %v6707_v57 = vsel %vm6691_vm12, %v6595_v2, %v12708_v19  ;;  %v6703_v15 = vsel %vm6687_vm1, %v6591_v10, %v12673_v37 }
0x10cd   : > { %v6559_v54 = vpop.permute.xlu1 %6558 }
0x10ce   : > { %v6594_v21 = vmul.f32 %v13163_v18, %v6559_v54  ;;  %v6638_v18 = vpop.permute.xlu0 %6637 }
0x10cf   : > { %vm6680_vm9 = vcmp.eq.s32.totalorder %v6638_v18, 1 }
0x10d0   : > { %v6706_v27 = vsel %vm6690_vm13, %v6594_v21, %v12717_v49  ;;  %vm6933_vm13 = vcmask 64512  }
0x10d1   : > { %v6565_v44 = vpop.permute.xlu1 %6564 }
0x10d2   : > { %v6597_v30 = vmul.f32 %v13171_v55, %v6565_v44  ;;  %v6635_v49 = vpop.permute.xlu0 %6634 }
0x10d4   : > { %v6709_v39 = vsel %vm6693_vm10, %v6597_v30, %v12714_v11  ;;  %vm6679_vm10 = vcmp.eq.s32.totalorder %v6635_v49, 1 }
0x10d5   : > { %6757 = vrot.lane.b32.xlu1 %v6709_v39, %s9720_s21  ;;  %v6563_v8 = vpop.permute.xlu1 %6562 }
0x10d6   : > { %v6596_v35 = vmul.f32 %v13177_v23, %v6563_v8  ;;  %v6592_v23 = vmul.f32 %v13150_v38, %v6555_v50  ;;  %v6710_v8 = vld [vmem:[%s13361_s8] sm:$0xff] }
0x10d8   : > { %v6708_v55 = vsel %vm6692_vm11, %v6596_v35, %v12727_v0  ;;  %v6590_v0 = vmul.f32 %v13140_v32, %v6551_v16  ;;  %v6704_v38 = vsel %vm6688_vm15, %v6592_v23, %v12700_v20 }
0x10d9   : > { %6753 = vrot.lane.b32.xlu1 %v6707_v57, %s9720_s21  ;;  %6755 = vrot.lane.b32.xlu0 %v6708_v55, %s9720_s21  ;;  %v6549_v11 = vpop.permute.xlu1 %6548  ;;  %v7294_v57 = vld [vmem:[%s13360_s7] ss:$0 sm:$0xff] }
0x10da   : > { %v6589_v13 = vmul.f32 %v13182_v36, %v6549_v11  ;;  %v6702_v32 = vsel %vm6686_vm2, %v6590_v0, %v12682_v3 }
0x10dc   : > { %v6701_v36 = vsel %vm6685_vm3, %v6589_v13, %v12655_v61 }
0x10dd   : > { %6749 = vrot.lane.b32.xlu1 %v6705_v59, %s9720_s21  ;;  %6751 = vrot.lane.b32.xlu0 %v6706_v27, %s9720_s21  ;;  %v6547_v19 = vpop.permute.xlu1 %6546 }
0x10de   : > { %v6588_v40 = vmul.f32 %v13186_v43, %v6547_v19  ;;  %v6632_v43 = vpop.permute.xlu0 %6631 }
0x10df   : > { %vm6678_vm11 = vcmp.eq.s32.totalorder %v6632_v43, 1 }
0x10e0   : > { %v6700_v4 = vsel %vm6684_vm4, %v6588_v40, %v12664_v41  ;;  %v6849_v41 = vld [vmem:[%s13359_s6 + $0x18] sm:$0xff] }
0x10e1   : > { %6745 = vrot.lane.b32.xlu1 %v6703_v15, %s9720_s21  ;;  %6747 = vrot.lane.b32.xlu0 %v6704_v38, %s9720_s21  ;;  %v6545_v58 = vpop.permute.xlu1 %6544 }
0x10e2   : > { %v6587_v31 = vmul.f32 %v13192_v1, %v6545_v58  ;;  %8552 = vmatpush3.msra.mxu1 %v6849_v41 }
0x10e3   : > { %8553 = vmatprep.subr.mxu1 %v13587_v62 }
0x10e4   : > { %v6699_v14 = vsel %vm6683_vm5, %v6587_v31, %v12635_v9 }
0x10e5   : > { %6743 = vrot.lane.b32.xlu0 %v6702_v32, %s9720_s21  ;;  %6741 = vrot.lane.b32.xlu1 %v6701_v36, %s9720_s21  ;;  %v6543_v37 = vpop.permute.xlu1 %6542 }
0x10e6   : > { %v6586_v20 = vmul.f32 %v13198_v60, %v6543_v37  ;;  %v6848_v60 = vld [vmem:[%s13359_s6 + $0x10] sm:$0xff] }
0x10e7   : > { %8554 = vmatpush3.msra.mxu1 %v6848_v60 }
0x10e8   : > { %v6698_v9 = vsel %vm6682_vm6, %v6586_v20, %v12646_v26  ;;  %v6847_v26 = vld [vmem:[%s13359_s6 + $0x8] sm:$0xff]  ;;  %8555 = vmatprep.subr.mxu1 %v13587_v62 }
0x10e9   : > { %6739 = vrot.lane.b32.xlu0 %v6700_v4, %s9720_s21  ;;  %6737 = vrot.lane.b32.xlu1 %v6699_v14, %s9720_s21  ;;  %v6541_v3 = vpop.permute.xlu1 %6540 }
0x10ea   : > { %v6585_v61 = vmul.f32 %v13204_v51, %v6541_v3  ;;  %v6535_v51 = vpop.permute.xlu0 %6534  ;;  %8556 = vmatpush3.msra.mxu1 %v6847_v26 }
0x10eb   : > { %8557 = vmatprep.subr.mxu1 %v13587_v62 }
0x10ec   : > { %v6697_v1 = vsel %vm6681_vm7, %v6585_v61, %v12617_v46  ;;  %v6582_v46 = vmul.f32 %v13165_v7, %v6535_v51  ;;  %8558 = vmatpush3.msra.mxu1 %v6846_v6  ;;  %v13605_v7 = vld [vmem:[#allocation35_spill] sm:$0xff] }
0x10ed   : > { %6735 = vrot.lane.b32.xlu0 %v6698_v9, %s9720_s21  ;;  %6733 = vrot.lane.b32.xlu1 %v6697_v1, %s9720_s21  ;;  %v6539_v5 = vpop.permute.xlu1 %6538 }
0x10ee   : > { %v6584_v17 = vmul.f32 %v13209_v22, %v6539_v5  ;;  %v6694_v52 = vsel %vm6678_vm11, %v6582_v46, %v13605_v7 }
0x10f0   : > { %v6696_v25 = vsel %vm6680_vm9, %v6584_v17, %v12628_v53  ;;  %v13606_v53 = vld [vmem:[#allocation29_spill] sm:$0xff] }
0x10f1   : > { %6731 = vrot.lane.b32.xlu0 %v6696_v25, %s9720_s21  ;;  %v6537_v22 = vpop.permute.xlu1 %6536 }
0x10f2   : > { %v6583_v63 = vmul.f32 %v13215_v45, %v6537_v22 }
0x10f4   : > { %v6695_v56 = vsel %vm6679_vm10, %v6583_v63, %v13606_v53 }
0x10f5   : > { %6727 = vrot.lane.b32.xlu0 %v6694_v52, %s9720_s21  ;;  %6729 = vrot.lane.b32.xlu1 %v6695_v56, %s9720_s21  ;;  %s6947_s21 = scalar_lea.sflag [#allocation3], %s353_s17 }
0x1147   : > { %v6758_v48 = vpop.permute.xlu1 %6757 }
0x1148   : > { %8517 = vmatpush3.msra.mxu0 %v6758_v48 }
0x1149   : > { %8518 = vmatprep.subr.mxu0 %v13587_v62 }
0x114b   : > { %v6756_v16 = vpop.permute.xlu0 %6755  ;;  %v6754_v24 = vpop.permute.xlu1 %6753 }
0x114c   : > { %8519 = vmatpush3.msra.mxu0 %v6756_v16 }
0x114d   : > { %8520 = vmatprep.subr.mxu0 %v13587_v62 }
0x114e   : > { %8521 = vmatpush3.msra.mxu0 %v6754_v24 }
0x114f   : > { %v6752_v45 = vpop.permute.xlu0 %6751  ;;  %8522 = vmatprep.subr.mxu0 %v13587_v62  ;;  %v6750_v42 = vpop.permute.xlu1 %6749 }
0x1150   : > { %8523 = vmatpush3.msra.mxu0 %v6752_v45 }
0x1151   : > { %8524 = vmatprep.subr.mxu0 %v13587_v62 }
0x1152   : > { %8525 = vmatpush3.msra.mxu0 %v6750_v42 }
0x1153   : > { %v6748_v33 = vpop.permute.xlu0 %6747  ;;  %8526 = vmatprep.subr.mxu0 %v13587_v62  ;;  %v6746_v50 = vpop.permute.xlu1 %6745 }
0x1154   : > { %8527 = vmatpush3.msra.mxu0 %v6748_v33 }
0x1155   : > { %8528 = vmatprep.subr.mxu0 %v13587_v62 }
0x1156   : > { %8529 = vmatpush3.msra.mxu0 %v6746_v50 }
0x1157   : > { %v6744_v34 = vpop.permute.xlu0 %6743  ;;  %8530 = vmatprep.subr.mxu0 %v13587_v62  ;;  %v6742_v47 = vpop.permute.xlu1 %6741 }
0x1158   : > { %8531 = vmatpush3.msra.mxu0 %v6744_v34 }
0x1159   : > { %8532 = vmatprep.subr.mxu0 %v13587_v62 }
0x115a   : > { %8533 = vmatpush3.msra.mxu0 %v6742_v47 }
0x115b   : > { %v6740_v54 = vpop.permute.xlu0 %6739  ;;  %8534 = vmatprep.subr.mxu0 %v13587_v62  ;;  %v6738_v12 = vpop.permute.xlu1 %6737 }
0x115c   : > { %8535 = vmatpush3.msra.mxu0 %v6740_v54 }
0x115d   : > { %8536 = vmatprep.subr.mxu0 %v13587_v62 }
0x115e   : > { %8537 = vmatpush3.msra.mxu0 %v6738_v12 }
0x115f   : > { %v6736_v44 = vpop.permute.xlu0 %6735  ;;  %8538 = vmatprep.subr.mxu0 %v13587_v62  ;;  %v6734_v30 = vpop.permute.xlu1 %6733 }
0x1160   : > { %8539 = vmatpush3.msra.mxu0 %v6736_v44 }
0x1161   : > { %8540 = vmatprep.subr.mxu0 %v13587_v62 }
0x1162   : > { %8541 = vmatpush3.msra.mxu0 %v6734_v30 }
0x1163   : > { %v6732_v2 = vpop.permute.xlu0 %6731  ;;  %8542 = vmatprep.subr.mxu0 %v13587_v62 }
0x1164   : > { %8543 = vmatpush3.msra.mxu0 %v6732_v2 }
0x1165   : > { %8544 = vmatprep.subr.mxu0 %v13587_v62 }
0x1167   : > { %v6730_v39 = vpop.permute.xlu1 %6729  ;;  %v6728_v35 = vpop.permute.xlu0 %6727 }
0x1168   : > { %8545 = vmatpush3.msra.mxu0 %v6730_v39 }
0x1169   : > { %8546 = vmatprep.subr.mxu0 %v13587_v62 }
0x116a   : > { %8547 = vmatpush3.msra.mxu0 %v6728_v35 }
0x116b   : > { %8549 = vmatmul.mubr.f32.vlgmr.msra.gmra.mxu0 %v6710_v8 }
0x122b   : > { %v6841_v28 = vpop.f32.mrf.mxu0 }
0x122c   : > { %v6845_v29 = vmax.f32 %v6841_v28, 0.0 }
0x122d   : > { %v8550_v21 = vpop.f32.mrf.mxu0 }
0x122e   : > { %8560 = vmatmul.mubr.msk.f32.vlgmr.msra.gmra.mxu1 %vm492_vm0, %v6845_v29 }
0x12ee   : > { %v6926_v55 = vpop.f32.mrf.mxu1 }
0x12ef   : > { %v6927_v11 = vadd.f32 %v7294_v57, %v6926_v55 }
0x12f0   : > { %v8561_v10 = vpop.f32.mrf.mxu1 }
0x12f1   : > { %v6931_v23 = vmul.f32 0.01, %v6927_v11  ;;  %vm6930_vm12 = vcmp.ge.f32.partialorder %v6927_v11, 0.0 }
0x12f3   : > { %v6932_v62 = vsel %vm6930_vm12, %v6927_v11, %v6931_v23 }
0x12f4   : > { %v6934_v59 = vsel %vm6933_vm13, %v6932_v62, -inf }
0x12f5   : > { %6935 = vmax.xlane.f32.xlu1 %v6934_v59 }
0x137e   : > { %v6936_v27 = vpop.xlane.xlu1 %6935 }
0x137f   : > { %v6937_v18 = vsub.f32 %v6932_v62, %v6936_v27 }
0x1381   : > { %v6938_v19 = vmul.f32 1.442695, %v6937_v18 }
0x1383   : > { %9570 = vpow2.f32 %v6938_v19 }
0x1390   : > { %v9571_v0 = vpop.eup %9570 }
0x1391   : > { %v6940_v13 = vsel %vm6933_vm13, %v9571_v0, 0.0 }
0x1392   : > { %6941 = vadd.xlane.f32.xlu0 %v6940_v13 }
0x141b   : > { %v6942_v15 = vpop.xlane.xlu0 %6941 }
0x141c   : > { %9572 = vrcp.f32 %v6942_v15 }
0x1429   : > { %v9573_v38 = vpop.eup %9572 }
0x142a   : > { %v6944_v58 = vmul.f32 %v9573_v38, %v9571_v0 }
0x142c   : > { %6945 = vst.msk [vmem:[%s355_s29] sm:$0xff] %vm6933_vm13, %v6944_v58 }
0x142d   : > { %9667 = shalt.err (!%p9664_p3)
}
0x142e   : > { %s9668_s24 = scalar_lea.hbm %s6958_s14, 128  ;;  %s9672_s29 = scalar_lea.hbm %s13362_s9, 256 }
0x142f   : > { %p9669_p4 = scmp.ne.s32.totalorder %s6958_s14, %s9668_s24  ;;  %p9673_p9 = scmp.lt.s32.totalorder %s6958_s14, %s13362_s9 }
0x1430   : > { %p9674_p10 = scmp.lt.s32.totalorder %s9672_s29, %s9668_s24 }
0x1431   : > { %p9670_p7 = pnand %p9669_p4, %p9811_p5 }
0x1432   : > { %p9675_p11 = por %p9674_p10, %p9673_p9 }
0x1433   : > { %p9671_p8 = pneg %p9670_p7 }
0x1435   : > { %p9676_p12 = pnand %p9675_p11, %p9671_p8 }
0x1437   : > { %9679 = shalt.err (!%p9676_p12)
}
0x1438   : > { %8563 = dma.vmem_to_hbm [thread:$0]  (%p9811_p5), %s6961_s26, 128, %s6958_s14, %s6947_s21  }
0x1439 PF: > { %p8569_p13 = scmp.ge.s32.totalorder %s9714_s12, 2  ;;  %s6972_s16 = sand.u32 1, %s9702_s30  }
0x143a   : > { %s6973_s22 = scalar_lea.sflag [#allocation3], %s6972_s16 }
0x143b   : > { %p8566_p0 = pnand %p8569_p13, %p9815_p6 }
0x143d   : > { %p8567_p1 = pneg %p8566_p0 }
0x143f   : > { %9697 = dma.done.wait (%p8567_p1), %s6973_s22, 128  }
0x1440   : > { %9699 = vsyncadd (%p8567_p1), %s6973_s22, 4294967168  ;;  %p19_p2 = scmp.ge.s32.totalorder %s9798_s15, 4   ;;  %s13607_s30 = smov %s9706_s10 }
0x1441   : > { %s13608_s10 = smov %s9710_s11  ;;  %s13609_s11 = smov %s9809_s18 }
0x1442   : > { %s13610_s12 = smov %s9798_s15  ;;  %21 = sbr.rel (!%p19_p2) target bundleno = 3 (0x3), region = 97 }
0x1447   :  { %6978 = vsyncpa [#allocation3], 1 }
0x1448   :  { %6980 = vsyncpa [#allocation3 + $0x1], 1 }

</bundles_post_ra>
